<compile_context>
chip_gen: v7x
topology: tpu7x:2x2x1
jax: 0.10.0
libtpu: 0.0.40
codegen_flags: <defaults>
</compile_context>

<pallas_src>
import functools

import jax
import jax.numpy as jnp
from jax.experimental import pallas as pl
from jax.experimental.pallas import tpu as pltpu


# ----------------------------------------------------------------------------
# Shared multi-head self-attention block (flat M = N*T rows, batched einsums)
# ----------------------------------------------------------------------------
def _mha_flat(x_flat, n, t, wqkv, bqkv, wo, bo, head_num):
    """x_flat: (n*t, d) -> (n*t, d).  Self-attention per sequence of length t."""
    d = x_flat.shape[-1]
    hd = d // head_num
    scale = 1.0 / (hd ** 0.5)

    # One fused QKV projection: (n*t, d) @ (d, 3d)
    qkv = jnp.dot(x_flat, wqkv, preferred_element_type=jnp.float32) + bqkv
    qkv3 = qkv.reshape(n, t, 3 * d)          # t == 8 -> layout-preserving split

    out = jnp.zeros((n * t, d), jnp.float32)
    for h in range(head_num):                # static, unrolled (head_num small)
        qh = qkv3[:, :, h * hd:(h + 1) * hd]
        kh = qkv3[:, :, d + h * hd:d + (h + 1) * hd]
        vh = qkv3[:, :, 2 * d + h * hd:2 * d + (h + 1) * hd]
        s = jnp.einsum('nld,nmd->nlm', qh, kh,
                       preferred_element_type=jnp.float32) * scale   # (n, t, t)
        s = s - jnp.max(s, axis=-1, keepdims=True)
        p = jnp.exp(s)
        p = p / jnp.sum(p, axis=-1, keepdims=True)
        ctx = jnp.einsum('nlm,nmd->nld', p, vh,
                         preferred_element_type=jnp.float32)          # (n, t, hd)
        # fold the output projection per head -> no lane concat needed
        out = out + jnp.dot(ctx.reshape(n * t, hd),
                            wo[h * hd:(h + 1) * hd, :],
                            preferred_element_type=jnp.float32)
    return out + bo


# ----------------------------------------------------------------------------
# Kernel 1: fused news encoder  (MHA -> MHA -> AttLayer pooling)
#           processes ALL title sequences (history + candidates) at once.
# ----------------------------------------------------------------------------
def _news_encoder_kernel(x_ref,
                         wqkv1_ref, bqkv1_ref, wo1_ref, bo1_ref,
                         wqkv2_ref, bqkv2_ref, wo2_ref, bo2_ref,
                         w1_ref, b1_ref, w2_ref, b2_ref,
                         o_ref, *, head_num):
    n, t, d = x_ref.shape
    x_flat = x_ref[...].reshape(n * t, d)

    y = _mha_flat(x_flat, n, t, wqkv1_ref[...], bqkv1_ref[...],
                  wo1_ref[...], bo1_ref[...], head_num)
    y = _mha_flat(y, n, t, wqkv2_ref[...], bqkv2_ref[...],
                  wo2_ref[...], bo2_ref[...], head_num)

    # AttLayer: Linear -> tanh -> Linear(A,1) -> softmax over seq -> weighted sum
    h = jnp.tanh(jnp.dot(y, w1_ref[...], preferred_element_type=jnp.float32)
                 + b1_ref[...])                                   # (n*t, A)
    a = h.shape[-1]
    h3 = h.reshape(n, t, a)
    e = jnp.sum(h3 * w2_ref[...], axis=-1, keepdims=True) + b2_ref[...]   # (n, t, 1)
    e = e - jnp.max(e, axis=1, keepdims=True)
    w = jnp.exp(e)
    w = w / jnp.sum(w, axis=1, keepdims=True)                     # softmax over t
    y3 = y.reshape(n, t, d)
    o_ref[...] = jnp.sum(y3 * w, axis=1).astype(o_ref.dtype)      # (n, d)


def news_encoder_pallas(x_emb, mha1, mha2, att, head_num):
    """x_emb: (N, T, D) float32 -> (N, D) news vectors."""
    N, T, D = x_emb.shape
    A = att["w1"].shape[1]
    kern = functools.partial(_news_encoder_kernel, head_num=head_num)
    full2 = lambda s: pl.BlockSpec(s, lambda i: (0, 0))
    return pl.pallas_call(
        kern,
        out_shape=jax.ShapeDtypeStruct((N, D), jnp.float32),
        grid=(1,),
        in_specs=[pl.BlockSpec((N, T, D), lambda i: (0, 0, 0)),
                  full2((D, 3 * D)), full2((1, 3 * D)), full2((D, D)), full2((1, D)),
                  full2((D, 3 * D)), full2((1, 3 * D)), full2((D, D)), full2((1, D)),
                  full2((D, A)), full2((1, A)), full2((1, A)), full2((1, 1))],
        out_specs=pl.BlockSpec((N, D), lambda i: (0, 0)),
        compiler_params=pltpu.CompilerParams(dimension_semantics=("arbitrary",)),
    )(x_emb,
      mha1["wqkv"], mha1["bqkv"], mha1["wo"], mha1["bo"],
      mha2["wqkv"], mha2["bqkv"], mha2["wo"], mha2["bo"],
      att["w1"], att["b1"], att["w2"], att["b2"])


# ----------------------------------------------------------------------------
# Kernel 2: fused user encoder + scoring
#           (user MHA over history -> AttLayer -> dot score -> softmax)
# ----------------------------------------------------------------------------
def _user_score_kernel(his_ref, cand_ref,
                       wqkv_ref, bqkv_ref, wo_ref, bo_ref,
                       w1_ref, b1_ref, w2_ref, b2_ref,
                       o_ref, *, head_num):
    b, hn, d = his_ref.shape
    hd = d // head_num
    scale = 1.0 / (hd ** 0.5)

    x = his_ref[...]                                              # (B, Hn, D)
    # fused QKV projection as a batched einsum (avoids unaligned reshapes;
    # weight broadcast hoisted out of the head loop)
    wqkv_b = jnp.broadcast_to(wqkv_ref[...], (b, d, 3 * d))
    qkv = jnp.einsum('bnd,bde->bne', x, wqkv_b,
                     preferred_element_type=jnp.float32) + bqkv_ref[...]

    out = jnp.zeros((b, hn, d), jnp.float32)
    for h in range(head_num):
        qh = qkv[:, :, h * hd:(h + 1) * hd]
        kh = qkv[:, :, d + h * hd:d + (h + 1) * hd]
        vh = qkv[:, :, 2 * d + h * hd:2 * d + (h + 1) * hd]
        s = jnp.einsum('bnd,bmd->bnm', qh, kh,
                       preferred_element_type=jnp.float32) * scale
        s = s - jnp.max(s, axis=-1, keepdims=True)
        p = jnp.exp(s)
        p = p / jnp.sum(p, axis=-1, keepdims=True)
        ctx = jnp.einsum('bnm,bmd->bnd', p, vh,
                         preferred_element_type=jnp.float32)       # (B, Hn, hd)
        wo_h = jnp.broadcast_to(wo_ref[h * hd:(h + 1) * hd, :], (b, hd, d))
        out = out + jnp.einsum('bnd,bde->bne', ctx, wo_h,
                               preferred_element_type=jnp.float32)
    y = out + bo_ref[...]                                         # (B, Hn, D)

    # user AttLayer pooling over the history axis
    a = w1_ref.shape[1]
    w1_b = jnp.broadcast_to(w1_ref[...], (b, d, a))
    hmid = jnp.tanh(jnp.einsum('bnd,bda->bna', y, w1_b,
                               preferred_element_type=jnp.float32) + b1_ref[...])
    e = jnp.sum(hmid * w2_ref[...], axis=-1, keepdims=True) + b2_ref[...]   # (B, Hn, 1)
    e = e - jnp.max(e, axis=1, keepdims=True)
    w = jnp.exp(e)
    w = w / jnp.sum(w, axis=1, keepdims=True)
    user = jnp.sum(y * w, axis=1, keepdims=True)                  # (B, 1, D)

    # scoring: dot(news, user) over D, softmax over candidates
    cand = cand_ref[...]                                          # (B, NP, D)
    scores = jnp.sum(cand * user, axis=-1)                        # (B, NP)
    scores = scores - jnp.max(scores, axis=-1, keepdims=True)
    p = jnp.exp(scores)
    o_ref[...] = (p / jnp.sum(p, axis=-1, keepdims=True)).astype(o_ref.dtype)


def user_score_pallas(news_his, news_cand, mha, att, head_num):
    """news_his: (B, Hn, D), news_cand: (B, NP, D) -> softmaxed preds (B, NP)."""
    B, Hn, D = news_his.shape
    _, NP, _ = news_cand.shape
    A = att["w1"].shape[1]
    kern = functools.partial(_user_score_kernel, head_num=head_num)
    full2 = lambda s: pl.BlockSpec(s, lambda i: (0, 0))
    return pl.pallas_call(
        kern,
        out_shape=jax.ShapeDtypeStruct((B, NP), jnp.float32),
        grid=(1,),
        in_specs=[pl.BlockSpec((B, Hn, D), lambda i: (0, 0, 0)),
                  pl.BlockSpec((B, NP, D), lambda i: (0, 0, 0)),
                  full2((D, 3 * D)), full2((1, 3 * D)), full2((D, D)), full2((1, D)),
                  full2((D, A)), full2((1, A)), full2((1, A)), full2((1, 1))],
        out_specs=pl.BlockSpec((B, NP), lambda i: (0, 0)),
        compiler_params=pltpu.CompilerParams(dimension_semantics=("arbitrary",)),
    )(news_his, news_cand,
      mha["wqkv"], mha["bqkv"], mha["wo"], mha["bo"],
      att["w1"], att["b1"], att["w2"], att["b2"])


# ----------------------------------------------------------------------------
# Parameter init (deterministic, synthetic — shapes follow NRMSModel.__init__)
# ----------------------------------------------------------------------------
def _mha_params(key, D):
    ks = jax.random.split(key, 4)
    sc = 0.1
    return dict(
        wqkv=jax.random.normal(ks[0], (D, 3 * D), jnp.float32) * sc,   # fused Q|K|V
        bqkv=jax.random.normal(ks[1], (1, 3 * D), jnp.float32) * sc,
        wo=jax.random.normal(ks[2], (D, D), jnp.float32) * sc,
        bo=jax.random.normal(ks[3], (1, D), jnp.float32) * sc,
    )


def _att_params(key, D, A):
    ks = jax.random.split(key, 4)
    sc = 0.1
    return dict(
        w1=jax.random.normal(ks[0], (D, A), jnp.float32) * sc,
        b1=jax.random.normal(ks[1], (1, A), jnp.float32) * sc,
        w2=jax.random.normal(ks[2], (1, A), jnp.float32) * sc,   # Linear(A, 1) weight row
        b2=jax.random.normal(ks[3], (1, 1), jnp.float32) * sc,
    )


def init_nrms_params(key, vocab_size, D, A):
    ks = jax.random.split(key, 7)
    return dict(
        emb=jax.random.normal(ks[0], (vocab_size, D), jnp.float32) * 0.1,
        news_mha1=_mha_params(ks[1], D),
        news_mha2=_mha_params(ks[2], D),
        user_mha=_mha_params(ks[3], D),
        news_att=_att_params(ks[4], D, A),
        user_att=_att_params(ks[5], D, A),
    )


# ----------------------------------------------------------------------------
# NRMS forward (mirrors NRMSModel.forward)
# ----------------------------------------------------------------------------
def nrms_forward(params, his_input_title, pred_input_title, *, head_num):
    D = params["emb"].shape[1]
    B, Hn, T = his_input_title.shape
    _, NP, _ = pred_input_title.shape

    # Encode ALL titles (history + candidates share the news encoder weights)
    # in a single fused pallas_call.
    tokens = jnp.concatenate(
        [his_input_title.reshape(B * Hn, T),
         pred_input_title.reshape(B * NP, T)], axis=0)            # (Ntot, T)
    emb = jnp.take(params["emb"], tokens, axis=0)                 # gather (glue)

    news_vec = news_encoder_pallas(emb, params["news_mha1"], params["news_mha2"],
                                   params["news_att"], head_num)  # (Ntot, D)
    news_his = news_vec[:B * Hn].reshape(B, Hn, D)
    news_cand = news_vec[B * Hn:].reshape(B, NP, D)

    # user self-attention + pooling + candidate scoring, fused.
    preds = user_score_pallas(news_his, news_cand, params["user_mha"],
                              params["user_att"], head_num)       # (B, NP)
    return preds


# ----------------------------------------------------------------------------
if __name__ == "__main__":
    # small hyper-parameters consistent with NRMS
    VOCAB = 50
    D = 32            # word_emb_dim
    HEAD_NUM = 4      # head_num  (head_dim = 8)
    ATT_HID = 16      # attention_hidden_dim
    TITLE = 8         # title_size
    HIST = 5          # history length
    NPRATIO = 4       # number of candidate news
    B = 2             # batch

    key = jax.random.PRNGKey(0)
    k_param, k_his, k_pred = jax.random.split(key, 3)

    params = init_nrms_params(k_param, VOCAB, D, ATT_HID)
    his_input_title = jax.random.randint(k_his, (B, HIST, TITLE), 0, VOCAB, dtype=jnp.int32)
    pred_input_title = jax.random.randint(k_pred, (B, NPRATIO, TITLE), 0, VOCAB, dtype=jnp.int32)

    fwd = jax.jit(functools.partial(nrms_forward, head_num=HEAD_NUM))
    preds = fwd(params, his_input_title, pred_input_title)
    preds = jax.block_until_ready(preds)

    assert preds.shape == (B, NPRATIO)
    assert jnp.all(jnp.isfinite(preds))
    # softmax rows sum to 1
    assert jnp.allclose(jnp.sum(preds, axis=-1), 1.0, atol=1e-4)
    print("KERNEL_OK")
</pallas_src>

<mosaic_0001>
module attributes {stable_mosaic.version = 11 : i64} {
  func.func @_news_encoder_kernel(%arg0: i32, %arg1: memref<18x8x32xf32, #tpu.memory_space<vmem>>, %arg2: memref<32x96xf32, #tpu.memory_space<vmem>>, %arg3: memref<1x96xf32, #tpu.memory_space<vmem>>, %arg4: memref<32x32xf32, #tpu.memory_space<vmem>>, %arg5: memref<1x32xf32, #tpu.memory_space<vmem>>, %arg6: memref<32x96xf32, #tpu.memory_space<vmem>>, %arg7: memref<1x96xf32, #tpu.memory_space<vmem>>, %arg8: memref<32x32xf32, #tpu.memory_space<vmem>>, %arg9: memref<1x32xf32, #tpu.memory_space<vmem>>, %arg10: memref<32x16xf32, #tpu.memory_space<vmem>>, %arg11: memref<1x16xf32, #tpu.memory_space<vmem>>, %arg12: memref<1x16xf32, #tpu.memory_space<vmem>>, %arg13: memref<1x1xf32, #tpu.memory_space<vmem>>, %arg14: memref<18x32xf32, #tpu.memory_space<vmem>>) attributes {dimension_semantics = [#tpu.dimension_semantics<arbitrary>], iteration_bounds = array<i64: 1>, scalar_prefetch = 0 : i64, scratch_operands = 0 : i64, tpu.core_type = #tpu.core_type<tc>, window_params = [{pipeline_mode = #tpu.pipeline_mode<synchronous>, transform_indices = @transform_0, window_bounds = array<i64: 18, 8, 32>}, {pipeline_mode = #tpu.pipeline_mode<synchronous>, transform_indices = @transform_1, window_bounds = array<i64: 32, 96>}, {pipeline_mode = #tpu.pipeline_mode<synchronous>, transform_indices = @transform_2, window_bounds = array<i64: 1, 96>}, {pipeline_mode = #tpu.pipeline_mode<synchronous>, transform_indices = @transform_3, window_bounds = array<i64: 32, 32>}, {pipeline_mode = #tpu.pipeline_mode<synchronous>, transform_indices = @transform_4, window_bounds = array<i64: 1, 32>}, {pipeline_mode = #tpu.pipeline_mode<synchronous>, transform_indices = @transform_5, window_bounds = array<i64: 32, 96>}, {pipeline_mode = #tpu.pipeline_mode<synchronous>, transform_indices = @transform_6, window_bounds = array<i64: 1, 96>}, {pipeline_mode = #tpu.pipeline_mode<synchronous>, transform_indices = @transform_7, window_bounds = array<i64: 32, 32>}, {pipeline_mode = #tpu.pipeline_mode<synchronous>, transform_indices = @transform_8, window_bounds = array<i64: 1, 32>}, {pipeline_mode = #tpu.pipeline_mode<synchronous>, transform_indices = @transform_9, window_bounds = array<i64: 32, 16>}, {pipeline_mode = #tpu.pipeline_mode<synchronous>, transform_indices = @transform_10, window_bounds = array<i64: 1, 16>}, {pipeline_mode = #tpu.pipeline_mode<synchronous>, transform_indices = @transform_11, window_bounds = array<i64: 1, 16>}, {pipeline_mode = #tpu.pipeline_mode<synchronous>, transform_indices = @transform_12, window_bounds = array<i64: 1, 1>}, {pipeline_mode = #tpu.pipeline_mode<synchronous>, transform_indices = @transform_13, window_bounds = array<i64: 18, 32>}]} {
    %c0 = arith.constant 0 : index
    %c0_0 = arith.constant 0 : index
    %c0_1 = arith.constant 0 : index
    %0 = vector.load %arg1[%c0, %c0_0, %c0_1] : memref<18x8x32xf32, #tpu.memory_space<vmem>>, vector<18x8x32xf32>
    %1 = vector.shape_cast %0 : vector<18x8x32xf32> to vector<144x32xf32>
    %c0_2 = arith.constant 0 : index
    %c0_3 = arith.constant 0 : index
    %2 = vector.load %arg2[%c0_2, %c0_3] : memref<32x96xf32, #tpu.memory_space<vmem>>, vector<32x96xf32>
    %c0_4 = arith.constant 0 : index
    %c0_5 = arith.constant 0 : index
    %3 = vector.load %arg3[%c0_4, %c0_5] : memref<1x96xf32, #tpu.memory_space<vmem>>, vector<1x96xf32>
    %c0_6 = arith.constant 0 : index
    %c0_7 = arith.constant 0 : index
    %4 = vector.load %arg4[%c0_6, %c0_7] : memref<32x32xf32, #tpu.memory_space<vmem>>, vector<32x32xf32>
    %c0_8 = arith.constant 0 : index
    %c0_9 = arith.constant 0 : index
    %5 = vector.load %arg5[%c0_8, %c0_9] : memref<1x32xf32, #tpu.memory_space<vmem>>, vector<1x32xf32>
    %cst = arith.constant dense<0.000000e+00> : vector<144x96xf32>
    %6 = tpu.matmul %1, %2, %cst {dimension_numbers = #tpu.dot_dimension_numbers<[1], [0], [0], [1], [0, 0, 1, 1], [], []>} : vector<144x32xf32>, vector<32x96xf32>, vector<144x96xf32> -> vector<144x96xf32>
    %7 = vector.broadcast %3 : vector<1x96xf32> to vector<144x96xf32>
    %8 = arith.addf %6, %7 : vector<144x96xf32>
    %9 = vector.shape_cast %8 : vector<144x96xf32> to vector<18x8x96xf32>
    %cst_10 = arith.constant 0.000000e+00 : f32
    %10 = vector.broadcast %cst_10 : f32 to vector<144x32xf32>
    %11 = vector.extract_strided_slice %9 {offsets = [0, 0, 0], sizes = [18, 8, 8], strides = [1, 1, 1]} : vector<18x8x96xf32> to vector<18x8x8xf32>
    %12 = vector.extract_strided_slice %9 {offsets = [0, 0, 32], sizes = [18, 8, 8], strides = [1, 1, 1]} : vector<18x8x96xf32> to vector<18x8x8xf32>
    %13 = vector.extract_strided_slice %9 {offsets = [0, 0, 64], sizes = [18, 8, 8], strides = [1, 1, 1]} : vector<18x8x96xf32> to vector<18x8x8xf32>
    "tpu.trace_start"() <{level = 10 : i32, message = "nld,nmd->nlm"}> : () -> ()
    %cst_11 = arith.constant dense<0.000000e+00> : vector<18x8x8xf32>
    %14 = tpu.matmul %11, %12, %cst_11 {dimension_numbers = #tpu.dot_dimension_numbers<[2], [2], [1], [1], [0, 0, 0, 1, 1, 1], [0], [0]>} : vector<18x8x8xf32>, vector<18x8x8xf32>, vector<18x8x8xf32> -> vector<18x8x8xf32>
    "tpu.trace_stop"() : () -> ()
    %cst_12 = arith.constant 0.353553385 : f32
    %15 = vector.broadcast %cst_12 : f32 to vector<18x8x8xf32>
    %16 = arith.mulf %14, %15 : vector<18x8x8xf32>
    %cst_13 = arith.constant dense<0xFF800000> : vector<18x8xf32>
    %17 = vector.multi_reduction <maximumf>, %16, %cst_13 [2] : vector<18x8x8xf32> to vector<18x8xf32>
    %18 = vector.shape_cast %17 : vector<18x8xf32> to vector<18x8x1xf32>
    %19 = vector.broadcast %18 : vector<18x8x1xf32> to vector<18x8x8xf32>
    %20 = arith.subf %16, %19 : vector<18x8x8xf32>
    %21 = math.exp %20 : vector<18x8x8xf32>
    %cst_14 = arith.constant dense<0.000000e+00> : vector<18x8xf32>
    %22 = vector.multi_reduction <add>, %21, %cst_14 [2] : vector<18x8x8xf32> to vector<18x8xf32>
    %23 = vector.shape_cast %22 : vector<18x8xf32> to vector<18x8x1xf32>
    %24 = vector.broadcast %23 : vector<18x8x1xf32> to vector<18x8x8xf32>
    %25 = arith.divf %21, %24 : vector<18x8x8xf32>
    "tpu.trace_start"() <{level = 10 : i32, message = "nlm,nmd->nld"}> : () -> ()
    %cst_15 = arith.constant dense<0.000000e+00> : vector<18x8x8xf32>
    %26 = tpu.matmul %25, %13, %cst_15 {dimension_numbers = #tpu.dot_dimension_numbers<[2], [1], [1], [2], [0, 0, 0, 1, 1, 2], [0], [0]>} : vector<18x8x8xf32>, vector<18x8x8xf32>, vector<18x8x8xf32> -> vector<18x8x8xf32>
    "tpu.trace_stop"() : () -> ()
    %27 = vector.shape_cast %26 : vector<18x8x8xf32> to vector<144x8xf32>
    %28 = vector.extract_strided_slice %4 {offsets = [0, 0], sizes = [8, 32], strides = [1, 1]} : vector<32x32xf32> to vector<8x32xf32>
    %cst_16 = arith.constant dense<0.000000e+00> : vector<144x32xf32>
    %29 = tpu.matmul %27, %28, %cst_16 {dimension_numbers = #tpu.dot_dimension_numbers<[1], [0], [0], [1], [0, 0, 1, 1], [], []>} : vector<144x8xf32>, vector<8x32xf32>, vector<144x32xf32> -> vector<144x32xf32>
    %30 = arith.addf %10, %29 : vector<144x32xf32>
    %31 = vector.extract_strided_slice %9 {offsets = [0, 0, 8], sizes = [18, 8, 8], strides = [1, 1, 1]} : vector<18x8x96xf32> to vector<18x8x8xf32>
    %32 = vector.extract_strided_slice %9 {offsets = [0, 0, 40], sizes = [18, 8, 8], strides = [1, 1, 1]} : vector<18x8x96xf32> to vector<18x8x8xf32>
    %33 = vector.extract_strided_slice %9 {offsets = [0, 0, 72], sizes = [18, 8, 8], strides = [1, 1, 1]} : vector<18x8x96xf32> to vector<18x8x8xf32>
    "tpu.trace_start"() <{level = 10 : i32, message = "nld,nmd->nlm"}> : () -> ()
    %cst_17 = arith.constant dense<0.000000e+00> : vector<18x8x8xf32>
    %34 = tpu.matmul %31, %32, %cst_17 {dimension_numbers = #tpu.dot_dimension_numbers<[2], [2], [1], [1], [0, 0, 0, 1, 1, 1], [0], [0]>} : vector<18x8x8xf32>, vector<18x8x8xf32>, vector<18x8x8xf32> -> vector<18x8x8xf32>
    "tpu.trace_stop"() : () -> ()
    %cst_18 = arith.constant 0.353553385 : f32
    %35 = vector.broadcast %cst_18 : f32 to vector<18x8x8xf32>
    %36 = arith.mulf %34, %35 : vector<18x8x8xf32>
    %cst_19 = arith.constant dense<0xFF800000> : vector<18x8xf32>
    %37 = vector.multi_reduction <maximumf>, %36, %cst_19 [2] : vector<18x8x8xf32> to vector<18x8xf32>
    %38 = vector.shape_cast %37 : vector<18x8xf32> to vector<18x8x1xf32>
    %39 = vector.broadcast %38 : vector<18x8x1xf32> to vector<18x8x8xf32>
    %40 = arith.subf %36, %39 : vector<18x8x8xf32>
    %41 = math.exp %40 : vector<18x8x8xf32>
    %cst_20 = arith.constant dense<0.000000e+00> : vector<18x8xf32>
    %42 = vector.multi_reduction <add>, %41, %cst_20 [2] : vector<18x8x8xf32> to vector<18x8xf32>
    %43 = vector.shape_cast %42 : vector<18x8xf32> to vector<18x8x1xf32>
    %44 = vector.broadcast %43 : vector<18x8x1xf32> to vector<18x8x8xf32>
    %45 = arith.divf %41, %44 : vector<18x8x8xf32>
    "tpu.trace_start"() <{level = 10 : i32, message = "nlm,nmd->nld"}> : () -> ()
    %cst_21 = arith.constant dense<0.000000e+00> : vector<18x8x8xf32>
    %46 = tpu.matmul %45, %33, %cst_21 {dimension_numbers = #tpu.dot_dimension_numbers<[2], [1], [1], [2], [0, 0, 0, 1, 1, 2], [0], [0]>} : vector<18x8x8xf32>, vector<18x8x8xf32>, vector<18x8x8xf32> -> vector<18x8x8xf32>
    "tpu.trace_stop"() : () -> ()
    %47 = vector.shape_cast %46 : vector<18x8x8xf32> to vector<144x8xf32>
    %48 = vector.extract_strided_slice %4 {offsets = [8, 0], sizes = [8, 32], strides = [1, 1]} : vector<32x32xf32> to vector<8x32xf32>
    %cst_22 = arith.constant dense<0.000000e+00> : vector<144x32xf32>
    %49 = tpu.matmul %47, %48, %cst_22 {dimension_numbers = #tpu.dot_dimension_numbers<[1], [0], [0], [1], [0, 0, 1, 1], [], []>} : vector<144x8xf32>, vector<8x32xf32>, vector<144x32xf32> -> vector<144x32xf32>
    %50 = arith.addf %30, %49 : vector<144x32xf32>
    %51 = vector.extract_strided_slice %9 {offsets = [0, 0, 16], sizes = [18, 8, 8], strides = [1, 1, 1]} : vector<18x8x96xf32> to vector<18x8x8xf32>
    %52 = vector.extract_strided_slice %9 {offsets = [0, 0, 48], sizes = [18, 8, 8], strides = [1, 1, 1]} : vector<18x8x96xf32> to vector<18x8x8xf32>
    %53 = vector.extract_strided_slice %9 {offsets = [0, 0, 80], sizes = [18, 8, 8], strides = [1, 1, 1]} : vector<18x8x96xf32> to vector<18x8x8xf32>
    "tpu.trace_start"() <{level = 10 : i32, message = "nld,nmd->nlm"}> : () -> ()
    %cst_23 = arith.constant dense<0.000000e+00> : vector<18x8x8xf32>
    %54 = tpu.matmul %51, %52, %cst_23 {dimension_numbers = #tpu.dot_dimension_numbers<[2], [2], [1], [1], [0, 0, 0, 1, 1, 1], [0], [0]>} : vector<18x8x8xf32>, vector<18x8x8xf32>, vector<18x8x8xf32> -> vector<18x8x8xf32>
    "tpu.trace_stop"() : () -> ()
    %cst_24 = arith.constant 0.353553385 : f32
    %55 = vector.broadcast %cst_24 : f32 to vector<18x8x8xf32>
    %56 = arith.mulf %54, %55 : vector<18x8x8xf32>
    %cst_25 = arith.constant dense<0xFF800000> : vector<18x8xf32>
    %57 = vector.multi_reduction <maximumf>, %56, %cst_25 [2] : vector<18x8x8xf32> to vector<18x8xf32>
    %58 = vector.shape_cast %57 : vector<18x8xf32> to vector<18x8x1xf32>
    %59 = vector.broadcast %58 : vector<18x8x1xf32> to vector<18x8x8xf32>
    %60 = arith.subf %56, %59 : vector<18x8x8xf32>
    %61 = math.exp %60 : vector<18x8x8xf32>
    %cst_26 = arith.constant dense<0.000000e+00> : vector<18x8xf32>
    %62 = vector.multi_reduction <add>, %61, %cst_26 [2] : vector<18x8x8xf32> to vector<18x8xf32>
    %63 = vector.shape_cast %62 : vector<18x8xf32> to vector<18x8x1xf32>
    %64 = vector.broadcast %63 : vector<18x8x1xf32> to vector<18x8x8xf32>
    %65 = arith.divf %61, %64 : vector<18x8x8xf32>
    "tpu.trace_start"() <{level = 10 : i32, message = "nlm,nmd->nld"}> : () -> ()
    %cst_27 = arith.constant dense<0.000000e+00> : vector<18x8x8xf32>
    %66 = tpu.matmul %65, %53, %cst_27 {dimension_numbers = #tpu.dot_dimension_numbers<[2], [1], [1], [2], [0, 0, 0, 1, 1, 2], [0], [0]>} : vector<18x8x8xf32>, vector<18x8x8xf32>, vector<18x8x8xf32> -> vector<18x8x8xf32>
    "tpu.trace_stop"() : () -> ()
    %67 = vector.shape_cast %66 : vector<18x8x8xf32> to vector<144x8xf32>
    %68 = vector.extract_strided_slice %4 {offsets = [16, 0], sizes = [8, 32], strides = [1, 1]} : vector<32x32xf32> to vector<8x32xf32>
    %cst_28 = arith.constant dense<0.000000e+00> : vector<144x32xf32>
    %69 = tpu.matmul %67, %68, %cst_28 {dimension_numbers = #tpu.dot_dimension_numbers<[1], [0], [0], [1], [0, 0, 1, 1], [], []>} : vector<144x8xf32>, vector<8x32xf32>, vector<144x32xf32> -> vector<144x32xf32>
    %70 = arith.addf %50, %69 : vector<144x32xf32>
    %71 = vector.extract_strided_slice %9 {offsets = [0, 0, 24], sizes = [18, 8, 8], strides = [1, 1, 1]} : vector<18x8x96xf32> to vector<18x8x8xf32>
    %72 = vector.extract_strided_slice %9 {offsets = [0, 0, 56], sizes = [18, 8, 8], strides = [1, 1, 1]} : vector<18x8x96xf32> to vector<18x8x8xf32>
    %73 = vector.extract_strided_slice %9 {offsets = [0, 0, 88], sizes = [18, 8, 8], strides = [1, 1, 1]} : vector<18x8x96xf32> to vector<18x8x8xf32>
    "tpu.trace_start"() <{level = 10 : i32, message = "nld,nmd->nlm"}> : () -> ()
    %cst_29 = arith.constant dense<0.000000e+00> : vector<18x8x8xf32>
    %74 = tpu.matmul %71, %72, %cst_29 {dimension_numbers = #tpu.dot_dimension_numbers<[2], [2], [1], [1], [0, 0, 0, 1, 1, 1], [0], [0]>} : vector<18x8x8xf32>, vector<18x8x8xf32>, vector<18x8x8xf32> -> vector<18x8x8xf32>
    "tpu.trace_stop"() : () -> ()
    %cst_30 = arith.constant 0.353553385 : f32
    %75 = vector.broadcast %cst_30 : f32 to vector<18x8x8xf32>
    %76 = arith.mulf %74, %75 : vector<18x8x8xf32>
    %cst_31 = arith.constant dense<0xFF800000> : vector<18x8xf32>
    %77 = vector.multi_reduction <maximumf>, %76, %cst_31 [2] : vector<18x8x8xf32> to vector<18x8xf32>
    %78 = vector.shape_cast %77 : vector<18x8xf32> to vector<18x8x1xf32>
    %79 = vector.broadcast %78 : vector<18x8x1xf32> to vector<18x8x8xf32>
    %80 = arith.subf %76, %79 : vector<18x8x8xf32>
    %81 = math.exp %80 : vector<18x8x8xf32>
    %cst_32 = arith.constant dense<0.000000e+00> : vector<18x8xf32>
    %82 = vector.multi_reduction <add>, %81, %cst_32 [2] : vector<18x8x8xf32> to vector<18x8xf32>
    %83 = vector.shape_cast %82 : vector<18x8xf32> to vector<18x8x1xf32>
    %84 = vector.broadcast %83 : vector<18x8x1xf32> to vector<18x8x8xf32>
    %85 = arith.divf %81, %84 : vector<18x8x8xf32>
    "tpu.trace_start"() <{level = 10 : i32, message = "nlm,nmd->nld"}> : () -> ()
    %cst_33 = arith.constant dense<0.000000e+00> : vector<18x8x8xf32>
    %86 = tpu.matmul %85, %73, %cst_33 {dimension_numbers = #tpu.dot_dimension_numbers<[2], [1], [1], [2], [0, 0, 0, 1, 1, 2], [0], [0]>} : vector<18x8x8xf32>, vector<18x8x8xf32>, vector<18x8x8xf32> -> vector<18x8x8xf32>
    "tpu.trace_stop"() : () -> ()
    %87 = vector.shape_cast %86 : vector<18x8x8xf32> to vector<144x8xf32>
    %88 = vector.extract_strided_slice %4 {offsets = [24, 0], sizes = [8, 32], strides = [1, 1]} : vector<32x32xf32> to vector<8x32xf32>
    %cst_34 = arith.constant dense<0.000000e+00> : vector<144x32xf32>
    %89 = tpu.matmul %87, %88, %cst_34 {dimension_numbers = #tpu.dot_dimension_numbers<[1], [0], [0], [1], [0, 0, 1, 1], [], []>} : vector<144x8xf32>, vector<8x32xf32>, vector<144x32xf32> -> vector<144x32xf32>
    %90 = arith.addf %70, %89 : vector<144x32xf32>
    %91 = vector.broadcast %5 : vector<1x32xf32> to vector<144x32xf32>
    %92 = arith.addf %90, %91 : vector<144x32xf32>
    %c0_35 = arith.constant 0 : index
    %c0_36 = arith.constant 0 : index
    %93 = vector.load %arg6[%c0_35, %c0_36] : memref<32x96xf32, #tpu.memory_space<vmem>>, vector<32x96xf32>
    %c0_37 = arith.constant 0 : index
    %c0_38 = arith.constant 0 : index
    %94 = vector.load %arg7[%c0_37, %c0_38] : memref<1x96xf32, #tpu.memory_space<vmem>>, vector<1x96xf32>
    %c0_39 = arith.constant 0 : index
    %c0_40 = arith.constant 0 : index
    %95 = vector.load %arg8[%c0_39, %c0_40] : memref<32x32xf32, #tpu.memory_space<vmem>>, vector<32x32xf32>
    %c0_41 = arith.constant 0 : index
    %c0_42 = arith.constant 0 : index
    %96 = vector.load %arg9[%c0_41, %c0_42] : memref<1x32xf32, #tpu.memory_space<vmem>>, vector<1x32xf32>
    %cst_43 = arith.constant dense<0.000000e+00> : vector<144x96xf32>
    %97 = tpu.matmul %92, %93, %cst_43 {dimension_numbers = #tpu.dot_dimension_numbers<[1], [0], [0], [1], [0, 0, 1, 1], [], []>} : vector<144x32xf32>, vector<32x96xf32>, vector<144x96xf32> -> vector<144x96xf32>
    %98 = vector.broadcast %94 : vector<1x96xf32> to vector<144x96xf32>
    %99 = arith.addf %97, %98 : vector<144x96xf32>
    %100 = vector.shape_cast %99 : vector<144x96xf32> to vector<18x8x96xf32>
    %cst_44 = arith.constant 0.000000e+00 : f32
    %101 = vector.broadcast %cst_44 : f32 to vector<144x32xf32>
    %102 = vector.extract_strided_slice %100 {offsets = [0, 0, 0], sizes = [18, 8, 8], strides = [1, 1, 1]} : vector<18x8x96xf32> to vector<18x8x8xf32>
    %103 = vector.extract_strided_slice %100 {offsets = [0, 0, 32], sizes = [18, 8, 8], strides = [1, 1, 1]} : vector<18x8x96xf32> to vector<18x8x8xf32>
    %104 = vector.extract_strided_slice %100 {offsets = [0, 0, 64], sizes = [18, 8, 8], strides = [1, 1, 1]} : vector<18x8x96xf32> to vector<18x8x8xf32>
    "tpu.trace_start"() <{level = 10 : i32, message = "nld,nmd->nlm"}> : () -> ()
    %cst_45 = arith.constant dense<0.000000e+00> : vector<18x8x8xf32>
    %105 = tpu.matmul %102, %103, %cst_45 {dimension_numbers = #tpu.dot_dimension_numbers<[2], [2], [1], [1], [0, 0, 0, 1, 1, 1], [0], [0]>} : vector<18x8x8xf32>, vector<18x8x8xf32>, vector<18x8x8xf32> -> vector<18x8x8xf32>
    "tpu.trace_stop"() : () -> ()
    %cst_46 = arith.constant 0.353553385 : f32
    %106 = vector.broadcast %cst_46 : f32 to vector<18x8x8xf32>
    %107 = arith.mulf %105, %106 : vector<18x8x8xf32>
    %cst_47 = arith.constant dense<0xFF800000> : vector<18x8xf32>
    %108 = vector.multi_reduction <maximumf>, %107, %cst_47 [2] : vector<18x8x8xf32> to vector<18x8xf32>
    %109 = vector.shape_cast %108 : vector<18x8xf32> to vector<18x8x1xf32>
    %110 = vector.broadcast %109 : vector<18x8x1xf32> to vector<18x8x8xf32>
    %111 = arith.subf %107, %110 : vector<18x8x8xf32>
    %112 = math.exp %111 : vector<18x8x8xf32>
    %cst_48 = arith.constant dense<0.000000e+00> : vector<18x8xf32>
    %113 = vector.multi_reduction <add>, %112, %cst_48 [2] : vector<18x8x8xf32> to vector<18x8xf32>
    %114 = vector.shape_cast %113 : vector<18x8xf32> to vector<18x8x1xf32>
    %115 = vector.broadcast %114 : vector<18x8x1xf32> to vector<18x8x8xf32>
    %116 = arith.divf %112, %115 : vector<18x8x8xf32>
    "tpu.trace_start"() <{level = 10 : i32, message = "nlm,nmd->nld"}> : () -> ()
    %cst_49 = arith.constant dense<0.000000e+00> : vector<18x8x8xf32>
    %117 = tpu.matmul %116, %104, %cst_49 {dimension_numbers = #tpu.dot_dimension_numbers<[2], [1], [1], [2], [0, 0, 0, 1, 1, 2], [0], [0]>} : vector<18x8x8xf32>, vector<18x8x8xf32>, vector<18x8x8xf32> -> vector<18x8x8xf32>
    "tpu.trace_stop"() : () -> ()
    %118 = vector.shape_cast %117 : vector<18x8x8xf32> to vector<144x8xf32>
    %119 = vector.extract_strided_slice %95 {offsets = [0, 0], sizes = [8, 32], strides = [1, 1]} : vector<32x32xf32> to vector<8x32xf32>
    %cst_50 = arith.constant dense<0.000000e+00> : vector<144x32xf32>
    %120 = tpu.matmul %118, %119, %cst_50 {dimension_numbers = #tpu.dot_dimension_numbers<[1], [0], [0], [1], [0, 0, 1, 1], [], []>} : vector<144x8xf32>, vector<8x32xf32>, vector<144x32xf32> -> vector<144x32xf32>
    %121 = arith.addf %101, %120 : vector<144x32xf32>
    %122 = vector.extract_strided_slice %100 {offsets = [0, 0, 8], sizes = [18, 8, 8], strides = [1, 1, 1]} : vector<18x8x96xf32> to vector<18x8x8xf32>
    %123 = vector.extract_strided_slice %100 {offsets = [0, 0, 40], sizes = [18, 8, 8], strides = [1, 1, 1]} : vector<18x8x96xf32> to vector<18x8x8xf32>
    %124 = vector.extract_strided_slice %100 {offsets = [0, 0, 72], sizes = [18, 8, 8], strides = [1, 1, 1]} : vector<18x8x96xf32> to vector<18x8x8xf32>
    "tpu.trace_start"() <{level = 10 : i32, message = "nld,nmd->nlm"}> : () -> ()
    %cst_51 = arith.constant dense<0.000000e+00> : vector<18x8x8xf32>
    %125 = tpu.matmul %122, %123, %cst_51 {dimension_numbers = #tpu.dot_dimension_numbers<[2], [2], [1], [1], [0, 0, 0, 1, 1, 1], [0], [0]>} : vector<18x8x8xf32>, vector<18x8x8xf32>, vector<18x8x8xf32> -> vector<18x8x8xf32>
    "tpu.trace_stop"() : () -> ()
    %cst_52 = arith.constant 0.353553385 : f32
    %126 = vector.broadcast %cst_52 : f32 to vector<18x8x8xf32>
    %127 = arith.mulf %125, %126 : vector<18x8x8xf32>
    %cst_53 = arith.constant dense<0xFF800000> : vector<18x8xf32>
    %128 = vector.multi_reduction <maximumf>, %127, %cst_53 [2] : vector<18x8x8xf32> to vector<18x8xf32>
    %129 = vector.shape_cast %128 : vector<18x8xf32> to vector<18x8x1xf32>
    %130 = vector.broadcast %129 : vector<18x8x1xf32> to vector<18x8x8xf32>
    %131 = arith.subf %127, %130 : vector<18x8x8xf32>
    %132 = math.exp %131 : vector<18x8x8xf32>
    %cst_54 = arith.constant dense<0.000000e+00> : vector<18x8xf32>
    %133 = vector.multi_reduction <add>, %132, %cst_54 [2] : vector<18x8x8xf32> to vector<18x8xf32>
    %134 = vector.shape_cast %133 : vector<18x8xf32> to vector<18x8x1xf32>
    %135 = vector.broadcast %134 : vector<18x8x1xf32> to vector<18x8x8xf32>
    %136 = arith.divf %132, %135 : vector<18x8x8xf32>
    "tpu.trace_start"() <{level = 10 : i32, message = "nlm,nmd->nld"}> : () -> ()
    %cst_55 = arith.constant dense<0.000000e+00> : vector<18x8x8xf32>
    %137 = tpu.matmul %136, %124, %cst_55 {dimension_numbers = #tpu.dot_dimension_numbers<[2], [1], [1], [2], [0, 0, 0, 1, 1, 2], [0], [0]>} : vector<18x8x8xf32>, vector<18x8x8xf32>, vector<18x8x8xf32> -> vector<18x8x8xf32>
    "tpu.trace_stop"() : () -> ()
    %138 = vector.shape_cast %137 : vector<18x8x8xf32> to vector<144x8xf32>
    %139 = vector.extract_strided_slice %95 {offsets = [8, 0], sizes = [8, 32], strides = [1, 1]} : vector<32x32xf32> to vector<8x32xf32>
    %cst_56 = arith.constant dense<0.000000e+00> : vector<144x32xf32>
    %140 = tpu.matmul %138, %139, %cst_56 {dimension_numbers = #tpu.dot_dimension_numbers<[1], [0], [0], [1], [0, 0, 1, 1], [], []>} : vector<144x8xf32>, vector<8x32xf32>, vector<144x32xf32> -> vector<144x32xf32>
    %141 = arith.addf %121, %140 : vector<144x32xf32>
    %142 = vector.extract_strided_slice %100 {offsets = [0, 0, 16], sizes = [18, 8, 8], strides = [1, 1, 1]} : vector<18x8x96xf32> to vector<18x8x8xf32>
    %143 = vector.extract_strided_slice %100 {offsets = [0, 0, 48], sizes = [18, 8, 8], strides = [1, 1, 1]} : vector<18x8x96xf32> to vector<18x8x8xf32>
    %144 = vector.extract_strided_slice %100 {offsets = [0, 0, 80], sizes = [18, 8, 8], strides = [1, 1, 1]} : vector<18x8x96xf32> to vector<18x8x8xf32>
    "tpu.trace_start"() <{level = 10 : i32, message = "nld,nmd->nlm"}> : () -> ()
    %cst_57 = arith.constant dense<0.000000e+00> : vector<18x8x8xf32>
    %145 = tpu.matmul %142, %143, %cst_57 {dimension_numbers = #tpu.dot_dimension_numbers<[2], [2], [1], [1], [0, 0, 0, 1, 1, 1], [0], [0]>} : vector<18x8x8xf32>, vector<18x8x8xf32>, vector<18x8x8xf32> -> vector<18x8x8xf32>
    "tpu.trace_stop"() : () -> ()
    %cst_58 = arith.constant 0.353553385 : f32
    %146 = vector.broadcast %cst_58 : f32 to vector<18x8x8xf32>
    %147 = arith.mulf %145, %146 : vector<18x8x8xf32>
    %cst_59 = arith.constant dense<0xFF800000> : vector<18x8xf32>
    %148 = vector.multi_reduction <maximumf>, %147, %cst_59 [2] : vector<18x8x8xf32> to vector<18x8xf32>
    %149 = vector.shape_cast %148 : vector<18x8xf32> to vector<18x8x1xf32>
    %150 = vector.broadcast %149 : vector<18x8x1xf32> to vector<18x8x8xf32>
    %151 = arith.subf %147, %150 : vector<18x8x8xf32>
    %152 = math.exp %151 : vector<18x8x8xf32>
    %cst_60 = arith.constant dense<0.000000e+00> : vector<18x8xf32>
    %153 = vector.multi_reduction <add>, %152, %cst_60 [2] : vector<18x8x8xf32> to vector<18x8xf32>
    %154 = vector.shape_cast %153 : vector<18x8xf32> to vector<18x8x1xf32>
    %155 = vector.broadcast %154 : vector<18x8x1xf32> to vector<18x8x8xf32>
    %156 = arith.divf %152, %155 : vector<18x8x8xf32>
    "tpu.trace_start"() <{level = 10 : i32, message = "nlm,nmd->nld"}> : () -> ()
    %cst_61 = arith.constant dense<0.000000e+00> : vector<18x8x8xf32>
    %157 = tpu.matmul %156, %144, %cst_61 {dimension_numbers = #tpu.dot_dimension_numbers<[2], [1], [1], [2], [0, 0, 0, 1, 1, 2], [0], [0]>} : vector<18x8x8xf32>, vector<18x8x8xf32>, vector<18x8x8xf32> -> vector<18x8x8xf32>
    "tpu.trace_stop"() : () -> ()
    %158 = vector.shape_cast %157 : vector<18x8x8xf32> to vector<144x8xf32>
    %159 = vector.extract_strided_slice %95 {offsets = [16, 0], sizes = [8, 32], strides = [1, 1]} : vector<32x32xf32> to vector<8x32xf32>
    %cst_62 = arith.constant dense<0.000000e+00> : vector<144x32xf32>
    %160 = tpu.matmul %158, %159, %cst_62 {dimension_numbers = #tpu.dot_dimension_numbers<[1], [0], [0], [1], [0, 0, 1, 1], [], []>} : vector<144x8xf32>, vector<8x32xf32>, vector<144x32xf32> -> vector<144x32xf32>
    %161 = arith.addf %141, %160 : vector<144x32xf32>
    %162 = vector.extract_strided_slice %100 {offsets = [0, 0, 24], sizes = [18, 8, 8], strides = [1, 1, 1]} : vector<18x8x96xf32> to vector<18x8x8xf32>
    %163 = vector.extract_strided_slice %100 {offsets = [0, 0, 56], sizes = [18, 8, 8], strides = [1, 1, 1]} : vector<18x8x96xf32> to vector<18x8x8xf32>
    %164 = vector.extract_strided_slice %100 {offsets = [0, 0, 88], sizes = [18, 8, 8], strides = [1, 1, 1]} : vector<18x8x96xf32> to vector<18x8x8xf32>
    "tpu.trace_start"() <{level = 10 : i32, message = "nld,nmd->nlm"}> : () -> ()
    %cst_63 = arith.constant dense<0.000000e+00> : vector<18x8x8xf32>
    %165 = tpu.matmul %162, %163, %cst_63 {dimension_numbers = #tpu.dot_dimension_numbers<[2], [2], [1], [1], [0, 0, 0, 1, 1, 1], [0], [0]>} : vector<18x8x8xf32>, vector<18x8x8xf32>, vector<18x8x8xf32> -> vector<18x8x8xf32>
    "tpu.trace_stop"() : () -> ()
    %cst_64 = arith.constant 0.353553385 : f32
    %166 = vector.broadcast %cst_64 : f32 to vector<18x8x8xf32>
    %167 = arith.mulf %165, %166 : vector<18x8x8xf32>
    %cst_65 = arith.constant dense<0xFF800000> : vector<18x8xf32>
    %168 = vector.multi_reduction <maximumf>, %167, %cst_65 [2] : vector<18x8x8xf32> to vector<18x8xf32>
    %169 = vector.shape_cast %168 : vector<18x8xf32> to vector<18x8x1xf32>
    %170 = vector.broadcast %169 : vector<18x8x1xf32> to vector<18x8x8xf32>
    %171 = arith.subf %167, %170 : vector<18x8x8xf32>
    %172 = math.exp %171 : vector<18x8x8xf32>
    %cst_66 = arith.constant dense<0.000000e+00> : vector<18x8xf32>
    %173 = vector.multi_reduction <add>, %172, %cst_66 [2] : vector<18x8x8xf32> to vector<18x8xf32>
    %174 = vector.shape_cast %173 : vector<18x8xf32> to vector<18x8x1xf32>
    %175 = vector.broadcast %174 : vector<18x8x1xf32> to vector<18x8x8xf32>
    %176 = arith.divf %172, %175 : vector<18x8x8xf32>
    "tpu.trace_start"() <{level = 10 : i32, message = "nlm,nmd->nld"}> : () -> ()
    %cst_67 = arith.constant dense<0.000000e+00> : vector<18x8x8xf32>
    %177 = tpu.matmul %176, %164, %cst_67 {dimension_numbers = #tpu.dot_dimension_numbers<[2], [1], [1], [2], [0, 0, 0, 1, 1, 2], [0], [0]>} : vector<18x8x8xf32>, vector<18x8x8xf32>, vector<18x8x8xf32> -> vector<18x8x8xf32>
    "tpu.trace_stop"() : () -> ()
    %178 = vector.shape_cast %177 : vector<18x8x8xf32> to vector<144x8xf32>
    %179 = vector.extract_strided_slice %95 {offsets = [24, 0], sizes = [8, 32], strides = [1, 1]} : vector<32x32xf32> to vector<8x32xf32>
    %cst_68 = arith.constant dense<0.000000e+00> : vector<144x32xf32>
    %180 = tpu.matmul %178, %179, %cst_68 {dimension_numbers = #tpu.dot_dimension_numbers<[1], [0], [0], [1], [0, 0, 1, 1], [], []>} : vector<144x8xf32>, vector<8x32xf32>, vector<144x32xf32> -> vector<144x32xf32>
    %181 = arith.addf %161, %180 : vector<144x32xf32>
    %182 = vector.broadcast %96 : vector<1x32xf32> to vector<144x32xf32>
    %183 = arith.addf %181, %182 : vector<144x32xf32>
    %c0_69 = arith.constant 0 : index
    %c0_70 = arith.constant 0 : index
    %184 = vector.load %arg10[%c0_69, %c0_70] : memref<32x16xf32, #tpu.memory_space<vmem>>, vector<32x16xf32>
    %cst_71 = arith.constant dense<0.000000e+00> : vector<144x16xf32>
    %185 = tpu.matmul %183, %184, %cst_71 {dimension_numbers = #tpu.dot_dimension_numbers<[1], [0], [0], [1], [0, 0, 1, 1], [], []>} : vector<144x32xf32>, vector<32x16xf32>, vector<144x16xf32> -> vector<144x16xf32>
    %c0_72 = arith.constant 0 : index
    %c0_73 = arith.constant 0 : index
    %186 = vector.load %arg11[%c0_72, %c0_73] : memref<1x16xf32, #tpu.memory_space<vmem>>, vector<1x16xf32>
    %187 = vector.broadcast %186 : vector<1x16xf32> to vector<144x16xf32>
    %188 = arith.addf %185, %187 : vector<144x16xf32>
    %189 = math.tanh %188 : vector<144x16xf32>
    %190 = vector.shape_cast %189 : vector<144x16xf32> to vector<18x8x16xf32>
    %c0_74 = arith.constant 0 : index
    %c0_75 = arith.constant 0 : index
    %191 = vector.load %arg12[%c0_74, %c0_75] : memref<1x16xf32, #tpu.memory_space<vmem>>, vector<1x16xf32>
    %192 = vector.shape_cast %191 : vector<1x16xf32> to vector<1x1x16xf32>
    %193 = vector.broadcast %192 : vector<1x1x16xf32> to vector<18x8x16xf32>
    %194 = arith.mulf %190, %193 : vector<18x8x16xf32>
    %cst_76 = arith.constant dense<0.000000e+00> : vector<18x8xf32>
    %195 = vector.multi_reduction <add>, %194, %cst_76 [2] : vector<18x8x16xf32> to vector<18x8xf32>
    %196 = vector.shape_cast %195 : vector<18x8xf32> to vector<18x8x1xf32>
    %c0_77 = arith.constant 0 : index
    %c0_78 = arith.constant 0 : index
    %197 = vector.load %arg13[%c0_77, %c0_78] : memref<1x1xf32, #tpu.memory_space<vmem>>, vector<1x1xf32>
    %198 = vector.shape_cast %197 : vector<1x1xf32> to vector<1x1x1xf32>
    %199 = vector.broadcast %198 : vector<1x1x1xf32> to vector<18x8x1xf32>
    %200 = arith.addf %196, %199 : vector<18x8x1xf32>
    %cst_79 = arith.constant dense<0xFF800000> : vector<18x1xf32>
    %201 = vector.multi_reduction <maximumf>, %200, %cst_79 [1] : vector<18x8x1xf32> to vector<18x1xf32>
    %202 = vector.shape_cast %201 : vector<18x1xf32> to vector<18x1x1xf32>
    %203 = vector.broadcast %202 : vector<18x1x1xf32> to vector<18x8x1xf32>
    %204 = arith.subf %200, %203 : vector<18x8x1xf32>
    %205 = math.exp %204 : vector<18x8x1xf32>
    %cst_80 = arith.constant dense<0.000000e+00> : vector<18x1xf32>
    %206 = vector.multi_reduction <add>, %205, %cst_80 [1] : vector<18x8x1xf32> to vector<18x1xf32>
    %207 = vector.shape_cast %206 : vector<18x1xf32> to vector<18x1x1xf32>
    %208 = vector.broadcast %207 : vector<18x1x1xf32> to vector<18x8x1xf32>
    %209 = arith.divf %205, %208 : vector<18x8x1xf32>
    %210 = vector.shape_cast %183 : vector<144x32xf32> to vector<18x8x32xf32>
    %211 = vector.broadcast %209 : vector<18x8x1xf32> to vector<18x8x32xf32>
    %212 = arith.mulf %210, %211 : vector<18x8x32xf32>
    %cst_81 = arith.constant dense<0.000000e+00> : vector<18x32xf32>
    %213 = vector.multi_reduction <add>, %212, %cst_81 [1] : vector<18x8x32xf32> to vector<18x32xf32>
    %c0_82 = arith.constant 0 : index
    %c0_83 = arith.constant 0 : index
    %214 = vector.load %arg14[%c0_82, %c0_83] : memref<18x32xf32, #tpu.memory_space<vmem>>, vector<18x32xf32>
    tpu.vector_store %arg14[%c0_82, %c0_83], %213 {strides = array<i32>} : memref<18x32xf32, #tpu.memory_space<vmem>>, vector<18x32xf32>,
    return
  }
  func.func @transform_0(%arg0: i32) -> (i32, i32, i32) {
    %c0_i32 = arith.constant 0 : i32
    %c0_i32_0 = arith.constant 0 : i32
    %c0_i32_1 = arith.constant 0 : i32
    %c0_i32_2 = arith.constant 0 : i32
    return %c0_i32, %c0_i32_0, %c0_i32_1 : i32, i32, i32
  }
  func.func @transform_1(%arg0: i32) -> (i32, i32) {
    %c0_i32 = arith.constant 0 : i32
    %c0_i32_0 = arith.constant 0 : i32
    %c0_i32_1 = arith.constant 0 : i32
    return %c0_i32, %c0_i32_0 : i32, i32
  }
  func.func @transform_2(%arg0: i32) -> (i32, i32) {
    %c0_i32 = arith.constant 0 : i32
    %c0_i32_0 = arith.constant 0 : i32
    %c0_i32_1 = arith.constant 0 : i32
    return %c0_i32, %c0_i32_0 : i32, i32
  }
  func.func @transform_3(%arg0: i32) -> (i32, i32) {
    %c0_i32 = arith.constant 0 : i32
    %c0_i32_0 = arith.constant 0 : i32
    %c0_i32_1 = arith.constant 0 : i32
    return %c0_i32, %c0_i32_0 : i32, i32
  }
  func.func @transform_4(%arg0: i32) -> (i32, i32) {
    %c0_i32 = arith.constant 0 : i32
    %c0_i32_0 = arith.constant 0 : i32
    %c0_i32_1 = arith.constant 0 : i32
    return %c0_i32, %c0_i32_0 : i32, i32
  }
  func.func @transform_5(%arg0: i32) -> (i32, i32) {
    %c0_i32 = arith.constant 0 : i32
    %c0_i32_0 = arith.constant 0 : i32
    %c0_i32_1 = arith.constant 0 : i32
    return %c0_i32, %c0_i32_0 : i32, i32
  }
  func.func @transform_6(%arg0: i32) -> (i32, i32) {
    %c0_i32 = arith.constant 0 : i32
    %c0_i32_0 = arith.constant 0 : i32
    %c0_i32_1 = arith.constant 0 : i32
    return %c0_i32, %c0_i32_0 : i32, i32
  }
  func.func @transform_7(%arg0: i32) -> (i32, i32) {
    %c0_i32 = arith.constant 0 : i32
    %c0_i32_0 = arith.constant 0 : i32
    %c0_i32_1 = arith.constant 0 : i32
    return %c0_i32, %c0_i32_0 : i32, i32
  }
  func.func @transform_8(%arg0: i32) -> (i32, i32) {
    %c0_i32 = arith.constant 0 : i32
    %c0_i32_0 = arith.constant 0 : i32
    %c0_i32_1 = arith.constant 0 : i32
    return %c0_i32, %c0_i32_0 : i32, i32
  }
  func.func @transform_9(%arg0: i32) -> (i32, i32) {
    %c0_i32 = arith.constant 0 : i32
    %c0_i32_0 = arith.constant 0 : i32
    %c0_i32_1 = arith.constant 0 : i32
    return %c0_i32, %c0_i32_0 : i32, i32
  }
  func.func @transform_10(%arg0: i32) -> (i32, i32) {
    %c0_i32 = arith.constant 0 : i32
    %c0_i32_0 = arith.constant 0 : i32
    %c0_i32_1 = arith.constant 0 : i32
    return %c0_i32, %c0_i32_0 : i32, i32
  }
  func.func @transform_11(%arg0: i32) -> (i32, i32) {
    %c0_i32 = arith.constant 0 : i32
    %c0_i32_0 = arith.constant 0 : i32
    %c0_i32_1 = arith.constant 0 : i32
    return %c0_i32, %c0_i32_0 : i32, i32
  }
  func.func @transform_12(%arg0: i32) -> (i32, i32) {
    %c0_i32 = arith.constant 0 : i32
    %c0_i32_0 = arith.constant 0 : i32
    %c0_i32_1 = arith.constant 0 : i32
    return %c0_i32, %c0_i32_0 : i32, i32
  }
  func.func @transform_13(%arg0: i32) -> (i32, i32) {
    %c0_i32 = arith.constant 0 : i32
    %c0_i32_0 = arith.constant 0 : i32
    %c0_i32_1 = arith.constant 0 : i32
    return %c0_i32, %c0_i32_0 : i32, i32
  }
}

module attributes {stable_mosaic.version = 11 : i64} {
  func.func @_user_score_kernel(%arg0: i32, %arg1: memref<2x5x32xf32, #tpu.memory_space<vmem>>, %arg2: memref<2x4x32xf32, #tpu.memory_space<vmem>>, %arg3: memref<32x96xf32, #tpu.memory_space<vmem>>, %arg4: memref<1x96xf32, #tpu.memory_space<vmem>>, %arg5: memref<32x32xf32, #tpu.memory_space<vmem>>, %arg6: memref<1x32xf32, #tpu.memory_space<vmem>>, %arg7: memref<32x16xf32, #tpu.memory_space<vmem>>, %arg8: memref<1x16xf32, #tpu.memory_space<vmem>>, %arg9: memref<1x16xf32, #tpu.memory_space<vmem>>, %arg10: memref<1x1xf32, #tpu.memory_space<vmem>>, %arg11: memref<2x4xf32, #tpu.memory_space<vmem>>) attributes {dimension_semantics = [#tpu.dimension_semantics<arbitrary>], iteration_bounds = array<i64: 1>, scalar_prefetch = 0 : i64, scratch_operands = 0 : i64, tpu.core_type = #tpu.core_type<tc>, window_params = [{pipeline_mode = #tpu.pipeline_mode<synchronous>, transform_indices = @transform_0, window_bounds = array<i64: 2, 5, 32>}, {pipeline_mode = #tpu.pipeline_mode<synchronous>, transform_indices = @transform_1, window_bounds = array<i64: 2, 4, 32>}, {pipeline_mode = #tpu.pipeline_mode<synchronous>, transform_indices = @transform_2, window_bounds = array<i64: 32, 96>}, {pipeline_mode = #tpu.pipeline_mode<synchronous>, transform_indices = @transform_3, window_bounds = array<i64: 1, 96>}, {pipeline_mode = #tpu.pipeline_mode<synchronous>, transform_indices = @transform_4, window_bounds = array<i64: 32, 32>}, {pipeline_mode = #tpu.pipeline_mode<synchronous>, transform_indices = @transform_5, window_bounds = array<i64: 1, 32>}, {pipeline_mode = #tpu.pipeline_mode<synchronous>, transform_indices = @transform_6, window_bounds = array<i64: 32, 16>}, {pipeline_mode = #tpu.pipeline_mode<synchronous>, transform_indices = @transform_7, window_bounds = array<i64: 1, 16>}, {pipeline_mode = #tpu.pipeline_mode<synchronous>, transform_indices = @transform_8, window_bounds = array<i64: 1, 16>}, {pipeline_mode = #tpu.pipeline_mode<synchronous>, transform_indices = @transform_9, window_bounds = array<i64: 1, 1>}, {pipeline_mode = #tpu.pipeline_mode<synchronous>, transform_indices = @transform_10, window_bounds = array<i64: 2, 4>}]} {
    %c0 = arith.constant 0 : index
    %c0_0 = arith.constant 0 : index
    %c0_1 = arith.constant 0 : index
    %0 = vector.load %arg1[%c0, %c0_0, %c0_1] : memref<2x5x32xf32, #tpu.memory_space<vmem>>, vector<2x5x32xf32>
    %c0_2 = arith.constant 0 : index
    %c0_3 = arith.constant 0 : index
    %1 = vector.load %arg3[%c0_2, %c0_3] : memref<32x96xf32, #tpu.memory_space<vmem>>, vector<32x96xf32>
    %2 = vector.shape_cast %1 : vector<32x96xf32> to vector<1x32x96xf32>
    %3 = vector.broadcast %2 : vector<1x32x96xf32> to vector<2x32x96xf32>
    "tpu.trace_start"() <{level = 10 : i32, message = "bnd,bde->bne"}> : () -> ()
    %cst = arith.constant dense<0.000000e+00> : vector<2x5x96xf32>
    %4 = tpu.matmul %0, %3, %cst {dimension_numbers = #tpu.dot_dimension_numbers<[2], [1], [1], [2], [0, 0, 0, 1, 1, 2], [0], [0]>} : vector<2x5x32xf32>, vector<2x32x96xf32>, vector<2x5x96xf32> -> vector<2x5x96xf32>
    "tpu.trace_stop"() : () -> ()
    %c0_4 = arith.constant 0 : index
    %c0_5 = arith.constant 0 : index
    %5 = vector.load %arg4[%c0_4, %c0_5] : memref<1x96xf32, #tpu.memory_space<vmem>>, vector<1x96xf32>
    %6 = vector.shape_cast %5 : vector<1x96xf32> to vector<1x1x96xf32>
    %7 = vector.broadcast %6 : vector<1x1x96xf32> to vector<2x5x96xf32>
    %8 = arith.addf %4, %7 : vector<2x5x96xf32>
    %cst_6 = arith.constant 0.000000e+00 : f32
    %9 = vector.broadcast %cst_6 : f32 to vector<2x5x32xf32>
    %10 = vector.extract_strided_slice %8 {offsets = [0, 0, 0], sizes = [2, 5, 8], strides = [1, 1, 1]} : vector<2x5x96xf32> to vector<2x5x8xf32>
    %11 = vector.extract_strided_slice %8 {offsets = [0, 0, 32], sizes = [2, 5, 8], strides = [1, 1, 1]} : vector<2x5x96xf32> to vector<2x5x8xf32>
    %12 = vector.extract_strided_slice %8 {offsets = [0, 0, 64], sizes = [2, 5, 8], strides = [1, 1, 1]} : vector<2x5x96xf32> to vector<2x5x8xf32>
    "tpu.trace_start"() <{level = 10 : i32, message = "bnd,bmd->bnm"}> : () -> ()
    %cst_7 = arith.constant dense<0.000000e+00> : vector<2x5x5xf32>
    %13 = tpu.matmul %10, %11, %cst_7 {dimension_numbers = #tpu.dot_dimension_numbers<[2], [2], [1], [1], [0, 0, 0, 1, 1, 1], [0], [0]>} : vector<2x5x8xf32>, vector<2x5x8xf32>, vector<2x5x5xf32> -> vector<2x5x5xf32>
    "tpu.trace_stop"() : () -> ()
    %cst_8 = arith.constant 0.353553385 : f32
    %14 = vector.broadcast %cst_8 : f32 to vector<2x5x5xf32>
    %15 = arith.mulf %13, %14 : vector<2x5x5xf32>
    %cst_9 = arith.constant dense<0xFF800000> : vector<2x5xf32>
    %16 = vector.multi_reduction <maximumf>, %15, %cst_9 [2] : vector<2x5x5xf32> to vector<2x5xf32>
    %17 = vector.shape_cast %16 : vector<2x5xf32> to vector<2x5x1xf32>
    %18 = vector.broadcast %17 : vector<2x5x1xf32> to vector<2x5x5xf32>
    %19 = arith.subf %15, %18 : vector<2x5x5xf32>
    %20 = math.exp %19 : vector<2x5x5xf32>
    %cst_10 = arith.constant dense<0.000000e+00> : vector<2x5xf32>
    %21 = vector.multi_reduction <add>, %20, %cst_10 [2] : vector<2x5x5xf32> to vector<2x5xf32>
    %22 = vector.shape_cast %21 : vector<2x5xf32> to vector<2x5x1xf32>
    %23 = vector.broadcast %22 : vector<2x5x1xf32> to vector<2x5x5xf32>
    %24 = arith.divf %20, %23 : vector<2x5x5xf32>
    "tpu.trace_start"() <{level = 10 : i32, message = "bnm,bmd->bnd"}> : () -> ()
    %cst_11 = arith.constant dense<0.000000e+00> : vector<2x5x8xf32>
    %25 = tpu.matmul %24, %12, %cst_11 {dimension_numbers = #tpu.dot_dimension_numbers<[2], [1], [1], [2], [0, 0, 0, 1, 1, 2], [0], [0]>} : vector<2x5x5xf32>, vector<2x5x8xf32>, vector<2x5x8xf32> -> vector<2x5x8xf32>
    "tpu.trace_stop"() : () -> ()
    %c0_12 = arith.constant 0 : index
    %c0_13 = arith.constant 0 : index
    %26 = vector.load %arg5[%c0_12, %c0_13] : memref<32x32xf32, #tpu.memory_space<vmem>>, vector<8x32xf32>
    %27 = vector.shape_cast %26 : vector<8x32xf32> to vector<1x8x32xf32>
    %28 = vector.broadcast %27 : vector<1x8x32xf32> to vector<2x8x32xf32>
    "tpu.trace_start"() <{level = 10 : i32, message = "bnd,bde->bne"}> : () -> ()
    %cst_14 = arith.constant dense<0.000000e+00> : vector<2x5x32xf32>
    %29 = tpu.matmul %25, %28, %cst_14 {dimension_numbers = #tpu.dot_dimension_numbers<[2], [1], [1], [2], [0, 0, 0, 1, 1, 2], [0], [0]>} : vector<2x5x8xf32>, vector<2x8x32xf32>, vector<2x5x32xf32> -> vector<2x5x32xf32>
    "tpu.trace_stop"() : () -> ()
    %30 = arith.addf %9, %29 : vector<2x5x32xf32>
    %31 = vector.extract_strided_slice %8 {offsets = [0, 0, 8], sizes = [2, 5, 8], strides = [1, 1, 1]} : vector<2x5x96xf32> to vector<2x5x8xf32>
    %32 = vector.extract_strided_slice %8 {offsets = [0, 0, 40], sizes = [2, 5, 8], strides = [1, 1, 1]} : vector<2x5x96xf32> to vector<2x5x8xf32>
    %33 = vector.extract_strided_slice %8 {offsets = [0, 0, 72], sizes = [2, 5, 8], strides = [1, 1, 1]} : vector<2x5x96xf32> to vector<2x5x8xf32>
    "tpu.trace_start"() <{level = 10 : i32, message = "bnd,bmd->bnm"}> : () -> ()
    %cst_15 = arith.constant dense<0.000000e+00> : vector<2x5x5xf32>
    %34 = tpu.matmul %31, %32, %cst_15 {dimension_numbers = #tpu.dot_dimension_numbers<[2], [2], [1], [1], [0, 0, 0, 1, 1, 1], [0], [0]>} : vector<2x5x8xf32>, vector<2x5x8xf32>, vector<2x5x5xf32> -> vector<2x5x5xf32>
    "tpu.trace_stop"() : () -> ()
    %cst_16 = arith.constant 0.353553385 : f32
    %35 = vector.broadcast %cst_16 : f32 to vector<2x5x5xf32>
    %36 = arith.mulf %34, %35 : vector<2x5x5xf32>
    %cst_17 = arith.constant dense<0xFF800000> : vector<2x5xf32>
    %37 = vector.multi_reduction <maximumf>, %36, %cst_17 [2] : vector<2x5x5xf32> to vector<2x5xf32>
    %38 = vector.shape_cast %37 : vector<2x5xf32> to vector<2x5x1xf32>
    %39 = vector.broadcast %38 : vector<2x5x1xf32> to vector<2x5x5xf32>
    %40 = arith.subf %36, %39 : vector<2x5x5xf32>
    %41 = math.exp %40 : vector<2x5x5xf32>
    %cst_18 = arith.constant dense<0.000000e+00> : vector<2x5xf32>
    %42 = vector.multi_reduction <add>, %41, %cst_18 [2] : vector<2x5x5xf32> to vector<2x5xf32>
    %43 = vector.shape_cast %42 : vector<2x5xf32> to vector<2x5x1xf32>
    %44 = vector.broadcast %43 : vector<2x5x1xf32> to vector<2x5x5xf32>
    %45 = arith.divf %41, %44 : vector<2x5x5xf32>
    "tpu.trace_start"() <{level = 10 : i32, message = "bnm,bmd->bnd"}> : () -> ()
    %cst_19 = arith.constant dense<0.000000e+00> : vector<2x5x8xf32>
    %46 = tpu.matmul %45, %33, %cst_19 {dimension_numbers = #tpu.dot_dimension_numbers<[2], [1], [1], [2], [0, 0, 0, 1, 1, 2], [0], [0]>} : vector<2x5x5xf32>, vector<2x5x8xf32>, vector<2x5x8xf32> -> vector<2x5x8xf32>
    "tpu.trace_stop"() : () -> ()
    %c8 = arith.constant 8 : index
    %c0_20 = arith.constant 0 : index
    %47 = vector.load %arg5[%c8, %c0_20] : memref<32x32xf32, #tpu.memory_space<vmem>>, vector<8x32xf32>
    %48 = vector.shape_cast %47 : vector<8x32xf32> to vector<1x8x32xf32>
    %49 = vector.broadcast %48 : vector<1x8x32xf32> to vector<2x8x32xf32>
    "tpu.trace_start"() <{level = 10 : i32, message = "bnd,bde->bne"}> : () -> ()
    %cst_21 = arith.constant dense<0.000000e+00> : vector<2x5x32xf32>
    %50 = tpu.matmul %46, %49, %cst_21 {dimension_numbers = #tpu.dot_dimension_numbers<[2], [1], [1], [2], [0, 0, 0, 1, 1, 2], [0], [0]>} : vector<2x5x8xf32>, vector<2x8x32xf32>, vector<2x5x32xf32> -> vector<2x5x32xf32>
    "tpu.trace_stop"() : () -> ()
    %51 = arith.addf %30, %50 : vector<2x5x32xf32>
    %52 = vector.extract_strided_slice %8 {offsets = [0, 0, 16], sizes = [2, 5, 8], strides = [1, 1, 1]} : vector<2x5x96xf32> to vector<2x5x8xf32>
    %53 = vector.extract_strided_slice %8 {offsets = [0, 0, 48], sizes = [2, 5, 8], strides = [1, 1, 1]} : vector<2x5x96xf32> to vector<2x5x8xf32>
    %54 = vector.extract_strided_slice %8 {offsets = [0, 0, 80], sizes = [2, 5, 8], strides = [1, 1, 1]} : vector<2x5x96xf32> to vector<2x5x8xf32>
    "tpu.trace_start"() <{level = 10 : i32, message = "bnd,bmd->bnm"}> : () -> ()
    %cst_22 = arith.constant dense<0.000000e+00> : vector<2x5x5xf32>
    %55 = tpu.matmul %52, %53, %cst_22 {dimension_numbers = #tpu.dot_dimension_numbers<[2], [2], [1], [1], [0, 0, 0, 1, 1, 1], [0], [0]>} : vector<2x5x8xf32>, vector<2x5x8xf32>, vector<2x5x5xf32> -> vector<2x5x5xf32>
    "tpu.trace_stop"() : () -> ()
    %cst_23 = arith.constant 0.353553385 : f32
    %56 = vector.broadcast %cst_23 : f32 to vector<2x5x5xf32>
    %57 = arith.mulf %55, %56 : vector<2x5x5xf32>
    %cst_24 = arith.constant dense<0xFF800000> : vector<2x5xf32>
    %58 = vector.multi_reduction <maximumf>, %57, %cst_24 [2] : vector<2x5x5xf32> to vector<2x5xf32>
    %59 = vector.shape_cast %58 : vector<2x5xf32> to vector<2x5x1xf32>
    %60 = vector.broadcast %59 : vector<2x5x1xf32> to vector<2x5x5xf32>
    %61 = arith.subf %57, %60 : vector<2x5x5xf32>
    %62 = math.exp %61 : vector<2x5x5xf32>
    %cst_25 = arith.constant dense<0.000000e+00> : vector<2x5xf32>
    %63 = vector.multi_reduction <add>, %62, %cst_25 [2] : vector<2x5x5xf32> to vector<2x5xf32>
    %64 = vector.shape_cast %63 : vector<2x5xf32> to vector<2x5x1xf32>
    %65 = vector.broadcast %64 : vector<2x5x1xf32> to vector<2x5x5xf32>
    %66 = arith.divf %62, %65 : vector<2x5x5xf32>
    "tpu.trace_start"() <{level = 10 : i32, message = "bnm,bmd->bnd"}> : () -> ()
    %cst_26 = arith.constant dense<0.000000e+00> : vector<2x5x8xf32>
    %67 = tpu.matmul %66, %54, %cst_26 {dimension_numbers = #tpu.dot_dimension_numbers<[2], [1], [1], [2], [0, 0, 0, 1, 1, 2], [0], [0]>} : vector<2x5x5xf32>, vector<2x5x8xf32>, vector<2x5x8xf32> -> vector<2x5x8xf32>
    "tpu.trace_stop"() : () -> ()
    %c16 = arith.constant 16 : index
    %c0_27 = arith.constant 0 : index
    %68 = vector.load %arg5[%c16, %c0_27] : memref<32x32xf32, #tpu.memory_space<vmem>>, vector<8x32xf32>
    %69 = vector.shape_cast %68 : vector<8x32xf32> to vector<1x8x32xf32>
    %70 = vector.broadcast %69 : vector<1x8x32xf32> to vector<2x8x32xf32>
    "tpu.trace_start"() <{level = 10 : i32, message = "bnd,bde->bne"}> : () -> ()
    %cst_28 = arith.constant dense<0.000000e+00> : vector<2x5x32xf32>
    %71 = tpu.matmul %67, %70, %cst_28 {dimension_numbers = #tpu.dot_dimension_numbers<[2], [1], [1], [2], [0, 0, 0, 1, 1, 2], [0], [0]>} : vector<2x5x8xf32>, vector<2x8x32xf32>, vector<2x5x32xf32> -> vector<2x5x32xf32>
    "tpu.trace_stop"() : () -> ()
    %72 = arith.addf %51, %71 : vector<2x5x32xf32>
    %73 = vector.extract_strided_slice %8 {offsets = [0, 0, 24], sizes = [2, 5, 8], strides = [1, 1, 1]} : vector<2x5x96xf32> to vector<2x5x8xf32>
    %74 = vector.extract_strided_slice %8 {offsets = [0, 0, 56], sizes = [2, 5, 8], strides = [1, 1, 1]} : vector<2x5x96xf32> to vector<2x5x8xf32>
    %75 = vector.extract_strided_slice %8 {offsets = [0, 0, 88], sizes = [2, 5, 8], strides = [1, 1, 1]} : vector<2x5x96xf32> to vector<2x5x8xf32>
    "tpu.trace_start"() <{level = 10 : i32, message = "bnd,bmd->bnm"}> : () -> ()
    %cst_29 = arith.constant dense<0.000000e+00> : vector<2x5x5xf32>
    %76 = tpu.matmul %73, %74, %cst_29 {dimension_numbers = #tpu.dot_dimension_numbers<[2], [2], [1], [1], [0, 0, 0, 1, 1, 1], [0], [0]>} : vector<2x5x8xf32>, vector<2x5x8xf32>, vector<2x5x5xf32> -> vector<2x5x5xf32>
    "tpu.trace_stop"() : () -> ()
    %cst_30 = arith.constant 0.353553385 : f32
    %77 = vector.broadcast %cst_30 : f32 to vector<2x5x5xf32>
    %78 = arith.mulf %76, %77 : vector<2x5x5xf32>
    %cst_31 = arith.constant dense<0xFF800000> : vector<2x5xf32>
    %79 = vector.multi_reduction <maximumf>, %78, %cst_31 [2] : vector<2x5x5xf32> to vector<2x5xf32>
    %80 = vector.shape_cast %79 : vector<2x5xf32> to vector<2x5x1xf32>
    %81 = vector.broadcast %80 : vector<2x5x1xf32> to vector<2x5x5xf32>
    %82 = arith.subf %78, %81 : vector<2x5x5xf32>
    %83 = math.exp %82 : vector<2x5x5xf32>
    %cst_32 = arith.constant dense<0.000000e+00> : vector<2x5xf32>
    %84 = vector.multi_reduction <add>, %83, %cst_32 [2] : vector<2x5x5xf32> to vector<2x5xf32>
    %85 = vector.shape_cast %84 : vector<2x5xf32> to vector<2x5x1xf32>
    %86 = vector.broadcast %85 : vector<2x5x1xf32> to vector<2x5x5xf32>
    %87 = arith.divf %83, %86 : vector<2x5x5xf32>
    "tpu.trace_start"() <{level = 10 : i32, message = "bnm,bmd->bnd"}> : () -> ()
    %cst_33 = arith.constant dense<0.000000e+00> : vector<2x5x8xf32>
    %88 = tpu.matmul %87, %75, %cst_33 {dimension_numbers = #tpu.dot_dimension_numbers<[2], [1], [1], [2], [0, 0, 0, 1, 1, 2], [0], [0]>} : vector<2x5x5xf32>, vector<2x5x8xf32>, vector<2x5x8xf32> -> vector<2x5x8xf32>
    "tpu.trace_stop"() : () -> ()
    %c24 = arith.constant 24 : index
    %c0_34 = arith.constant 0 : index
    %89 = vector.load %arg5[%c24, %c0_34] : memref<32x32xf32, #tpu.memory_space<vmem>>, vector<8x32xf32>
    %90 = vector.shape_cast %89 : vector<8x32xf32> to vector<1x8x32xf32>
    %91 = vector.broadcast %90 : vector<1x8x32xf32> to vector<2x8x32xf32>
    "tpu.trace_start"() <{level = 10 : i32, message = "bnd,bde->bne"}> : () -> ()
    %cst_35 = arith.constant dense<0.000000e+00> : vector<2x5x32xf32>
    %92 = tpu.matmul %88, %91, %cst_35 {dimension_numbers = #tpu.dot_dimension_numbers<[2], [1], [1], [2], [0, 0, 0, 1, 1, 2], [0], [0]>} : vector<2x5x8xf32>, vector<2x8x32xf32>, vector<2x5x32xf32> -> vector<2x5x32xf32>
    "tpu.trace_stop"() : () -> ()
    %93 = arith.addf %72, %92 : vector<2x5x32xf32>
    %c0_36 = arith.constant 0 : index
    %c0_37 = arith.constant 0 : index
    %94 = vector.load %arg6[%c0_36, %c0_37] : memref<1x32xf32, #tpu.memory_space<vmem>>, vector<1x32xf32>
    %95 = vector.shape_cast %94 : vector<1x32xf32> to vector<1x1x32xf32>
    %96 = vector.broadcast %95 : vector<1x1x32xf32> to vector<2x5x32xf32>
    %97 = arith.addf %93, %96 : vector<2x5x32xf32>
    %c0_38 = arith.constant 0 : index
    %c0_39 = arith.constant 0 : index
    %98 = vector.load %arg7[%c0_38, %c0_39] : memref<32x16xf32, #tpu.memory_space<vmem>>, vector<32x16xf32>
    %99 = vector.shape_cast %98 : vector<32x16xf32> to vector<1x32x16xf32>
    %100 = vector.broadcast %99 : vector<1x32x16xf32> to vector<2x32x16xf32>
    "tpu.trace_start"() <{level = 10 : i32, message = "bnd,bda->bna"}> : () -> ()
    %cst_40 = arith.constant dense<0.000000e+00> : vector<2x5x16xf32>
    %101 = tpu.matmul %97, %100, %cst_40 {dimension_numbers = #tpu.dot_dimension_numbers<[2], [1], [1], [2], [0, 0, 0, 1, 1, 2], [0], [0]>} : vector<2x5x32xf32>, vector<2x32x16xf32>, vector<2x5x16xf32> -> vector<2x5x16xf32>
    "tpu.trace_stop"() : () -> ()
    %c0_41 = arith.constant 0 : index
    %c0_42 = arith.constant 0 : index
    %102 = vector.load %arg8[%c0_41, %c0_42] : memref<1x16xf32, #tpu.memory_space<vmem>>, vector<1x16xf32>
    %103 = vector.shape_cast %102 : vector<1x16xf32> to vector<1x1x16xf32>
    %104 = vector.broadcast %103 : vector<1x1x16xf32> to vector<2x5x16xf32>
    %105 = arith.addf %101, %104 : vector<2x5x16xf32>
    %106 = math.tanh %105 : vector<2x5x16xf32>
    %c0_43 = arith.constant 0 : index
    %c0_44 = arith.constant 0 : index
    %107 = vector.load %arg9[%c0_43, %c0_44] : memref<1x16xf32, #tpu.memory_space<vmem>>, vector<1x16xf32>
    %108 = vector.shape_cast %107 : vector<1x16xf32> to vector<1x1x16xf32>
    %109 = vector.broadcast %108 : vector<1x1x16xf32> to vector<2x5x16xf32>
    %110 = arith.mulf %106, %109 : vector<2x5x16xf32>
    %cst_45 = arith.constant dense<0.000000e+00> : vector<2x5xf32>
    %111 = vector.multi_reduction <add>, %110, %cst_45 [2] : vector<2x5x16xf32> to vector<2x5xf32>
    %112 = vector.shape_cast %111 : vector<2x5xf32> to vector<2x5x1xf32>
    %c0_46 = arith.constant 0 : index
    %c0_47 = arith.constant 0 : index
    %113 = vector.load %arg10[%c0_46, %c0_47] : memref<1x1xf32, #tpu.memory_space<vmem>>, vector<1x1xf32>
    %114 = vector.shape_cast %113 : vector<1x1xf32> to vector<1x1x1xf32>
    %115 = vector.broadcast %114 : vector<1x1x1xf32> to vector<2x5x1xf32>
    %116 = arith.addf %112, %115 : vector<2x5x1xf32>
    %cst_48 = arith.constant dense<0xFF800000> : vector<2x1xf32>
    %117 = vector.multi_reduction <maximumf>, %116, %cst_48 [1] : vector<2x5x1xf32> to vector<2x1xf32>
    %118 = vector.shape_cast %117 : vector<2x1xf32> to vector<2x1x1xf32>
    %119 = vector.broadcast %118 : vector<2x1x1xf32> to vector<2x5x1xf32>
    %120 = arith.subf %116, %119 : vector<2x5x1xf32>
    %121 = math.exp %120 : vector<2x5x1xf32>
    %cst_49 = arith.constant dense<0.000000e+00> : vector<2x1xf32>
    %122 = vector.multi_reduction <add>, %121, %cst_49 [1] : vector<2x5x1xf32> to vector<2x1xf32>
    %123 = vector.shape_cast %122 : vector<2x1xf32> to vector<2x1x1xf32>
    %124 = vector.broadcast %123 : vector<2x1x1xf32> to vector<2x5x1xf32>
    %125 = arith.divf %121, %124 : vector<2x5x1xf32>
    %126 = vector.broadcast %125 : vector<2x5x1xf32> to vector<2x5x32xf32>
    %127 = arith.mulf %97, %126 : vector<2x5x32xf32>
    %cst_50 = arith.constant dense<0.000000e+00> : vector<2x32xf32>
    %128 = vector.multi_reduction <add>, %127, %cst_50 [1] : vector<2x5x32xf32> to vector<2x32xf32>
    %129 = vector.shape_cast %128 : vector<2x32xf32> to vector<2x1x32xf32>
    %c0_51 = arith.constant 0 : index
    %c0_52 = arith.constant 0 : index
    %c0_53 = arith.constant 0 : index
    %130 = vector.load %arg2[%c0_51, %c0_52, %c0_53] : memref<2x4x32xf32, #tpu.memory_space<vmem>>, vector<2x4x32xf32>
    %131 = vector.broadcast %129 : vector<2x1x32xf32> to vector<2x4x32xf32>
    %132 = arith.mulf %130, %131 : vector<2x4x32xf32>
    %cst_54 = arith.constant dense<0.000000e+00> : vector<2x4xf32>
    %133 = vector.multi_reduction <add>, %132, %cst_54 [2] : vector<2x4x32xf32> to vector<2x4xf32>
    %cst_55 = arith.constant dense<0xFF800000> : vector<2xf32>
    %134 = vector.multi_reduction <maximumf>, %133, %cst_55 [1] : vector<2x4xf32> to vector<2xf32>
    %135 = vector.shape_cast %134 : vector<2xf32> to vector<2x1xf32>
    %136 = vector.broadcast %135 : vector<2x1xf32> to vector<2x4xf32>
    %137 = arith.subf %133, %136 : vector<2x4xf32>
    %138 = math.exp %137 : vector<2x4xf32>
    %cst_56 = arith.constant dense<0.000000e+00> : vector<2xf32>
    %139 = vector.multi_reduction <add>, %138, %cst_56 [1] : vector<2x4xf32> to vector<2xf32>
    %140 = vector.shape_cast %139 : vector<2xf32> to vector<2x1xf32>
    %141 = vector.broadcast %140 : vector<2x1xf32> to vector<2x4xf32>
    %142 = arith.divf %138, %141 : vector<2x4xf32>
    %c0_57 = arith.constant 0 : index
    %c0_58 = arith.constant 0 : index
    %143 = vector.load %arg11[%c0_57, %c0_58] : memref<2x4xf32, #tpu.memory_space<vmem>>, vector<2x4xf32>
    tpu.vector_store %arg11[%c0_57, %c0_58], %142 {strides = array<i32>} : memref<2x4xf32, #tpu.memory_space<vmem>>, vector<2x4xf32>,
    return
  }
  func.func @transform_0(%arg0: i32) -> (i32, i32, i32) {
    %c0_i32 = arith.constant 0 : i32
    %c0_i32_0 = arith.constant 0 : i32
    %c0_i32_1 = arith.constant 0 : i32
    %c0_i32_2 = arith.constant 0 : i32
    return %c0_i32, %c0_i32_0, %c0_i32_1 : i32, i32, i32
  }
  func.func @transform_1(%arg0: i32) -> (i32, i32, i32) {
    %c0_i32 = arith.constant 0 : i32
    %c0_i32_0 = arith.constant 0 : i32
    %c0_i32_1 = arith.constant 0 : i32
    %c0_i32_2 = arith.constant 0 : i32
    return %c0_i32, %c0_i32_0, %c0_i32_1 : i32, i32, i32
  }
  func.func @transform_2(%arg0: i32) -> (i32, i32) {
    %c0_i32 = arith.constant 0 : i32
    %c0_i32_0 = arith.constant 0 : i32
    %c0_i32_1 = arith.constant 0 : i32
    return %c0_i32, %c0_i32_0 : i32, i32
  }
  func.func @transform_3(%arg0: i32) -> (i32, i32) {
    %c0_i32 = arith.constant 0 : i32
    %c0_i32_0 = arith.constant 0 : i32
    %c0_i32_1 = arith.constant 0 : i32
    return %c0_i32, %c0_i32_0 : i32, i32
  }
  func.func @transform_4(%arg0: i32) -> (i32, i32) {
    %c0_i32 = arith.constant 0 : i32
    %c0_i32_0 = arith.constant 0 : i32
    %c0_i32_1 = arith.constant 0 : i32
    return %c0_i32, %c0_i32_0 : i32, i32
  }
  func.func @transform_5(%arg0: i32) -> (i32, i32) {
    %c0_i32 = arith.constant 0 : i32
    %c0_i32_0 = arith.constant 0 : i32
    %c0_i32_1 = arith.constant 0 : i32
    return %c0_i32, %c0_i32_0 : i32, i32
  }
  func.func @transform_6(%arg0: i32) -> (i32, i32) {
    %c0_i32 = arith.constant 0 : i32
    %c0_i32_0 = arith.constant 0 : i32
    %c0_i32_1 = arith.constant 0 : i32
    return %c0_i32, %c0_i32_0 : i32, i32
  }
  func.func @transform_7(%arg0: i32) -> (i32, i32) {
    %c0_i32 = arith.constant 0 : i32
    %c0_i32_0 = arith.constant 0 : i32
    %c0_i32_1 = arith.constant 0 : i32
    return %c0_i32, %c0_i32_0 : i32, i32
  }
  func.func @transform_8(%arg0: i32) -> (i32, i32) {
    %c0_i32 = arith.constant 0 : i32
    %c0_i32_0 = arith.constant 0 : i32
    %c0_i32_1 = arith.constant 0 : i32
    return %c0_i32, %c0_i32_0 : i32, i32
  }
  func.func @transform_9(%arg0: i32) -> (i32, i32) {
    %c0_i32 = arith.constant 0 : i32
    %c0_i32_0 = arith.constant 0 : i32
    %c0_i32_1 = arith.constant 0 : i32
    return %c0_i32, %c0_i32_0 : i32, i32
  }
  func.func @transform_10(%arg0: i32) -> (i32, i32) {
    %c0_i32 = arith.constant 0 : i32
    %c0_i32_0 = arith.constant 0 : i32
    %c0_i32_1 = arith.constant 0 : i32
    return %c0_i32, %c0_i32_0 : i32, i32
  }
}

</mosaic_0001>

<bundles_post_ra>
// kernel: nrms_forward.3
= control target key start
LH: loop header
LB: loop body
LE: loop exit
PB: predicated region body
PF: predicated region fallthrough
CT: control target
= control target key end

     0   :  { %s3260_s0 = inlined_call_operand.vmem [shape: f32[2,5,32], index: 0, kind: input, shape index: {}]   ;;  %s3261_s1 = inlined_call_operand.vmem [shape: f32[2,4,32], index: 1, kind: input, shape index: {}]   ;;  %s3262_s2 = inlined_call_operand.vmem [shape: f32[32,96], index: 2, kind: input, shape index: {}]   ;;  %s3263_s3 = inlined_call_operand.vmem [shape: f32[1,96], index: 3, kind: input, shape index: {}]   ;;  %s3264_s4 = inlined_call_operand.vmem [shape: f32[32,32], index: 4, kind: input, shape index: {}]   ;;  %s3265_s5 = inlined_call_operand.vmem [shape: f32[1,32], index: 5, kind: input, shape index: {}]   ;;  %s3266_s6 = inlined_call_operand.vmem [shape: f32[32,16], index: 6, kind: input, shape index: {}]   ;;  %s3267_s7 = inlined_call_operand.vmem [shape: f32[1,16], index: 7, kind: input, shape index: {}]   ;;  %s3268_s8 = inlined_call_operand.vmem [shape: f32[1,16], index: 8, kind: input, shape index: {}]   ;;  %s3269_s9 = inlined_call_operand.<no memory space> [shape: f32[1,1], index: 9, kind: input, shape index: {}]   ;;  %s3270_s10 = inlined_call_operand.hbm [shape: f32[2,4], index: 10, kind: output, shape index: {}]  }
   0x1   :  { %v15_v0 = vstv %s3269_s9 }
   0x2   :  { %16 = vst [vmem:[#allocation2] sm:$0x1] %v15_v0 }
   0x3   :  { %v40_v1 = vld [vmem:[%s3262_s2] sm:$0xff]  ;;  %v41_v2 = vld [vmem:[%s3262_s2 + $0x8] sm:$0xff]  ;;  %v42_v3 = vld [vmem:[%s3262_s2 + $0x10] sm:$0xff]  ;;  %v2902_v4 = vmov 0.0|0.0   ;;  %vm2903_vm0 = vmmov 0   ;;  %v2904_v7 = vmov 0.0  }
   0x4   :  { %2784 = vmatprep.subr.bf16.mxu0 %v2902_v4  ;;  %v2785_v5 = vpack.c.bf16 %v41_v2, %v40_v1  ;;  %2790 = vmatprep.subr.bf16.mxu1 %v2902_v4  ;;  %v43_v6 = vld [vmem:[%s3262_s2 + $0x18] sm:$0xff] }
   0x5   :  { %2628 = vmatprep.mubr.msk.f32.mxu0 %vm2903_vm0, %v2904_v7  ;;  %2639 = vmatprep.mubr.msk.f32.mxu1 %vm2903_vm0, %v2904_v7 }
   0x6   :  { %17 = vsyncpa [#allocation4], 0  ;;  %2786 = vmatpush3.bf16.msra.mxu0 %v2785_v5  ;;  %2792 = vmatpush3.bf16.msra.mxu1 %v2785_v5  ;;  %v2788_v8 = vpack.c.bf16 %v43_v6, %v42_v3  ;;  %v38_v9 = vld [vmem:[%s3260_s0] sm:$0x1f]  ;;  %vm51_vm1 = vcmask 261120   ;;  %vm201_vm2 = vcmask 64512  }
   0x7   :  { %2787 = vmatprep.subr.bf16.mxu0 %v2902_v4  ;;  %2793 = vmatprep.subr.bf16.mxu1 %v2902_v4  ;;  %v39_v10 = vld [vmem:[%s3260_s0 + $0x8] sm:$0x1f]  ;;  %v2503_v11 = vld [vmem:[%s3263_s3] ss:$0 sm:$0xff]  ;;  %s2905_s0 = smov 96   ;;  %vm355_vm3 = vcmask 36864  }
   0x8   :  { %s2906_s3 = smov 64   ;;  %s2907_s27 = smov 88   ;;  %vm384_vm4 = vcmask 1044480   ;;  %vm380_vm5 = vcmask 39936   ;;  %vm2305_vm6 = vcmask 126976   ;;  %vm2321_vm7 = vcmask 4096  }
   0x9   :  { %s2908_s28 = smov 120   ;;  %s2909_s29 = smov 56   ;;  %vm2372_vm8 = vcmask 258048   ;;  %vm2391_vm9 = vcmask 257024   ;;  %vm2410_vm10 = vcmask 1041409   ;;  %vm2413_vm11 = vcmask 25600  }
   0xa   :  { %2789 = vmatpush3.bf16.msra.mxu0 %v2788_v8  ;;  %2795 = vmatpush3.bf16.msra.mxu1 %v2788_v8  ;;  %s2910_s30 = smov 112   ;;  %s2911_s11 = smov 80  }
   0xb   :  { %2642 = vmatprep.subr.mxu0 %v2904_v7  ;;  %2647 = vmatprep.subr.mxu1 %v2904_v7  ;;  %s2912_s16 = smov 48   ;;  %s2913_s17 = smov 72  }
   0xc   :  { %s2914_s18 = smov 104   ;;  %s2915_s9 = smov 40  }
   0xd   :  { %2629 = vmatmul.mubr.msk.f32.vlgmr.msra.gmra.mrb[0].mxu0 %vm51_vm1, %v38_v9  ;;  %2640 = vmatmul.mubr.msk.f32.vlgmr.msra.gmra.mrb[0].mxu1 %vm51_vm1, %v39_v10 }
   0xe   :  { %2644 = vmatprep.mubr.msk.f32.mxu0 %vm2903_vm0, %v2904_v7  ;;  %2649 = vmatprep.mubr.msk.f32.mxu1 %vm2903_vm0, %v2904_v7 }
  0xe0   :  { %v121_v12 = vpop.f32.mrb[0].mxu0  ;;  %v194_v13 = vpop.f32.mrb[0].mxu1 }
  0xe1   :  { %v3013_v14 = vadd.f32 %v2503_v11, %v121_v12  ;;  %v2630_v15 = vpop.f32.mrb[1].mxu0  ;;  %v2641_v16 = vpop.f32.mrb[1].mxu1  ;;  %v3015_v17 = vadd.f32 %v2503_v11, %v194_v13 }
  0xe3   :  { %199 = vrot.lane.b32.xlu0 %v3013_v14, %s2905_s0 }
  0xe7   :  { %277 = vrot.lane.b32.xlu0 %v3015_v17, %s2905_s0 }
 0x155   :  { %v200_v18 = vpop.permute.xlu0 %199 }
 0x156   :  { %2643 = vmatpush3.xpose.msk.msra.mxu0 %vm201_vm2, %v200_v18  ;;  %v869_v18 = vld [vmem:[%s3264_s4 + $0x8] sm:$0xff] }
 0x157   :  { %2652 = vmatprep.subr.mxu0 %v2904_v7 }
 0x159   :  { %2645 = vmatmul.mubr.msk.f32.vlgmr.msra.gmra.mrb[2].mxu0 %vm201_vm2, %v3013_v14  ;;  %v278_v19 = vpop.permute.xlu0 %277 }
 0x15a   :  { %2648 = vmatpush3.xpose.msk.msra.mxu1 %vm201_vm2, %v278_v19  ;;  %2654 = vmatprep.mubr.msk.f32.mxu0 %vm2903_vm0, %v2904_v7 }
 0x15b   :  { %2657 = vmatprep.subr.mxu1 %v2904_v7 }
 0x15d   :  { %2650 = vmatmul.mubr.msk.f32.vlgmr.msra.gmra.mrb[2].mxu1 %vm201_vm2, %v3015_v17 }
 0x15e   :  { %2659 = vmatprep.mubr.msk.f32.mxu1 %vm2903_vm0, %v2904_v7 }
 0x22c   :  { %v272_v20 = vpop.f32.mrb[2].mxu0 }
 0x22d   :  { %v353_v21 = vmul.f32 0.35355338, %v272_v20  ;;  %v2646_v22 = vpop.f32.mrb[3].mxu0 }
 0x22f   :  { %v356_v23 = vsel %vm355_vm3, %v353_v21, -inf }
 0x230   :  { %v349_v24 = vpop.f32.mrb[2].mxu1  ;;  %357 = vmax.xlane.f32.xlu1 %v356_v23 }
 0x231   :  { %v354_v25 = vmul.f32 0.35355338, %v349_v24  ;;  %v2651_v26 = vpop.f32.mrb[3].mxu1 }
 0x233   :  { %v359_v27 = vsel %vm355_vm3, %v354_v25, -inf }
 0x234   :  { %360 = vmax.xlane.f32.xlu1 %v359_v27 }
 0x245   :  { %378 = vrot.lane.b32.xlu1 %v3013_v14, %s2906_s3 }
 0x249   :  { %457 = vrot.lane.b32.xlu1 %v3015_v17, %s2906_s3 }
 0x24d   :  { %537 = vrot.lane.b32.xlu1 %v3013_v14, %s2907_s27 }
 0x251   :  { %615 = vrot.lane.b32.xlu1 %v3015_v17, %s2907_s27 }
 0x2bd   :  { %v358_v28 = vpop.xlane.xlu1 %357 }
 0x2be   :  { %v362_v29 = vsub.f32 %v353_v21, %v358_v28  ;;  %v534_v21 = vld [vmem:[%s3264_s4] sm:$0xff] }
 0x2c0   :  { %v364_v30 = vmul.f32 1.442695, %v362_v29 }
 0x2c1   :  { %v361_v31 = vpop.xlane.xlu1 %360 }
 0x2c2   :  { %2826 = vpow2.f32 %v364_v30  ;;  %v363_v32 = vsub.f32 %v354_v25, %v361_v31 }
 0x2c4   :  { %v366_v33 = vmul.f32 1.442695, %v363_v32 }
 0x2c5   :  { %v379_v34 = vpop.permute.xlu1 %378 }
 0x2c6   :  { %2828 = vpow2.f32 %v366_v33  ;;  %2653 = vmatpush3.msk.msra.mxu0 %vm384_vm4, %v379_v34 }
 0x2c7   :  { %2662 = vmatprep.subr.mxu0 %v2904_v7 }
 0x2c9   :  { %v458_v35 = vpop.permute.xlu1 %457 }
 0x2ca   :  { %2658 = vmatpush3.msk.msra.mxu1 %vm384_vm4, %v458_v35 }
 0x2cb   :  { %2667 = vmatprep.subr.mxu1 %v2904_v7 }
 0x2cc   :  { %v2827_v36 = vpop.eup %2826 }
 0x2cd   :  { %v368_v37 = vsel %vm355_vm3, %v2827_v36, 0.0  ;;  %v538_v40 = vpop.permute.xlu1 %537 }
 0x2ce   :  { %369 = vadd.xlane.f32.xlu0 %v368_v37 }
 0x2d0   :  { %v2829_v38 = vpop.eup %2828 }
 0x2d1   :  { %v371_v39 = vsel %vm355_vm3, %v2829_v38, 0.0  ;;  %v616_v41 = vpop.permute.xlu1 %615 }
 0x2d2   :  { %372 = vadd.xlane.f32.xlu1 %v371_v39 }
 0x2e3   :  { %613 = vrot.lane.b32.xlu1 %v3015_v17, %s2908_s28 }
 0x2e4   :  { %535 = vrot.lane.b32.xlu0 %v3013_v14, %s2908_s28 }
 0x35b   :  { %v370_v42 = vpop.xlane.xlu0 %369 }
 0x35c   :  { %2830 = vrcp.f32 %v370_v42 }
 0x35f   :  { %v373_v43 = vpop.xlane.xlu1 %372  ;;  %v536_v48 = vpop.permute.xlu0 %535 }
 0x360   :  { %2832 = vrcp.f32 %v373_v43 }
 0x363   :  { %v614_v49 = vpop.permute.xlu1 %613 }
 0x366   :  { %v2831_v44 = vpop.eup %2830 }
 0x367   :  { %v375_v45 = vmul.f32 %v2831_v44, %v2827_v36 }
 0x369   :  { %2655 = vmatmul.mubr.msk.f32.vlgmr.msra.gmra.mrb[4].mxu0 %vm380_vm5, %v375_v45 }
 0x36a   :  { %v2833_v46 = vpop.eup %2832  ;;  %2663 = vmatpush3.xpose.msk.msra.mxu0 %vm201_vm2, %v538_v40  ;;  %2664 = vmatprep.mubr.msk.f32.mxu0 %vm2903_vm0, %v2904_v7 }
 0x36b   :  { %v377_v47 = vmul.f32 %v2833_v46, %v2829_v38  ;;  %2672 = vmatprep.subr.mxu0 %v2904_v7 }
 0x36d   :  { %2660 = vmatmul.mubr.msk.f32.vlgmr.msra.gmra.mrb[4].mxu1 %vm380_vm5, %v377_v47  ;;  %2665 = vmatmul.mubr.msk.f32.vlgmr.msra.gmra.mrb[6].mxu0 %vm201_vm2, %v536_v48 }
 0x36e   :  { %2668 = vmatpush3.xpose.msk.msra.mxu1 %vm201_vm2, %v616_v41  ;;  %2669 = vmatprep.mubr.msk.f32.mxu1 %vm2903_vm0, %v2904_v7 }
 0x36f   :  { %2677 = vmatprep.subr.mxu1 %v2904_v7  ;;  %2674 = vmatprep.mubr.msk.f32.mxu0 %vm2903_vm0, %v2904_v7 }
 0x371   :  { %2670 = vmatmul.mubr.msk.f32.vlgmr.msra.gmra.mrb[6].mxu1 %vm201_vm2, %v614_v49 }
 0x372   :  { %2679 = vmatprep.mubr.msk.f32.mxu1 %vm2903_vm0, %v2904_v7 }
 0x43c   :  { %v3061_v50 = vpop.f32.mrb[4].mxu0 }
 0x43d   :  { %v2656_v51 = vpop.f32.mrb[5].mxu0 }
 0x440   :  { %v3063_v52 = vpop.f32.mrb[4].mxu1  ;;  %v609_v53 = vpop.f32.mrb[6].mxu0 }
 0x441   :  { %v691_v54 = vmul.f32 0.35355338, %v609_v53  ;;  %v2661_v55 = vpop.f32.mrb[5].mxu1  ;;  %v2666_v56 = vpop.f32.mrb[7].mxu0 }
 0x443   :  { %v693_v57 = vsel %vm355_vm3, %v691_v54, -inf }
 0x444   :  { %v687_v58 = vpop.f32.mrb[6].mxu1  ;;  %694 = vmax.xlane.f32.xlu1 %v693_v57 }
 0x445   :  { %v692_v59 = vmul.f32 0.35355338, %v687_v58  ;;  %v2671_v60 = vpop.f32.mrb[7].mxu1 }
 0x447   :  { %v696_v61 = vsel %vm355_vm3, %v692_v59, -inf }
 0x448   :  { %697 = vmax.xlane.f32.xlu0 %v696_v61 }
 0x45e   :  { %792 = vrot.lane.b32.xlu0 %v3015_v17, %s2909_s29 }
 0x462   :  { %1162 = vrot.lane.b32.xlu0 %v3013_v14, %s2910_s30 }
 0x4d1   :  { %v695_v62 = vpop.xlane.xlu1 %694 }
 0x4d2   :  { %v699_v63 = vsub.f32 %v691_v54, %v695_v62 }
 0x4d4   :  { %v701_v0 = vmul.f32 1.442695, %v699_v63 }
 0x4d5   :  { %v698_v1 = vpop.xlane.xlu0 %697 }
 0x4d6   :  { %2834 = vpow2.f32 %v701_v0  ;;  %v700_v2 = vsub.f32 %v692_v59, %v698_v1  ;;  %v1496_v0 = vld [vmem:[%s3264_s4 + $0x10] sm:$0xff] }
 0x4d8   :  { %v703_v3 = vmul.f32 1.442695, %v700_v2 }
 0x4d9   :  { %v793_v5 = vpop.permute.xlu0 %792 }
 0x4da   :  { %2836 = vpow2.f32 %v703_v3  ;;  %2678 = vmatpush3.msk.msra.mxu1 %vm384_vm4, %v793_v5 }
 0x4db   :  { %2687 = vmatprep.subr.mxu1 %v2904_v7 }
 0x4dd   :  { %v1163_v28 = vpop.permute.xlu0 %1162 }
 0x4e0   :  { %v2835_v6 = vpop.eup %2834 }
 0x4e1   :  { %v705_v8 = vsel %vm355_vm3, %v2835_v6, 0.0 }
 0x4e2   :  { %706 = vadd.xlane.f32.xlu1 %v705_v8 }
 0x4e4   :  { %v2837_v9 = vpop.eup %2836 }
 0x4e5   :  { %v708_v10 = vsel %vm355_vm3, %v2837_v9, 0.0 }
 0x4e6   :  { %709 = vadd.xlane.f32.xlu1 %v708_v10 }
 0x4f7   :  { %715 = vrot.lane.b32.xlu1 %v3013_v14, %s2909_s29 }
 0x4fb   :  { %1164 = vrot.lane.b32.xlu1 %v3013_v14, %s2911_s11 }
 0x4ff   :  { %1242 = vrot.lane.b32.xlu1 %v3015_v17, %s2911_s11 }
 0x503   :  { %1240 = vrot.lane.b32.xlu1 %v3015_v17, %s2910_s30 }
 0x56f   :  { %v707_v11 = vpop.xlane.xlu1 %706 }
 0x570   :  { %2838 = vrcp.f32 %v707_v11 }
 0x573   :  { %v710_v12 = vpop.xlane.xlu1 %709 }
 0x574   :  { %2840 = vrcp.f32 %v710_v12 }
 0x577   :  { %v716_v13 = vpop.permute.xlu1 %715 }
 0x578   :  { %2673 = vmatpush3.msk.msra.mxu0 %vm384_vm4, %v716_v13 }
 0x579   :  { %2682 = vmatprep.subr.mxu0 %v2904_v7 }
 0x57a   :  { %v2839_v15 = vpop.eup %2838 }
 0x57b   :  { %v712_v16 = vmul.f32 %v2839_v15, %v2835_v6  ;;  %v1165_v24 = vpop.permute.xlu1 %1164 }
 0x57d   :  { %2675 = vmatmul.mubr.msk.f32.vlgmr.msra.gmra.mrb[8].mxu0 %vm380_vm5, %v712_v16 }
 0x57e   :  { %v2841_v19 = vpop.eup %2840  ;;  %2683 = vmatpush3.msra.mxu0 %v869_v18  ;;  %2684 = vmatprep.mubr.msk.f32.mxu0 %vm2903_vm0, %v2904_v7 }
 0x57f   :  { %v714_v20 = vmul.f32 %v2841_v19, %v2837_v9  ;;  %2692 = vmatprep.subr.mxu0 %v2904_v7  ;;  %v1243_v27 = vpop.permute.xlu1 %1242 }
 0x581   :  { %2680 = vmatmul.mubr.msk.f32.vlgmr.msra.gmra.mrb[8].mxu1 %vm380_vm5, %v714_v20 }
 0x582   :  { %2688 = vmatpush3.msra.mxu1 %v869_v18  ;;  %2689 = vmatprep.mubr.msk.f32.mxu1 %vm2903_vm0, %v2904_v7 }
 0x583   :  { %2697 = vmatprep.subr.mxu1 %v2904_v7  ;;  %v1241_v29 = vpop.permute.xlu1 %1240 }
 0x650   :  { %v788_v22 = vpop.f32.mrb[8].mxu0 }
 0x651   :  { %v2676_v23 = vpop.f32.mrb[9].mxu0  ;;  %2685 = vmatmul.mubr.msk.f32.vlgmr.msra.gmra.mrb[10].mxu0 %vm201_vm2, %v788_v22 }
 0x652   :  { %2693 = vmatpush3.msra.mxu0 %v534_v21  ;;  %2694 = vmatprep.mubr.msk.f32.mxu0 %vm2903_vm0, %v2904_v7 }
 0x653   :  { %2702 = vmatprep.subr.mxu0 %v2904_v7 }
 0x654   :  { %v865_v25 = vpop.f32.mrb[8].mxu1 }
 0x655   :  { %v2681_v26 = vpop.f32.mrb[9].mxu1  ;;  %2690 = vmatmul.mubr.msk.f32.vlgmr.msra.gmra.mrb[10].mxu1 %vm201_vm2, %v865_v25  ;;  %2695 = vmatmul.mubr.msk.f32.vlgmr.msra.gmra.mrb[12].mxu0 %vm201_vm2, %v3061_v50 }
 0x656   :  { %2698 = vmatpush3.msra.mxu1 %v534_v21  ;;  %2699 = vmatprep.mubr.msk.f32.mxu1 %vm2903_vm0, %v2904_v7 }
 0x657   :  { %2704 = vmatprep.mubr.msk.f32.mxu0 %vm2903_vm0, %v2904_v7  ;;  %2707 = vmatprep.subr.mxu1 %v2904_v7 }
 0x659   :  { %2703 = vmatpush3.xpose.msk.msra.mxu0 %vm201_vm2, %v1165_v24  ;;  %2700 = vmatmul.mubr.msk.f32.vlgmr.msra.gmra.mrb[12].mxu1 %vm201_vm2, %v3063_v52 }
 0x65a   :  { %2709 = vmatprep.mubr.msk.f32.mxu1 %vm2903_vm0, %v2904_v7  ;;  %2712 = vmatprep.subr.mxu0 %v2904_v7 }
 0x65c   :  { %2705 = vmatmul.mubr.msk.f32.vlgmr.msra.gmra.mrb[14].mxu0 %vm201_vm2, %v1163_v28 }
 0x65d   :  { %2708 = vmatpush3.xpose.msk.msra.mxu1 %vm201_vm2, %v1243_v27  ;;  %2714 = vmatprep.mubr.msk.f32.mxu0 %vm2903_vm0, %v2904_v7 }
 0x65e   :  { %2717 = vmatprep.subr.mxu1 %v2904_v7 }
 0x660   :  { %2710 = vmatmul.mubr.msk.f32.vlgmr.msra.gmra.mrb[14].mxu1 %vm201_vm2, %v1241_v29 }
 0x661   :  { %2719 = vmatprep.mubr.msk.f32.mxu1 %vm2903_vm0, %v2904_v7 }
 0x724   :  { %v939_v30 = vpop.f32.mrb[10].mxu0 }
 0x725   :  { %v2686_v31 = vpop.f32.mrb[11].mxu0 }
 0x728   :  { %v1012_v32 = vpop.f32.mrb[10].mxu1  ;;  %v1085_v33 = vpop.f32.mrb[12].mxu0 }
 0x729   :  { %v3119_v34 = vadd.f32 %v1085_v33, %v939_v30  ;;  %v2691_v35 = vpop.f32.mrb[11].mxu1  ;;  %v2696_v36 = vpop.f32.mrb[13].mxu0 }
 0x72c   :  { %v1158_v37 = vpop.f32.mrb[12].mxu1 }
 0x72d   :  { %v3121_v38 = vadd.f32 %v1158_v37, %v1012_v32  ;;  %v2701_v39 = vpop.f32.mrb[13].mxu1 }
 0x72f   :  { %v1236_v40 = vpop.f32.mrb[14].mxu0 }
 0x730   :  { %v1318_v41 = vmul.f32 0.35355338, %v1236_v40  ;;  %v2706_v42 = vpop.f32.mrb[15].mxu0 }
 0x732   :  { %v1320_v43 = vsel %vm355_vm3, %v1318_v41, -inf }
 0x733   :  { %v1314_v44 = vpop.f32.mrb[14].mxu1  ;;  %1321 = vmax.xlane.f32.xlu0 %v1320_v43 }
 0x734   :  { %v1319_v45 = vmul.f32 0.35355338, %v1314_v44  ;;  %v2711_v46 = vpop.f32.mrb[15].mxu1 }
 0x735   :  { %v2137_v46 = vld [vmem:[%s3266_s6] sm:$0xff] }
 0x736   :  { %v1323_v47 = vsel %vm355_vm3, %v1319_v45, -inf }
 0x737   :  { %1324 = vmax.xlane.f32.xlu1 %v1323_v47  ;;  %v2138_v47 = vld [vmem:[%s3266_s6 + $0x8] sm:$0xff] }
 0x748   :  { %1342 = vrot.lane.b32.xlu1 %v3013_v14, %s2912_s16 }
 0x74c   :  { %1647 = vrot.lane.b32.xlu1 %v3013_v14, %s2913_s17 }
 0x750   :  { %1725 = vrot.lane.b32.xlu1 %v3015_v17, %s2913_s17 }
 0x754   :  { %1723 = vrot.lane.b32.xlu1 %v3015_v17, %s2914_s18 }
 0x7c0   :  { %v1322_v48 = vpop.xlane.xlu0 %1321 }
 0x7c1   :  { %v1326_v49 = vsub.f32 %v1318_v41, %v1322_v48  ;;  %v2797_v48 = vpack.c.bf16 %v2138_v47, %v2137_v46 }
 0x7c3   :  { %v1328_v50 = vmul.f32 1.442695, %v1326_v49 }
 0x7c4   :  { %v1325_v51 = vpop.xlane.xlu1 %1324 }
 0x7c5   :  { %2842 = vpow2.f32 %v1328_v50  ;;  %v1327_v52 = vsub.f32 %v1319_v45, %v1325_v51 }
 0x7c7   :  { %v1330_v53 = vmul.f32 1.442695, %v1327_v52 }
 0x7c8   :  { %v1343_v54 = vpop.permute.xlu1 %1342 }
 0x7c9   :  { %2844 = vpow2.f32 %v1330_v53  ;;  %2713 = vmatpush3.msk.msra.mxu0 %vm384_vm4, %v1343_v54  ;;  %v2139_v53 = vld [vmem:[%s3266_s6 + $0x10] sm:$0xff]  ;;  %v2140_v54 = vld [vmem:[%s3266_s6 + $0x18] sm:$0xff] }
 0x7ca   :  { %2722 = vmatprep.subr.mxu0 %v2904_v7 }
 0x7cc   :  { %v1648_v3 = vpop.permute.xlu1 %1647 }
 0x7cf   :  { %v2843_v55 = vpop.eup %2842 }
 0x7d0   :  { %v1332_v56 = vsel %vm355_vm3, %v2843_v55, 0.0  ;;  %v1726_v8 = vpop.permute.xlu1 %1725 }
 0x7d1   :  { %1333 = vadd.xlane.f32.xlu0 %v1332_v56 }
 0x7d3   :  { %v2845_v57 = vpop.eup %2844 }
 0x7d4   :  { %v1335_v58 = vsel %vm355_vm3, %v2845_v57, 0.0  ;;  %v1724_v12 = vpop.permute.xlu1 %1723 }
 0x7d5   :  { %1336 = vadd.xlane.f32.xlu0 %v1335_v58 }
 0x7eb   :  { %1419 = vrot.lane.b32.xlu0 %v3015_v17, %s2912_s16 }
 0x7ef   :  { %1645 = vrot.lane.b32.xlu0 %v3013_v14, %s2914_s18 }
 0x85e   :  { %v1334_v59 = vpop.xlane.xlu0 %1333 }
 0x85f   :  { %2846 = vrcp.f32 %v1334_v59 }
 0x862   :  { %v1337_v60 = vpop.xlane.xlu0 %1336 }
 0x863   :  { %2848 = vrcp.f32 %v1337_v60 }
 0x866   :  { %v1420_v61 = vpop.permute.xlu0 %1419 }
 0x867   :  { %2718 = vmatpush3.msk.msra.mxu1 %vm384_vm4, %v1420_v61 }
 0x868   :  { %2727 = vmatprep.subr.mxu1 %v2904_v7 }
 0x869   :  { %v2847_v62 = vpop.eup %2846 }
 0x86a   :  { %v1339_v63 = vmul.f32 %v2847_v62, %v2843_v55  ;;  %v1646_v9 = vpop.permute.xlu0 %1645  ;;  %v2800_v55 = vpack.c.bf16 %v2140_v54, %v2139_v53 }
 0x86c   :  { %2715 = vmatmul.mubr.msk.f32.vlgmr.msra.gmra.mrb[16].mxu0 %vm380_vm5, %v1339_v63  ;;  %v2547_v63 = vld [vmem:[%s3267_s7] ss:$0 sm:$0xff] }
 0x86d   :  { %v2849_v1 = vpop.eup %2848  ;;  %2723 = vmatpush3.msra.mxu0 %v1496_v0  ;;  %2724 = vmatprep.mubr.msk.f32.mxu0 %vm2903_vm0, %v2904_v7 }
 0x86e   :  { %v1341_v2 = vmul.f32 %v2849_v1, %v2845_v57  ;;  %2732 = vmatprep.subr.mxu0 %v2904_v7  ;;  %v2546_v57 = vld [vmem:[%s3265_s5] ss:$0 sm:$0xff] }
 0x870   :  { %2720 = vmatmul.mubr.msk.f32.vlgmr.msra.gmra.mrb[16].mxu1 %vm380_vm5, %v1341_v2 }
 0x871   :  { %2728 = vmatpush3.msra.mxu1 %v1496_v0  ;;  %2729 = vmatprep.mubr.msk.f32.mxu1 %vm2903_vm0, %v2904_v7 }
 0x872   :  { %2737 = vmatprep.subr.mxu1 %v2904_v7 }
 0x93f   :  { %v1415_v5 = vpop.f32.mrb[16].mxu0 }
 0x940   :  { %v2716_v6 = vpop.f32.mrb[17].mxu0  ;;  %2725 = vmatmul.mubr.msk.f32.vlgmr.msra.gmra.mrb[18].mxu0 %vm201_vm2, %v1415_v5 }
 0x941   :  { %2733 = vmatpush3.xpose.msk.msra.mxu0 %vm201_vm2, %v1648_v3  ;;  %2734 = vmatprep.mubr.msk.f32.mxu0 %vm2903_vm0, %v2904_v7 }
 0x942   :  { %2742 = vmatprep.subr.mxu0 %v2904_v7 }
 0x943   :  { %v1492_v10 = vpop.f32.mrb[16].mxu1 }
 0x944   :  { %v2721_v11 = vpop.f32.mrb[17].mxu1  ;;  %2730 = vmatmul.mubr.msk.f32.vlgmr.msra.gmra.mrb[18].mxu1 %vm201_vm2, %v1492_v10  ;;  %2735 = vmatmul.mubr.msk.f32.vlgmr.msra.gmra.mrb[20].mxu0 %vm201_vm2, %v1646_v9 }
 0x945   :  { %2738 = vmatpush3.xpose.msk.msra.mxu1 %vm201_vm2, %v1726_v8  ;;  %2739 = vmatprep.mubr.msk.f32.mxu1 %vm2903_vm0, %v2904_v7  ;;  %v2550_v8 = vld [vmem:[%s3268_s8] ss:$0 sm:$0xff] }
 0x946   :  { %2747 = vmatprep.subr.mxu1 %v2904_v7  ;;  %2744 = vmatprep.mubr.msk.f32.mxu0 %vm2903_vm0, %v2904_v7 }
 0x948   :  { %2740 = vmatmul.mubr.msk.f32.vlgmr.msra.gmra.mrb[20].mxu1 %vm201_vm2, %v1724_v12 }
 0x949   :  { %2749 = vmatprep.mubr.msk.f32.mxu1 %vm2903_vm0, %v2904_v7 }
 0xa13   :  { %v1566_v13 = vpop.f32.mrb[18].mxu0 }
 0xa14   :  { %v3165_v15 = vadd.f32 %v1566_v13, %v3119_v34  ;;  %v2726_v16 = vpop.f32.mrb[19].mxu0 }
 0xa15   :  { %v2916_v16 = vmov 0  }
 0xa16   :  { %2824 = vset.pattern.permute.xlu1 %v2916_v16  ;;  %2825 = vset.pattern.permute.xlu0 %v2916_v16 }
 0xa17   :  { %v1639_v18 = vpop.f32.mrb[18].mxu1  ;;  %v1719_v19 = vpop.f32.mrb[20].mxu0 }
 0xa18   :  { %v3168_v20 = vadd.f32 %v1639_v18, %v3121_v38  ;;  %v1801_v21 = vmul.f32 0.35355338, %v1719_v19  ;;  %v2731_v22 = vpop.f32.mrb[19].mxu1  ;;  %v2736_v23 = vpop.f32.mrb[21].mxu0  ;;  %v2551_v18 = vld [vmem:[#allocation2] ss:$0 sm:$0xff] }
 0xa1a   :  { %v1803_v24 = vsel %vm355_vm3, %v1801_v21, -inf }
 0xa1b   :  { %v1797_v25 = vpop.f32.mrb[20].mxu1  ;;  %1804 = vmax.xlane.f32.xlu0 %v1803_v24 }
 0xa1c   :  { %v1802_v26 = vmul.f32 0.35355338, %v1797_v25  ;;  %v2741_v27 = vpop.f32.mrb[21].mxu1 }
 0xa1e   :  { %v1806_v28 = vsel %vm355_vm3, %v1802_v26, -inf }
 0xa1f   :  { %1807 = vmax.xlane.f32.xlu1 %v1806_v28 }
 0xa30   :  { %1825 = vrot.lane.b32.xlu1 %v3013_v14, %s2915_s9 }
 0xaa8   :  { %v1805_v29 = vpop.xlane.xlu0 %1804 }
 0xaa9   :  { %v1809_v30 = vsub.f32 %v1801_v21, %v1805_v29 }
 0xaab   :  { %v1811_v31 = vmul.f32 1.442695, %v1809_v30 }
 0xaac   :  { %v1808_v32 = vpop.xlane.xlu1 %1807 }
 0xaad   :  { %2850 = vpow2.f32 %v1811_v31  ;;  %v1810_v33 = vsub.f32 %v1802_v26, %v1808_v32 }
 0xaaf   :  { %v1813_v34 = vmul.f32 1.442695, %v1810_v33 }
 0xab0   :  { %v1826_v35 = vpop.permute.xlu1 %1825 }
 0xab1   :  { %2852 = vpow2.f32 %v1813_v34  ;;  %2743 = vmatpush3.msk.msra.mxu0 %vm384_vm4, %v1826_v35 }
 0xab2   :  { %2752 = vmatprep.subr.mxu0 %v2904_v7 }
 0xab7   :  { %v2851_v36 = vpop.eup %2850 }
 0xab8   :  { %v1815_v37 = vsel %vm355_vm3, %v2851_v36, 0.0 }
 0xab9   :  { %1816 = vadd.xlane.f32.xlu0 %v1815_v37 }
 0xabb   :  { %v2853_v38 = vpop.eup %2852 }
 0xabc   :  { %v1818_v14 = vsel %vm355_vm3, %v2853_v38, 0.0 }
 0xabd   :  { %1819 = vadd.xlane.f32.xlu0 %v1818_v14 }
 0xad3   :  { %1902 = vrot.lane.b32.xlu0 %v3015_v17, %s2915_s9  ;;  %v1979_v17 = vld [vmem:[%s3264_s4 + $0x18] sm:$0xff] }
 0xb46   :  { %v1817_v39 = vpop.xlane.xlu0 %1816 }
 0xb47   :  { %2854 = vrcp.f32 %v1817_v39 }
 0xb4a   :  { %v1820_v40 = vpop.xlane.xlu0 %1819 }
 0xb4b   :  { %2856 = vrcp.f32 %v1820_v40 }
 0xb4e   :  { %v1903_v41 = vpop.permute.xlu0 %1902 }
 0xb4f   :  { %2748 = vmatpush3.msk.msra.mxu1 %vm384_vm4, %v1903_v41 }
 0xb50   :  { %2757 = vmatprep.subr.mxu1 %v2904_v7 }
 0xb51   :  { %v2855_v42 = vpop.eup %2854 }
 0xb52   :  { %v1822_v43 = vmul.f32 %v2855_v42, %v2851_v36 }
 0xb54   :  { %2745 = vmatmul.mubr.msk.f32.vlgmr.msra.gmra.mrb[22].mxu0 %vm380_vm5, %v1822_v43 }
 0xb55   :  { %v2857_v44 = vpop.eup %2856  ;;  %2754 = vmatprep.mubr.msk.f32.mxu0 %vm2903_vm0, %v2904_v7  ;;  %2753 = vmatpush3.msra.mxu0 %v1979_v17 }
 0xb56   :  { %v1824_v45 = vmul.f32 %v2857_v44, %v2853_v38  ;;  %2796 = vmatprep.subr.bf16.mxu0 %v2902_v4 }
 0xb58   :  { %2750 = vmatmul.mubr.msk.f32.vlgmr.msra.gmra.mrb[22].mxu1 %vm380_vm5, %v1824_v45 }
 0xb59   :  { %2759 = vmatprep.mubr.msk.f32.mxu1 %vm2903_vm0, %v2904_v7  ;;  %2758 = vmatpush3.msra.mxu1 %v1979_v17 }
 0xb5a   :  { %2802 = vmatprep.subr.bf16.mxu1 %v2902_v4 }
 0xc27   :  { %v1898_v49 = vpop.f32.mrb[22].mxu0 }
 0xc28   :  { %v2746_v50 = vpop.f32.mrb[23].mxu0  ;;  %2755 = vmatmul.mubr.msk.f32.vlgmr.msra.gmra.mrb[24].mxu0 %vm201_vm2, %v1898_v49 }
 0xc29   :  { %2798 = vmatpush3.bf16.msra.mxu0 %v2797_v48  ;;  %2770 = vmatprep.mubr.msk.f32.mxu0 %vm2903_vm0, %v2904_v7 }
 0xc2a   :  { %2799 = vmatprep.subr.bf16.mxu0 %v2902_v4 }
 0xc2b   :  { %v1975_v51 = vpop.f32.mrb[22].mxu1 }
 0xc2c   :  { %v2751_v52 = vpop.f32.mrb[23].mxu1  ;;  %2760 = vmatmul.mubr.msk.f32.vlgmr.msra.gmra.mrb[24].mxu1 %vm201_vm2, %v1975_v51 }
 0xc2d   :  { %2804 = vmatpush3.bf16.msra.mxu1 %v2797_v48  ;;  %2781 = vmatprep.mubr.msk.f32.mxu1 %vm2903_vm0, %v2904_v7 }
 0xc2e   :  { %2805 = vmatprep.subr.bf16.mxu1 %v2902_v4  ;;  %2801 = vmatpush3.bf16.msra.mxu0 %v2800_v55 }
 0xc31   :  { %2807 = vmatpush3.bf16.msra.mxu1 %v2800_v55 }
 0xcfb   :  { %v2049_v56 = vpop.f32.mrb[24].mxu0 }
 0xcfc   :  { %v2126_v7 = vadd.f32 %v2049_v56, %v3165_v15  ;;  %v2756_v58 = vpop.f32.mrb[25].mxu0 }
 0xcfe   :  { %v3215_v4 = vadd.f32 %v2546_v57, %v2126_v7 }
 0xcff   :  { %v2122_v59 = vpop.f32.mrb[24].mxu1 }
 0xd00   :  { %v2127_v60 = vadd.f32 %v2122_v59, %v3168_v20  ;;  %v2761_v61 = vpop.f32.mrb[25].mxu1  ;;  %2771 = vmatmul.mubr.msk.f32.vlgmr.msra.gmra.mrb[26].mxu0 %vm51_vm1, %v3215_v4 }
 0xd02   :  { %v3220_v62 = vadd.f32 %v2546_v57, %v2127_v60 }
 0xd04   :  { %2782 = vmatmul.mubr.msk.f32.vlgmr.msra.gmra.mrb[26].mxu1 %vm51_vm1, %v3220_v62 }
 0xdd3   :  { %v2217_v0 = vpop.f32.mrb[26].mxu0 }
 0xdd4   :  { %v2218_v1 = vadd.f32 %v2547_v63, %v2217_v0  ;;  %v2772_v2 = vpop.f32.mrb[27].mxu0 }
 0xdd6   :  { %2858 = vtanh.f32 %v2218_v1 }
 0xdd7   :  { %v2290_v3 = vpop.f32.mrb[26].mxu1 }
 0xdd8   :  { %v2291_v5 = vadd.f32 %v2547_v63, %v2290_v3  ;;  %v2783_v6 = vpop.f32.mrb[27].mxu1 }
 0xdda   :  { %2860 = vtanh.f32 %v2291_v5 }
 0xde0   :  { %v2859_v9 = vpop.eup %2858 }
 0xde1   :  { %v2303_v10 = vmul.f32 %v2859_v9, %v2550_v8 }
 0xde3   :  { %v2306_v11 = vsel %vm2305_vm6, %v2303_v10, 0.0 }
 0xde4   :  { %v2861_v12 = vpop.eup %2860  ;;  %2307 = vadd.xlane.f32.xlu1 %v2306_v11  ;;  %v2387_v11 = vld [vmem:[%s3261_s1] sm:$0xf] }
 0xde5   :  { %v2304_v13 = vmul.f32 %v2861_v12, %v2550_v8 }
 0xde7   :  { %v2309_v15 = vsel %vm2305_vm6, %v2304_v13, 0.0 }
 0xde8   :  { %2310 = vadd.xlane.f32.xlu0 %v2309_v15 }
 0xe71   :  { %v2308_v19 = vpop.xlane.xlu1 %2307 }
 0xe72   :  { %v2319_v20 = vadd.f32 %v2551_v18, %v2308_v19 }
 0xe74   :  { %v2322_v21 = vsel %vm2321_vm7, %v2319_v20, -inf }
 0xe75   :  { %v2323_v22 = vrot.slane %v2322_v21, 4  ;;  %v2311_v23 = vpop.xlane.xlu0 %2310 }
 0xe76   :  { %v2320_v24 = vadd.f32 %v2551_v18, %v2311_v23 }
 0xe77   :  { %v2324_v25 = vmax.f32 %v2322_v21, %v2323_v22  ;;  %v2400_v21 = vlaneseq }
 0xe78   :  { %v2329_v26 = vsel %vm2321_vm7, %v2320_v24, -inf }
 0xe79   :  { %v2325_v27 = vrot.slane %v2324_v25, 2  ;;  %v2330_v28 = vrot.slane %v2329_v26, 4  ;;  %v2401_v22 = vand.u32 127, %v2400_v21  ;;  %v2403_v23 = vshrl.u32 %v2400_v21, 7 }
 0xe7b   :  { %v2326_v29 = vmax.f32 %v2324_v25, %v2325_v27  ;;  %v2331_v30 = vmax.f32 %v2329_v26, %v2330_v28 }
 0xe7d   :  { %v2327_v31 = vrot.slane %v2326_v29, 1  ;;  %v2332_v32 = vrot.slane %v2331_v30, 2 }
 0xe7f   :  { %v2328_v33 = vmax.f32 %v2326_v29, %v2327_v31  ;;  %v2333_v34 = vmax.f32 %v2331_v30, %v2332_v32  ;;  %v2420_v31 = vsub.s32 0, %v2403_v23  ;;  %v2424_v32 = vsub.s32 1, %v2403_v23 }
 0xe81   :  { %v2336_v35 = vsub.f32 %v2319_v20, %v2328_v33  ;;  %v2334_v36 = vrot.slane %v2333_v34, 1 }
 0xe83   :  { %v2338_v37 = vmul.f32 1.442695, %v2336_v35  ;;  %v2335_v38 = vmax.f32 %v2333_v34, %v2334_v36 }
 0xe85   :  { %2862 = vpow2.f32 %v2338_v37  ;;  %v2337_v14 = vsub.f32 %v2320_v24, %v2335_v38  ;;  %v2404_v24 = vsub.s32 %v2401_v22, %v2403_v23 }
 0xe87   :  { %v2340_v39 = vmul.f32 1.442695, %v2337_v14 }
 0xe89   :  { %2864 = vpow2.f32 %v2340_v39 }
 0xe8f   :  { %v2863_v40 = vpop.eup %2862 }
 0xe90   :  { %v2342_v41 = vsel %vm2321_vm7, %v2863_v40, 0.0 }
 0xe91   :  { %v2343_v42 = vrot.slane %v2342_v41, 4 }
 0xe93   :  { %v2865_v43 = vpop.eup %2864  ;;  %v2344_v44 = vadd.f32 %v2343_v42, %v2342_v41 }
 0xe94   :  { %v2349_v45 = vsel %vm2321_vm7, %v2865_v43, 0.0 }
 0xe95   :  { %v2345_v17 = vrot.slane %v2344_v44, 2  ;;  %v2350_v46 = vrot.slane %v2349_v45, 4 }
 0xe97   :  { %v2346_v47 = vadd.f32 %v2345_v17, %v2344_v44  ;;  %v2351_v48 = vadd.f32 %v2350_v46, %v2349_v45 }
 0xe99   :  { %v2347_v49 = vrot.slane %v2346_v47, 1  ;;  %v2352_v50 = vrot.slane %v2351_v48, 2 }
 0xe9b   :  { %v2348_v51 = vadd.f32 %v2347_v49, %v2346_v47  ;;  %v2353_v52 = vadd.f32 %v2352_v50, %v2351_v48 }
 0xe9d   :  { %2866 = vrcp.f32 %v2348_v51  ;;  %v2354_v53 = vrot.slane %v2353_v52, 1 }
 0xe9f   :  { %v2355_v54 = vadd.f32 %v2354_v53, %v2353_v52 }
 0xea1   :  { %2868 = vrcp.f32 %v2355_v54 }
 0xea7   :  { %v2867_v55 = vpop.eup %2866 }
 0xea8   :  { %v2357_v56 = vmul.f32 %v2867_v55, %v2863_v40 }
 0xeaa   :  { %2362 = vperm.xlu1 %2824, %v2357_v56  }
 0xeab   :  { %v2869_v57 = vpop.eup %2868 }
 0xeac   :  { %v2359_v7 = vmul.f32 %v2869_v57, %v2865_v43 }
 0xeae   :  { %2367 = vperm.xlu0 %2825, %v2359_v7  }
 0xf29   :  { %v2363_v58 = vpop.permute.xlu1 %2362 }
 0xf2a   :  { %v2370_v59 = vmul.f32 %v2363_v58, %v3215_v4 }
 0xf2c   :  { %v2373_v60 = vsel %vm2372_vm8, %v2370_v59, 0.0 }
 0xf2d   :  { %v2374_v61 = vrot.slane %v2373_v60, 4  ;;  %v2368_v63 = vpop.permute.xlu0 %2367 }
 0xf2e   :  { %v2371_v0 = vmul.f32 %v2368_v63, %v3220_v62  ;;  %v2388_v62 = vld [vmem:[%s3261_s1 + $0x4] sm:$0xf]  ;;  %s2917_s1 = smov [#allocation3]  }
 0xf2f   :  { %v2375_v1 = vadd.f32 %v2374_v61, %v2373_v60  ;;  %s2495_s13 = sshll.u32 %s2917_s1, 4  ;;  %s2496_s13 = int_to_ptr.vmem [resolvable:$true] %s2495_s13 }
 0xf30   :  { %v2380_v2 = vsel %vm2372_vm8, %v2371_v0, 0.0  ;;  %s2878_s14 = scalar_lea.vmem %s2496_s13, 32  ;;  %p2883_p1 = scmp.lt.s32.totalorder %s2496_s13, %s2496_s13 }
 0xf31   :  { %v2376_v3 = vrot.slane %v2375_v1, 2  ;;  %v2381_v5 = vrot.slane %v2380_v2, 4  ;;  %p2879_p0 = scmp.ne.s32.totalorder %s2496_s13, %s2878_s14  ;;  %p2884_p2 = scmp.lt.s32.totalorder %s2878_s14, %s2878_s14 }
 0xf33   :  { %v2377_v6 = vadd.f32 %v2376_v3, %v2375_v1  ;;  %v2382_v8 = vadd.f32 %v2381_v5, %v2380_v2  ;;  %p2885_p3 = por %p2884_p2, %p2883_p1 }
 0xf35   :  { %v2383_v9 = vrot.slane %v2382_v8, 2  ;;  %v2378_v10 = vrot.slane %v2377_v6, 1  ;;  %p2886_p4 = pnand %p2885_p3, %p2879_p0 }
 0xf37   :  { %v2384_v12 = vadd.f32 %v2383_v9, %v2382_v8  ;;  %v2379_v13 = vadd.f32 %v2378_v10, %v2377_v6 }
 0xf39   :  { %v2389_v4 = vmul.f32 %v2387_v11, %v2379_v13  ;;  %v2385_v15 = vrot.slane %v2384_v12, 1 }
 0xf3b   :  { %v2392_v16 = vsel %vm2391_vm9, %v2389_v4, 0.0  ;;  %v2386_v18 = vadd.f32 %v2385_v15, %v2384_v12 }
 0xf3c   :  { %2393 = vadd.xlane.f32.xlu1 %v2392_v16 }
 0xf3d   :  { %v2390_v19 = vmul.f32 %v2388_v62, %v2386_v18 }
 0xf3f   :  { %v2395_v20 = vsel %vm2391_vm9, %v2390_v19, 0.0 }
 0xf40   :  { %2396 = vadd.xlane.f32.xlu0 %v2395_v20 }
 0xfc9   :  { %v2394_v25 = vpop.xlane.xlu1 %2393 }
 0xfca   :  { %v2405_v27 = vrot.slane %v2394_v25, %v2404_v24 }
 0xfcd   :  { %v2397_v26 = vpop.xlane.xlu0 %2396 }
 0xfce   :  { %v2409_v28 = vrot.slane %v2397_v26, %v2404_v24 }
 0xfd0   :  { %v2411_v29 = vsel %vm2410_vm10, %v2409_v28, %v2405_v27 }
 0xfd1   :  { %v2414_v30 = vsel %vm2413_vm11, %v2411_v29, -inf }
 0xfd2   :  { %2415 = vmax.xlane.f32.xlu1 %v2414_v30 }
0x105f   :  { %v2416_v33 = vpop.xlane.xlu1 %2415 }
0x1060   :  { %v2421_v34 = vrot.slane %v2416_v33, %v2420_v31  ;;  %v2425_v35 = vrot.slane %v2416_v33, %v2424_v32 }
0x1062   :  { %v2428_v36 = vsub.f32 %v2394_v25, %v2421_v34  ;;  %v2429_v37 = vsub.f32 %v2397_v26, %v2425_v35 }
0x1064   :  { %v2430_v38 = vmul.f32 1.442695, %v2428_v36  ;;  %v2432_v14 = vmul.f32 1.442695, %v2429_v37 }
0x1066   :  { %2870 = vpow2.f32 %v2430_v38 }
0x1067   :  { %2872 = vpow2.f32 %v2432_v14 }
0x1070   :  { %v2871_v39 = vpop.eup %2870 }
0x1071   :  { %2437 = vperm.xlu1 %2824, %v2871_v39   ;;  %v2873_v40 = vpop.eup %2872 }
0x1075   :  { %2440 = vperm.xlu1 %2824, %v2873_v40  }
0x10f0   :  { %v2438_v41 = vpop.permute.xlu1 %2437 }
0x10f1   :  { %v2445_v43 = vrot.slane %v2438_v41, %v2404_v24 }
0x10f4   :  { %v2441_v42 = vpop.permute.xlu1 %2440 }
0x10f5   :  { %v2449_v44 = vrot.slane %v2441_v42, %v2404_v24 }
0x10f7   :  { %v2450_v45 = vsel %vm2410_vm10, %v2449_v44, %v2445_v43 }
0x10f8   :  { %v2452_v17 = vsel %vm2413_vm11, %v2450_v45, 0.0 }
0x10f9   :  { %2453 = vadd.xlane.f32.xlu0 %v2452_v17 }
0x1186   :  { %v2454_v46 = vpop.xlane.xlu0 %2453 }
0x1187   :  { %v2459_v47 = vrot.slane %v2454_v46, %v2420_v31  ;;  %v2463_v48 = vrot.slane %v2454_v46, %v2424_v32 }
0x1189   :  { %2874 = vrcp.f32 %v2459_v47 }
0x118a   :  { %2876 = vrcp.f32 %v2463_v48 }
0x1193   :  { %v2875_v49 = vpop.eup %2874 }
0x1194   :  { %v2877_v50 = vpop.eup %2876  ;;  %v2467_v51 = vmul.f32 %v2875_v49, %v2871_v39 }
0x1195   :  { %v2469_v52 = vmul.f32 %v2877_v50, %v2873_v40 }
0x1196   :  { %2473 = vperm.xlu1 %2824, %v2467_v51  }
0x1197   :  { %2476 = vperm.xlu0 %2825, %v2469_v52  }
0x1215   :  { %v2474_v53 = vpop.permute.xlu1 %2473 }
0x1216   :  { %v2477_v54 = vpop.permute.xlu0 %2476  ;;  %v2481_v55 = vrot.slane %v2474_v53, %v2404_v24 }
0x1217   :  { %v2485_v56 = vrot.slane %v2477_v54, %v2404_v24 }
0x1219   :  { %v2486_v57 = vsel %vm2410_vm10, %v2485_v56, %v2481_v55 }
0x121a   :  { %2488 = vst.msk [vmem:[#allocation3] sm:$0x3] %vm2413_vm11, %v2486_v57 }
0x121b   :  { %2889 = shalt.err (!%p2886_p4)
}
0x121c   :  { %s2890_s17 = scalar_lea.hbm %s3270_s10, 32 }
0x121d   :  { %p2891_p5 = scmp.ne.s32.totalorder %s3270_s10, %s2890_s17  ;;  %p2894_p6 = scmp.lt.u32.totalorder %s2890_s17, %s3270_s10 }
0x121f   :  { %p2896_p7 = pnand %p2894_p6, %p2891_p5 }
0x1221   :  { %2899 = shalt.err (!%p2896_p7)
}
0x1222   :  { %2498 = dma.vmem_to_hbm [thread:$0]  %s2496_s13, 32, %s3270_s10, [#allocation4]  }
0x1223   :  { %2900 = dma.done.wait [#allocation4], 32  }
0x1224   :  { %2901 = vsyncadd [#allocation4], 4294967264 }
0x1225   :  { %2502 = vsyncpa [#allocation4], 1 }

// kernel: nrms_forward.2
= control target key start
LH: loop header
LB: loop body
LE: loop exit
PB: predicated region body
PF: predicated region fallthrough
CT: control target
= control target key end

     0   :  { %vm80_vm0 = vcmask 261120   ;;  %v36376_v24 = vmov 0.0   ;;  %vm31188_vm1 = vmmov 0   ;;  %s31191_s18 = smov 88   ;;  %s31192_s19 = smov 120   ;;  %vm293_vm2 = vcmask 64512   ;;  %s36362_s1 = inlined_call_operand.vmem [shape: f32[32,96], index: 1, kind: input, shape index: {}]   ;;  %s36363_s0 = inlined_call_operand.vmem [shape: f32[18,8,32], index: 0, kind: input, shape index: {}]   ;;  %s36364_s2 = inlined_call_operand.vmem [shape: f32[1,96], index: 2, kind: input, shape index: {}]   ;;  %s36365_s3 = inlined_call_operand.vmem [shape: f32[32,32], index: 3, kind: input, shape index: {}]   ;;  %s36366_s5 = inlined_call_operand.vmem [shape: f32[32,96], index: 5, kind: input, shape index: {}]   ;;  %s36367_s4 = inlined_call_operand.vmem [shape: f32[1,32], index: 4, kind: input, shape index: {}]   ;;  %s36368_s6 = inlined_call_operand.vmem [shape: f32[1,96], index: 6, kind: input, shape index: {}]   ;;  %s36369_s7 = inlined_call_operand.vmem [shape: f32[32,32], index: 7, kind: input, shape index: {}]   ;;  %s36370_s9 = inlined_call_operand.vmem [shape: f32[32,16], index: 9, kind: input, shape index: {}]   ;;  %s36371_s8 = inlined_call_operand.vmem [shape: f32[1,32], index: 8, kind: input, shape index: {}]   ;;  %s36372_s12 = inlined_call_operand.<no memory space> [shape: f32[1,1], index: 12, kind: input, shape index: {}]   ;;  %s36373_s10 = inlined_call_operand.vmem [shape: f32[1,16], index: 10, kind: input, shape index: {}]   ;;  %s36374_s11 = inlined_call_operand.vmem [shape: f32[1,16], index: 11, kind: input, shape index: {}]   ;;  %s36375_s13 = inlined_call_operand.vmem [shape: f32[18,32], index: 13, kind: output, shape index: {}]  }
   0x1   :  { %v64_v0 = vld [vmem:[%s36362_s1] sm:$0xff]  ;;  %v65_v1 = vld [vmem:[%s36362_s1 + $0x8] sm:$0xff]  ;;  %v66_v2 = vld [vmem:[%s36362_s1 + $0x10] sm:$0xff]  ;;  %28613 = vmatprep.subr.mxu1 %v36376_v24  ;;  %28615 = vmatprep.mubr.msk.f32.mxu1 %vm31188_vm1, %v36376_v24  ;;  %s31193_s20 = smov 56   ;;  %s31194_s21 = smov 80   ;;  %vm26439_vm3 = vcmask 130048  }
   0x2   :  { %v30355_v3 = vpack.c.bf16 %v65_v1, %v64_v0  ;;  %v67_v4 = vld [vmem:[%s36362_s1 + $0x18] sm:$0xff]  ;;  %v46_v5 = vld [vmem:[%s36363_s0] sm:$0xff]  ;;  %v47_v7 = vld [vmem:[%s36363_s0 + $0x8] sm:$0xff]  ;;  %s31195_s1 = smov 112   ;;  %s31196_s22 = smov 48   ;;  %vm26519_vm4 = vcmask 7168  }
   0x3   :  { %v30359_v6 = vpack.c.bf16 %v67_v4, %v66_v2  ;;  %28586 = vmatprep.mubr.msk.f32.mxu0 %vm80_vm0, %v46_v5  ;;  %v48_v8 = vld [vmem:[%s36363_s0 + $0x10] sm:$0xff]  ;;  %v49_v9 = vld [vmem:[%s36363_s0 + $0x18] sm:$0xff]  ;;  %v50_v10 = vld [vmem:[%s36363_s0 + $0x20] sm:$0xff]  ;;  %s31197_s27 = smov 72   ;;  %s31198_s28 = smov 104   ;;  %vm27114_vm5 = vcmask 1041409  }
   0x4   :  { %30356 = vmatprep.subr.bf16.mxu0 %v30355_v3  ;;  %v51_v11 = vld [vmem:[%s36363_s0 + $0x28] sm:$0xff]  ;;  %v52_v12 = vld [vmem:[%s36363_s0 + $0x30] sm:$0xff]  ;;  %v53_v13 = vld [vmem:[%s36363_s0 + $0x38] sm:$0xff]  ;;  %s31199_s29 = smov 40   ;;  %vm27116_vm6 = vcmask 1042434   ;;  %vm27118_vm7 = vcmask 1043459  }
   0x5   :  { %30358 = vmatpush3.bf16.msra.mxu0 %v30355_v3  ;;  %v54_v14 = vld [vmem:[%s36363_s0 + $0x40] sm:$0xff]  ;;  %v55_v15 = vld [vmem:[%s36363_s0 + $0x48] sm:$0xff]  ;;  %v56_v16 = vld [vmem:[%s36363_s0 + $0x50] sm:$0xff]  ;;  %vm27120_vm8 = vcmask 1044484   ;;  %vm27122_vm9 = vcmask 1045509   ;;  %vm27124_vm10 = vcmask 1046534  }
   0x6   :  { %30360 = vmatprep.subr.bf16.mxu0 %v30359_v6  ;;  %v57_v17 = vld [vmem:[%s36363_s0 + $0x58] sm:$0xff]  ;;  %v58_v18 = vld [vmem:[%s36363_s0 + $0x60] sm:$0xff]  ;;  %v59_v19 = vld [vmem:[%s36363_s0 + $0x68] sm:$0xff]  ;;  %vm27126_vm11 = vcmask 1047559   ;;  %vm27141_vm12 = vcmask 254976  }
   0x7   :  { %v60_v20 = vld [vmem:[%s36363_s0 + $0x70] sm:$0xff]  ;;  %v61_v21 = vld [vmem:[%s36363_s0 + $0x78] sm:$0xff]  ;;  %v62_v22 = vld [vmem:[%s36363_s0 + $0x80] sm:$0xff] }
   0x8   :  { %v63_v23 = vld [vmem:[%s36363_s0 + $0x88] sm:$0xff]  ;;  %v27147_v25 = vld [vmem:[%s36364_s2] ss:$0 sm:$0xff]  ;;  %s31189_s0 = smov 96   ;;  %s31190_s2 = smov 64  }
   0x9   :  { %30362 = vmatpush3.bf16.msra.mxu0 %v30359_v6 }
   0xa   :  { %28663 = vmatprep.subr.mxu0 %v36376_v24 }
   0xc   :  { %28587 = vmatmul.mubr.msk.f32.vlgmr.msra.gmra.mrb[0].mxu0 %vm80_vm0, %v47_v7 }
   0xd   :  { %28589 = vmatprep.mubr.msk.f32.mxu0 %vm80_vm0, %v48_v8 }
  0x10   :  { %28590 = vmatmul.mubr.msk.f32.gmra.mrb[2].mxu0 %vm80_vm0, %v49_v9 }
  0x11   :  { %28592 = vmatprep.mubr.msk.f32.mxu0 %vm80_vm0, %v50_v10 }
  0x14   :  { %28593 = vmatmul.mubr.msk.f32.gmra.mrb[4].mxu0 %vm80_vm0, %v51_v11 }
  0x15   :  { %28595 = vmatprep.mubr.msk.f32.mxu0 %vm80_vm0, %v52_v12 }
  0x18   :  { %28596 = vmatmul.mubr.msk.f32.gmra.mrb[6].mxu0 %vm80_vm0, %v53_v13 }
  0x19   :  { %28598 = vmatprep.mubr.msk.f32.mxu0 %vm80_vm0, %v54_v14 }
  0x1c   :  { %28599 = vmatmul.mubr.msk.f32.gmra.mrb[8].mxu0 %vm80_vm0, %v55_v15 }
  0x1d   :  { %28601 = vmatprep.mubr.msk.f32.mxu0 %vm80_vm0, %v56_v16 }
  0x20   :  { %28602 = vmatmul.mubr.msk.f32.gmra.mrb[10].mxu0 %vm80_vm0, %v57_v17 }
  0x21   :  { %28604 = vmatprep.mubr.msk.f32.mxu0 %vm80_vm0, %v58_v18 }
  0x24   :  { %28605 = vmatmul.mubr.msk.f32.gmra.mrb[12].mxu0 %vm80_vm0, %v59_v19 }
  0x25   :  { %28607 = vmatprep.mubr.msk.f32.mxu0 %vm80_vm0, %v60_v20 }
  0x28   :  { %28608 = vmatmul.mubr.msk.f32.gmra.mrb[14].mxu0 %vm80_vm0, %v61_v21 }
  0x29   :  { %28610 = vmatprep.mubr.msk.f32.mxu0 %vm80_vm0, %v62_v22 }
  0x2c   :  { %28611 = vmatmul.mubr.msk.f32.gmra.mrb[16].mxu0 %vm80_vm0, %v63_v23 }
  0x2d   :  { %28665 = vmatprep.mubr.msk.f32.mxu0 %vm31188_vm1, %v36376_v24 }
  0xdf   :  { %v28588_v26 = vpop.f32.mrb[0].mxu0 }
  0xe0   :  { %v201_v27 = vpop.f32.mrb[1].mxu0  ;;  %v31368_v31 = vadd.f32 %v28588_v26, %v27147_v25 }
  0xe1   :  { %v31364_v28 = vadd.f32 %v27147_v25, %v201_v27 }
  0xe3   :  { %v28591_v29 = vpop.f32.mrb[2].mxu0  ;;  %291 = vrot.lane.b32.xlu0 %v31364_v28, %s31189_s0 }
  0xe4   :  { %v211_v30 = vpop.f32.mrb[3].mxu0  ;;  %v31372_v33 = vadd.f32 %v28591_v29, %v27147_v25 }
  0xe5   :  { %v31370_v32 = vadd.f32 %v27147_v25, %v211_v30 }
  0xe7   :  { %36407 = vst [vmem:[#allocation3_spill] sm:$0xff] %v31370_v32  ;;  %446 = vrot.lane.b32.xlu1 %v31370_v32, %s31189_s0  ;;  %369 = vrot.lane.b32.xlu0 %v31368_v31, %s31189_s0  ;;  %v28594_v34 = vpop.f32.mrb[4].mxu0 }
  0xe8   :  { %v221_v35 = vpop.f32.mrb[5].mxu0  ;;  %v31380_v37 = vadd.f32 %v28594_v34, %v27147_v25 }
  0xe9   :  { %v31378_v36 = vadd.f32 %v27147_v25, %v221_v35 }
  0xea   :  { %36408 = vst [vmem:[#allocation4_spill] sm:$0xff] %v31380_v37 }
  0xeb   :  { %523 = vrot.lane.b32.xlu1 %v31372_v33, %s31189_s0  ;;  %v28597_v38 = vpop.f32.mrb[6].mxu0  ;;  %600 = vrot.lane.b32.xlu0 %v31378_v36, %s31189_s0 }
  0xec   :  { %v231_v39 = vpop.f32.mrb[7].mxu0  ;;  %v31388_v41 = vadd.f32 %v28597_v38, %v27147_v25 }
  0xed   :  { %v31386_v40 = vadd.f32 %v27147_v25, %v231_v39 }
  0xee   :  { %36409 = vst [vmem:[#allocation5_spill] sm:$0xff] %v31388_v41 }
  0xef   :  { %v28600_v42 = vpop.f32.mrb[8].mxu0  ;;  %677 = vrot.lane.b32.xlu1 %v31380_v37, %s31189_s0  ;;  %754 = vrot.lane.b32.xlu0 %v31386_v40, %s31189_s0 }
  0xf0   :  { %v241_v43 = vpop.f32.mrb[9].mxu0  ;;  %v31396_v45 = vadd.f32 %v28600_v42, %v27147_v25 }
  0xf1   :  { %v31394_v44 = vadd.f32 %v27147_v25, %v241_v43 }
  0xf2   :  { %36410 = vst [vmem:[#allocation6_spill] sm:$0xff] %v31396_v45 }
  0xf3   :  { %831 = vrot.lane.b32.xlu1 %v31388_v41, %s31189_s0  ;;  %908 = vrot.lane.b32.xlu0 %v31394_v44, %s31189_s0  ;;  %v28603_v46 = vpop.f32.mrb[10].mxu0 }
  0xf4   :  { %v31402_v47 = vadd.f32 %v28603_v46, %v27147_v25  ;;  %v251_v48 = vpop.f32.mrb[11].mxu0 }
  0xf5   :  { %v31414_v55 = vadd.f32 %v27147_v25, %v251_v48 }
  0xf7   :  { %v28606_v49 = vpop.f32.mrb[12].mxu0  ;;  %985 = vrot.lane.b32.xlu1 %v31396_v45, %s31189_s0  ;;  %1139 = vrot.lane.b32.xlu0 %v31402_v47, %s31189_s0 }
  0xf8   :  { %v31408_v50 = vadd.f32 %v28606_v49, %v27147_v25  ;;  %v261_v51 = vpop.f32.mrb[13].mxu0 }
  0xf9   :  { %v31420_v59 = vadd.f32 %v27147_v25, %v261_v51 }
  0xfb   :  { %v28609_v52 = vpop.f32.mrb[14].mxu0  ;;  %1293 = vrot.lane.b32.xlu1 %v31408_v50, %s31189_s0 }
  0xfc   :  { %v31412_v53 = vadd.f32 %v28609_v52, %v27147_v25  ;;  %v271_v54 = vpop.f32.mrb[15].mxu0 }
  0xfd   :  { %v31422_v60 = vadd.f32 %v27147_v25, %v271_v54 }
  0xfe   :  { %1447 = vrot.lane.b32.xlu0 %v31412_v53, %s31189_s0 }
  0xff   :  { %v28612_v56 = vpop.f32.mrb[16].mxu0 }
 0x100   :  { %v31418_v57 = vadd.f32 %v28612_v56, %v27147_v25  ;;  %v281_v58 = vpop.f32.mrb[17].mxu0 }
 0x101   :  { %v31432_v61 = vadd.f32 %v27147_v25, %v281_v58 }
 0x102   :  { %1601 = vrot.lane.b32.xlu1 %v31418_v57, %s31189_s0  ;;  %1062 = vrot.lane.b32.xlu0 %v31414_v55, %s31189_s0 }
 0x106   :  { %1216 = vrot.lane.b32.xlu1 %v31420_v59, %s31189_s0  ;;  %1370 = vrot.lane.b32.xlu0 %v31422_v60, %s31189_s0 }
 0x10a   :  { %1524 = vrot.lane.b32.xlu1 %v31432_v61, %s31189_s0  ;;  %2121 = vrot.lane.b32.xlu0 %v31372_v33, %s31190_s2 }
 0x10e   :  { %1969 = vrot.lane.b32.xlu1 %v31368_v31, %s31190_s2  ;;  %2273 = vrot.lane.b32.xlu0 %v31380_v37, %s31190_s2 }
 0x112   :  { %3341 = vrot.lane.b32.xlu1 %v31368_v31, %s31191_s18  ;;  %2425 = vrot.lane.b32.xlu0 %v31388_v41, %s31190_s2 }
 0x116   :  { %3651 = vrot.lane.b32.xlu1 %v31380_v37, %s31192_s19  ;;  %2577 = vrot.lane.b32.xlu0 %v31396_v45, %s31190_s2 }
 0x11a   :  { %3807 = vrot.lane.b32.xlu1 %v31388_v41, %s31192_s19  ;;  %2729 = vrot.lane.b32.xlu0 %v31402_v47, %s31190_s2 }
 0x11e   :  { %2881 = vrot.lane.b32.xlu0 %v31408_v50, %s31190_s2 }
 0x122   :  { %3033 = vrot.lane.b32.xlu0 %v31412_v53, %s31190_s2 }
 0x126   :  { %3185 = vrot.lane.b32.xlu0 %v31418_v57, %s31190_s2 }
 0x12a   :  { %3339 = vrot.lane.b32.xlu0 %v31368_v31, %s31192_s19 }
 0x12e   :  { %3497 = vrot.lane.b32.xlu0 %v31372_v33, %s31191_s18 }
 0x132   :  { %3495 = vrot.lane.b32.xlu0 %v31372_v33, %s31192_s19 }
 0x136   :  { %3653 = vrot.lane.b32.xlu0 %v31380_v37, %s31191_s18 }
 0x13a   :  { %3809 = vrot.lane.b32.xlu0 %v31388_v41, %s31191_s18 }
 0x13e   :  { %3965 = vrot.lane.b32.xlu0 %v31396_v45, %s31191_s18 }
 0x155   :  { %v292_v62 = vpop.permute.xlu0 %291 }
 0x156   :  { %28614 = vmatpush3.xpose.msk.msra.mxu1 %vm293_vm2, %v292_v62 }
 0x157   :  { %28618 = vmatprep.subr.mxu1 %v36376_v24 }
 0x159   :  { %v447_v63 = vpop.permute.xlu1 %446  ;;  %28616 = vmatmul.mubr.msk.f32.vlgmr.msra.gmra.mrb[0].mxu1 %vm293_vm2, %v31364_v28  ;;  %v370_v0 = vpop.permute.xlu0 %369 }
 0x15a   :  { %28619 = vmatpush3.xpose.msk.msra.mxu1 %vm293_vm2, %v370_v0  ;;  %28620 = vmatprep.mubr.msk.f32.mxu1 %vm31188_vm1, %v36376_v24 }
 0x15b   :  { %28623 = vmatprep.subr.mxu1 %v36376_v24 }
 0x15d   :  { %v524_v1 = vpop.permute.xlu1 %523  ;;  %28621 = vmatmul.mubr.msk.f32.vlgmr.msra.gmra.mrb[2].mxu1 %vm293_vm2, %v31368_v31  ;;  %v601_v2 = vpop.permute.xlu0 %600 }
 0x15e   :  { %28624 = vmatpush3.xpose.msk.msra.mxu1 %vm293_vm2, %v447_v63  ;;  %28625 = vmatprep.mubr.msk.f32.mxu1 %vm31188_vm1, %v36376_v24 }
 0x15f   :  { %28628 = vmatprep.subr.mxu1 %v36376_v24 }
 0x161   :  { %28626 = vmatmul.mubr.msk.f32.vlgmr.msra.gmra.mrb[4].mxu1 %vm293_vm2, %v31370_v32  ;;  %v678_v3 = vpop.permute.xlu1 %677  ;;  %v755_v4 = vpop.permute.xlu0 %754 }
 0x162   :  { %28629 = vmatpush3.xpose.msk.msra.mxu1 %vm293_vm2, %v524_v1  ;;  %28630 = vmatprep.mubr.msk.f32.mxu1 %vm31188_vm1, %v36376_v24 }
 0x163   :  { %28633 = vmatprep.subr.mxu1 %v36376_v24 }
 0x165   :  { %28631 = vmatmul.mubr.msk.f32.vlgmr.msra.gmra.mrb[6].mxu1 %vm293_vm2, %v31372_v33  ;;  %v832_v5 = vpop.permute.xlu1 %831  ;;  %v909_v6 = vpop.permute.xlu0 %908 }
 0x166   :  { %28634 = vmatpush3.xpose.msk.msra.mxu1 %vm293_vm2, %v601_v2  ;;  %28635 = vmatprep.mubr.msk.f32.mxu1 %vm31188_vm1, %v36376_v24 }
 0x167   :  { %28638 = vmatprep.subr.mxu1 %v36376_v24 }
 0x169   :  { %28636 = vmatmul.mubr.msk.f32.vlgmr.msra.gmra.mrb[8].mxu1 %vm293_vm2, %v31378_v36  ;;  %v986_v7 = vpop.permute.xlu1 %985  ;;  %v1140_v8 = vpop.permute.xlu0 %1139 }
 0x16a   :  { %28639 = vmatpush3.xpose.msk.msra.mxu1 %vm293_vm2, %v678_v3  ;;  %28640 = vmatprep.mubr.msk.f32.mxu1 %vm31188_vm1, %v36376_v24 }
 0x16b   :  { %28643 = vmatprep.subr.mxu1 %v36376_v24 }
 0x16d   :  { %28641 = vmatmul.mubr.msk.f32.vlgmr.msra.gmra.mrb[10].mxu1 %vm293_vm2, %v31380_v37  ;;  %v1294_v9 = vpop.permute.xlu1 %1293 }
 0x16e   :  { %28644 = vmatpush3.xpose.msk.msra.mxu1 %vm293_vm2, %v755_v4  ;;  %28645 = vmatprep.mubr.msk.f32.mxu1 %vm31188_vm1, %v36376_v24 }
 0x16f   :  { %28648 = vmatprep.subr.mxu1 %v36376_v24 }
 0x170   :  { %v1448_v10 = vpop.permute.xlu0 %1447 }
 0x171   :  { %28646 = vmatmul.mubr.msk.f32.vlgmr.msra.gmra.mrb[12].mxu1 %vm293_vm2, %v31386_v40 }
 0x172   :  { %28649 = vmatpush3.xpose.msk.msra.mxu1 %vm293_vm2, %v832_v5  ;;  %28650 = vmatprep.mubr.msk.f32.mxu1 %vm31188_vm1, %v36376_v24 }
 0x173   :  { %28653 = vmatprep.subr.mxu1 %v36376_v24 }
 0x174   :  { %v1602_v11 = vpop.permute.xlu1 %1601  ;;  %v1063_v12 = vpop.permute.xlu0 %1062 }
 0x175   :  { %28651 = vmatmul.mubr.msk.f32.vlgmr.msra.gmra.mrb[14].mxu1 %vm293_vm2, %v31388_v41  ;;  %28664 = vmatpush3.xpose.msk.msra.mxu0 %vm293_vm2, %v1063_v12 }
 0x176   :  { %28654 = vmatpush3.xpose.msk.msra.mxu1 %vm293_vm2, %v909_v6  ;;  %28655 = vmatprep.mubr.msk.f32.mxu1 %vm31188_vm1, %v36376_v24 }
 0x177   :  { %28673 = vmatprep.subr.mxu0 %v36376_v24  ;;  %28658 = vmatprep.subr.mxu1 %v36376_v24 }
 0x178   :  { %v1217_v13 = vpop.permute.xlu1 %1216  ;;  %28666 = vmatmul.mubr.msk.f32.vlgmr.msra.gmra.mrb[18].mxu0 %vm293_vm2, %v31414_v55  ;;  %v1371_v14 = vpop.permute.xlu0 %1370 }
 0x179   :  { %28656 = vmatmul.mubr.msk.f32.vlgmr.msra.gmra.mrb[16].mxu1 %vm293_vm2, %v31394_v44  ;;  %28674 = vmatpush3.xpose.msk.msra.mxu0 %vm293_vm2, %v1217_v13 }
 0x17a   :  { %28659 = vmatpush3.xpose.msk.msra.mxu1 %vm293_vm2, %v986_v7  ;;  %28675 = vmatprep.mubr.msk.f32.mxu0 %vm31188_vm1, %v36376_v24 }
 0x17b   :  { %28660 = vmatprep.mubr.msk.f32.mxu1 %vm31188_vm1, %v36376_v24  ;;  %28683 = vmatprep.subr.mxu0 %v36376_v24 }
 0x17c   :  { %28676 = vmatmul.mubr.msk.f32.vlgmr.msra.gmra.mrb[20].mxu0 %vm293_vm2, %v31420_v59  ;;  %28668 = vmatprep.subr.mxu1 %v36376_v24  ;;  %v1525_v15 = vpop.permute.xlu1 %1524 }
 0x17d   :  { %28661 = vmatmul.mubr.msk.f32.vlgmr.msra.gmra.mrb[18].mxu1 %vm293_vm2, %v31396_v45  ;;  %28684 = vmatpush3.xpose.msk.msra.mxu0 %vm293_vm2, %v1371_v14 }
 0x17e   :  { %28669 = vmatpush3.xpose.msk.msra.mxu1 %vm293_vm2, %v1140_v8  ;;  %28685 = vmatprep.mubr.msk.f32.mxu0 %vm31188_vm1, %v36376_v24 }
 0x17f   :  { %28670 = vmatprep.mubr.msk.f32.mxu1 %vm31188_vm1, %v36376_v24  ;;  %28693 = vmatprep.subr.mxu0 %v36376_v24 }
 0x180   :  { %28686 = vmatmul.mubr.msk.f32.vlgmr.msra.gmra.mrb[22].mxu0 %vm293_vm2, %v31422_v60  ;;  %28678 = vmatprep.subr.mxu1 %v36376_v24  ;;  %v1970_v16 = vpop.permute.xlu1 %1969 }
 0x181   :  { %28671 = vmatmul.mubr.msk.f32.vlgmr.msra.gmra.mrb[20].mxu1 %vm293_vm2, %v31402_v47  ;;  %28694 = vmatpush3.xpose.msk.msra.mxu0 %vm293_vm2, %v1525_v15 }
 0x182   :  { %28679 = vmatpush3.xpose.msk.msra.mxu1 %vm293_vm2, %v1294_v9  ;;  %28695 = vmatprep.mubr.msk.f32.mxu0 %vm31188_vm1, %v36376_v24 }
 0x183   :  { %28680 = vmatprep.mubr.msk.f32.mxu1 %vm31188_vm1, %v36376_v24  ;;  %28688 = vmatprep.subr.mxu1 %v36376_v24 }
 0x184   :  { %28696 = vmatmul.mubr.msk.f32.vlgmr.msra.gmra.mrb[24].mxu0 %vm293_vm2, %v31432_v61  ;;  %28703 = vmatprep.subr.mxu0 %v36376_v24 }
 0x185   :  { %28681 = vmatmul.mubr.msk.f32.vlgmr.msra.gmra.mrb[22].mxu1 %vm293_vm2, %v31408_v50  ;;  %28705 = vmatprep.mubr.msk.f32.mxu0 %vm31188_vm1, %v36376_v24 }
 0x186   :  { %28689 = vmatpush3.xpose.msk.msra.mxu1 %vm293_vm2, %v1448_v10  ;;  %28690 = vmatprep.mubr.msk.f32.mxu1 %vm31188_vm1, %v36376_v24 }
 0x187   :  { %28698 = vmatprep.subr.mxu1 %v36376_v24 }
 0x189   :  { %28691 = vmatmul.mubr.msk.f32.vlgmr.msra.gmra.mrb[24].mxu1 %vm293_vm2, %v31412_v53 }
 0x18a   :  { %28699 = vmatpush3.xpose.msk.msra.mxu1 %vm293_vm2, %v1602_v11  ;;  %28700 = vmatprep.mubr.msk.f32.mxu1 %vm31188_vm1, %v36376_v24 }
 0x18b   :  { %28708 = vmatprep.subr.mxu1 %v36376_v24 }
 0x18d   :  { %28701 = vmatmul.mubr.msk.f32.vlgmr.msra.gmra.mrb[26].mxu1 %vm293_vm2, %v31418_v57 }
 0x18e   :  { %28709 = vmatpush3.msra.mxu1 %v1970_v16  ;;  %28710 = vmatprep.mubr.msk.f32.mxu1 %vm31188_vm1, %v36376_v24 }
 0x18f   :  { %28718 = vmatprep.subr.mxu1 %v36376_v24 }
 0x22c   :  { %v31581_v17 = vpop.f32.mrb[0].mxu1 }
 0x22d   :  { %v28617_v18 = vpop.f32.mrb[1].mxu1 }
 0x230   :  { %v441_v19 = vpop.f32.mrb[2].mxu1 }
 0x231   :  { %v28622_v20 = vpop.f32.mrb[3].mxu1  ;;  %v31583_v21 = vmul.f32 0.35355338, %v441_v19 }
 0x233   :  { %v1698_v22 = vsel %vm293_vm2, %v31583_v21, -inf }
 0x234   :  { %1699 = vmax.xlane.f32.xlu0 %v1698_v22  ;;  %v31587_v23 = vpop.f32.mrb[4].mxu1 }
 0x235   :  { %v28627_v25 = vpop.f32.mrb[5].mxu1 }
 0x238   :  { %v595_v26 = vpop.f32.mrb[6].mxu1 }
 0x239   :  { %v28632_v27 = vpop.f32.mrb[7].mxu1  ;;  %v31589_v29 = vmul.f32 0.35355338, %v595_v26 }
 0x23b   :  { %v1704_v30 = vsel %vm293_vm2, %v31589_v29, -inf }
 0x23c   :  { %1705 = vmax.xlane.f32.xlu1 %v1704_v30  ;;  %v31593_v34 = vpop.f32.mrb[8].mxu1 }
 0x23d   :  { %v28637_v35 = vpop.f32.mrb[9].mxu1 }
 0x240   :  { %v749_v38 = vpop.f32.mrb[10].mxu1 }
 0x241   :  { %v28642_v39 = vpop.f32.mrb[11].mxu1  ;;  %v31595_v42 = vmul.f32 0.35355338, %v749_v38  ;;  %v31635_v38 = vpop.permute.xlu0 %2121 }
 0x243   :  { %v1710_v43 = vsel %vm293_vm2, %v31595_v42, -inf }
 0x244   :  { %1711 = vmax.xlane.f32.xlu0 %v1710_v43  ;;  %v31599_v46 = vpop.f32.mrb[12].mxu1 }
 0x245   :  { %v28647_v48 = vpop.f32.mrb[13].mxu1  ;;  %v31637_v39 = vpop.permute.xlu0 %2273 }
 0x248   :  { %v903_v49 = vpop.f32.mrb[14].mxu1 }
 0x249   :  { %v28652_v51 = vpop.f32.mrb[15].mxu1  ;;  %v31601_v52 = vmul.f32 0.35355338, %v903_v49  ;;  %v31643_v43 = vpop.permute.xlu0 %2425 }
 0x24b   :  { %v31603_v54 = vpop.f32.mrb[18].mxu0  ;;  %v1716_v56 = vsel %vm293_vm2, %v31601_v52, -inf }
 0x24c   :  { %1717 = vmax.xlane.f32.xlu0 %v1716_v56  ;;  %v31607_v58 = vpop.f32.mrb[16].mxu1  ;;  %v28667_v62 = vpop.f32.mrb[19].mxu0 }
 0x24d   :  { %v28657_v63 = vpop.f32.mrb[17].mxu1  ;;  %v31645_v48 = vpop.permute.xlu0 %2577 }
 0x24f   :  { %v31609_v0 = vpop.f32.mrb[20].mxu0 }
 0x250   :  { %v1057_v1 = vpop.f32.mrb[18].mxu1  ;;  %v28677_v2 = vpop.f32.mrb[21].mxu0 }
 0x251   :  { %v28662_v3 = vpop.f32.mrb[19].mxu1  ;;  %v31611_v4 = vmul.f32 0.35355338, %v1057_v1  ;;  %v31647_v49 = vpop.permute.xlu0 %2729 }
 0x253   :  { %v31613_v5 = vpop.f32.mrb[22].mxu0  ;;  %v1722_v6 = vsel %vm293_vm2, %v31611_v4, -inf }
 0x254   :  { %1723 = vmax.xlane.f32.xlu1 %v1722_v6  ;;  %v1211_v7 = vpop.f32.mrb[20].mxu1  ;;  %v28687_v8 = vpop.f32.mrb[23].mxu0 }
 0x255   :  { %v28672_v9 = vpop.f32.mrb[21].mxu1  ;;  %v31617_v10 = vmul.f32 0.35355338, %v1211_v7  ;;  %v31649_v51 = vpop.permute.xlu0 %2881 }
 0x256   :  { %v31665_v7 = vpop.permute.xlu1 %3341 }
 0x257   :  { %v31619_v11 = vpop.f32.mrb[24].mxu0  ;;  %v1728_v12 = vsel %vm293_vm2, %v31617_v10, -inf }
 0x258   :  { %1729 = vmax.xlane.f32.xlu0 %v1728_v12  ;;  %v1365_v13 = vpop.f32.mrb[22].mxu1  ;;  %v28697_v14 = vpop.f32.mrb[25].mxu0 }
 0x259   :  { %v28682_v15 = vpop.f32.mrb[23].mxu1  ;;  %v31623_v16 = vmul.f32 0.35355338, %v1365_v13  ;;  %v31651_v56 = vpop.permute.xlu0 %3033 }
 0x25a   :  { %v31669_v9 = vpop.permute.xlu1 %3651 }
 0x25b   :  { %v1734_v18 = vsel %vm293_vm2, %v31623_v16, -inf }
 0x25c   :  { %1735 = vmax.xlane.f32.xlu1 %v1734_v18  ;;  %v1519_v19 = vpop.f32.mrb[24].mxu1 }
 0x25d   :  { %v28692_v20 = vpop.f32.mrb[25].mxu1  ;;  %v31627_v22 = vmul.f32 0.35355338, %v1519_v19  ;;  %v31653_v62 = vpop.permute.xlu0 %3185 }
 0x25e   :  { %v31672_v15 = vpop.permute.xlu1 %3807 }
 0x25f   :  { %v1740_v25 = vsel %vm293_vm2, %v31627_v22, -inf }
 0x260   :  { %1741 = vmax.xlane.f32.xlu0 %v1740_v25  ;;  %v1673_v26 = vpop.f32.mrb[26].mxu1 }
 0x261   :  { %v28702_v27 = vpop.f32.mrb[27].mxu1  ;;  %v31631_v30 = vmul.f32 0.35355338, %v1673_v26  ;;  %v31655_v63 = vpop.permute.xlu0 %3339 }
 0x263   :  { %v1746_v35 = vsel %vm293_vm2, %v31631_v30, -inf }
 0x264   :  { %1747 = vmax.xlane.f32.xlu1 %v1746_v35 }
 0x265   :  { %v31657_v1 = vpop.permute.xlu0 %3497 }
 0x269   :  { %v31659_v2 = vpop.permute.xlu0 %3495 }
 0x26d   :  { %v31661_v3 = vpop.permute.xlu0 %3653 }
 0x271   :  { %v31663_v6 = vpop.permute.xlu0 %3809 }
 0x275   :  { %3963 = vrot.lane.b32.xlu1 %v31396_v45, %s31192_s19  ;;  %v31667_v8 = vpop.permute.xlu0 %3965 }
 0x276   :  { %4121 = vrot.lane.b32.xlu0 %v31402_v47, %s31191_s18 }
 0x2c1   :  { %v1700_v12 = vpop.xlane.xlu0 %1699 }
 0x2c2   :  { %v1750_v13 = vsub.f32 %v31583_v21, %v1700_v12 }
 0x2c4   :  { %v1769_v14 = vmul.f32 1.442695, %v1750_v13 }
 0x2c6   :  { %30503 = vpow2.f32 %v1769_v14 }
 0x2c9   :  { %v1706_v18 = vpop.xlane.xlu1 %1705 }
 0x2ca   :  { %v1752_v19 = vsub.f32 %v31589_v29, %v1706_v18 }
 0x2cc   :  { %v1773_v20 = vmul.f32 1.442695, %v1752_v19 }
 0x2ce   :  { %30505 = vpow2.f32 %v1773_v20 }
 0x2d0   :  { %v31675_v25 = vpop.eup %30503 }
 0x2d1   :  { %v1712_v26 = vpop.xlane.xlu0 %1711  ;;  %v1806_v27 = vsel %vm293_vm2, %v31675_v25, 0.0 }
 0x2d2   :  { %v1754_v35 = vsub.f32 %v31595_v42, %v1712_v26  ;;  %1807 = vadd.xlane.f32.xlu0 %v1806_v27 }
 0x2d4   :  { %v1777_v24 = vmul.f32 1.442695, %v1754_v35 }
 0x2d6   :  { %30507 = vpow2.f32 %v1777_v24 }
 0x2d8   :  { %v31680_v21 = vpop.eup %30505 }
 0x2d9   :  { %v1718_v12 = vpop.xlane.xlu0 %1717  ;;  %v1812_v13 = vsel %vm293_vm2, %v31680_v21, 0.0 }
 0x2da   :  { %v1756_v29 = vsub.f32 %v31601_v52, %v1718_v12  ;;  %1813 = vadd.xlane.f32.xlu1 %v1812_v13 }
 0x2dc   :  { %v1781_v14 = vmul.f32 1.442695, %v1756_v29 }
 0x2de   :  { %30509 = vpow2.f32 %v1781_v14 }
 0x2e0   :  { %v31685_v18 = vpop.eup %30507 }
 0x2e1   :  { %v1724_v19 = vpop.xlane.xlu1 %1723  ;;  %v1818_v42 = vsel %vm293_vm2, %v31685_v18, 0.0 }
 0x2e2   :  { %v1758_v20 = vsub.f32 %v31611_v4, %v1724_v19  ;;  %1819 = vadd.xlane.f32.xlu0 %v1818_v42 }
 0x2e4   :  { %v1785_v24 = vmul.f32 1.442695, %v1758_v20 }
 0x2e5   :  { %v1730_v26 = vpop.xlane.xlu0 %1729 }
 0x2e6   :  { %30511 = vpow2.f32 %v1785_v24  ;;  %v1760_v27 = vsub.f32 %v31617_v10, %v1730_v26 }
 0x2e8   :  { %v31691_v35 = vpop.eup %30509  ;;  %v1789_v52 = vmul.f32 1.442695, %v1760_v27 }
 0x2e9   :  { %v1736_v12 = vpop.xlane.xlu1 %1735  ;;  %v1824_v13 = vsel %vm293_vm2, %v31691_v35, 0.0 }
 0x2ea   :  { %30513 = vpow2.f32 %v1789_v52  ;;  %v1762_v29 = vsub.f32 %v31623_v16, %v1736_v12  ;;  %1825 = vadd.xlane.f32.xlu1 %v1824_v13 }
 0x2ec   :  { %v1793_v14 = vmul.f32 1.442695, %v1762_v29  ;;  %v31727_v29 = vmul.f32 0.35355338, %v31581_v17 }
 0x2ed   :  { %v1742_v45 = vpop.xlane.xlu0 %1741 }
 0x2ee   :  { %30515 = vpow2.f32 %v1793_v14  ;;  %v1764_v4 = vsub.f32 %v31627_v22, %v1742_v45  ;;  %v1695_v14 = vsel %vm293_vm2, %v31727_v29, -inf }
 0x2f0   :  { %v31697_v19 = vpop.eup %30511  ;;  %v1797_v42 = vmul.f32 1.442695, %v1764_v4  ;;  %v31732_v4 = vmul.f32 0.35355338, %v31587_v23 }
 0x2f1   :  { %v1748_v10 = vpop.xlane.xlu1 %1747  ;;  %v1830_v20 = vsel %vm293_vm2, %v31697_v19, 0.0  ;;  %v31747_v17 = vpop.permute.xlu0 %4121 }
 0x2f2   :  { %30517 = vpow2.f32 %v1797_v42  ;;  %v1766_v24 = vsub.f32 %v31631_v30, %v1748_v10  ;;  %1831 = vadd.xlane.f32.xlu0 %v1830_v20  ;;  %v1701_v42 = vsel %vm293_vm2, %v31732_v4, -inf  ;;  %v31737_v10 = vmul.f32 0.35355338, %v31593_v34 }
 0x2f4   :  { %v31702_v26 = vpop.eup %30513  ;;  %v1801_v16 = vmul.f32 1.442695, %v1766_v24  ;;  %v1707_v20 = vsel %vm293_vm2, %v31737_v10, -inf }
 0x2f5   :  { %v1836_v27 = vsel %vm293_vm2, %v31702_v26, 0.0  ;;  %v31749_v34 = vpop.permute.xlu1 %3963 }
 0x2f6   :  { %30519 = vpow2.f32 %v1801_v16  ;;  %1837 = vadd.xlane.f32.xlu1 %v1836_v27 }
 0x2f8   :  { %v31706_v45 = vpop.eup %30515 }
 0x2f9   :  { %v1842_v22 = vsel %vm293_vm2, %v31706_v45, 0.0 }
 0x2fa   :  { %1843 = vadd.xlane.f32.xlu0 %v1842_v22  ;;  %v31753_v22 = vmul.f32 0.35355338, %v31599_v46 }
 0x2fc   :  { %v31710_v52 = vpop.eup %30517 }
 0x2fd   :  { %v1848_v30 = vsel %vm293_vm2, %v31710_v52, 0.0 }
 0x2fe   :  { %1849 = vadd.xlane.f32.xlu0 %v1848_v30  ;;  %v31758_v30 = vmul.f32 0.35355338, %v31603_v54 }
 0x300   :  { %v31714_v12 = vpop.eup %30519 }
 0x301   :  { %v1854_v13 = vsel %vm293_vm2, %v31714_v12, 0.0 }
 0x302   :  { %1855 = vadd.xlane.f32.xlu1 %v1854_v13  ;;  %v36411_v13 = vmov 0.0  }
 0x313   :  { %4119 = vrot.lane.b32.xlu1 %v31402_v47, %s31192_s19 }
 0x314   :  { %4277 = vrot.lane.b32.xlu0 %v31408_v50, %s31191_s18 }
 0x318   :  { %4275 = vrot.lane.b32.xlu0 %v31408_v50, %s31192_s19 }
 0x31c   :  { %4433 = vrot.lane.b32.xlu0 %v31412_v53, %s31191_s18 }
 0x337   :  { %1696 = vmax.xlane.f32.xlu1 %v1695_v14 }
 0x33b   :  { %1702 = vmax.xlane.f32.xlu0 %v1701_v42  ;;  %v1713_v42 = vsel %vm293_vm2, %v31753_v22, -inf }
 0x33f   :  { %1708 = vmax.xlane.f32.xlu0 %v1707_v20  ;;  %v31765_v20 = vmul.f32 0.35355338, %v31607_v58  ;;  %v31784_v58 = vmul.f32 0.35355338, %v31619_v11 }
 0x341   :  { %v1719_v54 = vsel %vm293_vm2, %v31765_v20, -inf }
 0x348   :  { %4431 = vrot.lane.b32.xlu1 %v31412_v53, %s31192_s19 }
 0x34c   :  { %4587 = vrot.lane.b32.xlu1 %v31418_v57, %s31192_s19 }
 0x355   :  { %4589 = vrot.lane.b32.xlu0 %v31418_v57, %s31191_s18 }
 0x35f   :  { %v1808_v23 = vpop.xlane.xlu0 %1807 }
 0x360   :  { %30521 = vrcp.f32 %v1808_v23  ;;  %v31774_v23 = vmul.f32 0.35355338, %v31609_v0 }
 0x362   :  { %v1731_v0 = vsel %vm293_vm2, %v31774_v23, -inf }
 0x367   :  { %v1814_v24 = vpop.xlane.xlu1 %1813 }
 0x368   :  { %30523 = vrcp.f32 %v1814_v24  ;;  %v31777_v24 = vmul.f32 0.35355338, %v31613_v5 }
 0x36a   :  { %v30522_v16 = vpop.eup %30521  ;;  %v1737_v5 = vsel %vm293_vm2, %v31777_v24, -inf }
 0x36b   :  { %v1860_v27 = vmul.f32 %v30522_v16, %v31675_v25 }
 0x36d   :  { %28711 = vmatmul.mubr.msk.f32.vlgmr.msra.gmra.mrb[28].mxu1 %vm293_vm2, %v1860_v27 }
 0x36e   :  { %28719 = vmatpush3.msra.mxu1 %v31635_v38  ;;  %28720 = vmatprep.mubr.msk.f32.mxu1 %vm31188_vm1, %v36411_v13  ;;  %v1725_v38 = vsel %vm293_vm2, %v31758_v30, -inf }
 0x36f   :  { %v1820_v14 = vpop.xlane.xlu0 %1819  ;;  %28728 = vmatprep.subr.mxu1 %v36411_v13 }
 0x370   :  { %30525 = vrcp.f32 %v1820_v14  ;;  %1714 = vmax.xlane.f32.xlu1 %v1713_v42 }
 0x372   :  { %v30524_v46 = vpop.eup %30523 }
 0x373   :  { %v1864_v25 = vmul.f32 %v30524_v46, %v31680_v21 }
 0x374   :  { %1726 = vmax.xlane.f32.xlu1 %v1725_v38  ;;  %1720 = vmax.xlane.f32.xlu0 %v1719_v54 }
 0x375   :  { %28721 = vmatmul.mubr.msk.f32.vlgmr.msra.gmra.mrb[30].mxu1 %vm293_vm2, %v1864_v25 }
 0x376   :  { %28729 = vmatpush3.msra.mxu1 %v31637_v39  ;;  %28730 = vmatprep.mubr.msk.f32.mxu1 %vm31188_vm1, %v36411_v13  ;;  %v1743_v39 = vsel %vm293_vm2, %v31784_v58, -inf }
 0x377   :  { %v1826_v16 = vpop.xlane.xlu1 %1825  ;;  %28738 = vmatprep.subr.mxu1 %v36411_v13 }
 0x378   :  { %30527 = vrcp.f32 %v1826_v16  ;;  %1732 = vmax.xlane.f32.xlu1 %v1731_v0  ;;  %1738 = vmax.xlane.f32.xlu0 %v1737_v5 }
 0x37a   :  { %v30526_v21 = vpop.eup %30525 }
 0x37b   :  { %v1868_v27 = vmul.f32 %v30526_v21, %v31685_v18 }
 0x37c   :  { %1744 = vmax.xlane.f32.xlu1 %v1743_v39 }
 0x37d   :  { %28731 = vmatmul.mubr.msk.f32.vlgmr.msra.gmra.mrb[32].mxu1 %vm293_vm2, %v1868_v27 }
 0x37e   :  { %28739 = vmatpush3.msra.mxu1 %v31643_v43  ;;  %28740 = vmatprep.mubr.msk.f32.mxu1 %vm31188_vm1, %v36411_v13 }
 0x37f   :  { %v1832_v11 = vpop.xlane.xlu0 %1831  ;;  %28748 = vmatprep.subr.mxu1 %v36411_v13 }
 0x380   :  { %30529 = vrcp.f32 %v1832_v11 }
 0x382   :  { %v30528_v14 = vpop.eup %30527 }
 0x383   :  { %v1838_v42 = vpop.xlane.xlu1 %1837  ;;  %v1872_v46 = vmul.f32 %v30528_v14, %v31691_v35 }
 0x384   :  { %30531 = vrcp.f32 %v1838_v42 }
 0x385   :  { %28741 = vmatmul.mubr.msk.f32.vlgmr.msra.gmra.mrb[34].mxu1 %vm293_vm2, %v1872_v46 }
 0x386   :  { %28749 = vmatpush3.msra.mxu1 %v31645_v48  ;;  %28750 = vmatprep.mubr.msk.f32.mxu1 %vm31188_vm1, %v36411_v13 }
 0x387   :  { %v1844_v43 = vpop.xlane.xlu0 %1843  ;;  %28758 = vmatprep.subr.mxu1 %v36411_v13 }
 0x388   :  { %30533 = vrcp.f32 %v1844_v43 }
 0x38a   :  { %v30530_v18 = vpop.eup %30529 }
 0x38b   :  { %v1850_v38 = vpop.xlane.xlu0 %1849  ;;  %v1876_v54 = vmul.f32 %v30530_v18, %v31697_v19 }
 0x38c   :  { %30535 = vrcp.f32 %v1850_v38 }
 0x38d   :  { %28751 = vmatmul.mubr.msk.f32.vlgmr.msra.gmra.mrb[36].mxu1 %vm293_vm2, %v1876_v54 }
 0x38e   :  { %v30532_v35 = vpop.eup %30531  ;;  %28759 = vmatpush3.msra.mxu1 %v31647_v49  ;;  %28760 = vmatprep.mubr.msk.f32.mxu1 %vm31188_vm1, %v36411_v13 }
 0x38f   :  { %v1856_v48 = vpop.xlane.xlu1 %1855  ;;  %28768 = vmatprep.subr.mxu1 %v36411_v13  ;;  %v1880_v25 = vmul.f32 %v30532_v35, %v31702_v26 }
 0x390   :  { %30537 = vrcp.f32 %v1856_v48 }
 0x391   :  { %28761 = vmatmul.mubr.msk.f32.vlgmr.msra.gmra.mrb[38].mxu1 %vm293_vm2, %v1880_v25 }
 0x392   :  { %v30534_v16 = vpop.eup %30533  ;;  %28769 = vmatpush3.msra.mxu1 %v31649_v51  ;;  %28770 = vmatprep.mubr.msk.f32.mxu1 %vm31188_vm1, %v36411_v13 }
 0x393   :  { %28778 = vmatprep.subr.mxu1 %v36411_v13  ;;  %v1884_v49 = vmul.f32 %v30534_v16, %v31706_v45 }
 0x395   :  { %28771 = vmatmul.mubr.msk.f32.vlgmr.msra.gmra.mrb[40].mxu1 %vm293_vm2, %v1884_v49 }
 0x396   :  { %v30536_v19 = vpop.eup %30535  ;;  %28779 = vmatpush3.msra.mxu1 %v31651_v56  ;;  %28780 = vmatprep.mubr.msk.f32.mxu1 %vm31188_vm1, %v36411_v13  ;;  %v4278_v56 = vpop.permute.xlu0 %4277 }
 0x397   :  { %28788 = vmatprep.subr.mxu1 %v36411_v13  ;;  %v1888_v26 = vmul.f32 %v30536_v19, %v31710_v52 }
 0x399   :  { %28781 = vmatmul.mubr.msk.f32.vlgmr.msra.gmra.mrb[42].mxu1 %vm293_vm2, %v1888_v26 }
 0x39a   :  { %v30538_v51 = vpop.eup %30537  ;;  %28789 = vmatpush3.msra.mxu1 %v31653_v62  ;;  %28790 = vmatprep.mubr.msk.f32.mxu1 %vm31188_vm1, %v36411_v13  ;;  %v4276_v62 = vpop.permute.xlu0 %4275 }
 0x39b   :  { %v1892_v45 = vmul.f32 %v30538_v51, %v31714_v12  ;;  %28798 = vmatprep.subr.mxu1 %v36411_v13 }
 0x39d   :  { %28791 = vmatmul.mubr.msk.f32.vlgmr.msra.gmra.mrb[44].mxu1 %vm293_vm2, %v1892_v45 }
 0x39e   :  { %28800 = vmatprep.mubr.msk.f32.mxu1 %vm31188_vm1, %v36411_v13 }
 0x3a1   :  { %28799 = vmatpush3.xpose.msk.msra.mxu1 %vm293_vm2, %v31665_v7 }
 0x3a2   :  { %28808 = vmatprep.subr.mxu1 %v36411_v13 }
 0x3a4   :  { %28801 = vmatmul.mubr.msk.f32.vlgmr.msra.gmra.mrb[46].mxu1 %vm293_vm2, %v31655_v63  ;;  %v4120_v63 = vpop.permute.xlu1 %4119 }
 0x3a5   :  { %28809 = vmatpush3.xpose.msk.msra.mxu1 %vm293_vm2, %v31657_v1  ;;  %28810 = vmatprep.mubr.msk.f32.mxu1 %vm31188_vm1, %v36411_v13  ;;  %v4434_v1 = vpop.permute.xlu0 %4433 }
 0x3a6   :  { %28818 = vmatprep.subr.mxu1 %v36411_v13 }
 0x3a8   :  { %28811 = vmatmul.mubr.msk.f32.vlgmr.msra.gmra.mrb[48].mxu1 %vm293_vm2, %v31659_v2 }
 0x3a9   :  { %28819 = vmatpush3.xpose.msk.msra.mxu1 %vm293_vm2, %v31661_v3  ;;  %28820 = vmatprep.mubr.msk.f32.mxu1 %vm31188_vm1, %v36411_v13 }
 0x3aa   :  { %28828 = vmatprep.subr.mxu1 %v36411_v13 }
 0x3ac   :  { %28821 = vmatmul.mubr.msk.f32.vlgmr.msra.gmra.mrb[50].mxu1 %vm293_vm2, %v31669_v9 }
 0x3ad   :  { %28829 = vmatpush3.xpose.msk.msra.mxu1 %vm293_vm2, %v31663_v6  ;;  %28830 = vmatprep.mubr.msk.f32.mxu1 %vm31188_vm1, %v36411_v13 }
 0x3ae   :  { %28838 = vmatprep.subr.mxu1 %v36411_v13 }
 0x3b0   :  { %28831 = vmatmul.mubr.msk.f32.vlgmr.msra.gmra.mrb[52].mxu1 %vm293_vm2, %v31672_v15 }
 0x3b1   :  { %28839 = vmatpush3.xpose.msk.msra.mxu1 %vm293_vm2, %v31667_v8  ;;  %28840 = vmatprep.mubr.msk.f32.mxu1 %vm31188_vm1, %v36411_v13 }
 0x3b2   :  { %28848 = vmatprep.subr.mxu1 %v36411_v13 }
 0x3b4   :  { %28841 = vmatmul.mubr.msk.f32.vlgmr.msra.gmra.mrb[54].mxu1 %vm293_vm2, %v31749_v34 }
 0x3b5   :  { %28849 = vmatpush3.xpose.msk.msra.mxu1 %vm293_vm2, %v31747_v17  ;;  %28850 = vmatprep.mubr.msk.f32.mxu1 %vm31188_vm1, %v36411_v13 }
 0x3b6   :  { %28858 = vmatprep.subr.mxu1 %v36411_v13 }
 0x3b8   :  { %28851 = vmatmul.mubr.msk.f32.vlgmr.msra.gmra.mrb[56].mxu1 %vm293_vm2, %v4120_v63 }
 0x3b9   :  { %28859 = vmatpush3.xpose.msk.msra.mxu1 %vm293_vm2, %v4278_v56  ;;  %28860 = vmatprep.mubr.msk.f32.mxu1 %vm31188_vm1, %v36411_v13 }
 0x3ba   :  { %28868 = vmatprep.subr.mxu1 %v36411_v13 }
 0x3bc   :  { %28861 = vmatmul.mubr.msk.f32.vlgmr.msra.gmra.mrb[58].mxu1 %vm293_vm2, %v4276_v62 }
 0x3bd   :  { %28869 = vmatpush3.xpose.msk.msra.mxu1 %vm293_vm2, %v4434_v1  ;;  %28870 = vmatprep.mubr.msk.f32.mxu1 %vm31188_vm1, %v36411_v13 }
 0x3be   :  { %28878 = vmatprep.subr.mxu1 %v36411_v13 }
 0x3c4   :  { %v1697_v2 = vpop.xlane.xlu1 %1696 }
 0x3c5   :  { %v1749_v3 = vsub.f32 %v31727_v29, %v1697_v2 }
 0x3c7   :  { %v1767_v6 = vmul.f32 1.442695, %v1749_v3 }
 0x3c8   :  { %v4432_v7 = vpop.permute.xlu1 %4431  ;;  %v1703_v8 = vpop.xlane.xlu0 %1702 }
 0x3c9   :  { %30539 = vpow2.f32 %v1767_v6  ;;  %v1751_v9 = vsub.f32 %v31732_v4, %v1703_v8  ;;  %28871 = vmatmul.mubr.msk.f32.vlgmr.msra.gmra.mrb[60].mxu1 %vm293_vm2, %v4432_v7 }
 0x3ca   :  { %28880 = vmatprep.mubr.msk.f32.mxu1 %vm31188_vm1, %v36411_v13 }
 0x3cb   :  { %v1771_v15 = vmul.f32 1.442695, %v1751_v9 }
 0x3cc   :  { %v1709_v52 = vpop.xlane.xlu0 %1708  ;;  %v4588_v4 = vpop.permute.xlu1 %4587 }
 0x3cd   :  { %30541 = vpow2.f32 %v1771_v15  ;;  %v1753_v12 = vsub.f32 %v31737_v10, %v1709_v52 }
 0x3cf   :  { %v1775_v17 = vmul.f32 1.442695, %v1753_v12 }
 0x3d0   :  { %v4590_v34 = vpop.permute.xlu0 %4589 }
 0x3d1   :  { %30543 = vpow2.f32 %v1775_v17  ;;  %28879 = vmatpush3.xpose.msk.msra.mxu1 %vm293_vm2, %v4590_v34 }
 0x3d2   :  { %28888 = vmatprep.subr.mxu1 %v36411_v13 }
 0x3d3   :  { %v31889_v29 = vpop.eup %30539 }
 0x3d4   :  { %28881 = vmatmul.mubr.msk.f32.vlgmr.msra.gmra.mrb[62].mxu1 %vm293_vm2, %v4588_v4  ;;  %v1803_v0 = vsel %vm293_vm2, %v31889_v29, 0.0 }
 0x3d5   :  { %1804 = vadd.xlane.f32.xlu0 %v1803_v0  ;;  %28890 = vmatprep.mubr.msk.f32.mxu1 %vm31188_vm1, %v36411_v13 }
 0x3d7   :  { %v31896_v10 = vpop.eup %30541 }
 0x3d8   :  { %v1809_v5 = vsel %vm293_vm2, %v31896_v10, 0.0 }
 0x3d9   :  { %1810 = vadd.xlane.f32.xlu1 %v1809_v5 }
 0x3db   :  { %v31900_v21 = vpop.eup %30543 }
 0x3dc   :  { %v1815_v39 = vsel %vm293_vm2, %v31900_v21, 0.0 }
 0x3dd   :  { %1816 = vadd.xlane.f32.xlu0 %v1815_v39 }
 0x3fd   :  { %v1715_v27 = vpop.xlane.xlu1 %1714 }
 0x3fe   :  { %v1755_v11 = vsub.f32 %v31753_v22, %v1715_v27 }
 0x400   :  { %v1779_v14 = vmul.f32 1.442695, %v1755_v11 }
 0x401   :  { %v1727_v42 = vpop.xlane.xlu1 %1726  ;;  %v1721_v46 = vpop.xlane.xlu0 %1720 }
 0x402   :  { %30545 = vpow2.f32 %v1779_v14  ;;  %v1759_v43 = vsub.f32 %v31758_v30, %v1727_v42  ;;  %v1757_v18 = vsub.f32 %v31765_v20, %v1721_v46 }
 0x404   :  { %v1787_v38 = vmul.f32 1.442695, %v1759_v43  ;;  %v1783_v54 = vmul.f32 1.442695, %v1757_v18 }
 0x405   :  { %v1733_v35 = vpop.xlane.xlu1 %1732  ;;  %v1739_v48 = vpop.xlane.xlu0 %1738 }
 0x406   :  { %30547 = vpow2.f32 %v1787_v38  ;;  %v1761_v25 = vsub.f32 %v31774_v23, %v1733_v35  ;;  %v1763_v16 = vsub.f32 %v31777_v24, %v1739_v48 }
 0x407   :  { %30549 = vpow2.f32 %v1783_v54 }
 0x408   :  { %v1791_v49 = vmul.f32 1.442695, %v1761_v25  ;;  %v1795_v22 = vmul.f32 1.442695, %v1763_v16 }
 0x409   :  { %v1745_v63 = vpop.xlane.xlu1 %1744 }
 0x40a   :  { %30551 = vpow2.f32 %v1791_v49  ;;  %v1765_v1 = vsub.f32 %v31784_v58, %v1745_v63  ;;  %v36421_v49 = vld [vmem:[#allocation6_spill] sm:$0xff] }
 0x40b   :  { %30553 = vpow2.f32 %v1795_v22 }
 0x40c   :  { %v31909_v19 = vpop.eup %30545  ;;  %v1799_v2 = vmul.f32 1.442695, %v1765_v1 }
 0x40d   :  { %v1821_v30 = vsel %vm293_vm2, %v31909_v19, 0.0 }
 0x40e   :  { %1822 = vadd.xlane.f32.xlu1 %v1821_v30  ;;  %30555 = vpow2.f32 %v1799_v2 }
 0x410   :  { %v31913_v20 = vpop.eup %30547 }
 0x411   :  { %v31915_v26 = vpop.eup %30549  ;;  %v1833_v23 = vsel %vm293_vm2, %v31913_v20, 0.0 }
 0x412   :  { %1834 = vadd.xlane.f32.xlu1 %v1833_v23  ;;  %v1827_v24 = vsel %vm293_vm2, %v31915_v26, 0.0 }
 0x413   :  { %1828 = vadd.xlane.f32.xlu0 %v1827_v24 }
 0x414   :  { %v31921_v51 = vpop.eup %30551 }
 0x415   :  { %v1839_v45 = vsel %vm293_vm2, %v31921_v51, 0.0  ;;  %v31925_v56 = vpop.eup %30553 }
 0x416   :  { %v1845_v62 = vsel %vm293_vm2, %v31925_v56, 0.0 }
 0x417   :  { %1840 = vadd.xlane.f32.xlu0 %v1839_v45 }
 0x418   :  { %v31944_v6 = vpop.eup %30555 }
 0x419   :  { %v1851_v7 = vsel %vm293_vm2, %v31944_v6, 0.0 }
 0x41b   :  { %1846 = vadd.xlane.f32.xlu0 %v1845_v62 }
 0x423   :  { %1893 = vrot.lane.b32.xlu1 %v31364_v28, %s31190_s2 }
 0x431   :  { %2045 = vrot.lane.b32.xlu0 %v31370_v32, %s31190_s2 }
 0x435   :  { %2197 = vrot.lane.b32.xlu0 %v31378_v36, %s31190_s2 }
 0x439   :  { %2349 = vrot.lane.b32.xlu0 %v31386_v40, %s31190_s2 }
 0x43d   :  { %2501 = vrot.lane.b32.xlu0 %v31394_v44, %s31190_s2 }
 0x440   :  { %v31940_v3 = vpop.f32.mrb[28].mxu1 }
 0x441   :  { %36412 = vst [vmem:[#allocation7_spill] sm:$0xff] %v31940_v3  ;;  %2653 = vrot.lane.b32.xlu0 %v31414_v55, %s31190_s2  ;;  %v28712_v58 = vpop.f32.mrb[29].mxu1 }
 0x445   :  { %2805 = vrot.lane.b32.xlu0 %v31420_v59, %s31190_s2 }
 0x447   :  { %1852 = vadd.xlane.f32.xlu1 %v1851_v7 }
 0x448   :  { %v31950_v8 = vpop.f32.mrb[30].mxu1 }
 0x449   :  { %36413 = vst [vmem:[#allocation8_spill] sm:$0xff] %v31950_v8  ;;  %2957 = vrot.lane.b32.xlu0 %v31422_v60, %s31190_s2  ;;  %v28722_v9 = vpop.f32.mrb[31].mxu1 }
 0x44d   :  { %3109 = vrot.lane.b32.xlu0 %v31432_v61, %s31190_s2 }
 0x450   :  { %v31956_v15 = vpop.f32.mrb[32].mxu1 }
 0x451   :  { %36414 = vst [vmem:[#allocation9_spill] sm:$0xff] %v31956_v15  ;;  %3261 = vrot.lane.b32.xlu0 %v31364_v28, %s31192_s19  ;;  %v28732_v52 = vpop.f32.mrb[33].mxu1 }
 0x455   :  { %3419 = vrot.lane.b32.xlu0 %v31370_v32, %s31191_s18 }
 0x458   :  { %v31962_v12 = vpop.f32.mrb[34].mxu1  ;;  %3263 = vrot.lane.b32.xlu1 %v31364_v28, %s31191_s18 }
 0x459   :  { %36415 = vst [vmem:[#allocation10_spill] sm:$0xff] %v31962_v12  ;;  %3417 = vrot.lane.b32.xlu0 %v31370_v32, %s31192_s19  ;;  %v28742_v17 = vpop.f32.mrb[35].mxu1 }
 0x45c   :  { %3573 = vrot.lane.b32.xlu1 %v31378_v36, %s31192_s19 }
 0x45d   :  { %3575 = vrot.lane.b32.xlu0 %v31378_v36, %s31191_s18 }
 0x460   :  { %v31972_v34 = vpop.f32.mrb[36].mxu1  ;;  %3729 = vrot.lane.b32.xlu1 %v31386_v40, %s31192_s19 }
 0x461   :  { %36416 = vst [vmem:[#allocation11_spill] sm:$0xff] %v31972_v34  ;;  %3731 = vrot.lane.b32.xlu0 %v31386_v40, %s31191_s18  ;;  %v28752_v4 = vpop.f32.mrb[37].mxu1 }
 0x462   :  { %v1805_v63 = vpop.xlane.xlu0 %1804 }
 0x463   :  { %30557 = vrcp.f32 %v1805_v63 }
 0x464   :  { %v31978_v0 = vpop.f32.mrb[38].mxu1  ;;  %3885 = vrot.lane.b32.xlu1 %v31394_v44, %s31192_s19 }
 0x465   :  { %36417 = vst [vmem:[#allocation12_spill] sm:$0xff] %v31978_v0  ;;  %3887 = vrot.lane.b32.xlu0 %v31394_v44, %s31191_s18  ;;  %v28762_v5 = vpop.f32.mrb[39].mxu1 }
 0x466   :  { %v1811_v1 = vpop.xlane.xlu1 %1810 }
 0x467   :  { %30559 = vrcp.f32 %v1811_v1 }
 0x468   :  { %v31984_v39 = vpop.f32.mrb[40].mxu1  ;;  %4041 = vrot.lane.b32.xlu1 %v31414_v55, %s31192_s19 }
 0x469   :  { %36418 = vst [vmem:[#allocation13_spill] sm:$0xff] %v31984_v39  ;;  %4043 = vrot.lane.b32.xlu0 %v31414_v55, %s31191_s18  ;;  %v28772_v27 = vpop.f32.mrb[41].mxu1 }
 0x46a   :  { %v1817_v58 = vpop.xlane.xlu0 %1816 }
 0x46b   :  { %30561 = vrcp.f32 %v1817_v58 }
 0x46c   :  { %v31990_v11 = vpop.f32.mrb[42].mxu1  ;;  %4197 = vrot.lane.b32.xlu1 %v31420_v59, %s31192_s19 }
 0x46d   :  { %36419 = vst [vmem:[#allocation14_spill] sm:$0xff] %v31990_v11  ;;  %4199 = vrot.lane.b32.xlu0 %v31420_v59, %s31191_s18  ;;  %v28782_v14 = vpop.f32.mrb[43].mxu1  ;;  %v30558_v17 = vpop.eup %30557 }
 0x46e   :  { %v1858_v27 = vmul.f32 %v30558_v17, %v31889_v29 }
 0x470   :  { %v31996_v42 = vpop.f32.mrb[44].mxu1  ;;  %4353 = vrot.lane.b32.xlu1 %v31422_v60, %s31192_s19 }
 0x471   :  { %36420 = vst [vmem:[#allocation15_spill] sm:$0xff] %v31996_v42  ;;  %4355 = vrot.lane.b32.xlu0 %v31422_v60, %s31191_s18  ;;  %v28792_v46 = vpop.f32.mrb[45].mxu1 }
 0x474   :  { %4509 = vrot.lane.b32.xlu1 %v31432_v61, %s31192_s19 }
 0x475   :  { %4511 = vrot.lane.b32.xlu0 %v31432_v61, %s31191_s18 }
 0x477   :  { %v32006_v43 = vpop.f32.mrb[46].mxu1 }
 0x478   :  { %v28802_v18 = vpop.f32.mrb[47].mxu1  ;;  %4957 = vrot.lane.b32.xlu1 %v31368_v31, %s31193_s20 }
 0x479   :  { %5109 = vrot.lane.b32.xlu0 %v31372_v33, %s31193_s20 }
 0x47b   :  { %v32012_v38 = vpop.f32.mrb[48].mxu1 }
 0x47c   :  { %v28812_v54 = vpop.f32.mrb[49].mxu1  ;;  %6669 = vrot.lane.b32.xlu1 %v31364_v28, %s31194_s21 }
 0x47d   :  { %5261 = vrot.lane.b32.xlu0 %v31380_v37, %s31193_s20 }
 0x47f   :  { %v32018_v35 = vpop.f32.mrb[50].mxu1 }
 0x480   :  { %v28822_v48 = vpop.f32.mrb[51].mxu1  ;;  %6823 = vrot.lane.b32.xlu1 %v31370_v32, %s31195_s1 }
 0x481   :  { %5413 = vrot.lane.b32.xlu0 %v31388_v41, %s31193_s20  ;;  %v30560_v48 = vpop.eup %30559 }
 0x483   :  { %v32024_v25 = vpop.f32.mrb[52].mxu1 }
 0x484   :  { %v28832_v16 = vpop.f32.mrb[53].mxu1  ;;  %6901 = vrot.lane.b32.xlu1 %v31372_v33, %s31195_s1 }
 0x485   :  { %5565 = vrot.lane.b32.xlu0 %v36421_v49, %s31193_s20  ;;  %v1862_v16 = vmul.f32 %v30560_v48, %v31896_v10 }
 0x487   :  { %v32030_v22 = vpop.f32.mrb[54].mxu1 }
 0x488   :  { %v28842_v30 = vpop.f32.mrb[55].mxu1  ;;  %6979 = vrot.lane.b32.xlu1 %v31378_v36, %s31195_s1 }
 0x489   :  { %5717 = vrot.lane.b32.xlu0 %v31402_v47, %s31193_s20  ;;  %v30562_v30 = vpop.eup %30561 }
 0x48b   :  { %v32036_v23 = vpop.f32.mrb[56].mxu1 }
 0x48c   :  { %v28852_v24 = vpop.f32.mrb[57].mxu1  ;;  %7057 = vrot.lane.b32.xlu1 %v31380_v37, %s31195_s1 }
 0x48d   :  { %5869 = vrot.lane.b32.xlu0 %v31408_v50, %s31193_s20 }
 0x48f   :  { %v32042_v45 = vpop.f32.mrb[58].mxu1 }
 0x490   :  { %v28862_v62 = vpop.f32.mrb[59].mxu1  ;;  %7213 = vrot.lane.b32.xlu1 %v31388_v41, %s31195_s1 }
 0x491   :  { %6021 = vrot.lane.b32.xlu0 %v31412_v53, %s31193_s20  ;;  %v1866_v62 = vmul.f32 %v30562_v30, %v31900_v21 }
 0x495   :  { %6173 = vrot.lane.b32.xlu0 %v31418_v57, %s31193_s20 }
 0x499   :  { %6667 = vrot.lane.b32.xlu0 %v31364_v28, %s31195_s1 }
 0x49b   :  { %v1823_v2 = vpop.xlane.xlu1 %1822 }
 0x49c   :  { %v32052_v7 = vpop.f32.mrb[60].mxu1  ;;  %30563 = vrcp.f32 %v1823_v2 }
 0x49d   :  { %6747 = vrot.lane.b32.xlu0 %v31368_v31, %s31194_s21  ;;  %v28872_v9 = vpop.f32.mrb[61].mxu1 }
 0x49f   :  { %v1835_v52 = vpop.xlane.xlu1 %1834 }
 0x4a0   :  { %v1829_v4 = vpop.xlane.xlu0 %1828 }
 0x4a1   :  { %6745 = vrot.lane.b32.xlu0 %v31368_v31, %s31195_s1  ;;  %30565 = vrcp.f32 %v1829_v4 }
 0x4a2   :  { %30567 = vrcp.f32 %v1835_v52 }
 0x4a3   :  { %v1894_v5 = vpop.permute.xlu1 %1893 }
 0x4a4   :  { %v1841_v14 = vpop.xlane.xlu0 %1840  ;;  %28704 = vmatpush3.msra.mxu0 %v1894_v5 }
 0x4a5   :  { %6825 = vrot.lane.b32.xlu0 %v31370_v32, %s31194_s21  ;;  %28706 = vmatmul.mubr.msk.f32.vlgmr.msra.gmra.mrb[26].mxu0 %vm293_vm2, %v1858_v27  ;;  %30569 = vrcp.f32 %v1841_v14 }
 0x4a6   :  { %28713 = vmatprep.subr.mxu0 %v36411_v13  ;;  %28715 = vmatprep.mubr.msk.f32.mxu0 %vm31188_vm1, %v36411_v13  ;;  %v30564_v63 = vpop.eup %30563 }
 0x4a7   :  { %v32065_v46 = vpop.f32.mrb[62].mxu1  ;;  %v1870_v1 = vmul.f32 %v30564_v63, %v31909_v19  ;;  %v32124_v63 = vmul.f32 0.35355338, %v32006_v43 }
 0x4a8   :  { %v1847_v18 = vpop.xlane.xlu0 %1846  ;;  %v28882_v54 = vpop.f32.mrb[63].mxu1  ;;  %v32288_v15 = vmul.f32 0.35355338, %v32065_v46 }
 0x4a9   :  { %6903 = vrot.lane.b32.xlu0 %v31372_v33, %s31194_s21  ;;  %30571 = vrcp.f32 %v1847_v18 }
 0x4ab   :  { %v30566_v2 = vpop.eup %30565 }
 0x4ac   :  { %v2046_v29 = vpop.permute.xlu0 %2045  ;;  %v1874_v58 = vmul.f32 %v30566_v2, %v31915_v26  ;;  %v30568_v9 = vpop.eup %30567 }
 0x4ad   :  { %6981 = vrot.lane.b32.xlu0 %v31378_v36, %s31194_s21  ;;  %28714 = vmatpush3.msra.mxu0 %v2046_v29  ;;  %v1878_v52 = vmul.f32 %v30568_v9, %v31913_v20 }
 0x4ae   :  { %28716 = vmatmul.mubr.msk.f32.vlgmr.msra.gmra.mrb[28].mxu0 %vm293_vm2, %v1862_v16  ;;  %28723 = vmatprep.subr.mxu0 %v36411_v13 }
 0x4af   :  { %28725 = vmatprep.mubr.msk.f32.mxu0 %vm31188_vm1, %v36411_v13  ;;  %v30570_v17 = vpop.eup %30569 }
 0x4b0   :  { %v2198_v24 = vpop.permute.xlu0 %2197  ;;  %v1882_v4 = vmul.f32 %v30570_v17, %v31921_v51 }
 0x4b1   :  { %7059 = vrot.lane.b32.xlu0 %v31380_v37, %s31194_s21  ;;  %28724 = vmatpush3.msra.mxu0 %v2198_v24 }
 0x4b2   :  { %28726 = vmatmul.mubr.msk.f32.vlgmr.msra.gmra.mrb[30].mxu0 %vm293_vm2, %v1866_v62  ;;  %28733 = vmatprep.subr.mxu0 %v36411_v13 }
 0x4b3   :  { %28735 = vmatprep.mubr.msk.f32.mxu0 %vm31188_vm1, %v36411_v13  ;;  %v30572_v5 = vpop.eup %30571 }
 0x4b4   :  { %v2350_v10 = vpop.permute.xlu0 %2349  ;;  %v1886_v27 = vmul.f32 %v30572_v5, %v31925_v56 }
 0x4b5   :  { %7137 = vrot.lane.b32.xlu0 %v31386_v40, %s31194_s21  ;;  %28734 = vmatpush3.msra.mxu0 %v2350_v10 }
 0x4b6   :  { %28736 = vmatmul.mubr.msk.f32.vlgmr.msra.gmra.mrb[32].mxu0 %vm293_vm2, %v1870_v1  ;;  %28743 = vmatprep.subr.mxu0 %v36411_v13 }
 0x4b7   :  { %28745 = vmatprep.mubr.msk.f32.mxu0 %vm31188_vm1, %v36411_v13 }
 0x4b8   :  { %v2502_v21 = vpop.permute.xlu0 %2501 }
 0x4b9   :  { %7135 = vrot.lane.b32.xlu0 %v31386_v40, %s31195_s1  ;;  %28744 = vmatpush3.msra.mxu0 %v2502_v21 }
 0x4ba   :  { %28746 = vmatmul.mubr.msk.f32.vlgmr.msra.gmra.mrb[34].mxu0 %vm293_vm2, %v1874_v58  ;;  %28753 = vmatprep.subr.mxu0 %v36411_v13 }
 0x4bb   :  { %28755 = vmatprep.mubr.msk.f32.mxu0 %vm31188_vm1, %v36411_v13 }
 0x4bc   :  { %v2654_v19 = vpop.permute.xlu0 %2653 }
 0x4bd   :  { %7215 = vrot.lane.b32.xlu0 %v31388_v41, %s31194_s21  ;;  %28754 = vmatpush3.msra.mxu0 %v2654_v19 }
 0x4be   :  { %28756 = vmatmul.mubr.msk.f32.vlgmr.msra.gmra.mrb[36].mxu0 %vm293_vm2, %v1878_v52  ;;  %28763 = vmatprep.subr.mxu0 %v36411_v13 }
 0x4bf   :  { %28765 = vmatprep.mubr.msk.f32.mxu0 %vm31188_vm1, %v36411_v13 }
 0x4c0   :  { %v2806_v26 = vpop.permute.xlu0 %2805 }
 0x4c1   :  { %7293 = vrot.lane.b32.xlu0 %v31394_v44, %s31194_s21  ;;  %28764 = vmatpush3.msra.mxu0 %v2806_v26 }
 0x4c2   :  { %28766 = vmatmul.mubr.msk.f32.vlgmr.msra.gmra.mrb[38].mxu0 %vm293_vm2, %v1882_v4  ;;  %28773 = vmatprep.subr.mxu0 %v36411_v13 }
 0x4c3   :  { %28775 = vmatprep.mubr.msk.f32.mxu0 %vm31188_vm1, %v36411_v13 }
 0x4c4   :  { %v2958_v20 = vpop.permute.xlu0 %2957 }
 0x4c5   :  { %7291 = vrot.lane.b32.xlu0 %v31394_v44, %s31195_s1  ;;  %28774 = vmatpush3.msra.mxu0 %v2958_v20 }
 0x4c6   :  { %28776 = vmatmul.mubr.msk.f32.vlgmr.msra.gmra.mrb[40].mxu0 %vm293_vm2, %v1886_v27  ;;  %28783 = vmatprep.subr.mxu0 %v36411_v13 }
 0x4c7   :  { %28785 = vmatprep.mubr.msk.f32.mxu0 %vm31188_vm1, %v36411_v13 }
 0x4c8   :  { %v3110_v51 = vpop.permute.xlu0 %3109 }
 0x4c9   :  { %7371 = vrot.lane.b32.xlu0 %v36421_v49, %s31194_s21  ;;  %28784 = vmatpush3.msra.mxu0 %v3110_v51 }
 0x4ca   :  { %28793 = vmatprep.subr.mxu0 %v36411_v13 }
 0x4cc   :  { %v3262_v14 = vpop.permute.xlu0 %3261 }
 0x4d0   :  { %v3420_v56 = vpop.permute.xlu0 %3419 }
 0x4d4   :  { %v1853_v18 = vpop.xlane.xlu1 %1852  ;;  %v3418_v54 = vpop.permute.xlu0 %3417 }
 0x4d5   :  { %30573 = vrcp.f32 %v1853_v18 }
 0x4d8   :  { %v3264_v48 = vpop.permute.xlu1 %3263  ;;  %v3576_v16 = vpop.permute.xlu0 %3575 }
 0x4dc   :  { %v3574_v29 = vpop.permute.xlu1 %3573  ;;  %v3732_v10 = vpop.permute.xlu0 %3731 }
 0x4df   :  { %v30574_v30 = vpop.eup %30573 }
 0x4e0   :  { %v3730_v24 = vpop.permute.xlu1 %3729  ;;  %v1890_v62 = vmul.f32 %v30574_v30, %v31944_v6  ;;  %v4686_v6 = vsel %vm293_vm2, %v32124_v63, -inf  ;;  %v3888_v2 = vpop.permute.xlu0 %3887 }
 0x4e2   :  { %28786 = vmatmul.mubr.msk.f32.vlgmr.msra.gmra.mrb[42].mxu0 %vm293_vm2, %v1890_v62 }
 0x4e3   :  { %28794 = vmatpush3.xpose.msk.msra.mxu0 %vm293_vm2, %v3264_v48  ;;  %28795 = vmatprep.mubr.msk.f32.mxu0 %vm31188_vm1, %v36411_v13 }
 0x4e4   :  { %v3886_v1 = vpop.permute.xlu1 %3885  ;;  %28803 = vmatprep.subr.mxu0 %v36411_v13  ;;  %v4044_v58 = vpop.permute.xlu0 %4043 }
 0x4e6   :  { %28796 = vmatmul.mubr.msk.f32.vlgmr.msra.gmra.mrb[44].mxu0 %vm293_vm2, %v3262_v14 }
 0x4e7   :  { %28804 = vmatpush3.xpose.msk.msra.mxu0 %vm293_vm2, %v3420_v56  ;;  %28805 = vmatprep.mubr.msk.f32.mxu0 %vm31188_vm1, %v36411_v13 }
 0x4e8   :  { %4687 = vmax.xlane.f32.xlu0 %v4686_v6  ;;  %v4042_v43 = vpop.permute.xlu1 %4041  ;;  %28813 = vmatprep.subr.mxu0 %v36411_v13  ;;  %v4200_v52 = vpop.permute.xlu0 %4199 }
 0x4ea   :  { %28806 = vmatmul.mubr.msk.f32.vlgmr.msra.gmra.mrb[46].mxu0 %vm293_vm2, %v3418_v54 }
 0x4eb   :  { %28814 = vmatpush3.xpose.msk.msra.mxu0 %vm293_vm2, %v3576_v16  ;;  %28815 = vmatprep.mubr.msk.f32.mxu0 %vm31188_vm1, %v36411_v13 }
 0x4ec   :  { %v4198_v21 = vpop.permute.xlu1 %4197  ;;  %28823 = vmatprep.subr.mxu0 %v36411_v13  ;;  %v4356_v26 = vpop.permute.xlu0 %4355 }
 0x4ee   :  { %28816 = vmatmul.mubr.msk.f32.vlgmr.msra.gmra.mrb[48].mxu0 %vm293_vm2, %v3574_v29 }
 0x4ef   :  { %28824 = vmatpush3.xpose.msk.msra.mxu0 %vm293_vm2, %v3732_v10  ;;  %28825 = vmatprep.mubr.msk.f32.mxu0 %vm31188_vm1, %v36411_v13 }
 0x4f0   :  { %v4354_v9 = vpop.permute.xlu1 %4353  ;;  %28833 = vmatprep.subr.mxu0 %v36411_v13  ;;  %v4512_v4 = vpop.permute.xlu0 %4511 }
 0x4f2   :  { %28826 = vmatmul.mubr.msk.f32.vlgmr.msra.gmra.mrb[50].mxu0 %vm293_vm2, %v3730_v24 }
 0x4f3   :  { %28834 = vmatpush3.xpose.msk.msra.mxu0 %vm293_vm2, %v3888_v2  ;;  %28835 = vmatprep.mubr.msk.f32.mxu0 %vm31188_vm1, %v36411_v13 }
 0x4f4   :  { %v4510_v19 = vpop.permute.xlu1 %4509  ;;  %28843 = vmatprep.subr.mxu0 %v36411_v13  ;;  %v32192_v6 = vpop.permute.xlu0 %5109 }
 0x4f6   :  { %28836 = vmatmul.mubr.msk.f32.vlgmr.msra.gmra.mrb[52].mxu0 %vm293_vm2, %v3886_v1 }
 0x4f7   :  { %28844 = vmatpush3.xpose.msk.msra.mxu0 %vm293_vm2, %v4044_v58  ;;  %28845 = vmatprep.mubr.msk.f32.mxu0 %vm31188_vm1, %v36411_v13 }
 0x4f8   :  { %v4958_v17 = vpop.permute.xlu1 %4957  ;;  %28853 = vmatprep.subr.mxu0 %v36411_v13 }
 0x4f9   :  { %28889 = vmatpush3.msra.mxu1 %v4958_v17 }
 0x4fa   :  { %28846 = vmatmul.mubr.msk.f32.vlgmr.msra.gmra.mrb[54].mxu0 %vm293_vm2, %v4042_v43  ;;  %28898 = vmatprep.subr.mxu1 %v36411_v13  ;;  %v32194_v43 = vpop.permute.xlu0 %5261 }
 0x4fb   :  { %28854 = vmatpush3.xpose.msk.msra.mxu0 %vm293_vm2, %v4200_v52  ;;  %28855 = vmatprep.mubr.msk.f32.mxu0 %vm31188_vm1, %v36411_v13 }
 0x4fc   :  { %28863 = vmatprep.subr.mxu0 %v36411_v13  ;;  %v32311_v3 = vpop.permute.xlu1 %6669 }
 0x4fe   :  { %28856 = vmatmul.mubr.msk.f32.vlgmr.msra.gmra.mrb[56].mxu0 %vm293_vm2, %v4198_v21  ;;  %v32196_v2 = vpop.permute.xlu0 %5413 }
 0x4ff   :  { %28864 = vmatpush3.xpose.msk.msra.mxu0 %vm293_vm2, %v4356_v26  ;;  %28865 = vmatprep.mubr.msk.f32.mxu0 %vm31188_vm1, %v36411_v13  ;;  %v32205_v26 = vmul.f32 0.35355338, %v32012_v38 }
 0x500   :  { %28873 = vmatprep.subr.mxu0 %v36411_v13 }
 0x502   :  { %28866 = vmatmul.mubr.msk.f32.vlgmr.msra.gmra.mrb[58].mxu0 %vm293_vm2, %v4354_v9  ;;  %v32200_v9 = vpop.permute.xlu0 %5565 }
 0x503   :  { %28874 = vmatpush3.xpose.msk.msra.mxu0 %vm293_vm2, %v4512_v4  ;;  %28875 = vmatprep.mubr.msk.f32.mxu0 %vm31188_vm1, %v36411_v13 }
 0x504   :  { %28883 = vmatprep.subr.mxu0 %v36411_v13 }
 0x506   :  { %28876 = vmatmul.mubr.msk.f32.vlgmr.msra.gmra.mrb[60].mxu0 %vm293_vm2, %v4510_v19 }
 0x507   :  { %28885 = vmatprep.mubr.msk.f32.mxu0 %vm31188_vm1, %v36411_v13 }
 0x578   :  { %v32176_v5 = vpop.f32.mrb[26].mxu0 }
 0x579   :  { %36422 = vst [vmem:[#allocation16_spill] sm:$0xff] %v32176_v5  ;;  %v28707_v20 = vpop.f32.mrb[27].mxu0 }
 0x581   :  { %v32178_v27 = vpop.f32.mrb[28].mxu0 }
 0x582   :  { %36423 = vst [vmem:[#allocation17_spill] sm:$0xff] %v32178_v27  ;;  %v28717_v51 = vpop.f32.mrb[29].mxu0 }
 0x583   :  { %v32209_v51 = vpop.permute.xlu0 %5717 }
 0x585   :  { %v32180_v14 = vpop.f32.mrb[30].mxu0 }
 0x586   :  { %36424 = vst [vmem:[#allocation18_spill] sm:$0xff] %v32180_v14  ;;  %v28727_v56 = vpop.f32.mrb[31].mxu0 }
 0x589   :  { %v32182_v18 = vpop.f32.mrb[32].mxu0 }
 0x58a   :  { %36425 = vst [vmem:[#allocation19_spill] sm:$0xff] %v32182_v18  ;;  %v28737_v54 = vpop.f32.mrb[33].mxu0  ;;  %v32285_v18 = vmul.f32 0.35355338, %v32052_v7 }
 0x58d   :  { %v32184_v48 = vpop.f32.mrb[34].mxu0 }
 0x58e   :  { %36426 = vst [vmem:[#allocation20_spill] sm:$0xff] %v32184_v48  ;;  %v28747_v29 = vpop.f32.mrb[35].mxu0 }
 0x58f   :  { %v32214_v29 = vmul.f32 0.35355338, %v32018_v35 }
 0x591   :  { %v32186_v16 = vpop.f32.mrb[36].mxu0  ;;  %v4698_v35 = vsel %vm293_vm2, %v32214_v29, -inf }
 0x592   :  { %36427 = vst [vmem:[#allocation21_spill] sm:$0xff] %v32186_v16  ;;  %v28757_v30 = vpop.f32.mrb[37].mxu0 }
 0x593   :  { %v4692_v30 = vsel %vm293_vm2, %v32205_v26, -inf }
 0x595   :  { %v32188_v24 = vpop.f32.mrb[38].mxu0 }
 0x596   :  { %36428 = vst [vmem:[#allocation22_spill] sm:$0xff] %v32188_v24  ;;  %v28767_v62 = vpop.f32.mrb[39].mxu0 }
 0x599   :  { %v32190_v10 = vpop.f32.mrb[40].mxu0 }
 0x59a   :  { %36429 = vst [vmem:[#allocation23_spill] sm:$0xff] %v32190_v10  ;;  %v28777_v1 = vpop.f32.mrb[41].mxu0 }
 0x5b5   :  { %v32198_v21 = vpop.f32.mrb[42].mxu0 }
 0x5b6   :  { %36430 = vst [vmem:[#allocation24_spill] sm:$0xff] %v32198_v21  ;;  %v28787_v58 = vpop.f32.mrb[43].mxu0 }
 0x5b9   :  { %v3335_v19 = vpop.f32.mrb[44].mxu0 }
 0x5ba   :  { %v32202_v52 = vmul.f32 0.35355338, %v3335_v19  ;;  %v28797_v17 = vpop.f32.mrb[45].mxu0  ;;  %v32223_v19 = vmul.f32 0.35355338, %v32030_v22 }
 0x5bb   :  { %v32225_v17 = vpop.permute.xlu0 %5869 }
 0x5bc   :  { %v4683_v4 = vsel %vm293_vm2, %v32202_v52, -inf  ;;  %v4710_v22 = vsel %vm293_vm2, %v32223_v19, -inf }
 0x5bd   :  { %4684 = vmax.xlane.f32.xlu1 %v4683_v4  ;;  %v3491_v20 = vpop.f32.mrb[46].mxu0 }
 0x5be   :  { %v32211_v56 = vmul.f32 0.35355338, %v3491_v20  ;;  %v28807_v54 = vpop.f32.mrb[47].mxu0 }
 0x5bf   :  { %v32240_v42 = vpop.permute.xlu0 %6021 }
 0x5c0   :  { %v4689_v38 = vsel %vm293_vm2, %v32211_v56, -inf }
 0x5c1   :  { %4693 = vmax.xlane.f32.xlu1 %v4692_v30  ;;  %4690 = vmax.xlane.f32.xlu0 %v4689_v38  ;;  %v3647_v62 = vpop.f32.mrb[48].mxu0  ;;  %v32234_v38 = vmul.f32 0.35355338, %v32024_v25 }
 0x5c2   :  { %v32220_v1 = vmul.f32 0.35355338, %v3647_v62  ;;  %v28817_v58 = vpop.f32.mrb[49].mxu0 }
 0x5c4   :  { %v4695_v4 = vsel %vm293_vm2, %v32220_v1, -inf }
 0x5c5   :  { %4699 = vmax.xlane.f32.xlu0 %v4698_v35  ;;  %4696 = vmax.xlane.f32.xlu1 %v4695_v4  ;;  %v3803_v20 = vpop.f32.mrb[50].mxu0  ;;  %v4704_v4 = vsel %vm293_vm2, %v32234_v38, -inf }
 0x5c6   :  { %v32231_v54 = vmul.f32 0.35355338, %v3803_v20  ;;  %v28827_v30 = vpop.f32.mrb[51].mxu0 }
 0x5c7   :  { %v32246_v30 = vpop.permute.xlu0 %6173 }
 0x5c8   :  { %v4701_v62 = vsel %vm293_vm2, %v32231_v54, -inf }
 0x5c9   :  { %4711 = vmax.xlane.f32.xlu1 %v4710_v22  ;;  %4702 = vmax.xlane.f32.xlu0 %v4701_v62  ;;  %v3959_v58 = vpop.f32.mrb[52].mxu0 }
 0x5ca   :  { %v28837_v35 = vpop.f32.mrb[53].mxu0  ;;  %v32278_v34 = vmul.f32 0.35355338, %v3959_v58  ;;  %v4728_v58 = vsel %vm293_vm2, %v32285_v18, -inf }
 0x5cb   :  { %v32252_v22 = vpop.permute.xlu0 %6667 }
 0x5cd   :  { %4705 = vmax.xlane.f32.xlu0 %v4704_v4  ;;  %v32244_v20 = vpop.f32.mrb[54].mxu0 }
 0x5ce   :  { %v28847_v25 = vpop.f32.mrb[55].mxu0 }
 0x5cf   :  { %v32258_v4 = vpop.permute.xlu0 %6747 }
 0x5d1   :  { %v32248_v21 = vpop.f32.mrb[56].mxu0 }
 0x5d2   :  { %v28857_v11 = vpop.f32.mrb[57].mxu0 }
 0x5d3   :  { %v32260_v24 = vpop.permute.xlu0 %6745 }
 0x5d5   :  { %v32250_v10 = vpop.f32.mrb[58].mxu0 }
 0x5d6   :  { %v28867_v62 = vpop.f32.mrb[59].mxu0 }
 0x5d7   :  { %v32264_v25 = vpop.permute.xlu0 %6825  ;;  %v32271_v62 = vmul.f32 0.35355338, %v32042_v45 }
 0x5d9   :  { %v32254_v39 = vpop.f32.mrb[60].mxu0  ;;  %v4722_v48 = vsel %vm293_vm2, %v32271_v62, -inf }
 0x5da   :  { %7369 = vrot.lane.b32.xlu1 %v36421_v49, %s31195_s1  ;;  %v28877_v35 = vpop.f32.mrb[61].mxu0 }
 0x5db   :  { %v32266_v11 = vpop.permute.xlu0 %6903  ;;  %v32276_v35 = vmul.f32 0.35355338, %v32036_v23  ;;  %v4707_v23 = vsel %vm293_vm2, %v32278_v34, -inf }
 0x5dd   :  { %v4716_v45 = vsel %vm293_vm2, %v32276_v35, -inf }
 0x5df   :  { %v32268_v0 = vpop.permute.xlu0 %6981 }
 0x5e0   :  { %36431 = vst [vmem:[#allocation25_spill] sm:$0xff] %v32268_v0 }
 0x5e3   :  { %7449 = vrot.lane.b32.xlu0 %v31414_v55, %s31194_s21  ;;  %v32273_v16 = vpop.permute.xlu0 %7059 }
 0x5e4   :  { %36432 = vst [vmem:[#allocation26_spill] sm:$0xff] %v32273_v16 }
 0x5e7   :  { %v32282_v12 = vpop.permute.xlu0 %7137 }
 0x5e8   :  { %36433 = vst [vmem:[#allocation27_spill] sm:$0xff] %v32282_v12 }
 0x5eb   :  { %v32298_v14 = vpop.permute.xlu0 %7135 }
 0x5ec   :  { %36434 = vst [vmem:[#allocation28_spill] sm:$0xff] %v32298_v14 }
 0x5ef   :  { %v32300_v7 = vpop.permute.xlu0 %7215 }
 0x5f0   :  { %36435 = vst [vmem:[#allocation29_spill] sm:$0xff] %v32300_v7 }
 0x5f3   :  { %v32302_v46 = vpop.permute.xlu0 %7293 }
 0x5f4   :  { %36436 = vst [vmem:[#allocation30_spill] sm:$0xff] %v32302_v46 }
 0x5f7   :  { %v32304_v8 = vpop.permute.xlu0 %7291 }
 0x5f8   :  { %36437 = vst [vmem:[#allocation31_spill] sm:$0xff] %v32304_v8 }
 0x5fe   :  { %4723 = vmax.xlane.f32.xlu1 %v4722_v48  ;;  %v4734_v48 = vsel %vm293_vm2, %v32288_v15, -inf }
 0x602   :  { %4717 = vmax.xlane.f32.xlu0 %v4716_v45  ;;  %4708 = vmax.xlane.f32.xlu1 %v4707_v23  ;;  %v32308_v45 = vpop.permute.xlu0 %7371 }
 0x603   :  { %36438 = vst [vmem:[#allocation32_spill] sm:$0xff] %v32308_v45 }
 0x606   :  { %4729 = vmax.xlane.f32.xlu0 %v4728_v58  ;;  %4735 = vmax.xlane.f32.xlu1 %v4734_v48  ;;  %v4688_v23 = vpop.xlane.xlu0 %4687  ;;  %v32313_v58 = vpop.permute.xlu1 %6823 }
 0x607   :  { %v4738_v27 = vsub.f32 %v32124_v63, %v4688_v23 }
 0x609   :  { %v4757_v5 = vmul.f32 1.442695, %v4738_v27 }
 0x60a   :  { %v32315_v48 = vpop.permute.xlu1 %6901 }
 0x60b   :  { %30575 = vpow2.f32 %v4757_v5  ;;  %36439 = vst [vmem:[#allocation33_spill] sm:$0xff] %v32315_v48 }
 0x60e   :  { %v32319_v32 = vpop.permute.xlu1 %6979 }
 0x60f   :  { %36440 = vst [vmem:[#allocation34_spill] sm:$0xff] %v32319_v32 }
 0x612   :  { %v32323_v45 = vpop.permute.xlu1 %7057 }
 0x613   :  { %36441 = vst [vmem:[#allocation35_spill] sm:$0xff] %v32323_v45 }
 0x615   :  { %v32317_v41 = vpop.eup %30575 }
 0x616   :  { %v4794_v8 = vsel %vm293_vm2, %v32317_v41, 0.0  ;;  %v32325_v46 = vpop.permute.xlu1 %7213 }
 0x617   :  { %36442 = vst [vmem:[#allocation36_spill] sm:$0xff] %v32325_v46 }
 0x61c   :  { %7447 = vrot.lane.b32.xlu0 %v31414_v55, %s31195_s1 }
 0x63b   :  { %4795 = vadd.xlane.f32.xlu0 %v4794_v8 }
 0x64a   :  { %v32327_v63 = vpop.xlane.xlu1 %4684 }
 0x64e   :  { %v4694_v27 = vpop.xlane.xlu1 %4693  ;;  %v32329_v5 = vpop.xlane.xlu0 %4690 }
 0x64f   :  { %v4740_v23 = vsub.f32 %v32205_v26, %v4694_v27 }
 0x651   :  { %v4761_v7 = vmul.f32 1.442695, %v4740_v23 }
 0x652   :  { %v32332_v14 = vpop.xlane.xlu1 %4696  ;;  %v4700_v12 = vpop.xlane.xlu0 %4699 }
 0x653   :  { %30577 = vpow2.f32 %v4761_v7  ;;  %v4742_v16 = vsub.f32 %v32214_v29, %v4700_v12 }
 0x655   :  { %v4765_v49 = vmul.f32 1.442695, %v4742_v16 }
 0x656   :  { %v4712_v8 = vpop.xlane.xlu1 %4711  ;;  %v32335_v32 = vpop.xlane.xlu0 %4702 }
 0x657   :  { %v4746_v46 = vsub.f32 %v32223_v19, %v4712_v8  ;;  %30579 = vpow2.f32 %v4765_v49 }
 0x659   :  { %v4773_v45 = vmul.f32 1.442695, %v4746_v46 }
 0x65a   :  { %v4706_v0 = vpop.xlane.xlu0 %4705  ;;  %v32357_v19 = vpop.permute.xlu1 %7369 }
 0x65b   :  { %30581 = vpow2.f32 %v4773_v45  ;;  %v4744_v37 = vsub.f32 %v32234_v38, %v4706_v0  ;;  %36443 = vst [vmem:[#allocation37_spill] sm:$0xff] %v32357_v19 }
 0x65d   :  { %v32339_v26 = vpop.eup %30577  ;;  %v4769_v27 = vmul.f32 1.442695, %v4744_v37 }
 0x65e   :  { %v4800_v7 = vsel %vm293_vm2, %v32339_v26, 0.0  ;;  %v32359_v38 = vpop.permute.xlu0 %7449 }
 0x65f   :  { %30583 = vpow2.f32 %v4769_v27  ;;  %4801 = vadd.xlane.f32.xlu1 %v4800_v7  ;;  %36444 = vst [vmem:[#allocation38_spill] sm:$0xff] %v32359_v38 }
 0x661   :  { %v32343_v12 = vpop.eup %30579 }
 0x662   :  { %v4806_v16 = vsel %vm293_vm2, %v32343_v12, 0.0 }
 0x663   :  { %4807 = vadd.xlane.f32.xlu0 %v4806_v16 }
 0x665   :  { %v32347_v49 = vpop.eup %30581 }
 0x666   :  { %v4818_v29 = vsel %vm293_vm2, %v32347_v49, 0.0 }
 0x667   :  { %4819 = vadd.xlane.f32.xlu0 %v4818_v29 }
 0x669   :  { %v32351_v0 = vpop.eup %30583 }
 0x66a   :  { %v4812_v37 = vsel %vm293_vm2, %v32351_v0, 0.0 }
 0x66b   :  { %4813 = vadd.xlane.f32.xlu1 %v4812_v37 }
 0x67d   :  { %7527 = vrot.lane.b32.xlu0 %v31402_v47, %s31194_s21 }
 0x68b   :  { %v4724_v46 = vpop.xlane.xlu1 %4723 }
 0x68c   :  { %v4750_v45 = vsub.f32 %v32271_v62, %v4724_v46  ;;  %v32375_v46 = vmul.f32 0.35355338, %v32244_v20 }
 0x68e   :  { %v4781_v23 = vmul.f32 1.442695, %v4750_v45  ;;  %v32380_v45 = vmul.f32 0.35355338, %v32248_v21 }
 0x68f   :  { %v4718_v8 = vpop.xlane.xlu0 %4717  ;;  %v32390_v20 = vpop.xlane.xlu1 %4708 }
 0x690   :  { %30585 = vpow2.f32 %v4781_v23  ;;  %v4748_v27 = vsub.f32 %v32276_v35, %v4718_v8  ;;  %v4719_v23 = vsel %vm293_vm2, %v32380_v45, -inf }
 0x692   :  { %v4777_v7 = vmul.f32 1.442695, %v4748_v27 }
 0x693   :  { %v4730_v16 = vpop.xlane.xlu0 %4729  ;;  %v4736_v8 = vpop.xlane.xlu1 %4735 }
 0x694   :  { %v4752_v29 = vsub.f32 %v32285_v18, %v4730_v16  ;;  %30587 = vpow2.f32 %v4777_v7  ;;  %v4754_v21 = vsub.f32 %v32288_v15, %v4736_v8 }
 0x696   :  { %v4785_v37 = vmul.f32 1.442695, %v4752_v29  ;;  %v4789_v7 = vmul.f32 1.442695, %v4754_v21 }
 0x697   :  { %v32395_v27 = vpop.permute.xlu0 %7447 }
 0x698   :  { %30589 = vpow2.f32 %v4785_v37 }
 0x69a   :  { %v32364_v48 = vpop.eup %30585 }
 0x69b   :  { %v4830_v38 = vsel %vm293_vm2, %v32364_v48, 0.0 }
 0x69c   :  { %4831 = vadd.xlane.f32.xlu0 %v4830_v38  ;;  %v4713_v38 = vsel %vm293_vm2, %v32375_v46, -inf }
 0x69e   :  { %v32368_v19 = vpop.eup %30587 }
 0x69f   :  { %v4824_v62 = vsel %vm293_vm2, %v32368_v19, 0.0 }
 0x6a0   :  { %4825 = vadd.xlane.f32.xlu1 %v4824_v62 }
 0x6a2   :  { %v32372_v35 = vpop.eup %30589 }
 0x6a3   :  { %v4836_v18 = vsel %vm293_vm2, %v32372_v35, 0.0 }
 0x6a4   :  { %4837 = vadd.xlane.f32.xlu0 %v4836_v18  ;;  %v32412_v18 = vmul.f32 0.35355338, %v32254_v39 }
 0x6a8   :  { %4714 = vmax.xlane.f32.xlu0 %v4713_v38 }
 0x6ac   :  { %4720 = vmax.xlane.f32.xlu0 %v4719_v23 }
 0x6b1   :  { %7525 = vrot.lane.b32.xlu1 %v31402_v47, %s31195_s1 }
 0x6b5   :  { %7605 = vrot.lane.b32.xlu1 %v31420_v59, %s31194_s21 }
 0x6c2   :  { %7683 = vrot.lane.b32.xlu0 %v31408_v50, %s31194_s21 }
 0x6c6   :  { %7681 = vrot.lane.b32.xlu0 %v31408_v50, %s31195_s1 }
 0x6c8   :  { %v4796_v16 = vpop.xlane.xlu0 %4795 }
 0x6c9   :  { %30591 = vrcp.f32 %v4796_v16 }
 0x6ca   :  { %7761 = vrot.lane.b32.xlu0 %v31422_v60, %s31194_s21  ;;  %30593 = vpow2.f32 %v4789_v7 }
 0x6d3   :  { %v30592_v29 = vpop.eup %30591 }
 0x6d4   :  { %v4848_v37 = vmul.f32 %v30592_v29, %v32317_v41  ;;  %v32402_v62 = vpop.eup %30593  ;;  %v4731_v41 = vsel %vm293_vm2, %v32412_v18, -inf }
 0x6d5   :  { %v4842_v15 = vsel %vm293_vm2, %v32402_v62, 0.0 }
 0x6d6   :  { %28891 = vmatmul.mubr.msk.f32.vlgmr.msra.gmra.mrb[64].mxu1 %vm293_vm2, %v4848_v37  ;;  %v32442_v37 = vmul.f32 0.35355338, %v32250_v10 }
 0x6d7   :  { %28899 = vmatpush3.msra.mxu1 %v32192_v6  ;;  %28900 = vmatprep.mubr.msk.f32.mxu1 %vm31188_vm1, %v36411_v13 }
 0x6d8   :  { %28908 = vmatprep.subr.mxu1 %v36411_v13 }
 0x6d9   :  { %4843 = vadd.xlane.f32.xlu1 %v4842_v15 }
 0x6e9   :  { %4732 = vmax.xlane.f32.xlu0 %v4731_v41 }
 0x6ea   :  { %7603 = vrot.lane.b32.xlu1 %v31420_v59, %s31195_s1 }
 0x6ec   :  { %v4802_v6 = vpop.xlane.xlu1 %4801 }
 0x6ed   :  { %30595 = vrcp.f32 %v4802_v6 }
 0x6f0   :  { %v4808_v38 = vpop.xlane.xlu0 %4807 }
 0x6f1   :  { %30597 = vrcp.f32 %v4808_v38 }
 0x6f4   :  { %v4820_v8 = vpop.xlane.xlu0 %4819 }
 0x6f7   :  { %v30596_v23 = vpop.eup %30595 }
 0x6f8   :  { %v4814_v21 = vpop.xlane.xlu1 %4813  ;;  %v4852_v7 = vmul.f32 %v30596_v23, %v32339_v26 }
 0x6f9   :  { %30599 = vrcp.f32 %v4814_v21 }
 0x6fa   :  { %28901 = vmatmul.mubr.msk.f32.vlgmr.msra.gmra.mrb[66].mxu1 %vm293_vm2, %v4852_v7  ;;  %30601 = vrcp.f32 %v4820_v8 }
 0x6fb   :  { %28909 = vmatpush3.msra.mxu1 %v32194_v43  ;;  %28910 = vmatprep.mubr.msk.f32.mxu1 %vm31188_vm1, %v36411_v13  ;;  %v30598_v39 = vpop.eup %30597 }
 0x6fc   :  { %28918 = vmatprep.subr.mxu1 %v36411_v13  ;;  %v4856_v16 = vmul.f32 %v30598_v39, %v32343_v12  ;;  %v4739_v12 = vsub.f32 %v32211_v56, %v32329_v5 }
 0x6fe   :  { %28911 = vmatmul.mubr.msk.f32.vlgmr.msra.gmra.mrb[68].mxu1 %vm293_vm2, %v4856_v16 }
 0x6ff   :  { %28919 = vmatpush3.msra.mxu1 %v32196_v2  ;;  %7917 = vrot.lane.b32.xlu0 %v31432_v61, %s31194_s21 }
 0x700   :  { %28920 = vmatprep.mubr.msk.f32.mxu1 %vm31188_vm1, %v36411_v13  ;;  %28928 = vmatprep.subr.mxu1 %v36411_v13 }
 0x703   :  { %v30600_v43 = vpop.eup %30599 }
 0x704   :  { %v4860_v26 = vmul.f32 %v30600_v43, %v32351_v0  ;;  %v30602_v29 = vpop.eup %30601  ;;  %v4743_v0 = vsub.f32 %v32231_v54, %v32335_v32  ;;  %v32467_v54 = vpop.permute.xlu0 %7527 }
 0x705   :  { %v4864_v2 = vmul.f32 %v30602_v29, %v32347_v49  ;;  %v4725_v49 = vsel %vm293_vm2, %v32442_v37, -inf }
 0x706   :  { %28921 = vmatmul.mubr.msk.f32.vlgmr.msra.gmra.mrb[70].mxu1 %vm293_vm2, %v4860_v26  ;;  %v4767_v10 = vmul.f32 1.442695, %v4743_v0 }
 0x707   :  { %28929 = vmatpush3.msra.mxu1 %v32200_v9  ;;  %28930 = vmatprep.mubr.msk.f32.mxu1 %vm31188_vm1, %v36411_v13  ;;  %v4759_v9 = vmul.f32 1.442695, %v4739_v12 }
 0x708   :  { %28938 = vmatprep.subr.mxu1 %v36411_v13 }
 0x709   :  { %30603 = vpow2.f32 %v4759_v9 }
 0x70a   :  { %28931 = vmatmul.mubr.msk.f32.vlgmr.msra.gmra.mrb[72].mxu1 %vm293_vm2, %v4864_v2  ;;  %30605 = vpow2.f32 %v4767_v10 }
 0x70b   :  { %28939 = vmatpush3.msra.mxu1 %v32209_v51  ;;  %28940 = vmatprep.mubr.msk.f32.mxu1 %vm31188_vm1, %v36411_v13 }
 0x70c   :  { %28948 = vmatprep.subr.mxu1 %v36411_v13 }
 0x70e   :  { %4726 = vmax.xlane.f32.xlu1 %v4725_v49 }
 0x713   :  { %v32453_v56 = vpop.eup %30603 }
 0x714   :  { %v4797_v51 = vsel %vm293_vm2, %v32453_v56, 0.0  ;;  %v32457_v5 = vpop.eup %30605 }
 0x715   :  { %v4809_v32 = vsel %vm293_vm2, %v32457_v5, 0.0 }
 0x71e   :  { %4798 = vadd.xlane.f32.xlu0 %v4797_v51 }
 0x71f   :  { %7759 = vrot.lane.b32.xlu1 %v31422_v60, %s31195_s1 }
 0x722   :  { %4810 = vadd.xlane.f32.xlu0 %v4809_v32 }
 0x723   :  { %7839 = vrot.lane.b32.xlu1 %v31412_v53, %s31194_s21 }
 0x727   :  { %7837 = vrot.lane.b32.xlu1 %v31412_v53, %s31195_s1 }
 0x729   :  { %v4832_v15 = vpop.xlane.xlu0 %4831 }
 0x72b   :  { %7915 = vrot.lane.b32.xlu1 %v31432_v61, %s31195_s1 }
 0x72d   :  { %v4826_v41 = vpop.xlane.xlu1 %4825 }
 0x72e   :  { %30607 = vrcp.f32 %v4826_v41  ;;  %v36453_v41 = vld [vmem:[#allocation28_spill] sm:$0xff] }
 0x72f   :  { %7995 = vrot.lane.b32.xlu1 %v31418_v57, %s31194_s21  ;;  %30609 = vrcp.f32 %v4832_v15 }
 0x731   :  { %v4838_v6 = vpop.xlane.xlu0 %4837 }
 0x732   :  { %30611 = vrcp.f32 %v4838_v6  ;;  %v36454_v6 = vld [vmem:[#allocation29_spill] sm:$0xff] }
 0x733   :  { %7993 = vrot.lane.b32.xlu1 %v31418_v57, %s31195_s1 }
 0x735   :  { %v4715_v38 = vpop.xlane.xlu0 %4714 }
 0x736   :  { %v4747_v23 = vsub.f32 %v32375_v46, %v4715_v38  ;;  %v36455_v38 = vld [vmem:[#allocation36_spill] sm:$0xff] }
 0x738   :  { %v30608_v8 = vpop.eup %30607  ;;  %v4775_v21 = vmul.f32 1.442695, %v4747_v23  ;;  %v36456_v23 = vld [vmem:[#allocation30_spill] sm:$0xff] }
 0x739   :  { %v4868_v7 = vmul.f32 %v30608_v8, %v32368_v19  ;;  %v30610_v39 = vpop.eup %30609  ;;  %v4737_v19 = vsub.f32 %v32202_v52, %v32327_v63  ;;  %v4721_v26 = vpop.xlane.xlu0 %4720 }
 0x73a   :  { %30613 = vpow2.f32 %v4775_v21  ;;  %v4872_v16 = vmul.f32 %v30610_v39, %v32364_v48  ;;  %v4741_v48 = vsub.f32 %v32220_v1, %v32332_v14  ;;  %v4749_v29 = vsub.f32 %v32380_v45, %v4721_v26  ;;  %v36457_v21 = vld [vmem:[#allocation31_spill] sm:$0xff] }
 0x73b   :  { %28941 = vmatmul.mubr.msk.f32.vlgmr.msra.gmra.mrb[74].mxu1 %vm293_vm2, %v4868_v7  ;;  %v36458_v7 = vld [vmem:[#allocation32_spill] sm:$0xff] }
 0x73c   :  { %28949 = vmatpush3.msra.mxu1 %v32225_v17  ;;  %28950 = vmatprep.mubr.msk.f32.mxu1 %vm31188_vm1, %v36411_v13  ;;  %v30612_v43 = vpop.eup %30611  ;;  %v4763_v63 = vmul.f32 1.442695, %v4741_v48  ;;  %v4779_v2 = vmul.f32 1.442695, %v4749_v29 }
 0x73d   :  { %28958 = vmatprep.subr.mxu1 %v36411_v13  ;;  %v4876_v17 = vmul.f32 %v30612_v43, %v32372_v35  ;;  %v4745_v35 = vsub.f32 %v32278_v34, %v32390_v20  ;;  %v32515_v20 = vpop.permute.xlu1 %7525  ;;  %v36459_v43 = vld [vmem:[#allocation37_spill] sm:$0xff] }
 0x73f   :  { %28951 = vmatmul.mubr.msk.f32.vlgmr.msra.gmra.mrb[76].mxu1 %vm293_vm2, %v4872_v16 }
 0x740   :  { %28959 = vmatpush3.msra.mxu1 %v32240_v42  ;;  %28960 = vmatprep.mubr.msk.f32.mxu1 %vm31188_vm1, %v36411_v13  ;;  %v4755_v42 = vmul.f32 1.442695, %v4737_v19  ;;  %v36460_v19 = vld [vmem:[#allocation38_spill] sm:$0xff] }
 0x741   :  { %28968 = vmatprep.subr.mxu1 %v36411_v13  ;;  %v32525_v49 = vpop.permute.xlu1 %7605 }
 0x742   :  { %30615 = vpow2.f32 %v4755_v42 }
 0x743   :  { %28961 = vmatmul.mubr.msk.f32.vlgmr.msra.gmra.mrb[78].mxu1 %vm293_vm2, %v4876_v17  ;;  %30617 = vpow2.f32 %v4763_v63  ;;  %v7684_v17 = vpop.permute.xlu0 %7683 }
 0x744   :  { %v32492_v46 = vpop.eup %30613  ;;  %28969 = vmatpush3.msra.mxu1 %v32246_v30  ;;  %28970 = vmatprep.mubr.msk.f32.mxu1 %vm31188_vm1, %v36411_v13  ;;  %v4771_v30 = vmul.f32 1.442695, %v4745_v35 }
 0x745   :  { %v4821_v52 = vsel %vm293_vm2, %v32492_v46, 0.0  ;;  %29031 = vmatprep.subr.mxu1 %v36411_v13 }
 0x746   :  { %4822 = vadd.xlane.f32.xlu0 %v4821_v52  ;;  %30619 = vpow2.f32 %v4771_v30 }
 0x747   :  { %30621 = vpow2.f32 %v4779_v2  ;;  %v7682_v52 = vpop.permute.xlu0 %7681 }
 0x74b   :  { %v7762_v26 = vpop.permute.xlu0 %7761 }
 0x74c   :  { %v32505_v12 = vpop.eup %30615 }
 0x74d   :  { %v4791_v14 = vsel %vm293_vm2, %v32505_v12, 0.0  ;;  %v32509_v1 = vpop.eup %30617 }
 0x74e   :  { %v4803_v9 = vsel %vm293_vm2, %v32509_v1, 0.0 }
 0x750   :  { %v32513_v34 = vpop.eup %30619 }
 0x751   :  { %v4815_v45 = vsel %vm293_vm2, %v32513_v34, 0.0  ;;  %v32521_v0 = vpop.eup %30621 }
 0x752   :  { %v4827_v10 = vsel %vm293_vm2, %v32521_v0, 0.0 }
 0x757   :  { %4792 = vadd.xlane.f32.xlu1 %v4791_v14 }
 0x75b   :  { %4804 = vadd.xlane.f32.xlu1 %v4803_v9 }
 0x75c   :  { %4881 = vrot.lane.b32.xlu0 %v31364_v28, %s31193_s20 }
 0x75f   :  { %4816 = vadd.xlane.f32.xlu1 %v4815_v45  ;;  %v36461_v45 = vld [vmem:[#allocation3_spill] sm:$0xff] }
 0x760   :  { %5185 = vrot.lane.b32.xlu0 %v31378_v36, %s31193_s20 }
 0x763   :  { %4828 = vadd.xlane.f32.xlu1 %v4827_v10 }
 0x764   :  { %5337 = vrot.lane.b32.xlu0 %v31386_v40, %s31193_s20 }
 0x766   :  { %v4844_v51 = vpop.xlane.xlu1 %4843 }
 0x767   :  { %30623 = vrcp.f32 %v4844_v51 }
 0x768   :  { %5489 = vrot.lane.b32.xlu0 %v31394_v44, %s31193_s20 }
 0x76a   :  { %v7604_v8 = vpop.permute.xlu1 %7603 }
 0x76c   :  { %5641 = vrot.lane.b32.xlu0 %v31414_v55, %s31193_s20 }
 0x770   :  { %5793 = vrot.lane.b32.xlu0 %v31420_v59, %s31193_s20 }
 0x771   :  { %v30624_v32 = vpop.eup %30623 }
 0x772   :  { %v4880_v15 = vmul.f32 %v30624_v32, %v32402_v62  ;;  %v36452_v62 = vld [vmem:[#allocation27_spill] sm:$0xff] }
 0x774   :  { %28971 = vmatmul.mubr.msk.f32.vlgmr.msra.gmra.mrb[80].mxu1 %vm293_vm2, %v4880_v15  ;;  %5945 = vrot.lane.b32.xlu0 %v31422_v60, %s31193_s20 }
 0x775   :  { %29032 = vmatpush3.xpose.msk.msra.mxu1 %vm293_vm2, %v32311_v3  ;;  %29033 = vmatprep.mubr.msk.f32.mxu1 %vm31188_vm1, %v36411_v13  ;;  %v36445_v3 = vld [vmem:[#allocation33_spill] sm:$0xff] }
 0x776   :  { %29036 = vmatprep.subr.mxu1 %v36411_v13  ;;  %v4733_v29 = vpop.xlane.xlu0 %4732 }
 0x777   :  { %v4753_v10 = vsub.f32 %v32412_v18, %v4733_v29 }
 0x778   :  { %29034 = vmatmul.mubr.msk.f32.vlgmr.msra.gmra.mrb[82].mxu1 %vm293_vm2, %v32252_v22  ;;  %6097 = vrot.lane.b32.xlu0 %v31432_v61, %s31193_s20  ;;  %v36447_v22 = vld [vmem:[#allocation25_spill] sm:$0xff] }
 0x779   :  { %29037 = vmatpush3.xpose.msk.msra.mxu1 %vm293_vm2, %v32258_v4  ;;  %29038 = vmatprep.mubr.msk.f32.mxu1 %vm31188_vm1, %v36411_v13  ;;  %v36448_v4 = vld [vmem:[#allocation34_spill] sm:$0xff]  ;;  %v4787_v15 = vmul.f32 1.442695, %v4753_v10 }
 0x77a   :  { %29041 = vmatprep.subr.mxu1 %v36411_v13  ;;  %v7918_v14 = vpop.permute.xlu0 %7917 }
 0x77c   :  { %29039 = vmatmul.mubr.msk.f32.vlgmr.msra.gmra.mrb[84].mxu1 %vm293_vm2, %v32260_v24  ;;  %8363 = vrot.lane.b32.xlu0 %v31368_v31, %s31196_s22  ;;  %v36446_v24 = vld [vmem:[#allocation4_spill] sm:$0xff] }
 0x77d   :  { %29042 = vmatpush3.xpose.msk.msra.mxu1 %vm293_vm2, %v32264_v25  ;;  %29043 = vmatprep.mubr.msk.f32.mxu1 %vm31188_vm1, %v36411_v13  ;;  %v36449_v25 = vld [vmem:[#allocation6_spill] sm:$0xff] }
 0x77e   :  { %29046 = vmatprep.subr.mxu1 %v36411_v13 }
 0x780   :  { %29044 = vmatmul.mubr.msk.f32.vlgmr.msra.gmra.mrb[86].mxu1 %vm293_vm2, %v32313_v58  ;;  %8515 = vrot.lane.b32.xlu0 %v31372_v33, %s31196_s22  ;;  %v36451_v58 = vld [vmem:[#allocation35_spill] sm:$0xff] }
 0x781   :  { %29047 = vmatpush3.xpose.msk.msra.mxu1 %vm293_vm2, %v32266_v11  ;;  %29048 = vmatprep.mubr.msk.f32.mxu1 %vm31188_vm1, %v36411_v13  ;;  %v36450_v11 = vld [vmem:[#allocation26_spill] sm:$0xff] }
 0x782   :  { %29051 = vmatprep.subr.mxu1 %v36411_v13 }
 0x784   :  { %29049 = vmatmul.mubr.msk.f32.vlgmr.msra.gmra.mrb[88].mxu1 %vm293_vm2, %v36445_v3  ;;  %8667 = vrot.lane.b32.xlu0 %v36446_v24, %s31196_s22 }
 0x785   :  { %29052 = vmatpush3.xpose.msk.msra.mxu1 %vm293_vm2, %v36447_v22  ;;  %29053 = vmatprep.mubr.msk.f32.mxu1 %vm31188_vm1, %v36411_v13 }
 0x786   :  { %29056 = vmatprep.subr.mxu1 %v36411_v13 }
 0x788   :  { %29054 = vmatmul.mubr.msk.f32.vlgmr.msra.gmra.mrb[90].mxu1 %vm293_vm2, %v36448_v4  ;;  %8971 = vrot.lane.b32.xlu0 %v36449_v25, %s31196_s22 }
 0x789   :  { %29057 = vmatpush3.xpose.msk.msra.mxu1 %vm293_vm2, %v36450_v11  ;;  %29058 = vmatprep.mubr.msk.f32.mxu1 %vm31188_vm1, %v36411_v13 }
 0x78a   :  { %29061 = vmatprep.subr.mxu1 %v36411_v13 }
 0x78c   :  { %29059 = vmatmul.mubr.msk.f32.vlgmr.msra.gmra.mrb[92].mxu1 %vm293_vm2, %v36451_v58  ;;  %9123 = vrot.lane.b32.xlu0 %v31402_v47, %s31196_s22 }
 0x78d   :  { %29062 = vmatpush3.xpose.msk.msra.mxu1 %vm293_vm2, %v36452_v62  ;;  %29063 = vmatprep.mubr.msk.f32.mxu1 %vm31188_vm1, %v36411_v13 }
 0x78e   :  { %29066 = vmatprep.subr.mxu1 %v36411_v13 }
 0x790   :  { %29064 = vmatmul.mubr.msk.f32.vlgmr.msra.gmra.mrb[94].mxu1 %vm293_vm2, %v36453_v41 }
 0x791   :  { %29067 = vmatpush3.xpose.msk.msra.mxu1 %vm293_vm2, %v36454_v6  ;;  %29068 = vmatprep.mubr.msk.f32.mxu1 %vm31188_vm1, %v36411_v13 }
 0x792   :  { %29071 = vmatprep.subr.mxu1 %v36411_v13 }
 0x794   :  { %29069 = vmatmul.mubr.msk.f32.vlgmr.msra.gmra.mrb[96].mxu1 %vm293_vm2, %v36455_v38 }
 0x795   :  { %29072 = vmatpush3.xpose.msk.msra.mxu1 %vm293_vm2, %v36456_v23  ;;  %29073 = vmatprep.mubr.msk.f32.mxu1 %vm31188_vm1, %v36411_v13 }
 0x796   :  { %29076 = vmatprep.subr.mxu1 %v36411_v13 }
 0x798   :  { %29074 = vmatmul.mubr.msk.f32.vlgmr.msra.gmra.mrb[98].mxu1 %vm293_vm2, %v36457_v21 }
 0x799   :  { %29077 = vmatpush3.xpose.msk.msra.mxu1 %vm293_vm2, %v36458_v7  ;;  %29078 = vmatprep.mubr.msk.f32.mxu1 %vm31188_vm1, %v36411_v13 }
 0x79a   :  { %29081 = vmatprep.subr.mxu1 %v36411_v13 }
 0x79b   :  { %v4727_v39 = vpop.xlane.xlu1 %4726 }
 0x79c   :  { %v4751_v16 = vsub.f32 %v32442_v37, %v4727_v39  ;;  %29079 = vmatmul.mubr.msk.f32.vlgmr.msra.gmra.mrb[100].mxu1 %vm293_vm2, %v36459_v43 }
 0x79d   :  { %29082 = vmatpush3.xpose.msk.msra.mxu1 %vm293_vm2, %v36460_v19  ;;  %29083 = vmatprep.mubr.msk.f32.mxu1 %vm31188_vm1, %v36411_v13 }
 0x79e   :  { %v4783_v42 = vmul.f32 1.442695, %v4751_v16  ;;  %29086 = vmatprep.subr.mxu1 %v36411_v13 }
 0x79f   :  { %v7760_v48 = vpop.permute.xlu1 %7759 }
 0x7a0   :  { %30625 = vpow2.f32 %v4783_v42  ;;  %29084 = vmatmul.mubr.msk.f32.vlgmr.msra.gmra.mrb[102].mxu1 %vm293_vm2, %v32395_v27 }
 0x7a1   :  { %29087 = vmatpush3.xpose.msk.msra.mxu1 %vm293_vm2, %v32467_v54  ;;  %29088 = vmatprep.mubr.msk.f32.mxu1 %vm31188_vm1, %v36411_v13  ;;  %30627 = vpow2.f32 %v4787_v15 }
 0x7a2   :  { %29091 = vmatprep.subr.mxu1 %v36411_v13 }
 0x7a3   :  { %v7840_v37 = vpop.permute.xlu1 %7839 }
 0x7a4   :  { %29089 = vmatmul.mubr.msk.f32.vlgmr.msra.gmra.mrb[104].mxu1 %vm293_vm2, %v32515_v20 }
 0x7a5   :  { %29092 = vmatpush3.xpose.msk.msra.mxu1 %vm293_vm2, %v32525_v49  ;;  %29093 = vmatprep.mubr.msk.f32.mxu1 %vm31188_vm1, %v36411_v13 }
 0x7a6   :  { %29096 = vmatprep.subr.mxu1 %v36411_v13 }
 0x7a7   :  { %v7838_v54 = vpop.permute.xlu1 %7837 }
 0x7a8   :  { %29094 = vmatmul.mubr.msk.f32.vlgmr.msra.gmra.mrb[106].mxu1 %vm293_vm2, %v7604_v8 }
 0x7a9   :  { %v32644_v27 = vpop.f32.mrb[64].mxu1  ;;  %29097 = vmatpush3.xpose.msk.msra.mxu1 %vm293_vm2, %v7684_v17  ;;  %29098 = vmatprep.mubr.msk.f32.mxu1 %vm31188_vm1, %v36411_v13 }
 0x7aa   :  { %v28892_v63 = vpop.f32.mrb[65].mxu1  ;;  %v32649_v35 = vpop.eup %30625  ;;  %29101 = vmatprep.subr.mxu1 %v36411_v13 }
 0x7ab   :  { %v4833_v30 = vsel %vm293_vm2, %v32649_v35, 0.0  ;;  %v7916_v2 = vpop.permute.xlu1 %7915  ;;  %v4799_v49 = vpop.xlane.xlu0 %4798 }
 0x7ac   :  { %4834 = vadd.xlane.f32.xlu1 %v4833_v30  ;;  %29099 = vmatmul.mubr.msk.f32.vlgmr.msra.gmra.mrb[108].mxu1 %vm293_vm2, %v7682_v52  ;;  %v32689_v18 = vpop.eup %30627 }
 0x7ad   :  { %29102 = vmatpush3.xpose.msk.msra.mxu1 %vm293_vm2, %v7762_v26  ;;  %29103 = vmatprep.mubr.msk.f32.mxu1 %vm31188_vm1, %v36411_v13  ;;  %v4839_v21 = vsel %vm293_vm2, %v32689_v18, 0.0 }
 0x7ae   :  { %29106 = vmatprep.subr.mxu1 %v36411_v13 }
 0x7af   :  { %v7996_v9 = vpop.permute.xlu1 %7995  ;;  %v4811_v3 = vpop.xlane.xlu0 %4810 }
 0x7b0   :  { %29104 = vmatmul.mubr.msk.f32.vlgmr.msra.gmra.mrb[110].mxu1 %vm293_vm2, %v7760_v48 }
 0x7b1   :  { %29107 = vmatpush3.xpose.msk.msra.mxu1 %vm293_vm2, %v7840_v37  ;;  %29108 = vmatprep.mubr.msk.f32.mxu1 %vm31188_vm1, %v36411_v13 }
 0x7b2   :  { %29111 = vmatprep.subr.mxu1 %v36411_v13 }
 0x7b3   :  { %v7994_v20 = vpop.permute.xlu1 %7993 }
 0x7b4   :  { %29109 = vmatmul.mubr.msk.f32.vlgmr.msra.gmra.mrb[112].mxu1 %vm293_vm2, %v7838_v54 }
 0x7b5   :  { %29112 = vmatpush3.xpose.msk.msra.mxu1 %vm293_vm2, %v7918_v14  ;;  %29113 = vmatprep.mubr.msk.f32.mxu1 %vm31188_vm1, %v36411_v13 }
 0x7b6   :  { %29116 = vmatprep.subr.mxu1 %v36411_v13 }
 0x7b8   :  { %29114 = vmatmul.mubr.msk.f32.vlgmr.msra.gmra.mrb[114].mxu1 %vm293_vm2, %v7916_v2 }
 0x7b9   :  { %29117 = vmatpush3.xpose.msk.msra.mxu1 %vm293_vm2, %v7996_v9  ;;  %29118 = vmatprep.mubr.msk.f32.mxu1 %vm31188_vm1, %v36411_v13 }
 0x7ba   :  { %29126 = vmatprep.subr.mxu1 %v36411_v13 }
 0x7bc   :  { %29119 = vmatmul.mubr.msk.f32.vlgmr.msra.gmra.mrb[116].mxu1 %vm293_vm2, %v7994_v20 }
 0x7bd   :  { %5033 = vrot.lane.b32.xlu1 %v36461_v45, %s31193_s20  ;;  %29128 = vmatprep.mubr.msk.f32.mxu1 %vm31188_vm1, %v36411_v13 }
 0x7cd   :  { %v32680_v51 = vpop.f32.mrb[66].mxu1 }
 0x7ce   :  { %v28902_v32 = vpop.f32.mrb[67].mxu1 }
 0x7d1   :  { %v32682_v22 = vpop.f32.mrb[68].mxu1 }
 0x7d2   :  { %v28912_v4 = vpop.f32.mrb[69].mxu1 }
 0x7d3   :  { %v4823_v11 = vpop.xlane.xlu0 %4822 }
 0x7d7   :  { %v4882_v58 = vpop.permute.xlu0 %4881 }
 0x7d8   :  { %28884 = vmatpush3.msra.mxu0 %v4882_v58 }
 0x7d9   :  { %v32684_v62 = vpop.f32.mrb[70].mxu1  ;;  %28893 = vmatprep.subr.mxu0 %v36411_v13 }
 0x7da   :  { %v28922_v41 = vpop.f32.mrb[71].mxu1 }
 0x7db   :  { %v5186_v6 = vpop.permute.xlu0 %5185 }
 0x7dd   :  { %v32687_v38 = vpop.f32.mrb[72].mxu1 }
 0x7de   :  { %v28932_v23 = vpop.f32.mrb[73].mxu1 }
 0x7df   :  { %v5338_v8 = vpop.permute.xlu0 %5337 }
 0x7e1   :  { %4840 = vadd.xlane.f32.xlu1 %v4839_v21 }
 0x7e3   :  { %v5490_v7 = vpop.permute.xlu0 %5489 }
 0x7e4   :  { %v4793_v39 = vpop.xlane.xlu1 %4792 }
 0x7e5   :  { %30629 = vrcp.f32 %v4793_v39 }
 0x7e6   :  { %30631 = vrcp.f32 %v4799_v49 }
 0x7e7   :  { %v32693_v16 = vpop.permute.xlu0 %5641 }
 0x7e8   :  { %v4805_v2 = vpop.xlane.xlu1 %4804 }
 0x7e9   :  { %30633 = vrcp.f32 %v4805_v2  ;;  %v70_v2 = vld [vmem:[%s36365_s3 + $0x8] sm:$0xff] }
 0x7ea   :  { %30635 = vrcp.f32 %v4811_v3 }
 0x7eb   :  { %v32695_v43 = vpop.permute.xlu0 %5793 }
 0x7ec   :  { %v4817_v14 = vpop.xlane.xlu1 %4816 }
 0x7ed   :  { %30637 = vrcp.f32 %v4817_v14 }
 0x7ee   :  { %30639 = vrcp.f32 %v4823_v11 }
 0x7ef   :  { %v30630_v19 = vpop.eup %30629  ;;  %v32697_v17 = vpop.permute.xlu0 %5945 }
 0x7f0   :  { %v4846_v42 = vmul.f32 %v30630_v19, %v32505_v12  ;;  %v36462_v12 = vld [vmem:[#allocation5_spill] sm:$0xff]  ;;  %v4829_v9 = vpop.xlane.xlu1 %4828  ;;  %v30632_v10 = vpop.eup %30631 }
 0x7f1   :  { %v4850_v15 = vmul.f32 %v30632_v10, %v32453_v56  ;;  %30641 = vrcp.f32 %v4829_v9 }
 0x7f2   :  { %8287 = vrot.lane.b32.xlu1 %v31364_v28, %s31196_s22  ;;  %28886 = vmatmul.mubr.msk.f32.vlgmr.msra.gmra.mrb[62].mxu0 %vm293_vm2, %v4846_v42 }
 0x7f3   :  { %v32703_v48 = vpop.permute.xlu0 %6097  ;;  %28895 = vmatprep.mubr.msk.f32.mxu0 %vm31188_vm1, %v36411_v13  ;;  %v30634_v4 = vpop.eup %30633 }
 0x7f4   :  { %v4854_v49 = vmul.f32 %v30634_v4, %v32509_v1  ;;  %v30636_v3 = vpop.eup %30635 }
 0x7f5   :  { %v4858_v56 = vmul.f32 %v30636_v3, %v32457_v5 }
 0x7f6   :  { %8439 = vrot.lane.b32.xlu1 %v36461_v45, %s31196_s22 }
 0x7f7   :  { %v8364_v37 = vpop.permute.xlu0 %8363  ;;  %v30638_v11 = vpop.eup %30637 }
 0x7f8   :  { %29127 = vmatpush3.msra.mxu1 %v8364_v37  ;;  %v4862_v41 = vmul.f32 %v30638_v11, %v32513_v34 }
 0x7f9   :  { %29136 = vmatprep.subr.mxu1 %v36411_v13 }
 0x7fa   :  { %8591 = vrot.lane.b32.xlu1 %v31378_v36, %s31196_s22 }
 0x7fe   :  { %8743 = vrot.lane.b32.xlu1 %v31386_v40, %s31196_s22 }
 0x802   :  { %8819 = vrot.lane.b32.xlu1 %v36462_v12, %s31196_s22 }
 0x806   :  { %8895 = vrot.lane.b32.xlu1 %v31394_v44, %s31196_s22 }
 0x80a   :  { %9047 = vrot.lane.b32.xlu1 %v31414_v55, %s31196_s22 }
 0x80e   :  { %v32720_v52 = vpop.f32.mrb[74].mxu1  ;;  %9199 = vrot.lane.b32.xlu1 %v31420_v59, %s31196_s22 }
 0x80f   :  { %v28942_v54 = vpop.f32.mrb[75].mxu1 }
 0x812   :  { %v32724_v63 = vpop.f32.mrb[76].mxu1 }
 0x813   :  { %v28952_v26 = vpop.f32.mrb[77].mxu1 }
 0x816   :  { %v32726_v30 = vpop.f32.mrb[78].mxu1 }
 0x817   :  { %v28962_v29 = vpop.f32.mrb[79].mxu1 }
 0x839   :  { %v4835_v20 = vpop.xlane.xlu1 %4834 }
 0x83a   :  { %30643 = vrcp.f32 %v4835_v20 }
 0x83d   :  { %v5034_v32 = vpop.permute.xlu1 %5033 }
 0x83e   :  { %28894 = vmatpush3.msra.mxu0 %v5034_v32 }
 0x83f   :  { %28896 = vmatmul.mubr.msk.f32.vlgmr.msra.gmra.mrb[64].mxu0 %vm293_vm2, %v4850_v15  ;;  %28903 = vmatprep.subr.mxu0 %v36411_v13 }
 0x840   :  { %28904 = vmatpush3.msra.mxu0 %v5186_v6  ;;  %28905 = vmatprep.mubr.msk.f32.mxu0 %vm31188_vm1, %v36411_v13  ;;  %v30640_v6 = vpop.eup %30639 }
 0x841   :  { %28913 = vmatprep.subr.mxu0 %v36411_v13  ;;  %v4866_v21 = vmul.f32 %v30640_v6, %v32492_v46 }
 0x843   :  { %28906 = vmatmul.mubr.msk.f32.vlgmr.msra.gmra.mrb[66].mxu0 %vm293_vm2, %v4854_v49 }
 0x844   :  { %28914 = vmatpush3.msra.mxu0 %v5338_v8  ;;  %28915 = vmatprep.mubr.msk.f32.mxu0 %vm31188_vm1, %v36411_v13 }
 0x845   :  { %28923 = vmatprep.subr.mxu0 %v36411_v13 }
 0x847   :  { %28916 = vmatmul.mubr.msk.f32.vlgmr.msra.gmra.mrb[68].mxu0 %vm293_vm2, %v4858_v56  ;;  %v32741_v58 = vpop.f32.mrb[80].mxu1 }
 0x848   :  { %28924 = vmatpush3.msra.mxu0 %v5490_v7  ;;  %v28972_v1 = vpop.f32.mrb[81].mxu1  ;;  %28925 = vmatprep.mubr.msk.f32.mxu0 %vm31188_vm1, %v36411_v13  ;;  %v30642_v7 = vpop.eup %30641 }
 0x849   :  { %28933 = vmatprep.subr.mxu0 %v36411_v13  ;;  %v4870_v46 = vmul.f32 %v30642_v7, %v32521_v0  ;;  %v30644_v42 = vpop.eup %30643 }
 0x84a   :  { %v4874_v0 = vmul.f32 %v30644_v42, %v32649_v35 }
 0x84b   :  { %28926 = vmatmul.mubr.msk.f32.vlgmr.msra.gmra.mrb[70].mxu0 %vm293_vm2, %v4862_v41  ;;  %v6741_v23 = vpop.f32.mrb[82].mxu1 }
 0x84c   :  { %28934 = vmatpush3.msra.mxu0 %v32693_v16  ;;  %v32749_v5 = vmul.f32 0.35355338, %v6741_v23  ;;  %v29035_v8 = vpop.f32.mrb[83].mxu1  ;;  %28935 = vmatprep.mubr.msk.f32.mxu0 %vm31188_vm1, %v36411_v13 }
 0x84d   :  { %28943 = vmatprep.subr.mxu0 %v36411_v13 }
 0x84e   :  { %v8089_v34 = vsel %vm293_vm2, %v32749_v5, -inf }
 0x84f   :  { %v6819_v39 = vpop.f32.mrb[84].mxu1  ;;  %8090 = vmax.xlane.f32.xlu0 %v8089_v34  ;;  %28936 = vmatmul.mubr.msk.f32.vlgmr.msra.gmra.mrb[72].mxu0 %vm293_vm2, %v4866_v21 }
 0x850   :  { %v32758_v19 = vmul.f32 0.35355338, %v6819_v39  ;;  %28944 = vmatpush3.msra.mxu0 %v32695_v43  ;;  %v29040_v16 = vpop.f32.mrb[85].mxu1  ;;  %28945 = vmatprep.mubr.msk.f32.mxu0 %vm31188_vm1, %v36411_v13 }
 0x851   :  { %28953 = vmatprep.subr.mxu0 %v36411_v13 }
 0x852   :  { %v8092_v37 = vsel %vm293_vm2, %v32758_v19, -inf }
 0x853   :  { %v6897_v54 = vpop.f32.mrb[86].mxu1  ;;  %8093 = vmax.xlane.f32.xlu1 %v8092_v37  ;;  %28946 = vmatmul.mubr.msk.f32.vlgmr.msra.gmra.mrb[74].mxu0 %vm293_vm2, %v4870_v46 }
 0x854   :  { %v32768_v26 = vmul.f32 0.35355338, %v6897_v54  ;;  %28954 = vmatpush3.msra.mxu0 %v32697_v17  ;;  %v29045_v43 = vpop.f32.mrb[87].mxu1  ;;  %28955 = vmatprep.mubr.msk.f32.mxu0 %vm31188_vm1, %v36411_v13 }
 0x855   :  { %28963 = vmatprep.subr.mxu0 %v36411_v13 }
 0x856   :  { %v8095_v29 = vsel %vm293_vm2, %v32768_v26, -inf }
 0x857   :  { %v6975_v14 = vpop.f32.mrb[88].mxu1  ;;  %8096 = vmax.xlane.f32.xlu1 %v8095_v29  ;;  %28956 = vmatmul.mubr.msk.f32.vlgmr.msra.gmra.mrb[76].mxu0 %vm293_vm2, %v4874_v0 }
 0x858   :  { %v32781_v17 = vmul.f32 0.35355338, %v6975_v14  ;;  %28964 = vmatpush3.msra.mxu0 %v32703_v48  ;;  %v29050_v9 = vpop.f32.mrb[89].mxu1  ;;  %28965 = vmatprep.mubr.msk.f32.mxu0 %vm31188_vm1, %v36411_v13 }
 0x859   :  { %28973 = vmatprep.subr.mxu0 %v70_v2 }
 0x85a   :  { %v8098_v35 = vsel %vm293_vm2, %v32781_v17, -inf }
 0x85b   :  { %v7053_v20 = vpop.f32.mrb[90].mxu1  ;;  %8099 = vmax.xlane.f32.xlu1 %v8098_v35 }
 0x85c   :  { %v32788_v10 = vmul.f32 0.35355338, %v7053_v20  ;;  %v29055_v32 = vpop.f32.mrb[91].mxu1 }
 0x85e   :  { %v8101_v15 = vsel %vm293_vm2, %v32788_v10, -inf }
 0x85f   :  { %v7131_v4 = vpop.f32.mrb[92].mxu1  ;;  %8102 = vmax.xlane.f32.xlu1 %v8101_v15 }
 0x860   :  { %v32792_v49 = vmul.f32 0.35355338, %v7131_v4  ;;  %v29060_v48 = vpop.f32.mrb[93].mxu1 }
 0x862   :  { %v8104_v3 = vsel %vm293_vm2, %v32792_v49, -inf }
 0x863   :  { %v7209_v56 = vpop.f32.mrb[94].mxu1  ;;  %8105 = vmax.xlane.f32.xlu1 %v8104_v3 }
 0x864   :  { %v32796_v11 = vmul.f32 0.35355338, %v7209_v56  ;;  %v29065_v1 = vpop.f32.mrb[95].mxu1 }
 0x865   :  { %9275 = vrot.lane.b32.xlu0 %v31408_v50, %s31196_s22 }
 0x866   :  { %v8107_v41 = vsel %vm293_vm2, %v32796_v11, -inf }
 0x867   :  { %v7287_v6 = vpop.f32.mrb[96].mxu1  ;;  %8108 = vmax.xlane.f32.xlu1 %v8107_v41 }
 0x868   :  { %v29070_v23 = vpop.f32.mrb[97].mxu1  ;;  %v32816_v4 = vmul.f32 0.35355338, %v7287_v6 }
 0x86b   :  { %v7365_v8 = vpop.f32.mrb[98].mxu1 }
 0x86c   :  { %v32802_v21 = vmul.f32 0.35355338, %v7365_v8  ;;  %v29075_v7 = vpop.f32.mrb[99].mxu1 }
 0x86e   :  { %v4841_v34 = vpop.xlane.xlu1 %4840  ;;  %v8113_v39 = vsel %vm293_vm2, %v32802_v21, -inf }
 0x86f   :  { %30645 = vrcp.f32 %v4841_v34  ;;  %v7443_v16 = vpop.f32.mrb[100].mxu1  ;;  %8114 = vmax.xlane.f32.xlu1 %v8113_v39 }
 0x870   :  { %v29080_v46 = vpop.f32.mrb[101].mxu1  ;;  %v32818_v56 = vmul.f32 0.35355338, %v7443_v16 }
 0x872   :  { %v8116_v7 = vsel %vm293_vm2, %v32818_v56, -inf }
 0x873   :  { %v7521_v42 = vpop.f32.mrb[102].mxu1 }
 0x874   :  { %v32806_v37 = vmul.f32 0.35355338, %v7521_v42  ;;  %v29085_v54 = vpop.f32.mrb[103].mxu1 }
 0x876   :  { %v8119_v43 = vsel %vm293_vm2, %v32806_v37, -inf }
 0x877   :  { %v7599_v0 = vpop.f32.mrb[104].mxu1  ;;  %8120 = vmax.xlane.f32.xlu1 %v8119_v43 }
 0x878   :  { %v29090_v29 = vpop.f32.mrb[105].mxu1  ;;  %v32826_v8 = vmul.f32 0.35355338, %v7599_v0 }
 0x879   :  { %v30646_v14 = vpop.eup %30645 }
 0x87a   :  { %v4878_v9 = vmul.f32 %v30646_v14, %v32689_v18  ;;  %v8110_v18 = vsel %vm293_vm2, %v32816_v4, -inf  ;;  %v8122_v46 = vsel %vm293_vm2, %v32826_v8, -inf }
 0x87b   :  { %v7677_v35 = vpop.f32.mrb[106].mxu1 }
 0x87c   :  { %v32811_v20 = vmul.f32 0.35355338, %v7677_v35  ;;  %28966 = vmatmul.mubr.msk.f32.vlgmr.msra.gmra.mrb[78].mxu0 %vm293_vm2, %v4878_v9  ;;  %v29095_v32 = vpop.f32.mrb[107].mxu1 }
 0x87d   :  { %28974 = vmatpush3.msra.mxu0 %v70_v2 }
 0x87e   :  { %v8125_v15 = vsel %vm293_vm2, %v32811_v20, -inf }
 0x87f   :  { %v7755_v48 = vpop.f32.mrb[108].mxu1  ;;  %8126 = vmax.xlane.f32.xlu1 %v8125_v15 }
 0x880   :  { %v29100_v3 = vpop.f32.mrb[109].mxu1  ;;  %v32830_v39 = vmul.f32 0.35355338, %v7755_v48  ;;  %v32852_v48 = vpop.permute.xlu1 %8287 }
 0x882   :  { %v8128_v14 = vsel %vm293_vm2, %v32830_v39, -inf }
 0x883   :  { %v7833_v1 = vpop.f32.mrb[110].mxu1 }
 0x884   :  { %v32822_v41 = vmul.f32 0.35355338, %v7833_v1  ;;  %8111 = vmax.xlane.f32.xlu0 %v8110_v18  ;;  %v29105_v23 = vpop.f32.mrb[111].mxu1  ;;  %v32854_v3 = vpop.permute.xlu1 %8439 }
 0x886   :  { %v8131_v2 = vsel %vm293_vm2, %v32822_v41, -inf }
 0x887   :  { %v7911_v6 = vpop.f32.mrb[112].mxu1  ;;  %8132 = vmax.xlane.f32.xlu1 %v8131_v2  ;;  %v32860_v2 = vpop.permute.xlu0 %8515 }
 0x888   :  { %8117 = vmax.xlane.f32.xlu0 %v8116_v7  ;;  %v29110_v34 = vpop.f32.mrb[113].mxu1  ;;  %v32838_v0 = vmul.f32 0.35355338, %v7911_v6  ;;  %v32856_v1 = vpop.permute.xlu1 %8591 }
 0x88a   :  { %v8134_v32 = vsel %vm293_vm2, %v32838_v0, -inf }
 0x88b   :  { %v7989_v16 = vpop.f32.mrb[114].mxu1  ;;  %v32867_v34 = vpop.permute.xlu0 %8667 }
 0x88c   :  { %v32834_v42 = vmul.f32 0.35355338, %v7989_v16  ;;  %8123 = vmax.xlane.f32.xlu0 %v8122_v46  ;;  %v29115_v54 = vpop.f32.mrb[115].mxu1  ;;  %v32858_v18 = vpop.permute.xlu1 %8743  ;;  %v69_v46 = vld [vmem:[%s36365_s3] sm:$0xff] }
 0x88d   :  { %36463 = vst [vmem:[#allocation33_spill] sm:$0xff] %v32858_v18  ;;  %29002 = vmatprep.subr.mxu0 %v69_v46 }
 0x88e   :  { %v8137_v43 = vsel %vm293_vm2, %v32834_v42, -inf }
 0x88f   :  { %8138 = vmax.xlane.f32.xlu1 %v8137_v43  ;;  %v8067_v29 = vpop.f32.mrb[116].mxu1  ;;  %v32874_v54 = vpop.permute.xlu0 %8971 }
 0x890   :  { %8129 = vmax.xlane.f32.xlu0 %v8128_v14  ;;  %v29120_v9 = vpop.f32.mrb[117].mxu1  ;;  %v32842_v35 = vmul.f32 0.35355338, %v8067_v29  ;;  %v32865_v7 = vpop.permute.xlu1 %8819  ;;  %36466 = vst [vmem:[#allocation34_spill] sm:$0xff] %v32874_v54 }
 0x891   :  { %36464 = vst [vmem:[#allocation4_spill] sm:$0xff] %v32865_v7 }
 0x892   :  { %v8140_v15 = vsel %vm293_vm2, %v32842_v35, -inf }
 0x893   :  { %v32879_v29 = vpop.permute.xlu0 %9123 }
 0x894   :  { %8135 = vmax.xlane.f32.xlu0 %v8134_v32  ;;  %v32869_v16 = vpop.permute.xlu1 %8895  ;;  %36468 = vst [vmem:[#allocation26_spill] sm:$0xff] %v32879_v29 }
 0x895   :  { %36465 = vst [vmem:[#allocation25_spill] sm:$0xff] %v32869_v16 }
 0x898   :  { %8141 = vmax.xlane.f32.xlu0 %v8140_v15  ;;  %v32877_v43 = vpop.permute.xlu1 %9047 }
 0x899   :  { %36467 = vst [vmem:[#allocation6_spill] sm:$0xff] %v32877_v43 }
 0x8a0   :  { %9351 = vrot.lane.b32.xlu1 %v31422_v60, %s31196_s22 }
 0x8ae   :  { %9427 = vrot.lane.b32.xlu0 %v31412_v53, %s31196_s22 }
 0x8c5   :  { %v4953_v23 = vpop.f32.mrb[62].mxu0 }
 0x8c6   :  { %v28887_v6 = vpop.f32.mrb[63].mxu0  ;;  %28975 = vmatprep.mubr.msk.f32.mxu0 %vm293_vm2, %v4953_v23 }
 0x8c7   :  { %28976 = vmatmul.mubr.msk.f32.vlgmr.msra.gmra.mrb[80].mxu0 %vm293_vm2, %v32644_v27  ;;  %v32881_v27 = vpop.permute.xlu1 %9199 }
 0x8c8   :  { %29003 = vmatpush3.msra.mxu0 %v69_v46  ;;  %36469 = vst [vmem:[#allocation35_spill] sm:$0xff] %v32881_v27 }
 0x8c9   :  { %29121 = vmatprep.subr.mxu0 %v36411_v13 }
 0x8dc   :  { %v8091_v14 = vpop.xlane.xlu0 %8090 }
 0x8dd   :  { %v8143_v9 = vsub.f32 %v32749_v5, %v8091_v14 }
 0x8df   :  { %v8161_v32 = vmul.f32 1.442695, %v8143_v9 }
 0x8e0   :  { %v8094_v15 = vpop.xlane.xlu1 %8093 }
 0x8e1   :  { %30647 = vpow2.f32 %v8161_v32  ;;  %v8144_v23 = vsub.f32 %v32758_v19, %v8094_v15 }
 0x8e3   :  { %v8163_v6 = vmul.f32 1.442695, %v8144_v23 }
 0x8e4   :  { %v8097_v54 = vpop.xlane.xlu1 %8096 }
 0x8e5   :  { %30649 = vpow2.f32 %v8163_v6  ;;  %v8145_v46 = vsub.f32 %v32768_v26, %v8097_v54 }
 0x8e7   :  { %v8165_v16 = vmul.f32 1.442695, %v8145_v46 }
 0x8e8   :  { %v8100_v7 = vpop.xlane.xlu1 %8099 }
 0x8e9   :  { %30651 = vpow2.f32 %v8165_v16  ;;  %v8146_v29 = vsub.f32 %v32781_v17, %v8100_v7 }
 0x8eb   :  { %v32887_v43 = vpop.eup %30647  ;;  %v8167_v27 = vmul.f32 1.442695, %v8146_v29 }
 0x8ec   :  { %v8103_v18 = vpop.xlane.xlu1 %8102  ;;  %v8197_v5 = vsel %vm293_vm2, %v32887_v43, 0.0 }
 0x8ed   :  { %30653 = vpow2.f32 %v8167_v27  ;;  %v8147_v19 = vsub.f32 %v32788_v10, %v8103_v18  ;;  %8198 = vadd.xlane.f32.xlu1 %v8197_v5 }
 0x8ef   :  { %v32892_v14 = vpop.eup %30649  ;;  %v8169_v9 = vmul.f32 1.442695, %v8147_v19 }
 0x8f0   :  { %v8106_v26 = vpop.xlane.xlu1 %8105  ;;  %v8200_v16 = vsel %vm293_vm2, %v32892_v14, 0.0 }
 0x8f1   :  { %30655 = vpow2.f32 %v8169_v9  ;;  %v8148_v17 = vsub.f32 %v32792_v49, %v8106_v26  ;;  %8201 = vadd.xlane.f32.xlu0 %v8200_v16 }
 0x8f3   :  { %v32897_v7 = vpop.eup %30651  ;;  %v8171_v54 = vmul.f32 1.442695, %v8148_v17 }
 0x8f4   :  { %v8109_v29 = vpop.xlane.xlu1 %8108  ;;  %v8203_v27 = vsel %vm293_vm2, %v32897_v7, 0.0 }
 0x8f5   :  { %30657 = vpow2.f32 %v8171_v54  ;;  %v8149_v10 = vsub.f32 %v32796_v11, %v8109_v29  ;;  %8204 = vadd.xlane.f32.xlu1 %v8203_v27 }
 0x8f7   :  { %v32902_v18 = vpop.eup %30653  ;;  %v8173_v32 = vmul.f32 1.442695, %v8149_v10  ;;  %v32924_v10 = vpop.permute.xlu0 %9275 }
 0x8f8   :  { %v8206_v15 = vsel %vm293_vm2, %v32902_v18, 0.0 }
 0x8f9   :  { %30659 = vpow2.f32 %v8173_v32  ;;  %8207 = vadd.xlane.f32.xlu0 %v8206_v15 }
 0x8fb   :  { %v32906_v49 = vpop.eup %30655 }
 0x8fc   :  { %v8115_v23 = vpop.xlane.xlu1 %8114  ;;  %v8209_v6 = vsel %vm293_vm2, %v32906_v49, 0.0 }
 0x8fd   :  { %v8151_v46 = vsub.f32 %v32802_v21, %v8115_v23  ;;  %8210 = vadd.xlane.f32.xlu1 %v8209_v6 }
 0x8ff   :  { %v32911_v5 = vpop.eup %30657  ;;  %v8177_v11 = vmul.f32 1.442695, %v8151_v46 }
 0x900   :  { %v8212_v19 = vsel %vm293_vm2, %v32911_v5, 0.0 }
 0x901   :  { %30661 = vpow2.f32 %v8177_v11  ;;  %8213 = vadd.xlane.f32.xlu0 %v8212_v19 }
 0x903   :  { %v32915_v9 = vpop.eup %30659 }
 0x904   :  { %v8121_v26 = vpop.xlane.xlu1 %8120  ;;  %v8215_v16 = vsel %vm293_vm2, %v32915_v9, 0.0 }
 0x905   :  { %v8153_v17 = vsub.f32 %v32806_v37, %v8121_v26  ;;  %8216 = vadd.xlane.f32.xlu1 %v8215_v16 }
 0x907   :  { %v8181_v54 = vmul.f32 1.442695, %v8153_v17 }
 0x909   :  { %30663 = vpow2.f32 %v8181_v54 }
 0x90b   :  { %v32920_v21 = vpop.eup %30661 }
 0x90c   :  { %v8127_v29 = vpop.xlane.xlu1 %8126  ;;  %v8221_v27 = vsel %vm293_vm2, %v32920_v21, 0.0 }
 0x90d   :  { %v8155_v32 = vsub.f32 %v32811_v20, %v8127_v29  ;;  %8222 = vadd.xlane.f32.xlu1 %v8221_v27 }
 0x90f   :  { %v8185_v15 = vmul.f32 1.442695, %v8155_v32 }
 0x911   :  { %30665 = vpow2.f32 %v8185_v15  ;;  %v8112_v23 = vpop.xlane.xlu0 %8111 }
 0x912   :  { %v8150_v6 = vsub.f32 %v32816_v4, %v8112_v23  ;;  %v5105_v37 = vpop.f32.mrb[64].mxu0 }
 0x913   :  { %v32928_v46 = vpop.eup %30663  ;;  %v28897_v11 = vpop.f32.mrb[65].mxu0  ;;  %28978 = vmatprep.mubr.msk.f32.mxu0 %vm293_vm2, %v5105_v37 }
 0x914   :  { %v8175_v19 = vmul.f32 1.442695, %v8150_v6  ;;  %v8133_v26 = vpop.xlane.xlu1 %8132  ;;  %28979 = vmatmul.mubr.msk.f32.gmra.mrb[82].mxu0 %vm293_vm2, %v32680_v51  ;;  %v8227_v20 = vsel %vm293_vm2, %v32928_v46, 0.0 }
 0x915   :  { %v8157_v16 = vsub.f32 %v32822_v41, %v8133_v26  ;;  %8228 = vadd.xlane.f32.xlu1 %v8227_v20  ;;  %v8118_v17 = vpop.xlane.xlu0 %8117 }
 0x916   :  { %30667 = vpow2.f32 %v8175_v19  ;;  %v8152_v4 = vsub.f32 %v32818_v56, %v8118_v17  ;;  %v5257_v54 = vpop.f32.mrb[66].mxu0 }
 0x917   :  { %v8189_v29 = vmul.f32 1.442695, %v8157_v16  ;;  %v28907_v27 = vpop.f32.mrb[67].mxu0  ;;  %28981 = vmatprep.mubr.msk.f32.mxu0 %vm293_vm2, %v5257_v54 }
 0x918   :  { %v8179_v32 = vmul.f32 1.442695, %v8152_v4  ;;  %28982 = vmatmul.mubr.msk.f32.gmra.mrb[84].mxu0 %vm293_vm2, %v32682_v22 }
 0x919   :  { %30669 = vpow2.f32 %v8189_v29  ;;  %v8124_v51 = vpop.xlane.xlu0 %8123 }
 0x91a   :  { %30671 = vpow2.f32 %v8179_v32  ;;  %v8154_v15 = vsub.f32 %v32826_v8, %v8124_v51  ;;  %v5409_v41 = vpop.f32.mrb[68].mxu0 }
 0x91b   :  { %v32941_v23 = vpop.eup %30665  ;;  %v28917_v6 = vpop.f32.mrb[69].mxu0  ;;  %28984 = vmatprep.mubr.msk.f32.mxu0 %vm293_vm2, %v5409_v41 }
 0x91c   :  { %v8183_v56 = vmul.f32 1.442695, %v8154_v15  ;;  %v8139_v37 = vpop.xlane.xlu1 %8138  ;;  %28985 = vmatmul.mubr.msk.f32.gmra.mrb[86].mxu0 %vm293_vm2, %v32684_v62  ;;  %v8233_v11 = vsel %vm293_vm2, %v32941_v23, 0.0 }
 0x91d   :  { %v8159_v22 = vsub.f32 %v32834_v42, %v8139_v37  ;;  %8234 = vadd.xlane.f32.xlu1 %v8233_v11  ;;  %v8130_v19 = vpop.xlane.xlu0 %8129 }
 0x91e   :  { %30673 = vpow2.f32 %v8183_v56  ;;  %v8156_v8 = vsub.f32 %v32830_v39, %v8130_v19  ;;  %v5561_v26 = vpop.f32.mrb[70].mxu0 }
 0x91f   :  { %v8193_v20 = vmul.f32 1.442695, %v8159_v22  ;;  %v28927_v16 = vpop.f32.mrb[71].mxu0  ;;  %28987 = vmatprep.mubr.msk.f32.mxu0 %vm293_vm2, %v5561_v26 }
 0x920   :  { %v32951_v17 = vpop.eup %30667  ;;  %v8187_v4 = vmul.f32 1.442695, %v8156_v8  ;;  %28988 = vmatmul.mubr.msk.f32.gmra.mrb[88].mxu0 %vm293_vm2, %v32687_v38 }
 0x921   :  { %30675 = vpow2.f32 %v8193_v20  ;;  %v8136_v62 = vpop.xlane.xlu0 %8135  ;;  %v8218_v42 = vsel %vm293_vm2, %v32951_v17, 0.0 }
 0x922   :  { %30677 = vpow2.f32 %v8187_v4  ;;  %v8158_v54 = vsub.f32 %v32838_v0, %v8136_v62  ;;  %v5713_v39 = vpop.f32.mrb[72].mxu0  ;;  %8219 = vadd.xlane.f32.xlu0 %v8218_v42 }
 0x923   :  { %v32958_v29 = vpop.eup %30669  ;;  %v28937_v27 = vpop.f32.mrb[73].mxu0  ;;  %28990 = vmatprep.mubr.msk.f32.mxu0 %vm293_vm2, %v5713_v39  ;;  %v36471_v39 = vld [vmem:[#allocation7_spill] sm:$0xff] }
 0x924   :  { %v32961_v32 = vpop.eup %30671  ;;  %v8191_v51 = vmul.f32 1.442695, %v8158_v54  ;;  %28991 = vmatmul.mubr.msk.f32.gmra.mrb[90].mxu0 %vm293_vm2, %v32720_v52  ;;  %v8239_v38 = vsel %vm293_vm2, %v32958_v29, 0.0  ;;  %v36470_v54 = vld [vmem:[#allocation16_spill] sm:$0xff]  ;;  %v36472_v27 = vld [vmem:[#allocation17_spill] sm:$0xff] }
 0x925   :  { %8240 = vadd.xlane.f32.xlu1 %v8239_v38  ;;  %v8142_v15 = vpop.xlane.xlu0 %8141  ;;  %v8224_v0 = vsel %vm293_vm2, %v32961_v32, 0.0  ;;  %v36476_v38 = vld [vmem:[#allocation19_spill] sm:$0xff] }
 0x926   :  { %30679 = vpow2.f32 %v8191_v51  ;;  %v8160_v41 = vsub.f32 %v32842_v35, %v8142_v15  ;;  %v5865_v6 = vpop.f32.mrb[74].mxu0  ;;  %8225 = vadd.xlane.f32.xlu0 %v8224_v0  ;;  %v36474_v51 = vld [vmem:[#allocation18_spill] sm:$0xff]  ;;  %v36478_v0 = vld [vmem:[#allocation20_spill] sm:$0xff] }
 0x927   :  { %v28947_v56 = vpop.f32.mrb[75].mxu0  ;;  %28993 = vmatprep.mubr.msk.f32.mxu0 %vm293_vm2, %v5865_v6  ;;  %v36477_v15 = vld [vmem:[#allocation10_spill] sm:$0xff]  ;;  %v36480_v6 = vld [vmem:[#allocation21_spill] sm:$0xff] }
 0x928   :  { %v32971_v37 = vpop.eup %30673  ;;  %v8195_v11 = vmul.f32 1.442695, %v8160_v41  ;;  %28994 = vmatmul.mubr.msk.f32.gmra.mrb[92].mxu0 %vm293_vm2, %v32724_v63  ;;  %v36479_v41 = vld [vmem:[#allocation11_spill] sm:$0xff]  ;;  %v36481_v56 = vld [vmem:[#allocation12_spill] sm:$0xff] }
 0x929   :  { %v8230_v52 = vsel %vm293_vm2, %v32971_v37, 0.0 }
 0x92a   :  { %30681 = vpow2.f32 %v8195_v11  ;;  %v6017_v22 = vpop.f32.mrb[76].mxu0  ;;  %8231 = vadd.xlane.f32.xlu0 %v8230_v52  ;;  %v36482_v11 = vld [vmem:[#allocation22_spill] sm:$0xff]  ;;  %v36483_v52 = vld [vmem:[#allocation13_spill] sm:$0xff] }
 0x92b   :  { %v32977_v19 = vpop.eup %30675  ;;  %v28957_v35 = vpop.f32.mrb[77].mxu0  ;;  %28996 = vmatprep.mubr.msk.f32.mxu0 %vm293_vm2, %v6017_v22  ;;  %v36484_v22 = vld [vmem:[#allocation23_spill] sm:$0xff] }
 0x92c   :  { %v32980_v8 = vpop.eup %30677  ;;  %28997 = vmatmul.mubr.msk.f32.gmra.mrb[94].mxu0 %vm293_vm2, %v32726_v30  ;;  %v8245_v26 = vsel %vm293_vm2, %v32977_v19, 0.0  ;;  %v36485_v35 = vld [vmem:[#allocation14_spill] sm:$0xff] }
 0x92d   :  { %8246 = vadd.xlane.f32.xlu1 %v8245_v26  ;;  %v8236_v63 = vsel %vm293_vm2, %v32980_v8, 0.0  ;;  %v36486_v26 = vld [vmem:[#allocation24_spill] sm:$0xff] }
 0x92e   :  { %8237 = vadd.xlane.f32.xlu0 %v8236_v63  ;;  %v36487_v63 = vld [vmem:[#allocation15_spill] sm:$0xff] }
 0x930   :  { %v32988_v20 = vpop.eup %30679 }
 0x931   :  { %v8242_v16 = vsel %vm293_vm2, %v32988_v20, 0.0 }
 0x932   :  { %8243 = vadd.xlane.f32.xlu0 %v8242_v16  ;;  %v33087_v16 = vpop.permute.xlu1 %9351 }
 0x934   :  { %v32992_v4 = vpop.eup %30681 }
 0x935   :  { %v8248_v62 = vsel %vm293_vm2, %v32992_v4, 0.0 }
 0x936   :  { %8249 = vadd.xlane.f32.xlu0 %v8248_v62  ;;  %v33095_v62 = vpop.permute.xlu0 %9427 }
 0x93e   :  { %9503 = vrot.lane.b32.xlu1 %v31432_v61, %s31196_s22 }
 0x942   :  { %9884 = vrot.lane.b32.xlu1 %v31364_v28, %s31197_s27 }
 0x946   :  { %9962 = vrot.lane.b32.xlu1 %v31368_v31, %s31197_s27 }
 0x94a   :  { %10040 = vrot.lane.b32.xlu1 %v36461_v45, %s31197_s27 }
 0x94c   :  { %9579 = vrot.lane.b32.xlu0 %v31418_v57, %s31196_s22 }
 0x94e   :  { %10118 = vrot.lane.b32.xlu1 %v31372_v33, %s31197_s27 }
 0x94f   :  { %v6169_v30 = vpop.f32.mrb[78].mxu0 }
 0x950   :  { %v28967_v42 = vpop.f32.mrb[79].mxu0  ;;  %28999 = vmatprep.mubr.msk.f32.mxu0 %vm293_vm2, %v6169_v30  ;;  %9882 = vrot.lane.b32.xlu0 %v31364_v28, %s31198_s28 }
 0x951   :  { %29000 = vmatmul.mubr.msk.f32.gmra.mrb[96].mxu0 %vm293_vm2, %v32741_v58  ;;  %v36473_v58 = vld [vmem:[#allocation8_spill] sm:$0xff] }
 0x952   :  { %29004 = vmatprep.mubr.msk.f32.mxu0 %vm293_vm2, %v36470_v54  ;;  %10196 = vrot.lane.b32.xlu1 %v31378_v36, %s31197_s27 }
 0x954   :  { %9960 = vrot.lane.b32.xlu0 %v31368_v31, %s31198_s28 }
 0x955   :  { %29005 = vmatmul.mubr.msk.f32.vlgmr.msra.gmra.mrb[80].mxu0 %vm293_vm2, %v36471_v39 }
 0x956   :  { %29122 = vmatpush3.msra.mxu0 %v32852_v48  ;;  %29007 = vmatprep.mubr.msk.f32.mxu0 %vm293_vm2, %v36472_v27  ;;  %v36475_v48 = vld [vmem:[#allocation9_spill] sm:$0xff] }
 0x957   :  { %10274 = vrot.lane.b32.xlu1 %v36446_v24, %s31197_s27  ;;  %29131 = vmatprep.subr.mxu0 %v36411_v13 }
 0x958   :  { %10038 = vrot.lane.b32.xlu0 %v36461_v45, %s31198_s28 }
 0x959   :  { %29008 = vmatmul.mubr.msk.f32.gmra.mrb[82].mxu0 %vm293_vm2, %v36473_v58 }
 0x95a   :  { %29010 = vmatprep.mubr.msk.f32.mxu0 %vm293_vm2, %v36474_v51 }
 0x95b   :  { %10352 = vrot.lane.b32.xlu1 %v31386_v40, %s31197_s27 }
 0x95c   :  { %10116 = vrot.lane.b32.xlu0 %v31372_v33, %s31198_s28 }
 0x95d   :  { %29011 = vmatmul.mubr.msk.f32.gmra.mrb[84].mxu0 %vm293_vm2, %v36475_v48 }
 0x95e   :  { %29013 = vmatprep.mubr.msk.f32.mxu0 %vm293_vm2, %v36476_v38 }
 0x95f   :  { %10430 = vrot.lane.b32.xlu1 %v36462_v12, %s31197_s27 }
 0x960   :  { %10194 = vrot.lane.b32.xlu0 %v31378_v36, %s31198_s28 }
 0x961   :  { %29014 = vmatmul.mubr.msk.f32.gmra.mrb[86].mxu0 %vm293_vm2, %v36477_v15 }
 0x962   :  { %29016 = vmatprep.mubr.msk.f32.mxu0 %vm293_vm2, %v36478_v0  ;;  %v36488_v0 = vld [vmem:[#allocation33_spill] sm:$0xff] }
 0x963   :  { %10508 = vrot.lane.b32.xlu1 %v31394_v44, %s31197_s27 }
 0x964   :  { %10272 = vrot.lane.b32.xlu0 %v36446_v24, %s31198_s28 }
 0x965   :  { %29017 = vmatmul.mubr.msk.f32.gmra.mrb[88].mxu0 %vm293_vm2, %v36479_v41 }
 0x966   :  { %29019 = vmatprep.mubr.msk.f32.mxu0 %vm293_vm2, %v36480_v6  ;;  %v36489_v6 = vld [vmem:[#allocation4_spill] sm:$0xff] }
 0x967   :  { %10506 = vrot.lane.b32.xlu1 %v31394_v44, %s31198_s28 }
 0x968   :  { %10350 = vrot.lane.b32.xlu0 %v31386_v40, %s31198_s28 }
 0x969   :  { %29020 = vmatmul.mubr.msk.f32.gmra.mrb[90].mxu0 %vm293_vm2, %v36481_v56  ;;  %v36490_v56 = vld [vmem:[#allocation25_spill] sm:$0xff] }
 0x96a   :  { %29022 = vmatprep.mubr.msk.f32.mxu0 %vm293_vm2, %v36482_v11 }
 0x96b   :  { %10664 = vrot.lane.b32.xlu1 %v31414_v55, %s31197_s27 }
 0x96c   :  { %10428 = vrot.lane.b32.xlu0 %v36462_v12, %s31198_s28 }
 0x96d   :  { %29023 = vmatmul.mubr.msk.f32.gmra.mrb[92].mxu0 %vm293_vm2, %v36483_v52 }
 0x96e   :  { %29025 = vmatprep.mubr.msk.f32.mxu0 %vm293_vm2, %v36484_v22  ;;  %v36491_v22 = vld [vmem:[#allocation6_spill] sm:$0xff] }
 0x96f   :  { %10662 = vrot.lane.b32.xlu1 %v31414_v55, %s31198_s28 }
 0x970   :  { %10586 = vrot.lane.b32.xlu0 %v36449_v25, %s31197_s27 }
 0x971   :  { %29026 = vmatmul.mubr.msk.f32.gmra.mrb[94].mxu0 %vm293_vm2, %v36485_v35 }
 0x972   :  { %29028 = vmatprep.mubr.msk.f32.mxu0 %vm293_vm2, %v36486_v26 }
 0x973   :  { %10820 = vrot.lane.b32.xlu1 %v31420_v59, %s31197_s27 }
 0x974   :  { %10584 = vrot.lane.b32.xlu0 %v36449_v25, %s31198_s28 }
 0x975   :  { %29029 = vmatmul.mubr.msk.f32.gmra.mrb[96].mxu0 %vm293_vm2, %v36487_v63 }
 0x976   :  { %29123 = vmatprep.mubr.msk.f32.mxu0 %vm31188_vm1, %v36411_v13 }
 0x977   :  { %10818 = vrot.lane.b32.xlu1 %v31420_v59, %s31198_s28 }
 0x978   :  { %10742 = vrot.lane.b32.xlu0 %v31402_v47, %s31197_s27 }
 0x97a   :  { %v8199_v30 = vpop.xlane.xlu1 %8198 }
 0x97b   :  { %10976 = vrot.lane.b32.xlu1 %v31422_v60, %s31197_s27  ;;  %30683 = vrcp.f32 %v8199_v30  ;;  %v36492_v30 = vld [vmem:[#allocation35_spill] sm:$0xff] }
 0x97c   :  { %10740 = vrot.lane.b32.xlu0 %v31402_v47, %s31198_s28 }
 0x97e   :  { %v8202_v42 = vpop.xlane.xlu0 %8201 }
 0x97f   :  { %10974 = vrot.lane.b32.xlu1 %v31422_v60, %s31198_s28  ;;  %30685 = vrcp.f32 %v8202_v42 }
 0x980   :  { %10898 = vrot.lane.b32.xlu0 %v31408_v50, %s31197_s27 }
 0x982   :  { %v8205_v54 = vpop.xlane.xlu1 %8204 }
 0x983   :  { %11132 = vrot.lane.b32.xlu1 %v31432_v61, %s31197_s27  ;;  %30687 = vrcp.f32 %v8205_v54 }
 0x984   :  { %10896 = vrot.lane.b32.xlu0 %v31408_v50, %s31198_s28 }
 0x985   :  { %v30684_v39 = vpop.eup %30683 }
 0x986   :  { %v8252_v27 = vmul.f32 %v30684_v39, %v32887_v43  ;;  %v8208_v58 = vpop.xlane.xlu0 %8207 }
 0x987   :  { %11130 = vrot.lane.b32.xlu1 %v31432_v61, %s31198_s28  ;;  %30689 = vrcp.f32 %v8208_v58 }
 0x988   :  { %29124 = vmatmul.mubr.msk.f32.vlgmr.msra.gmra.mrb[98].mxu0 %vm293_vm2, %v8252_v27  ;;  %11054 = vrot.lane.b32.xlu0 %v31412_v53, %s31197_s27 }
 0x989   :  { %v30686_v51 = vpop.eup %30685  ;;  %29132 = vmatpush3.msra.mxu0 %v32854_v3  ;;  %29133 = vmatprep.mubr.msk.f32.mxu0 %vm31188_vm1, %v36411_v13 }
 0x98a   :  { %v8211_v48 = vpop.xlane.xlu1 %8210  ;;  %v8254_v38 = vmul.f32 %v30686_v51, %v32892_v14  ;;  %29141 = vmatprep.subr.mxu0 %v36411_v13 }
 0x98b   :  { %11502 = vrot.lane.b32.xlu1 %v31364_v28, %s31199_s29  ;;  %30691 = vrcp.f32 %v8211_v48 }
 0x98c   :  { %11052 = vrot.lane.b32.xlu0 %v31412_v53, %s31198_s28  ;;  %29129 = vmatmul.mubr.msk.f32.vlgmr.msra.gmra.mrb[118].mxu1 %vm293_vm2, %v8254_v38 }
 0x98d   :  { %v30688_v43 = vpop.eup %30687  ;;  %29137 = vmatpush3.msra.mxu1 %v32860_v2  ;;  %29138 = vmatprep.mubr.msk.f32.mxu1 %vm31188_vm1, %v36411_v13 }
 0x98e   :  { %v8214_v3 = vpop.xlane.xlu0 %8213  ;;  %v8256_v14 = vmul.f32 %v30688_v43, %v32897_v7  ;;  %29146 = vmatprep.subr.mxu1 %v36411_v13  ;;  %v36493_v43 = vld [vmem:[#allocation34_spill] sm:$0xff] }
 0x98f   :  { %30693 = vrcp.f32 %v8214_v3 }
 0x990   :  { %29134 = vmatmul.mubr.msk.f32.vlgmr.msra.gmra.mrb[100].mxu0 %vm293_vm2, %v8256_v14  ;;  %11210 = vrot.lane.b32.xlu0 %v31418_v57, %s31197_s27 }
 0x991   :  { %v30690_v28 = vpop.eup %30689  ;;  %29142 = vmatpush3.msra.mxu0 %v32856_v1  ;;  %29143 = vmatprep.mubr.msk.f32.mxu0 %vm31188_vm1, %v36411_v13 }
 0x992   :  { %v8217_v2 = vpop.xlane.xlu1 %8216  ;;  %v8258_v15 = vmul.f32 %v30690_v28, %v32902_v18  ;;  %29151 = vmatprep.subr.mxu0 %v36411_v13 }
 0x993   :  { %30695 = vrcp.f32 %v8217_v2 }
 0x994   :  { %11208 = vrot.lane.b32.xlu0 %v31418_v57, %s31198_s28  ;;  %29139 = vmatmul.mubr.msk.f32.vlgmr.msra.gmra.mrb[120].mxu1 %vm293_vm2, %v8258_v15  ;;  %v36494_v15 = vld [vmem:[#allocation26_spill] sm:$0xff] }
 0x995   :  { %v30692_v7 = vpop.eup %30691  ;;  %29147 = vmatpush3.msra.mxu1 %v32867_v34  ;;  %29148 = vmatprep.mubr.msk.f32.mxu1 %vm31188_vm1, %v36411_v13 }
 0x996   :  { %v8260_v1 = vmul.f32 %v30692_v7, %v32906_v49  ;;  %29156 = vmatprep.subr.mxu1 %v36411_v13 }
 0x998   :  { %29144 = vmatmul.mubr.msk.f32.vlgmr.msra.gmra.mrb[102].mxu0 %vm293_vm2, %v8260_v1  ;;  %11578 = vrot.lane.b32.xlu0 %v31368_v31, %s31199_s29 }
 0x999   :  { %v30694_v18 = vpop.eup %30693  ;;  %29152 = vmatpush3.msra.mxu0 %v36488_v0  ;;  %29153 = vmatprep.mubr.msk.f32.mxu0 %vm31188_vm1, %v36411_v13 }
 0x99a   :  { %v8223_v41 = vpop.xlane.xlu1 %8222  ;;  %v8262_v34 = vmul.f32 %v30694_v18, %v32911_v5  ;;  %29161 = vmatprep.subr.mxu0 %v36411_v13 }
 0x99b   :  { %30697 = vrcp.f32 %v8223_v41 }
 0x99c   :  { %29149 = vmatmul.mubr.msk.f32.vlgmr.msra.gmra.mrb[122].mxu1 %vm293_vm2, %v8262_v34 }
 0x99d   :  { %v30696_v49 = vpop.eup %30695  ;;  %29157 = vmatpush3.msra.mxu1 %v36489_v6  ;;  %29158 = vmatprep.mubr.msk.f32.mxu1 %vm31188_vm1, %v36411_v13 }
 0x99e   :  { %v8264_v31 = vmul.f32 %v30696_v49, %v32915_v9  ;;  %29166 = vmatprep.subr.mxu1 %v36411_v13 }
 0x9a0   :  { %29154 = vmatmul.mubr.msk.f32.vlgmr.msra.gmra.mrb[104].mxu0 %vm293_vm2, %v8264_v31 }
 0x9a1   :  { %29162 = vmatpush3.msra.mxu0 %v36490_v56  ;;  %29163 = vmatprep.mubr.msk.f32.mxu0 %vm31188_vm1, %v36411_v13 }
 0x9a2   :  { %v8229_v5 = vpop.xlane.xlu1 %8228  ;;  %29171 = vmatprep.subr.mxu0 %v36411_v13 }
 0x9a3   :  { %30699 = vrcp.f32 %v8229_v5 }
 0x9a5   :  { %v30698_v11 = vpop.eup %30697 }
 0x9a6   :  { %v8268_v52 = vmul.f32 %v30698_v11, %v32920_v21 }
 0x9a8   :  { %29164 = vmatmul.mubr.msk.f32.vlgmr.msra.gmra.mrb[106].mxu0 %vm293_vm2, %v8268_v52 }
 0x9a9   :  { %29172 = vmatpush3.msra.mxu0 %v36491_v22  ;;  %29173 = vmatprep.mubr.msk.f32.mxu0 %vm31188_vm1, %v36411_v13 }
 0x9aa   :  { %v8235_v9 = vpop.xlane.xlu1 %8234  ;;  %29181 = vmatprep.subr.mxu0 %v36411_v13 }
 0x9ab   :  { %30701 = vrcp.f32 %v8235_v9 }
 0x9ad   :  { %v30700_v35 = vpop.eup %30699 }
 0x9ae   :  { %v8272_v26 = vmul.f32 %v30700_v35, %v32928_v46 }
 0x9af   :  { %v8220_v63 = vpop.xlane.xlu0 %8219 }
 0x9b0   :  { %30703 = vrcp.f32 %v8220_v63  ;;  %29174 = vmatmul.mubr.msk.f32.vlgmr.msra.gmra.mrb[108].mxu0 %vm293_vm2, %v8272_v26 }
 0x9b1   :  { %29182 = vmatpush3.msra.mxu0 %v36492_v30  ;;  %29183 = vmatprep.mubr.msk.f32.mxu0 %vm31188_vm1, %v36411_v13 }
 0x9b2   :  { %v8241_v21 = vpop.xlane.xlu1 %8240  ;;  %29191 = vmatprep.subr.mxu0 %v36411_v13 }
 0x9b3   :  { %30705 = vrcp.f32 %v8241_v21  ;;  %v8226_v42 = vpop.xlane.xlu0 %8225 }
 0x9b4   :  { %30707 = vrcp.f32 %v8226_v42 }
 0x9b5   :  { %v30702_v54 = vpop.eup %30701 }
 0x9b6   :  { %v8276_v39 = vmul.f32 %v30702_v54, %v32941_v23 }
 0x9b7   :  { %v8232_v27 = vpop.xlane.xlu0 %8231 }
 0x9b8   :  { %30709 = vrcp.f32 %v8232_v27  ;;  %29184 = vmatmul.mubr.msk.f32.vlgmr.msra.gmra.mrb[110].mxu0 %vm293_vm2, %v8276_v39 }
 0x9b9   :  { %29192 = vmatpush3.msra.mxu0 %v33087_v16  ;;  %29193 = vmatprep.mubr.msk.f32.mxu0 %vm31188_vm1, %v36411_v13 }
 0x9ba   :  { %v30704_v46 = vpop.eup %30703  ;;  %v8247_v58 = vpop.xlane.xlu1 %8246  ;;  %29201 = vmatprep.subr.mxu0 %v36411_v13 }
 0x9bb   :  { %30711 = vrcp.f32 %v8247_v58  ;;  %v8238_v51 = vpop.xlane.xlu0 %8237  ;;  %v8266_v48 = vmul.f32 %v30704_v46, %v32951_v17  ;;  %v71_v17 = vld [vmem:[%s36365_s3 + $0x10] sm:$0xff] }
 0x9bc   :  { %30713 = vrcp.f32 %v8238_v51 }
 0x9bd   :  { %v30706_v38 = vpop.eup %30705  ;;  %29159 = vmatmul.mubr.msk.f32.vlgmr.msra.gmra.mrb[124].mxu1 %vm293_vm2, %v8266_v48 }
 0x9be   :  { %v30708_v23 = vpop.eup %30707  ;;  %29167 = vmatpush3.msra.mxu1 %v36493_v43  ;;  %v9504_v3 = vpop.permute.xlu1 %9503  ;;  %29168 = vmatprep.mubr.msk.f32.mxu1 %vm31188_vm1, %v36411_v13  ;;  %v8280_v16 = vmul.f32 %v30706_v38, %v32958_v29 }
 0x9bf   :  { %v8244_v14 = vpop.xlane.xlu0 %8243  ;;  %29176 = vmatprep.subr.mxu1 %v36411_v13  ;;  %v8270_v28 = vmul.f32 %v30708_v23, %v32961_v32 }
 0x9c0   :  { %30715 = vrcp.f32 %v8244_v14  ;;  %29194 = vmatmul.mubr.msk.f32.vlgmr.msra.gmra.mrb[112].mxu0 %vm293_vm2, %v8280_v16 }
 0x9c1   :  { %29202 = vmatpush3.msra.mxu0 %v9504_v3  ;;  %29169 = vmatmul.mubr.msk.f32.vlgmr.msra.gmra.mrb[126].mxu1 %vm293_vm2, %v8270_v28 }
 0x9c2   :  { %v30710_v2 = vpop.eup %30709  ;;  %29177 = vmatpush3.msra.mxu1 %v36494_v15  ;;  %v9885_v7 = vpop.permute.xlu1 %9884  ;;  %29178 = vmatprep.mubr.msk.f32.mxu1 %vm31188_vm1, %v36411_v13 }
 0x9c3   :  { %v8250_v29 = vpop.xlane.xlu0 %8249  ;;  %29186 = vmatprep.subr.mxu1 %v36411_v13  ;;  %v8274_v32 = vmul.f32 %v30710_v2, %v32971_v37  ;;  %29203 = vmatprep.mubr.msk.f32.mxu0 %vm31188_vm1, %v36411_v13 }
 0x9c4   :  { %30717 = vrcp.f32 %v8250_v29  ;;  %29211 = vmatprep.subr.mxu0 %v71_v17 }
 0x9c5   :  { %v30712_v1 = vpop.eup %30711  ;;  %29179 = vmatmul.mubr.msk.f32.vlgmr.msra.gmra.mrb[128].mxu1 %vm293_vm2, %v8274_v32 }
 0x9c6   :  { %v30714_v18 = vpop.eup %30713  ;;  %29187 = vmatpush3.msra.mxu1 %v32924_v10  ;;  %v9963_v0 = vpop.permute.xlu1 %9962  ;;  %29188 = vmatprep.mubr.msk.f32.mxu1 %vm31188_vm1, %v36411_v13  ;;  %v8284_v41 = vmul.f32 %v30712_v1, %v32977_v19 }
 0x9c7   :  { %v9580_v34 = vpop.permute.xlu0 %9579  ;;  %29196 = vmatprep.subr.mxu1 %v36411_v13  ;;  %v8278_v37 = vmul.f32 %v30714_v18, %v32980_v8 }
 0x9c8   :  { %29204 = vmatmul.mubr.msk.f32.vlgmr.msra.gmra.mrb[114].mxu0 %vm293_vm2, %v8284_v41 }
 0x9c9   :  { %29189 = vmatmul.mubr.msk.f32.vlgmr.msra.gmra.mrb[130].mxu1 %vm293_vm2, %v8278_v37  ;;  %29212 = vmatpush3.msra.mxu0 %v71_v17 }
 0x9ca   :  { %v30716_v49 = vpop.eup %30715  ;;  %29197 = vmatpush3.msra.mxu1 %v33095_v62  ;;  %v10041_v10 = vpop.permute.xlu1 %10040  ;;  %29198 = vmatprep.mubr.msk.f32.mxu1 %vm31188_vm1, %v36411_v13 }
 0x9cb   :  { %v9883_v6 = vpop.permute.xlu0 %9882  ;;  %29206 = vmatprep.subr.mxu1 %v36411_v13  ;;  %v8282_v19 = vmul.f32 %v30716_v49, %v32988_v20  ;;  %29285 = vmatprep.subr.mxu0 %v36411_v13 }
 0x9cd   :  { %29199 = vmatmul.mubr.msk.f32.vlgmr.msra.gmra.mrb[132].mxu1 %vm293_vm2, %v8282_v19 }
 0x9ce   :  { %v30718_v8 = vpop.eup %30717  ;;  %29207 = vmatpush3.msra.mxu1 %v9580_v34  ;;  %v10119_v31 = vpop.permute.xlu1 %10118  ;;  %29208 = vmatprep.mubr.msk.f32.mxu1 %vm31188_vm1, %v36411_v13 }
 0x9cf   :  { %v9961_v62 = vpop.permute.xlu0 %9960  ;;  %v8286_v56 = vmul.f32 %v30718_v8, %v32992_v4  ;;  %29240 = vmatprep.subr.mxu1 %v36411_v13 }
 0x9d1   :  { %29209 = vmatmul.mubr.msk.f32.vlgmr.msra.gmra.mrb[134].mxu1 %vm293_vm2, %v8286_v56 }
 0x9d2   :  { %v10197_v5 = vpop.permute.xlu1 %10196  ;;  %29242 = vmatprep.mubr.msk.f32.mxu1 %vm31188_vm1, %v36411_v13 }
 0x9d3   :  { %v10039_v20 = vpop.permute.xlu0 %10038 }
 0x9d5   :  { %29241 = vmatpush3.xpose.msk.msra.mxu1 %vm293_vm2, %v9885_v7 }
 0x9d6   :  { %v10275_v11 = vpop.permute.xlu1 %10274  ;;  %29245 = vmatprep.subr.mxu1 %v36411_v13 }
 0x9d7   :  { %v10117_v52 = vpop.permute.xlu0 %10116 }
 0x9d8   :  { %29243 = vmatmul.mubr.msk.f32.vlgmr.msra.gmra.mrb[136].mxu1 %vm293_vm2, %v9883_v6 }
 0x9d9   :  { %29246 = vmatpush3.xpose.msk.msra.mxu1 %vm293_vm2, %v9963_v0  ;;  %29247 = vmatprep.mubr.msk.f32.mxu1 %vm31188_vm1, %v36411_v13 }
 0x9da   :  { %v10353_v4 = vpop.permute.xlu1 %10352  ;;  %29250 = vmatprep.subr.mxu1 %v36411_v13 }
 0x9db   :  { %v10195_v9 = vpop.permute.xlu0 %10194 }
 0x9dc   :  { %29248 = vmatmul.mubr.msk.f32.vlgmr.msra.gmra.mrb[138].mxu1 %vm293_vm2, %v9961_v62 }
 0x9dd   :  { %29251 = vmatpush3.xpose.msk.msra.mxu1 %vm293_vm2, %v10041_v10  ;;  %29252 = vmatprep.mubr.msk.f32.mxu1 %vm31188_vm1, %v36411_v13 }
 0x9de   :  { %v10431_v22 = vpop.permute.xlu1 %10430  ;;  %29255 = vmatprep.subr.mxu1 %v36411_v13 }
 0x9df   :  { %v10273_v63 = vpop.permute.xlu0 %10272 }
 0x9e0   :  { %29253 = vmatmul.mubr.msk.f32.vlgmr.msra.gmra.mrb[140].mxu1 %vm293_vm2, %v10039_v20 }
 0x9e1   :  { %29256 = vmatpush3.xpose.msk.msra.mxu1 %vm293_vm2, %v10119_v31  ;;  %29257 = vmatprep.mubr.msk.f32.mxu1 %vm31188_vm1, %v36411_v13 }
 0x9e2   :  { %v10509_v35 = vpop.permute.xlu1 %10508  ;;  %29260 = vmatprep.subr.mxu1 %v36411_v13 }
 0x9e3   :  { %v10351_v21 = vpop.permute.xlu0 %10350 }
 0x9e4   :  { %29258 = vmatmul.mubr.msk.f32.vlgmr.msra.gmra.mrb[142].mxu1 %vm293_vm2, %v10117_v52 }
 0x9e5   :  { %29261 = vmatpush3.xpose.msk.msra.mxu1 %vm293_vm2, %v10197_v5  ;;  %29262 = vmatprep.mubr.msk.f32.mxu1 %vm31188_vm1, %v36411_v13 }
 0x9e6   :  { %v10507_v26 = vpop.permute.xlu1 %10506  ;;  %29265 = vmatprep.subr.mxu1 %v36411_v13 }
 0x9e7   :  { %v10429_v39 = vpop.permute.xlu0 %10428 }
 0x9e8   :  { %29263 = vmatmul.mubr.msk.f32.vlgmr.msra.gmra.mrb[144].mxu1 %vm293_vm2, %v10195_v9 }
 0x9e9   :  { %29266 = vmatpush3.xpose.msk.msra.mxu1 %vm293_vm2, %v10275_v11  ;;  %29267 = vmatprep.mubr.msk.f32.mxu1 %vm31188_vm1, %v36411_v13 }
 0x9ea   :  { %v10665_v30 = vpop.permute.xlu1 %10664  ;;  %29270 = vmatprep.subr.mxu1 %v36411_v13 }
 0x9eb   :  { %v10587_v16 = vpop.permute.xlu0 %10586 }
 0x9ec   :  { %29268 = vmatmul.mubr.msk.f32.vlgmr.msra.gmra.mrb[146].mxu1 %vm293_vm2, %v10273_v63 }
 0x9ed   :  { %29271 = vmatpush3.xpose.msk.msra.mxu1 %vm293_vm2, %v10353_v4  ;;  %29272 = vmatprep.mubr.msk.f32.mxu1 %vm31188_vm1, %v36411_v13 }
 0x9ee   :  { %v10663_v42 = vpop.permute.xlu1 %10662  ;;  %29275 = vmatprep.subr.mxu1 %v36411_v13 }
 0x9ef   :  { %v10585_v37 = vpop.permute.xlu0 %10584 }
 0x9f0   :  { %29273 = vmatmul.mubr.msk.f32.vlgmr.msra.gmra.mrb[148].mxu1 %vm293_vm2, %v10351_v21 }
 0x9f1   :  { %29276 = vmatpush3.xpose.msk.msra.mxu1 %vm293_vm2, %v10431_v22  ;;  %29277 = vmatprep.mubr.msk.f32.mxu1 %vm31188_vm1, %v36411_v13 }
 0x9f2   :  { %v10821_v54 = vpop.permute.xlu1 %10820  ;;  %29280 = vmatprep.subr.mxu1 %v36411_v13 }
 0x9f3   :  { %v10743_v6 = vpop.permute.xlu0 %10742 }
 0x9f4   :  { %29278 = vmatmul.mubr.msk.f32.vlgmr.msra.gmra.mrb[150].mxu1 %vm293_vm2, %v10429_v39 }
 0x9f5   :  { %29281 = vmatpush3.xpose.msk.msra.mxu1 %vm293_vm2, %v10509_v35  ;;  %29282 = vmatprep.mubr.msk.f32.mxu1 %vm31188_vm1, %v36411_v13 }
 0x9f6   :  { %v10819_v27 = vpop.permute.xlu1 %10818  ;;  %29290 = vmatprep.subr.mxu1 %v36411_v13 }
 0x9f7   :  { %v10741_v31 = vpop.permute.xlu0 %10740 }
 0x9f8   :  { %29283 = vmatmul.mubr.msk.f32.vlgmr.msra.gmra.mrb[152].mxu1 %vm293_vm2, %v10507_v26 }
 0x9f9   :  { %29291 = vmatpush3.xpose.msk.msra.mxu1 %vm293_vm2, %v10665_v30  ;;  %29292 = vmatprep.mubr.msk.f32.mxu1 %vm31188_vm1, %v36411_v13 }
 0x9fa   :  { %v10977_v46 = vpop.permute.xlu1 %10976  ;;  %29300 = vmatprep.subr.mxu1 %v36411_v13 }
 0x9fb   :  { %v10899_v4 = vpop.permute.xlu0 %10898 }
 0x9fc   :  { %29293 = vmatmul.mubr.msk.f32.vlgmr.msra.gmra.mrb[154].mxu1 %vm293_vm2, %v10663_v42 }
 0x9fd   :  { %29301 = vmatpush3.xpose.msk.msra.mxu1 %vm293_vm2, %v10821_v54  ;;  %29302 = vmatprep.mubr.msk.f32.mxu1 %vm31188_vm1, %v36411_v13 }
 0x9fe   :  { %v10975_v58 = vpop.permute.xlu1 %10974  ;;  %29310 = vmatprep.subr.mxu1 %v36411_v13 }
 0x9ff   :  { %v10897_v35 = vpop.permute.xlu0 %10896 }
 0xa00   :  { %29303 = vmatmul.mubr.msk.f32.vlgmr.msra.gmra.mrb[156].mxu1 %vm293_vm2, %v10819_v27 }
 0xa01   :  { %29311 = vmatpush3.xpose.msk.msra.mxu1 %vm293_vm2, %v10977_v46  ;;  %29312 = vmatprep.mubr.msk.f32.mxu1 %vm31188_vm1, %v36411_v13 }
 0xa02   :  { %v11133_v51 = vpop.permute.xlu1 %11132  ;;  %29320 = vmatprep.subr.mxu1 %v36411_v13 }
 0xa03   :  { %v11055_v54 = vpop.permute.xlu0 %11054 }
 0xa04   :  { %29313 = vmatmul.mubr.msk.f32.vlgmr.msra.gmra.mrb[158].mxu1 %vm293_vm2, %v10975_v58 }
 0xa05   :  { %29321 = vmatpush3.xpose.msk.msra.mxu1 %vm293_vm2, %v11133_v51  ;;  %29322 = vmatprep.mubr.msk.f32.mxu1 %vm31188_vm1, %v36411_v13 }
 0xa06   :  { %v11131_v48 = vpop.permute.xlu1 %11130  ;;  %29330 = vmatprep.subr.mxu1 %v36411_v13 }
 0xa07   :  { %v11053_v58 = vpop.permute.xlu0 %11052 }
 0xa08   :  { %29323 = vmatmul.mubr.msk.f32.vlgmr.msra.gmra.mrb[160].mxu1 %vm293_vm2, %v11131_v48 }
 0xa09   :  { %29332 = vmatprep.mubr.msk.f32.mxu1 %vm31188_vm1, %v36411_v13 }
 0xa0a   :  { %v11503_v38 = vpop.permute.xlu1 %11502 }
 0xa0b   :  { %29331 = vmatpush3.msra.mxu1 %v11503_v38 }
 0xa0c   :  { %29340 = vmatprep.subr.mxu1 %v36411_v13 }
 0xa5b   :  { %v8359_v23 = vpop.f32.mrb[98].mxu0 }
 0xa5c   :  { %v29125_v43 = vpop.f32.mrb[99].mxu0  ;;  %29213 = vmatprep.mubr.msk.f32.mxu0 %vm293_vm2, %v8359_v23  ;;  %v11211_v23 = vpop.permute.xlu0 %11210 }
 0xa5f   :  { %v8435_v3 = vpop.f32.mrb[118].mxu1 }
 0xa60   :  { %v29130_v14 = vpop.f32.mrb[119].mxu1  ;;  %29214 = vmatmul.mubr.msk.f32.vlgmr.msra.gmra.mrb[80].mxu0 %vm293_vm2, %v8435_v3 }
 0xa61   :  { %29286 = vmatpush3.xpose.msk.msra.mxu0 %vm293_vm2, %v10587_v16 }
 0xa62   :  { %29295 = vmatprep.subr.mxu0 %v36411_v13 }
 0xa63   :  { %v8511_v28 = vpop.f32.mrb[100].mxu0 }
 0xa64   :  { %v29135_v17 = vpop.f32.mrb[101].mxu0  ;;  %29216 = vmatprep.mubr.msk.f32.mxu0 %vm293_vm2, %v8511_v28 }
 0xa65   :  { %v11209_v17 = vpop.permute.xlu0 %11208 }
 0xa67   :  { %v8587_v2 = vpop.f32.mrb[120].mxu1 }
 0xa68   :  { %v29140_v15 = vpop.f32.mrb[121].mxu1  ;;  %29217 = vmatmul.mubr.msk.f32.gmra.mrb[82].mxu0 %vm293_vm2, %v8587_v2 }
 0xa6b   :  { %v8663_v7 = vpop.f32.mrb[102].mxu0 }
 0xa6c   :  { %v29145_v29 = vpop.f32.mrb[103].mxu0  ;;  %29219 = vmatprep.mubr.msk.f32.mxu0 %vm293_vm2, %v8663_v7 }
 0xa6f   :  { %v8739_v32 = vpop.f32.mrb[122].mxu1 }
 0xa70   :  { %v29150_v1 = vpop.f32.mrb[123].mxu1  ;;  %29220 = vmatmul.mubr.msk.f32.gmra.mrb[84].mxu0 %vm293_vm2, %v8739_v32 }
 0xa73   :  { %v8815_v18 = vpop.f32.mrb[104].mxu0 }
 0xa74   :  { %v29155_v0 = vpop.f32.mrb[105].mxu0  ;;  %29222 = vmatprep.mubr.msk.f32.mxu0 %vm293_vm2, %v8815_v18 }
 0xa75   :  { %v11579_v0 = vpop.permute.xlu0 %11578 }
 0xa7b   :  { %v8967_v41 = vpop.f32.mrb[106].mxu0 }
 0xa7c   :  { %v29165_v34 = vpop.f32.mrb[107].mxu0 }
 0xa83   :  { %v9119_v49 = vpop.f32.mrb[108].mxu0 }
 0xa84   :  { %v29175_v10 = vpop.f32.mrb[109].mxu0 }
 0xa8b   :  { %v9271_v19 = vpop.f32.mrb[110].mxu0 }
 0xa8c   :  { %v29185_v8 = vpop.f32.mrb[111].mxu0 }
 0xa90   :  { %v8891_v62 = vpop.f32.mrb[124].mxu1 }
 0xa91   :  { %v29160_v56 = vpop.f32.mrb[125].mxu1  ;;  %29223 = vmatmul.mubr.msk.f32.gmra.mrb[86].mxu0 %vm293_vm2, %v8891_v62 }
 0xa92   :  { %29225 = vmatprep.mubr.msk.f32.mxu0 %vm293_vm2, %v8967_v41 }
 0xa93   :  { %v9423_v5 = vpop.f32.mrb[112].mxu0 }
 0xa94   :  { %v9043_v20 = vpop.f32.mrb[126].mxu1  ;;  %v29195_v11 = vpop.f32.mrb[113].mxu0 }
 0xa95   :  { %v29170_v52 = vpop.f32.mrb[127].mxu1  ;;  %29226 = vmatmul.mubr.msk.f32.gmra.mrb[88].mxu0 %vm293_vm2, %v9043_v20 }
 0xa96   :  { %29228 = vmatprep.mubr.msk.f32.mxu0 %vm293_vm2, %v9119_v49 }
 0xa98   :  { %v9195_v22 = vpop.f32.mrb[128].mxu1 }
 0xa99   :  { %v29180_v9 = vpop.f32.mrb[129].mxu1  ;;  %29229 = vmatmul.mubr.msk.f32.gmra.mrb[90].mxu0 %vm293_vm2, %v9195_v22 }
 0xa9a   :  { %29231 = vmatprep.mubr.msk.f32.mxu0 %vm293_vm2, %v9271_v19 }
 0xa9b   :  { %v9575_v26 = vpop.f32.mrb[114].mxu0 }
 0xa9c   :  { %v9347_v63 = vpop.f32.mrb[130].mxu1  ;;  %v29205_v30 = vpop.f32.mrb[115].mxu0 }
 0xa9d   :  { %v29190_v21 = vpop.f32.mrb[131].mxu1  ;;  %29232 = vmatmul.mubr.msk.f32.gmra.mrb[92].mxu0 %vm293_vm2, %v9347_v63 }
 0xa9e   :  { %29234 = vmatprep.mubr.msk.f32.mxu0 %vm293_vm2, %v9423_v5 }
 0xaa0   :  { %v9499_v42 = vpop.f32.mrb[132].mxu1 }
 0xaa1   :  { %v29200_v39 = vpop.f32.mrb[133].mxu1  ;;  %29235 = vmatmul.mubr.msk.f32.gmra.mrb[94].mxu0 %vm293_vm2, %v9499_v42 }
 0xaa2   :  { %29237 = vmatprep.mubr.msk.f32.mxu0 %vm293_vm2, %v9575_v26 }
 0xaa4   :  { %v9651_v27 = vpop.f32.mrb[134].mxu1 }
 0xaa5   :  { %v29210_v46 = vpop.f32.mrb[135].mxu1  ;;  %29238 = vmatmul.mubr.msk.f32.gmra.mrb[96].mxu0 %vm293_vm2, %v9651_v27 }
 0xaa6   :  { %29287 = vmatprep.mubr.msk.f32.mxu0 %vm31188_vm1, %v36411_v13 }
 0xaa9   :  { %29288 = vmatmul.mubr.msk.f32.vlgmr.msra.gmra.mrb[116].mxu0 %vm293_vm2, %v10585_v37 }
 0xaaa   :  { %29296 = vmatpush3.xpose.msk.msra.mxu0 %vm293_vm2, %v10743_v6  ;;  %29297 = vmatprep.mubr.msk.f32.mxu0 %vm31188_vm1, %v36411_v13 }
 0xaab   :  { %v9956_v51 = vpop.f32.mrb[136].mxu1  ;;  %29305 = vmatprep.subr.mxu0 %v36411_v13 }
 0xaac   :  { %v33319_v48 = vmul.f32 0.35355338, %v9956_v51  ;;  %v29244_v38 = vpop.f32.mrb[137].mxu1 }
 0xaad   :  { %29298 = vmatmul.mubr.msk.f32.vlgmr.msra.gmra.mrb[118].mxu0 %vm293_vm2, %v10741_v31 }
 0xaae   :  { %29306 = vmatpush3.xpose.msk.msra.mxu0 %vm293_vm2, %v10899_v4  ;;  %v11304_v43 = vsel %vm293_vm2, %v33319_v48, -inf  ;;  %29307 = vmatprep.mubr.msk.f32.mxu0 %vm31188_vm1, %v36411_v13 }
 0xaaf   :  { %11305 = vmax.xlane.f32.xlu1 %v11304_v43  ;;  %v10034_v3 = vpop.f32.mrb[138].mxu1  ;;  %29315 = vmatprep.subr.mxu0 %v36411_v13 }
 0xab0   :  { %v33328_v16 = vmul.f32 0.35355338, %v10034_v3  ;;  %v29249_v14 = vpop.f32.mrb[139].mxu1 }
 0xab1   :  { %29308 = vmatmul.mubr.msk.f32.vlgmr.msra.gmra.mrb[120].mxu0 %vm293_vm2, %v10897_v35 }
 0xab2   :  { %29316 = vmatpush3.xpose.msk.msra.mxu0 %vm293_vm2, %v11055_v54  ;;  %v11307_v28 = vsel %vm293_vm2, %v33328_v16, -inf  ;;  %29317 = vmatprep.mubr.msk.f32.mxu0 %vm31188_vm1, %v36411_v13 }
 0xab3   :  { %11308 = vmax.xlane.f32.xlu0 %v11307_v28  ;;  %v10112_v2 = vpop.f32.mrb[140].mxu1  ;;  %29325 = vmatprep.subr.mxu0 %v36411_v13 }
 0xab4   :  { %v33337_v15 = vmul.f32 0.35355338, %v10112_v2  ;;  %v29254_v7 = vpop.f32.mrb[141].mxu1 }
 0xab5   :  { %29318 = vmatmul.mubr.msk.f32.vlgmr.msra.gmra.mrb[122].mxu0 %vm293_vm2, %v11053_v58 }
 0xab6   :  { %29326 = vmatpush3.xpose.msk.msra.mxu0 %vm293_vm2, %v11211_v23  ;;  %v11310_v29 = vsel %vm293_vm2, %v33337_v15, -inf  ;;  %29327 = vmatprep.mubr.msk.f32.mxu0 %vm31188_vm1, %v36411_v13 }
 0xab7   :  { %11311 = vmax.xlane.f32.xlu0 %v11310_v29  ;;  %v10190_v32 = vpop.f32.mrb[142].mxu1  ;;  %29335 = vmatprep.subr.mxu0 %v36411_v13 }
 0xab8   :  { %v33346_v1 = vmul.f32 0.35355338, %v10190_v32  ;;  %v29259_v18 = vpop.f32.mrb[143].mxu1 }
 0xab9   :  { %29328 = vmatmul.mubr.msk.f32.vlgmr.msra.gmra.mrb[124].mxu0 %vm293_vm2, %v11209_v17 }
 0xaba   :  { %29336 = vmatpush3.msra.mxu0 %v11579_v0  ;;  %v11313_v41 = vsel %vm293_vm2, %v33346_v1, -inf  ;;  %29337 = vmatprep.mubr.msk.f32.mxu0 %vm31188_vm1, %v36411_v13 }
 0xabb   :  { %11314 = vmax.xlane.f32.xlu0 %v11313_v41  ;;  %v10268_v34 = vpop.f32.mrb[144].mxu1  ;;  %29345 = vmatprep.subr.mxu0 %v36411_v13 }
 0xabc   :  { %v33354_v37 = vmul.f32 0.35355338, %v10268_v34  ;;  %v29264_v49 = vpop.f32.mrb[145].mxu1 }
 0xabe   :  { %v11316_v10 = vsel %vm293_vm2, %v33354_v37, -inf }
 0xabf   :  { %11317 = vmax.xlane.f32.xlu1 %v11316_v10  ;;  %v10346_v6 = vpop.f32.mrb[146].mxu1 }
 0xac0   :  { %v33358_v19 = vmul.f32 0.35355338, %v10346_v6  ;;  %v29269_v8 = vpop.f32.mrb[147].mxu1 }
 0xac2   :  { %v11319_v31 = vsel %vm293_vm2, %v33358_v19, -inf }
 0xac3   :  { %11320 = vmax.xlane.f32.xlu0 %v11319_v31  ;;  %v10424_v62 = vpop.f32.mrb[148].mxu1 }
 0xac4   :  { %v33362_v56 = vmul.f32 0.35355338, %v10424_v62  ;;  %v29274_v5 = vpop.f32.mrb[149].mxu1 }
 0xac6   :  { %v11322_v20 = vsel %vm293_vm2, %v33362_v56, -inf }
 0xac7   :  { %11323 = vmax.xlane.f32.xlu1 %v11322_v20  ;;  %v10502_v11 = vpop.f32.mrb[150].mxu1 }
 0xac8   :  { %v33366_v4 = vmul.f32 0.35355338, %v10502_v11  ;;  %v29279_v52 = vpop.f32.mrb[151].mxu1 }
 0xaca   :  { %v11325_v22 = vsel %vm293_vm2, %v33366_v4, -inf }
 0xacb   :  { %11326 = vmax.xlane.f32.xlu0 %v11325_v22  ;;  %v10580_v9 = vpop.f32.mrb[152].mxu1 }
 0xacc   :  { %v33370_v35 = vmul.f32 0.35355338, %v10580_v9  ;;  %v29284_v26 = vpop.f32.mrb[153].mxu1 }
 0xace   :  { %v11328_v63 = vsel %vm293_vm2, %v33370_v35, -inf }
 0xacf   :  { %11329 = vmax.xlane.f32.xlu1 %v11328_v63  ;;  %v10736_v30 = vpop.f32.mrb[154].mxu1 }
 0xad0   :  { %v33374_v21 = vmul.f32 0.35355338, %v10736_v30  ;;  %v29294_v42 = vpop.f32.mrb[155].mxu1 }
 0xad2   :  { %v11334_v54 = vsel %vm293_vm2, %v33374_v21, -inf }
 0xad3   :  { %11335 = vmax.xlane.f32.xlu1 %v11334_v54  ;;  %v10892_v39 = vpop.f32.mrb[156].mxu1 }
 0xad4   :  { %v33378_v27 = vmul.f32 0.35355338, %v10892_v39  ;;  %v29304_v46 = vpop.f32.mrb[157].mxu1 }
 0xad6   :  { %v11340_v58 = vsel %vm293_vm2, %v33378_v27, -inf }
 0xad7   :  { %11341 = vmax.xlane.f32.xlu1 %v11340_v58  ;;  %v11048_v51 = vpop.f32.mrb[158].mxu1 }
 0xad8   :  { %v33382_v38 = vmul.f32 0.35355338, %v11048_v51  ;;  %v29314_v23 = vpop.f32.mrb[159].mxu1 }
 0xada   :  { %v11346_v43 = vsel %vm293_vm2, %v33382_v38, -inf }
 0xadb   :  { %11347 = vmax.xlane.f32.xlu1 %v11346_v43  ;;  %v11204_v3 = vpop.f32.mrb[160].mxu1 }
 0xadc   :  { %v33386_v14 = vmul.f32 0.35355338, %v11204_v3  ;;  %v29324_v28 = vpop.f32.mrb[161].mxu1 }
 0xade   :  { %v11352_v17 = vsel %vm293_vm2, %v33386_v14, -inf }
 0xadf   :  { %11353 = vmax.xlane.f32.xlu1 %v11352_v17 }
 0xae1   :  { %11730 = vrot.lane.b32.xlu0 %v31372_v33, %s31199_s29 }
 0xaf0   :  { %11654 = vrot.lane.b32.xlu1 %v36461_v45, %s31199_s29 }
 0xb3c   :  { %v11306_v2 = vpop.xlane.xlu1 %11305 }
 0xb3d   :  { %v11358_v7 = vsub.f32 %v33319_v48, %v11306_v2 }
 0xb3f   :  { %v11376_v29 = vmul.f32 1.442695, %v11358_v7 }
 0xb40   :  { %v11309_v32 = vpop.xlane.xlu0 %11308 }
 0xb41   :  { %30719 = vpow2.f32 %v11376_v29  ;;  %v11359_v18 = vsub.f32 %v33328_v16, %v11309_v32 }
 0xb43   :  { %v11378_v0 = vmul.f32 1.442695, %v11359_v18 }
 0xb44   :  { %v11312_v41 = vpop.xlane.xlu0 %11311 }
 0xb45   :  { %30721 = vpow2.f32 %v11378_v0  ;;  %v11360_v34 = vsub.f32 %v33337_v15, %v11312_v41 }
 0xb47   :  { %v11380_v49 = vmul.f32 1.442695, %v11360_v34 }
 0xb48   :  { %v11315_v10 = vpop.xlane.xlu0 %11314 }
 0xb49   :  { %30723 = vpow2.f32 %v11380_v49  ;;  %v11361_v33 = vsub.f32 %v33346_v1, %v11315_v10 }
 0xb4b   :  { %v33398_v6 = vpop.eup %30719  ;;  %v11382_v45 = vmul.f32 1.442695, %v11361_v33 }
 0xb4c   :  { %v11318_v8 = vpop.xlane.xlu1 %11317  ;;  %v11412_v48 = vsel %vm293_vm2, %v33398_v6, 0.0 }
 0xb4d   :  { %30725 = vpow2.f32 %v11382_v45  ;;  %v11362_v16 = vsub.f32 %v33354_v37, %v11318_v8  ;;  %11413 = vadd.xlane.f32.xlu1 %v11412_v48 }
 0xb4f   :  { %v33403_v31 = vpop.eup %30721  ;;  %v11384_v62 = vmul.f32 1.442695, %v11362_v16 }
 0xb50   :  { %v11321_v15 = vpop.xlane.xlu0 %11320  ;;  %v11415_v5 = vsel %vm293_vm2, %v33403_v31, 0.0 }
 0xb51   :  { %30727 = vpow2.f32 %v11384_v62  ;;  %v11363_v1 = vsub.f32 %v33358_v19, %v11321_v15  ;;  %11416 = vadd.xlane.f32.xlu0 %v11415_v5 }
 0xb53   :  { %v33408_v20 = vpop.eup %30723  ;;  %v11386_v11 = vmul.f32 1.442695, %v11363_v1 }
 0xb54   :  { %v11324_v52 = vpop.xlane.xlu1 %11323  ;;  %v11418_v22 = vsel %vm293_vm2, %v33408_v20, 0.0 }
 0xb55   :  { %30729 = vpow2.f32 %v11386_v11  ;;  %v11364_v37 = vsub.f32 %v33362_v56, %v11324_v52  ;;  %11419 = vadd.xlane.f32.xlu1 %v11418_v22 }
 0xb57   :  { %v33413_v9 = vpop.eup %30725  ;;  %v11388_v26 = vmul.f32 1.442695, %v11364_v37 }
 0xb58   :  { %v11327_v63 = vpop.xlane.xlu0 %11326  ;;  %v11421_v30 = vsel %vm293_vm2, %v33413_v9, 0.0 }
 0xb59   :  { %30731 = vpow2.f32 %v11388_v26  ;;  %v11365_v19 = vsub.f32 %v33366_v4, %v11327_v63  ;;  %11422 = vadd.xlane.f32.xlu0 %v11421_v30 }
 0xb5b   :  { %v33418_v42 = vpop.eup %30727  ;;  %v11390_v54 = vmul.f32 1.442695, %v11365_v19 }
 0xb5c   :  { %v11330_v39 = vpop.xlane.xlu1 %11329  ;;  %v11424_v46 = vsel %vm293_vm2, %v33418_v42, 0.0 }
 0xb5d   :  { %30733 = vpow2.f32 %v11390_v54  ;;  %v11366_v56 = vsub.f32 %v33370_v35, %v11330_v39  ;;  %11425 = vadd.xlane.f32.xlu1 %v11424_v46 }
 0xb5f   :  { %v33423_v58 = vpop.eup %30729  ;;  %v11392_v51 = vmul.f32 1.442695, %v11366_v56 }
 0xb60   :  { %v11336_v23 = vpop.xlane.xlu1 %11335  ;;  %v11427_v43 = vsel %vm293_vm2, %v33423_v58, 0.0 }
 0xb61   :  { %30735 = vpow2.f32 %v11392_v51  ;;  %v11368_v4 = vsub.f32 %v33374_v21, %v11336_v23  ;;  %11428 = vadd.xlane.f32.xlu0 %v11427_v43 }
 0xb63   :  { %v33428_v3 = vpop.eup %30731  ;;  %v11396_v28 = vmul.f32 1.442695, %v11368_v4 }
 0xb64   :  { %v11342_v17 = vpop.xlane.xlu1 %11341  ;;  %v11430_v2 = vsel %vm293_vm2, %v33428_v3, 0.0 }
 0xb65   :  { %30737 = vpow2.f32 %v11396_v28  ;;  %v11370_v35 = vsub.f32 %v33378_v27, %v11342_v17  ;;  %11431 = vadd.xlane.f32.xlu1 %v11430_v2 }
 0xb67   :  { %v33433_v7 = vpop.eup %30733  ;;  %v11400_v29 = vmul.f32 1.442695, %v11370_v35 }
 0xb68   :  { %v11348_v32 = vpop.xlane.xlu1 %11347  ;;  %v11433_v18 = vsel %vm293_vm2, %v33433_v7, 0.0 }
 0xb69   :  { %30739 = vpow2.f32 %v11400_v29  ;;  %v11372_v21 = vsub.f32 %v33382_v38, %v11348_v32  ;;  %11434 = vadd.xlane.f32.xlu0 %v11433_v18 }
 0xb6b   :  { %v33438_v0 = vpop.eup %30735  ;;  %v11404_v41 = vmul.f32 1.442695, %v11372_v21 }
 0xb6c   :  { %v11354_v34 = vpop.xlane.xlu1 %11353  ;;  %v11436_v49 = vsel %vm293_vm2, %v33438_v0, 0.0 }
 0xb6d   :  { %30741 = vpow2.f32 %v11404_v41  ;;  %v11374_v27 = vsub.f32 %v33386_v14, %v11354_v34  ;;  %11437 = vadd.xlane.f32.xlu1 %v11436_v49 }
 0xb6f   :  { %v33443_v10 = vpop.eup %30737  ;;  %v11408_v33 = vmul.f32 1.442695, %v11374_v27 }
 0xb70   :  { %v11442_v45 = vsel %vm293_vm2, %v33443_v10, 0.0 }
 0xb71   :  { %30743 = vpow2.f32 %v11408_v33  ;;  %11443 = vadd.xlane.f32.xlu1 %v11442_v45 }
 0xb73   :  { %v33447_v38 = vpop.eup %30739 }
 0xb74   :  { %v11448_v8 = vsel %vm293_vm2, %v33447_v38, 0.0 }
 0xb75   :  { %11449 = vadd.xlane.f32.xlu1 %v11448_v8 }
 0xb77   :  { %v33451_v48 = vpop.eup %30741 }
 0xb78   :  { %v11454_v14 = vsel %vm293_vm2, %v33451_v48, 0.0 }
 0xb79   :  { %11455 = vadd.xlane.f32.xlu1 %v11454_v14 }
 0xb7b   :  { %v33455_v16 = vpop.eup %30743 }
 0xb7c   :  { %v10658_v62 = vpop.f32.mrb[116].mxu0  ;;  %v11460_v15 = vsel %vm293_vm2, %v33455_v16, 0.0 }
 0xb7d   :  { %v33459_v5 = vmul.f32 0.35355338, %v10658_v62  ;;  %11461 = vadd.xlane.f32.xlu1 %v11460_v15  ;;  %v29289_v1 = vpop.f32.mrb[117].mxu0 }
 0xb7f   :  { %v11331_v11 = vsel %vm293_vm2, %v33459_v5, -inf }
 0xb80   :  { %v10814_v52 = vpop.f32.mrb[118].mxu0  ;;  %11332 = vmax.xlane.f32.xlu0 %v11331_v11 }
 0xb81   :  { %v33463_v22 = vmul.f32 0.35355338, %v10814_v52  ;;  %v29299_v37 = vpop.f32.mrb[119].mxu0 }
 0xb83   :  { %v11337_v26 = vsel %vm293_vm2, %v33463_v22, -inf }
 0xb84   :  { %v10970_v63 = vpop.f32.mrb[120].mxu0  ;;  %11338 = vmax.xlane.f32.xlu0 %v11337_v26 }
 0xb85   :  { %v33467_v30 = vmul.f32 0.35355338, %v10970_v63  ;;  %v29309_v19 = vpop.f32.mrb[121].mxu0 }
 0xb87   :  { %v11343_v54 = vsel %vm293_vm2, %v33467_v30, -inf }
 0xb88   :  { %v11126_v39 = vpop.f32.mrb[122].mxu0  ;;  %11344 = vmax.xlane.f32.xlu0 %v11343_v54 }
 0xb89   :  { %v33471_v46 = vmul.f32 0.35355338, %v11126_v39  ;;  %v29319_v56 = vpop.f32.mrb[123].mxu0 }
 0xb8b   :  { %v11349_v51 = vsel %vm293_vm2, %v33471_v46, -inf }
 0xb8c   :  { %v11282_v23 = vpop.f32.mrb[124].mxu0  ;;  %11350 = vmax.xlane.f32.xlu0 %v11349_v51 }
 0xb8d   :  { %v33475_v43 = vmul.f32 0.35355338, %v11282_v23  ;;  %v29329_v4 = vpop.f32.mrb[125].mxu0 }
 0xb8e   :  { %11882 = vrot.lane.b32.xlu1 %v36446_v24, %s31199_s29 }
 0xb8f   :  { %v11355_v28 = vsel %vm293_vm2, %v33475_v43, -inf }
 0xb90   :  { %11356 = vmax.xlane.f32.xlu0 %v11355_v28 }
 0xb92   :  { %12034 = vrot.lane.b32.xlu1 %v36462_v12, %s31199_s29 }
 0xb96   :  { %12110 = vrot.lane.b32.xlu1 %v31394_v44, %s31199_s29  ;;  %v11655_v44 = vpop.permute.xlu1 %11654 }
 0xb9a   :  { %12186 = vrot.lane.b32.xlu1 %v36449_v25, %s31199_s29 }
 0xb9e   :  { %12262 = vrot.lane.b32.xlu1 %v31414_v55, %s31199_s29  ;;  %v11731_v55 = vpop.permute.xlu0 %11730 }
 0xba2   :  { %12414 = vrot.lane.b32.xlu1 %v31420_v59, %s31199_s29 }
 0xba6   :  { %12566 = vrot.lane.b32.xlu1 %v31422_v60, %s31199_s29  ;;  %11806 = vrot.lane.b32.xlu0 %v31378_v36, %s31199_s29 }
 0xbaa   :  { %12718 = vrot.lane.b32.xlu1 %v31432_v61, %s31199_s29  ;;  %11958 = vrot.lane.b32.xlu0 %v31386_v40, %s31199_s29 }
 0xbae   :  { %12338 = vrot.lane.b32.xlu0 %v31402_v47, %s31199_s29 }
 0xbb2   :  { %12490 = vrot.lane.b32.xlu0 %v31408_v50, %s31199_s29 }
 0xbb6   :  { %12642 = vrot.lane.b32.xlu0 %v31412_v53, %s31199_s29 }
 0xbda   :  { %v11414_v59 = vpop.xlane.xlu1 %11413 }
 0xbdb   :  { %30745 = vrcp.f32 %v11414_v59 }
 0xbde   :  { %v11417_v36 = vpop.xlane.xlu0 %11416 }
 0xbdf   :  { %30747 = vrcp.f32 %v11417_v36 }
 0xbe2   :  { %v11420_v60 = vpop.xlane.xlu1 %11419 }
 0xbe3   :  { %30749 = vrcp.f32 %v11420_v60 }
 0xbe5   :  { %v30746_v61 = vpop.eup %30745 }
 0xbe6   :  { %v11423_v24 = vpop.xlane.xlu0 %11422  ;;  %v11467_v40 = vmul.f32 %v30746_v61, %v33398_v6 }
 0xbe7   :  { %30751 = vrcp.f32 %v11423_v24 }
 0xbe8   :  { %29333 = vmatmul.mubr.msk.f32.vlgmr.msra.gmra.mrb[162].mxu1 %vm293_vm2, %v11467_v40 }
 0xbe9   :  { %v30748_v47 = vpop.eup %30747  ;;  %29341 = vmatpush3.msra.mxu1 %v11655_v44  ;;  %29342 = vmatprep.mubr.msk.f32.mxu1 %vm31188_vm1, %v36411_v13 }
 0xbea   :  { %v11469_v50 = vmul.f32 %v30748_v47, %v33403_v31  ;;  %29350 = vmatprep.subr.mxu1 %v36411_v13  ;;  %v11426_v6 = vpop.xlane.xlu1 %11425 }
 0xbec   :  { %29338 = vmatmul.mubr.msk.f32.vlgmr.msra.gmra.mrb[126].mxu0 %vm293_vm2, %v11469_v50 }
 0xbed   :  { %v30750_v53 = vpop.eup %30749  ;;  %29346 = vmatpush3.msra.mxu0 %v11731_v55  ;;  %29347 = vmatprep.mubr.msk.f32.mxu0 %vm31188_vm1, %v36411_v13 }
 0xbee   :  { %v11471_v25 = vmul.f32 %v30750_v53, %v33408_v20  ;;  %29355 = vmatprep.subr.mxu0 %v36411_v13  ;;  %v11429_v35 = vpop.xlane.xlu0 %11428 }
 0xbef   :  { %30753 = vrcp.f32 %v11429_v35 }
 0xbf0   :  { %29343 = vmatmul.mubr.msk.f32.vlgmr.msra.gmra.mrb[164].mxu1 %vm293_vm2, %v11471_v25 }
 0xbf1   :  { %v30752_v12 = vpop.eup %30751  ;;  %29352 = vmatprep.mubr.msk.f32.mxu1 %vm31188_vm1, %v36411_v13 }
 0xbf2   :  { %v11473_v31 = vmul.f32 %v30752_v12, %v33413_v9  ;;  %v11432_v17 = vpop.xlane.xlu1 %11431 }
 0xbf4   :  { %29348 = vmatmul.mubr.msk.f32.vlgmr.msra.gmra.mrb[128].mxu0 %vm293_vm2, %v11473_v31 }
 0xbf5   :  { %29357 = vmatprep.mubr.msk.f32.mxu0 %vm31188_vm1, %v36411_v13 }
 0xbf6   :  { %v11435_v29 = vpop.xlane.xlu0 %11434 }
 0xbf7   :  { %30755 = vrcp.f32 %v11435_v29 }
 0xbf9   :  { %v30754_v41 = vpop.eup %30753 }
 0xbfa   :  { %v11438_v2 = vpop.xlane.xlu1 %11437  ;;  %v11477_v27 = vmul.f32 %v30754_v41, %v33423_v58 }
 0xbfe   :  { %v11444_v20 = vpop.xlane.xlu1 %11443 }
 0xc01   :  { %v30756_v33 = vpop.eup %30755 }
 0xc02   :  { %v11450_v32 = vpop.xlane.xlu1 %11449  ;;  %v11481_v15 = vmul.f32 %v30756_v33, %v33433_v7 }
 0xc06   :  { %v33523_v18 = vpop.xlane.xlu1 %11455 }
 0xc0a   :  { %v33525_v21 = vpop.xlane.xlu1 %11461 }
 0xc0d   :  { %v11333_v34 = vpop.xlane.xlu0 %11332 }
 0xc0e   :  { %v11883_v9 = vpop.permute.xlu1 %11882  ;;  %v11367_v49 = vsub.f32 %v33459_v5, %v11333_v34 }
 0xc0f   :  { %29356 = vmatpush3.msra.mxu0 %v11883_v9 }
 0xc10   :  { %v11394_v45 = vmul.f32 1.442695, %v11367_v49  ;;  %29358 = vmatmul.mubr.msk.f32.vlgmr.msra.gmra.mrb[130].mxu0 %vm293_vm2, %v11477_v27  ;;  %29365 = vmatprep.subr.mxu0 %v36411_v13 }
 0xc11   :  { %v11339_v8 = vpop.xlane.xlu0 %11338  ;;  %29367 = vmatprep.mubr.msk.f32.mxu0 %vm31188_vm1, %v36411_v13 }
 0xc12   :  { %30757 = vpow2.f32 %v11394_v45  ;;  %v12035_v14 = vpop.permute.xlu1 %12034  ;;  %v11369_v62 = vsub.f32 %v33463_v22, %v11339_v8 }
 0xc13   :  { %29366 = vmatpush3.msra.mxu0 %v12035_v14  ;;  %30759 = vrcp.f32 %v11426_v6 }
 0xc14   :  { %v11398_v58 = vmul.f32 1.442695, %v11369_v62  ;;  %29368 = vmatmul.mubr.msk.f32.vlgmr.msra.gmra.mrb[132].mxu0 %vm293_vm2, %v11481_v15  ;;  %29375 = vmatprep.subr.mxu0 %v36411_v13 }
 0xc15   :  { %v11345_v5 = vpop.xlane.xlu0 %11344  ;;  %29377 = vmatprep.mubr.msk.f32.mxu0 %vm31188_vm1, %v36411_v13 }
 0xc16   :  { %30761 = vpow2.f32 %v11398_v58  ;;  %v12111_v1 = vpop.permute.xlu1 %12110  ;;  %v11371_v11 = vsub.f32 %v33467_v30, %v11345_v5  ;;  %v72_v5 = vld [vmem:[%s36365_s3 + $0x18] sm:$0xff] }
 0xc17   :  { %30763 = vrcp.f32 %v11432_v17 }
 0xc18   :  { %v11402_v52 = vmul.f32 1.442695, %v11371_v11 }
 0xc19   :  { %v11351_v22 = vpop.xlane.xlu0 %11350 }
 0xc1a   :  { %30765 = vpow2.f32 %v11402_v52  ;;  %v12187_v7 = vpop.permute.xlu1 %12186  ;;  %v11373_v37 = vsub.f32 %v33471_v46, %v11351_v22 }
 0xc1b   :  { %29376 = vmatpush3.msra.mxu0 %v12187_v7  ;;  %30767 = vrcp.f32 %v11438_v2 }
 0xc1c   :  { %v33541_v26 = vpop.eup %30757  ;;  %v11406_v63 = vmul.f32 1.442695, %v11373_v37  ;;  %29385 = vmatprep.subr.mxu0 %v36411_v13 }
 0xc1d   :  { %v11357_v19 = vpop.xlane.xlu0 %11356  ;;  %v11439_v54 = vsel %vm293_vm2, %v33541_v26, 0.0  ;;  %v30760_v39 = vpop.eup %30759 }
 0xc1e   :  { %30769 = vpow2.f32 %v11406_v63  ;;  %v11375_v30 = vsub.f32 %v33475_v43, %v11357_v19  ;;  %11440 = vadd.xlane.f32.xlu0 %v11439_v54  ;;  %v11475_v4 = vmul.f32 %v30760_v39, %v33418_v42  ;;  %v12263_v44 = vpop.permute.xlu1 %12262 }
 0xc1f   :  { %30771 = vrcp.f32 %v11444_v20 }
 0xc20   :  { %v33547_v56 = vpop.eup %30761  ;;  %v11410_v46 = vmul.f32 1.442695, %v11375_v30 }
 0xc21   :  { %v11807_v51 = vpop.permute.xlu0 %11806  ;;  %v11445_v23 = vsel %vm293_vm2, %v33547_v56, 0.0  ;;  %v30764_v28 = vpop.eup %30763 }
 0xc22   :  { %30773 = vpow2.f32 %v11410_v46  ;;  %11446 = vadd.xlane.f32.xlu0 %v11445_v23  ;;  %29351 = vmatpush3.msra.mxu1 %v11807_v51  ;;  %v11479_v42 = vmul.f32 %v30764_v28, %v33428_v3  ;;  %v12415_v40 = vpop.permute.xlu1 %12414 }
 0xc23   :  { %29353 = vmatmul.mubr.msk.f32.vlgmr.msra.gmra.mrb[166].mxu1 %vm293_vm2, %v11475_v4  ;;  %29360 = vmatprep.subr.mxu1 %v36411_v13  ;;  %30775 = vrcp.f32 %v11450_v32 }
 0xc24   :  { %v33554_v43 = vpop.eup %30765  ;;  %29362 = vmatprep.mubr.msk.f32.mxu1 %vm31188_vm1, %v36411_v13  ;;  %30777 = vrcp.f32 %v33523_v18 }
 0xc25   :  { %v11959_v55 = vpop.permute.xlu0 %11958  ;;  %v11451_v59 = vsel %vm293_vm2, %v33554_v43, 0.0  ;;  %v30768_v36 = vpop.eup %30767  ;;  %30779 = vrcp.f32 %v33525_v21 }
 0xc26   :  { %11452 = vadd.xlane.f32.xlu0 %v11451_v59  ;;  %29361 = vmatpush3.msra.mxu1 %v11959_v55  ;;  %v11483_v3 = vmul.f32 %v30768_v36, %v33438_v0  ;;  %v12567_v25 = vpop.permute.xlu1 %12566  ;;  %v13121_v36 = vld [vmem:[%s36366_s5] sm:$0xff] }
 0xc27   :  { %29363 = vmatmul.mubr.msk.f32.vlgmr.msra.gmra.mrb[168].mxu1 %vm293_vm2, %v11479_v42  ;;  %29370 = vmatprep.subr.mxu1 %v36411_v13 }
 0xc28   :  { %v33563_v60 = vpop.eup %30769  ;;  %29371 = vmatpush3.msra.mxu1 %v12111_v1  ;;  %29372 = vmatprep.mubr.msk.f32.mxu1 %vm31188_vm1, %v36411_v13 }
 0xc29   :  { %v11457_v61 = vsel %vm293_vm2, %v33563_v60, 0.0  ;;  %29380 = vmatprep.subr.mxu1 %v36411_v13  ;;  %v30772_v24 = vpop.eup %30771  ;;  %v12339_v2 = vpop.permute.xlu0 %12338 }
 0xc2a   :  { %11458 = vadd.xlane.f32.xlu0 %v11457_v61  ;;  %v11487_v0 = vmul.f32 %v30772_v24, %v33443_v10  ;;  %v12719_v17 = vpop.permute.xlu1 %12718  ;;  %v13124_v24 = vld [vmem:[%s36366_s5 + $0x18] sm:$0xff] }
 0xc2b   :  { %29373 = vmatmul.mubr.msk.f32.vlgmr.msra.gmra.mrb[170].mxu1 %vm293_vm2, %v11483_v3  ;;  %v13123_v3 = vld [vmem:[%s36366_s5 + $0x10] sm:$0xff] }
 0xc2c   :  { %v33573_v47 = vpop.eup %30773  ;;  %29381 = vmatpush3.msra.mxu1 %v12263_v44  ;;  %29382 = vmatprep.mubr.msk.f32.mxu1 %vm31188_vm1, %v36411_v13 }
 0xc2d   :  { %v11463_v50 = vsel %vm293_vm2, %v33573_v47, 0.0  ;;  %29390 = vmatprep.subr.mxu1 %v36411_v13  ;;  %v30776_v53 = vpop.eup %30775  ;;  %v12491_v35 = vpop.permute.xlu0 %12490 }
 0xc2e   :  { %11464 = vadd.xlane.f32.xlu0 %v11463_v50  ;;  %v11491_v12 = vmul.f32 %v30776_v53, %v33447_v38  ;;  %v30778_v6 = vpop.eup %30777 }
 0xc2f   :  { %29383 = vmatmul.mubr.msk.f32.vlgmr.msra.gmra.mrb[172].mxu1 %vm293_vm2, %v11487_v0  ;;  %v11495_v10 = vmul.f32 %v30778_v6, %v33451_v48  ;;  %v30780_v31 = vpop.eup %30779 }
 0xc30   :  { %29391 = vmatpush3.msra.mxu1 %v12415_v40  ;;  %29392 = vmatprep.mubr.msk.f32.mxu1 %vm31188_vm1, %v36411_v13  ;;  %v11499_v38 = vmul.f32 %v30780_v31, %v33455_v16  ;;  %v30367_v40 = vpack.c.bf16 %v13124_v24, %v13123_v3 }
 0xc31   :  { %29400 = vmatprep.subr.mxu1 %v36411_v13  ;;  %v12643_v20 = vpop.permute.xlu0 %12642 }
 0xc33   :  { %29393 = vmatmul.mubr.msk.f32.vlgmr.msra.gmra.mrb[174].mxu1 %vm293_vm2, %v11491_v12 }
 0xc34   :  { %29401 = vmatpush3.msra.mxu1 %v12567_v25  ;;  %29402 = vmatprep.mubr.msk.f32.mxu1 %vm31188_vm1, %v36411_v13 }
 0xc35   :  { %29410 = vmatprep.subr.mxu1 %v36411_v13 }
 0xc37   :  { %29403 = vmatmul.mubr.msk.f32.vlgmr.msra.gmra.mrb[176].mxu1 %vm293_vm2, %v11495_v10 }
 0xc38   :  { %29411 = vmatpush3.msra.mxu1 %v12719_v17  ;;  %29412 = vmatprep.mubr.msk.f32.mxu1 %vm31188_vm1, %v36411_v13 }
 0xc3b   :  { %29413 = vmatmul.mubr.msk.f32.vlgmr.msra.gmra.mrb[178].mxu1 %vm293_vm2, %v11499_v38  ;;  %v27454_v38 = vld [vmem:[%s36367_s4] ss:$0 sm:$0xff] }
 0xc44   :  { %12794 = vrot.lane.b32.xlu0 %v31418_v57, %s31199_s29 }
 0xcab   :  { %v11441_v29 = vpop.xlane.xlu0 %11440 }
 0xcac   :  { %30781 = vrcp.f32 %v11441_v29 }
 0xcaf   :  { %v11447_v48 = vpop.xlane.xlu0 %11446 }
 0xcb0   :  { %30783 = vrcp.f32 %v11447_v48 }
 0xcb3   :  { %v11453_v32 = vpop.xlane.xlu0 %11452 }
 0xcb4   :  { %30785 = vrcp.f32 %v11453_v32 }
 0xcb6   :  { %v30782_v18 = vpop.eup %30781 }
 0xcb7   :  { %v11459_v21 = vpop.xlane.xlu0 %11458  ;;  %v11485_v41 = vmul.f32 %v30782_v18, %v33541_v26 }
 0xcb8   :  { %30787 = vrcp.f32 %v11459_v21 }
 0xcb9   :  { %29378 = vmatmul.mubr.msk.f32.vlgmr.msra.gmra.mrb[134].mxu0 %vm293_vm2, %v11485_v41 }
 0xcba   :  { %v30784_v16 = vpop.eup %30783  ;;  %29386 = vmatpush3.msra.mxu0 %v12339_v2  ;;  %29387 = vmatprep.mubr.msk.f32.mxu0 %vm31188_vm1, %v36411_v13 }
 0xcbb   :  { %v11574_v57 = vpop.f32.mrb[162].mxu1  ;;  %v11465_v34 = vpop.xlane.xlu0 %11464  ;;  %29395 = vmatprep.subr.mxu0 %v36411_v13  ;;  %v11489_v9 = vmul.f32 %v30784_v16, %v33547_v56 }
 0xcbc   :  { %v29334_v49 = vpop.f32.mrb[163].mxu1  ;;  %30789 = vrcp.f32 %v11465_v34 }
 0xcbd   :  { %29388 = vmatmul.mubr.msk.f32.vlgmr.msra.gmra.mrb[136].mxu0 %vm293_vm2, %v11489_v9 }
 0xcbe   :  { %v30786_v27 = vpop.eup %30785  ;;  %29396 = vmatpush3.msra.mxu0 %v12491_v35  ;;  %29397 = vmatprep.mubr.msk.f32.mxu0 %vm31188_vm1, %v36411_v13 }
 0xcbf   :  { %v11650_v33 = vpop.f32.mrb[126].mxu0  ;;  %29405 = vmatprep.subr.mxu0 %v36411_v13  ;;  %v11493_v45 = vmul.f32 %v30786_v27, %v33554_v43  ;;  %v12795_v1 = vpop.permute.xlu0 %12794 }
 0xcc0   :  { %v29339_v8 = vpop.f32.mrb[127].mxu0 }
 0xcc1   :  { %29398 = vmatmul.mubr.msk.f32.vlgmr.msra.gmra.mrb[138].mxu0 %vm293_vm2, %v11493_v45 }
 0xcc2   :  { %v30788_v14 = vpop.eup %30787  ;;  %29406 = vmatpush3.msra.mxu0 %v12643_v20  ;;  %29407 = vmatprep.mubr.msk.f32.mxu0 %vm31188_vm1, %v36411_v13 }
 0xcc3   :  { %v11726_v62 = vpop.f32.mrb[164].mxu1  ;;  %29415 = vmatprep.subr.mxu0 %v36411_v13  ;;  %v11497_v15 = vmul.f32 %v30788_v14, %v33563_v60  ;;  %v13122_v60 = vld [vmem:[%s36366_s5 + $0x8] sm:$0xff] }
 0xcc4   :  { %v29344_v58 = vpop.f32.mrb[165].mxu1  ;;  %v30363_v61 = vpack.c.bf16 %v13122_v60, %v13121_v36 }
 0xcc5   :  { %29408 = vmatmul.mubr.msk.f32.vlgmr.msra.gmra.mrb[140].mxu0 %vm293_vm2, %v11497_v15 }
 0xcc6   :  { %v30790_v11 = vpop.eup %30789  ;;  %29416 = vmatpush3.msra.mxu0 %v12795_v1  ;;  %29417 = vmatprep.mubr.msk.f32.mxu0 %vm31188_vm1, %v36411_v13 }
 0xcc7   :  { %v11802_v52 = vpop.f32.mrb[128].mxu0  ;;  %v11501_v22 = vmul.f32 %v30790_v11, %v33573_v47  ;;  %29420 = vmatprep.subr.mxu0 %v72_v5  ;;  %30364 = vmatprep.subr.bf16.mxu1 %v30363_v61 }
 0xcc8   :  { %v29349_v7 = vpop.f32.mrb[129].mxu0  ;;  %30366 = vmatpush3.bf16.msra.mxu1 %v30363_v61 }
 0xcc9   :  { %29418 = vmatmul.mubr.msk.f32.vlgmr.msra.gmra.mrb[142].mxu0 %vm293_vm2, %v11501_v22  ;;  %30368 = vmatprep.subr.bf16.mxu1 %v30367_v40 }
 0xcca   :  { %29422 = vmatprep.mubr.msk.f32.mxu0 %vm293_vm2, %v11574_v57  ;;  %29421 = vmatpush3.msra.mxu0 %v72_v5 }
 0xccb   :  { %29484 = vmatprep.subr.mxu0 %v36411_v13 }
 0xccc   :  { %30370 = vmatpush3.bf16.msra.mxu1 %v30367_v40 }
 0xccd   :  { %29423 = vmatmul.mubr.msk.f32.vlgmr.msra.gmra.mrb[80].mxu0 %vm293_vm2, %v11650_v33  ;;  %29489 = vmatprep.subr.mxu1 %v36411_v13 }
 0xcce   :  { %29425 = vmatprep.mubr.msk.f32.mxu0 %vm293_vm2, %v11726_v62 }
 0xcd1   :  { %29426 = vmatmul.mubr.msk.f32.gmra.mrb[82].mxu0 %vm293_vm2, %v11802_v52 }
 0xce3   :  { %v11954_v37 = vpop.f32.mrb[130].mxu0 }
 0xce4   :  { %v29359_v26 = vpop.f32.mrb[131].mxu0 }
 0xce7   :  { %v12106_v63 = vpop.f32.mrb[132].mxu0 }
 0xce8   :  { %v29369_v19 = vpop.f32.mrb[133].mxu0 }
 0xcf6   :  { %v11878_v54 = vpop.f32.mrb[166].mxu1 }
 0xcf7   :  { %v29354_v39 = vpop.f32.mrb[167].mxu1  ;;  %29428 = vmatprep.mubr.msk.f32.mxu0 %vm293_vm2, %v11878_v54 }
 0xcf8   :  { %29429 = vmatmul.mubr.msk.f32.gmra.mrb[84].mxu0 %vm293_vm2, %v11954_v37 }
 0xcfa   :  { %v12030_v30 = vpop.f32.mrb[168].mxu1 }
 0xcfb   :  { %v29364_v56 = vpop.f32.mrb[169].mxu1  ;;  %29431 = vmatprep.mubr.msk.f32.mxu0 %vm293_vm2, %v12030_v30 }
 0xcfc   :  { %29432 = vmatmul.mubr.msk.f32.gmra.mrb[86].mxu0 %vm293_vm2, %v12106_v63 }
 0xcfe   :  { %v12182_v46 = vpop.f32.mrb[170].mxu1 }
 0xcff   :  { %v29374_v51 = vpop.f32.mrb[171].mxu1  ;;  %29434 = vmatprep.mubr.msk.f32.mxu0 %vm293_vm2, %v12182_v46  ;;  %v33681_v46 = vld [vmem:[%s36368_s6] ss:$0 sm:$0xff] }
 0xd02   :  { %v12334_v23 = vpop.f32.mrb[172].mxu1 }
 0xd03   :  { %v29384_v4 = vpop.f32.mrb[173].mxu1 }
 0xd06   :  { %v12486_v28 = vpop.f32.mrb[174].mxu1 }
 0xd07   :  { %v29394_v43 = vpop.f32.mrb[175].mxu1 }
 0xd0a   :  { %v12638_v44 = vpop.f32.mrb[176].mxu1 }
 0xd0b   :  { %v29404_v55 = vpop.f32.mrb[177].mxu1 }
 0xd0e   :  { %v12790_v59 = vpop.f32.mrb[178].mxu1 }
 0xd0f   :  { %v29414_v42 = vpop.f32.mrb[179].mxu1 }
 0xd8c   :  { %v12258_v47 = vpop.f32.mrb[134].mxu0 }
 0xd8d   :  { %v29379_v50 = vpop.f32.mrb[135].mxu0  ;;  %29435 = vmatmul.mubr.msk.f32.gmra.mrb[88].mxu0 %vm293_vm2, %v12258_v47 }
 0xd8e   :  { %29437 = vmatprep.mubr.msk.f32.mxu0 %vm293_vm2, %v12334_v23 }
 0xd90   :  { %v12410_v0 = vpop.f32.mrb[136].mxu0 }
 0xd91   :  { %v29389_v53 = vpop.f32.mrb[137].mxu0  ;;  %29438 = vmatmul.mubr.msk.f32.gmra.mrb[90].mxu0 %vm293_vm2, %v12410_v0 }
 0xd92   :  { %29440 = vmatprep.mubr.msk.f32.mxu0 %vm293_vm2, %v12486_v28 }
 0xd94   :  { %v12562_v25 = vpop.f32.mrb[138].mxu0 }
 0xd95   :  { %v29399_v12 = vpop.f32.mrb[139].mxu0  ;;  %29441 = vmatmul.mubr.msk.f32.gmra.mrb[92].mxu0 %vm293_vm2, %v12562_v25 }
 0xd96   :  { %29443 = vmatprep.mubr.msk.f32.mxu0 %vm293_vm2, %v12638_v44 }
 0xd98   :  { %v12714_v6 = vpop.f32.mrb[140].mxu0 }
 0xd99   :  { %v29409_v10 = vpop.f32.mrb[141].mxu0  ;;  %29444 = vmatmul.mubr.msk.f32.gmra.mrb[94].mxu0 %vm293_vm2, %v12714_v6 }
 0xd9a   :  { %29446 = vmatprep.mubr.msk.f32.mxu0 %vm293_vm2, %v12790_v59 }
 0xd9c   :  { %v12866_v31 = vpop.f32.mrb[142].mxu0 }
 0xd9d   :  { %v29419_v17 = vpop.f32.mrb[143].mxu0  ;;  %29447 = vmatmul.mubr.msk.f32.gmra.mrb[96].mxu0 %vm293_vm2, %v12866_v31 }
 0xd9e   :  { %29486 = vmatprep.mubr.msk.f32.mxu0 %vm31188_vm1, %v36411_v13 }
 0xda0   :  { %v29424_v2 = vpop.f32.mrb[80].mxu0 }
 0xda1   :  { %v12990_v35 = vpop.f32.mrb[81].mxu0  ;;  %v13104_v29 = vadd.f32 %v29424_v2, %v27454_v38 }
 0xda2   :  { %v13103_v20 = vadd.f32 %v27454_v38, %v12990_v35 }
 0xda4   :  { %v29427_v48 = vpop.f32.mrb[82].mxu0  ;;  %29457 = vmatprep.mubr.msk.f32.mxu1 %vm80_vm0, %v13103_v20 }
 0xda5   :  { %v13000_v32 = vpop.f32.mrb[83].mxu0  ;;  %29458 = vmatmul.mubr.msk.f32.vlgmr.msra.gmra.mrb[180].mxu1 %vm80_vm0, %v13104_v29  ;;  %v13106_v21 = vadd.f32 %v29427_v48, %v27454_v38 }
 0xda6   :  { %v13105_v18 = vadd.f32 %v27454_v38, %v13000_v32 }
 0xda8   :  { %29460 = vmatprep.mubr.msk.f32.mxu1 %vm80_vm0, %v13105_v18 }
 0xda9   :  { %29461 = vmatmul.mubr.msk.f32.gmra.mrb[182].mxu1 %vm80_vm0, %v13106_v21 }
 0xdcb   :  { %v29430_v41 = vpop.f32.mrb[84].mxu0 }
 0xdcc   :  { %v13010_v16 = vpop.f32.mrb[85].mxu0  ;;  %v13108_v34 = vadd.f32 %v29430_v41, %v27454_v38 }
 0xdcd   :  { %v13107_v57 = vadd.f32 %v27454_v38, %v13010_v16 }
 0xdcf   :  { %v29433_v9 = vpop.f32.mrb[86].mxu0  ;;  %29463 = vmatprep.mubr.msk.f32.mxu1 %vm80_vm0, %v13107_v57 }
 0xdd0   :  { %v13020_v49 = vpop.f32.mrb[87].mxu0  ;;  %29464 = vmatmul.mubr.msk.f32.gmra.mrb[184].mxu1 %vm80_vm0, %v13108_v34  ;;  %v13110_v33 = vadd.f32 %v29433_v9, %v27454_v38 }
 0xdd1   :  { %v13109_v27 = vadd.f32 %v27454_v38, %v13020_v49 }
 0xdd3   :  { %29466 = vmatprep.mubr.msk.f32.mxu1 %vm80_vm0, %v13109_v27 }
 0xdd4   :  { %29467 = vmatmul.mubr.msk.f32.gmra.mrb[186].mxu1 %vm80_vm0, %v13110_v33 }
 0xe60   :  { %v29436_v45 = vpop.f32.mrb[88].mxu0 }
 0xe61   :  { %v13030_v8 = vpop.f32.mrb[89].mxu0  ;;  %v13112_v62 = vadd.f32 %v29436_v45, %v27454_v38 }
 0xe62   :  { %v13111_v14 = vadd.f32 %v27454_v38, %v13030_v8 }
 0xe64   :  { %v29439_v15 = vpop.f32.mrb[90].mxu0  ;;  %29469 = vmatprep.mubr.msk.f32.mxu1 %vm80_vm0, %v13111_v14 }
 0xe65   :  { %v13040_v58 = vpop.f32.mrb[91].mxu0  ;;  %29470 = vmatmul.mubr.msk.f32.gmra.mrb[188].mxu1 %vm80_vm0, %v13112_v62  ;;  %v13114_v1 = vadd.f32 %v29439_v15, %v27454_v38 }
 0xe66   :  { %v13113_v5 = vadd.f32 %v27454_v38, %v13040_v58 }
 0xe68   :  { %v29442_v11 = vpop.f32.mrb[92].mxu0  ;;  %29472 = vmatprep.mubr.msk.f32.mxu1 %vm80_vm0, %v13113_v5 }
 0xe69   :  { %v13050_v52 = vpop.f32.mrb[93].mxu0  ;;  %29473 = vmatmul.mubr.msk.f32.gmra.mrb[190].mxu1 %vm80_vm0, %v13114_v1  ;;  %v13116_v7 = vadd.f32 %v29442_v11, %v27454_v38 }
 0xe6a   :  { %v13115_v22 = vadd.f32 %v27454_v38, %v13050_v52 }
 0xe6c   :  { %v29445_v37 = vpop.f32.mrb[94].mxu0  ;;  %29475 = vmatprep.mubr.msk.f32.mxu1 %vm80_vm0, %v13115_v22 }
 0xe6d   :  { %v13060_v26 = vpop.f32.mrb[95].mxu0  ;;  %29476 = vmatmul.mubr.msk.f32.gmra.mrb[192].mxu1 %vm80_vm0, %v13116_v7  ;;  %v13118_v19 = vadd.f32 %v29445_v37, %v27454_v38 }
 0xe6e   :  { %v13117_v63 = vadd.f32 %v27454_v38, %v13060_v26 }
 0xe70   :  { %v29448_v54 = vpop.f32.mrb[96].mxu0  ;;  %29478 = vmatprep.mubr.msk.f32.mxu1 %vm80_vm0, %v13117_v63 }
 0xe71   :  { %v13070_v39 = vpop.f32.mrb[97].mxu0  ;;  %29479 = vmatmul.mubr.msk.f32.gmra.mrb[194].mxu1 %vm80_vm0, %v13118_v19  ;;  %v13120_v56 = vadd.f32 %v29448_v54, %v27454_v38 }
 0xe72   :  { %v13119_v30 = vadd.f32 %v27454_v38, %v13070_v39 }
 0xe74   :  { %29481 = vmatprep.mubr.msk.f32.mxu1 %vm80_vm0, %v13119_v30 }
 0xe75   :  { %29482 = vmatmul.mubr.msk.f32.gmra.mrb[196].mxu1 %vm80_vm0, %v13120_v56 }
 0xe76   :  { %29491 = vmatprep.mubr.msk.f32.mxu1 %vm31188_vm1, %v36411_v13 }
 0xe78   :  { %v29459_v51 = vpop.f32.mrb[180].mxu1 }
 0xe79   :  { %v33686_v23 = vadd.f32 %v29459_v51, %v33681_v46  ;;  %v13257_v4 = vpop.f32.mrb[181].mxu1 }
 0xe7a   :  { %v33750_v29 = vadd.f32 %v33681_v46, %v13257_v4 }
 0xe7b   :  { %36495 = vst [vmem:[#allocation27_spill] sm:$0xff] %v33686_v23  ;;  %13424 = vrot.lane.b32.xlu1 %v33686_v23, %s31189_s0 }
 0xe7c   :  { %v29462_v28 = vpop.f32.mrb[182].mxu1 }
 0xe7d   :  { %v33691_v43 = vadd.f32 %v29462_v28, %v33681_v46  ;;  %v13267_v44 = vpop.f32.mrb[183].mxu1 }
 0xe7e   :  { %v33760_v18 = vadd.f32 %v33681_v46, %v13267_v44 }
 0xe7f   :  { %36496 = vst [vmem:[#allocation28_spill] sm:$0xff] %v33691_v43  ;;  %13578 = vrot.lane.b32.xlu0 %v33691_v43, %s31189_s0 }
 0xe80   :  { %36500 = vst [vmem:[#allocation31_spill] sm:$0xff] %v33760_v18 }
 0xea3   :  { %v29465_v55 = vpop.f32.mrb[184].mxu1 }
 0xea4   :  { %v33696_v59 = vadd.f32 %v29465_v55, %v33681_v46  ;;  %v13277_v42 = vpop.f32.mrb[185].mxu1 }
 0xea5   :  { %v33763_v21 = vadd.f32 %v33681_v46, %v13277_v42 }
 0xea6   :  { %36497 = vst [vmem:[#allocation29_spill] sm:$0xff] %v33696_v59  ;;  %13732 = vrot.lane.b32.xlu1 %v33696_v59, %s31189_s0 }
 0xea7   :  { %v29468_v36 = vpop.f32.mrb[186].mxu1  ;;  %36501 = vst [vmem:[#allocation32_spill] sm:$0xff] %v33763_v21 }
 0xea8   :  { %v33701_v60 = vadd.f32 %v29468_v36, %v33681_v46  ;;  %v13287_v61 = vpop.f32.mrb[187].mxu1 }
 0xea9   :  { %v33770_v41 = vadd.f32 %v33681_v46, %v13287_v61 }
 0xeaa   :  { %36498 = vst [vmem:[#allocation36_spill] sm:$0xff] %v33701_v60  ;;  %13886 = vrot.lane.b32.xlu0 %v33701_v60, %s31189_s0 }
 0xeab   :  { %36502 = vst [vmem:[#allocation37_spill] sm:$0xff] %v33770_v41 }
 0xeed   :  { %v13425_v3 = vpop.permute.xlu1 %13424 }
 0xeee   :  { %29490 = vmatpush3.xpose.msk.msra.mxu1 %vm293_vm2, %v13425_v3 }
 0xeef   :  { %29499 = vmatprep.subr.mxu1 %v36411_v13 }
 0xef1   :  { %v13579_v24 = vpop.permute.xlu0 %13578  ;;  %29492 = vmatmul.mubr.msk.f32.vlgmr.msra.gmra.mrb[198].mxu1 %vm293_vm2, %v33686_v23 }
 0xef2   :  { %29500 = vmatpush3.xpose.msk.msra.mxu1 %vm293_vm2, %v13579_v24  ;;  %29501 = vmatprep.mubr.msk.f32.mxu1 %vm31188_vm1, %v36411_v13 }
 0xef3   :  { %29509 = vmatprep.subr.mxu1 %v36411_v13 }
 0xef5   :  { %29502 = vmatmul.mubr.msk.f32.vlgmr.msra.gmra.mrb[200].mxu1 %vm293_vm2, %v33691_v43 }
 0xef6   :  { %29511 = vmatprep.mubr.msk.f32.mxu1 %vm31188_vm1, %v36411_v13 }
 0xf18   :  { %v13733_v40 = vpop.permute.xlu1 %13732 }
 0xf19   :  { %29510 = vmatpush3.xpose.msk.msra.mxu1 %vm293_vm2, %v13733_v40 }
 0xf1a   :  { %29519 = vmatprep.subr.mxu1 %v36411_v13 }
 0xf1c   :  { %v13887_v47 = vpop.permute.xlu0 %13886  ;;  %29512 = vmatmul.mubr.msk.f32.vlgmr.msra.gmra.mrb[202].mxu1 %vm293_vm2, %v33696_v59 }
 0xf1d   :  { %29520 = vmatpush3.xpose.msk.msra.mxu1 %vm293_vm2, %v13887_v47  ;;  %29521 = vmatprep.mubr.msk.f32.mxu1 %vm31188_vm1, %v36411_v13 }
 0xf1e   :  { %29529 = vmatprep.subr.mxu1 %v36411_v13 }
 0xf20   :  { %29522 = vmatmul.mubr.msk.f32.vlgmr.msra.gmra.mrb[204].mxu1 %vm293_vm2, %v33701_v60 }
 0xf21   :  { %29531 = vmatprep.mubr.msk.f32.mxu1 %vm31188_vm1, %v36411_v13 }
 0xf38   :  { %v29471_v50 = vpop.f32.mrb[188].mxu1 }
 0xf39   :  { %v33730_v0 = vadd.f32 %v29471_v50, %v33681_v46  ;;  %v13297_v53 = vpop.f32.mrb[189].mxu1 }
 0xf3a   :  { %v33773_v16 = vadd.f32 %v33681_v46, %v13297_v53 }
 0xf3b   :  { %36499 = vst [vmem:[#allocation30_spill] sm:$0xff] %v33730_v0  ;;  %14040 = vrot.lane.b32.xlu1 %v33730_v0, %s31189_s0 }
 0xf3c   :  { %v29474_v25 = vpop.f32.mrb[190].mxu1  ;;  %36503 = vst [vmem:[#allocation38_spill] sm:$0xff] %v33773_v16 }
 0xf3d   :  { %v33735_v12 = vadd.f32 %v29474_v25, %v33681_v46  ;;  %v13307_v6 = vpop.f32.mrb[191].mxu1 }
 0xf3e   :  { %v33780_v57 = vadd.f32 %v33681_v46, %v13307_v6 }
 0xf3f   :  { %14194 = vrot.lane.b32.xlu0 %v33735_v12, %s31189_s0 }
 0xf40   :  { %v29477_v10 = vpop.f32.mrb[192].mxu1  ;;  %36504 = vst [vmem:[#allocation3_spill] sm:$0xff] %v33780_v57 }
 0xf41   :  { %v33740_v31 = vadd.f32 %v29477_v10, %v33681_v46  ;;  %v13317_v17 = vpop.f32.mrb[193].mxu1 }
 0xf42   :  { %v33783_v34 = vadd.f32 %v33681_v46, %v13317_v17 }
 0xf43   :  { %14348 = vrot.lane.b32.xlu1 %v33740_v31, %s31189_s0 }
 0xf44   :  { %v29480_v38 = vpop.f32.mrb[194].mxu1 }
 0xf45   :  { %v33745_v2 = vadd.f32 %v29480_v38, %v33681_v46  ;;  %v13327_v35 = vpop.f32.mrb[195].mxu1 }
 0xf46   :  { %v33790_v9 = vadd.f32 %v33681_v46, %v13327_v35 }
 0xf47   :  { %14502 = vrot.lane.b32.xlu0 %v33745_v2, %s31189_s0 }
 0xf48   :  { %v29483_v20 = vpop.f32.mrb[196].mxu1 }
 0xf49   :  { %v33753_v48 = vadd.f32 %v29483_v20, %v33681_v46  ;;  %v13337_v32 = vpop.f32.mrb[197].mxu1 }
 0xf4a   :  { %v33827_v49 = vadd.f32 %v33681_v46, %v13337_v32 }
 0xf4b   :  { %13347 = vrot.lane.b32.xlu0 %v33750_v29, %s31189_s0  ;;  %14656 = vrot.lane.b32.xlu1 %v33753_v48, %s31189_s0 }
 0xf4f   :  { %13655 = vrot.lane.b32.xlu0 %v33763_v21, %s31189_s0  ;;  %13501 = vrot.lane.b32.xlu1 %v33760_v18, %s31189_s0 }
 0xf53   :  { %13963 = vrot.lane.b32.xlu0 %v33773_v16, %s31189_s0  ;;  %13809 = vrot.lane.b32.xlu1 %v33770_v41, %s31189_s0 }
 0xf57   :  { %14271 = vrot.lane.b32.xlu0 %v33783_v34, %s31189_s0  ;;  %14117 = vrot.lane.b32.xlu1 %v33780_v57, %s31189_s0 }
 0xf5b   :  { %15176 = vrot.lane.b32.xlu0 %v33691_v43, %s31190_s2  ;;  %14425 = vrot.lane.b32.xlu1 %v33790_v9, %s31189_s0 }
 0xf5f   :  { %15328 = vrot.lane.b32.xlu0 %v33696_v59, %s31190_s2  ;;  %15024 = vrot.lane.b32.xlu1 %v33686_v23, %s31190_s2 }
 0xf63   :  { %15480 = vrot.lane.b32.xlu0 %v33701_v60, %s31190_s2  ;;  %16706 = vrot.lane.b32.xlu1 %v33696_v59, %s31192_s19 }
 0xf67   :  { %15632 = vrot.lane.b32.xlu0 %v33730_v0, %s31190_s2  ;;  %16240 = vrot.lane.b32.xlu1 %v33753_v48, %s31190_s2 }
 0xf6b   :  { %15784 = vrot.lane.b32.xlu0 %v33735_v12, %s31190_s2 }
 0xf6f   :  { %15936 = vrot.lane.b32.xlu0 %v33740_v31, %s31190_s2 }
 0xf73   :  { %16088 = vrot.lane.b32.xlu0 %v33745_v2, %s31190_s2 }
 0xf77   :  { %16396 = vrot.lane.b32.xlu0 %v33686_v23, %s31191_s18 }
 0xf7b   :  { %16394 = vrot.lane.b32.xlu0 %v33686_v23, %s31192_s19 }
 0xf7f   :  { %16552 = vrot.lane.b32.xlu0 %v33691_v43, %s31191_s18 }
 0xf83   :  { %16550 = vrot.lane.b32.xlu0 %v33691_v43, %s31192_s19 }
 0xf87   :  { %16708 = vrot.lane.b32.xlu0 %v33696_v59, %s31191_s18 }
 0xf8b   :  { %16864 = vrot.lane.b32.xlu0 %v33701_v60, %s31191_s18 }
 0xf8f   :  { %14579 = vrot.lane.b32.xlu0 %v33827_v49, %s31189_s0 }
 0xf93   :  { %17020 = vrot.lane.b32.xlu0 %v33730_v0, %s31191_s18 }
 0xfad   :  { %v14041_v27 = vpop.permute.xlu1 %14040 }
 0xfae   :  { %29530 = vmatpush3.xpose.msk.msra.mxu1 %vm293_vm2, %v14041_v27 }
 0xfaf   :  { %29539 = vmatprep.subr.mxu1 %v36411_v13 }
 0xfb1   :  { %v14195_v33 = vpop.permute.xlu0 %14194  ;;  %29532 = vmatmul.mubr.msk.f32.vlgmr.msra.gmra.mrb[206].mxu1 %vm293_vm2, %v33730_v0 }
 0xfb2   :  { %29540 = vmatpush3.xpose.msk.msra.mxu1 %vm293_vm2, %v14195_v33  ;;  %29541 = vmatprep.mubr.msk.f32.mxu1 %vm31188_vm1, %v36411_v13 }
 0xfb3   :  { %29549 = vmatprep.subr.mxu1 %v36411_v13 }
 0xfb5   :  { %v14349_v45 = vpop.permute.xlu1 %14348  ;;  %29542 = vmatmul.mubr.msk.f32.vlgmr.msra.gmra.mrb[208].mxu1 %vm293_vm2, %v33735_v12 }
 0xfb6   :  { %29550 = vmatpush3.xpose.msk.msra.mxu1 %vm293_vm2, %v14349_v45  ;;  %29551 = vmatprep.mubr.msk.f32.mxu1 %vm31188_vm1, %v36411_v13 }
 0xfb7   :  { %29559 = vmatprep.subr.mxu1 %v36411_v13 }
 0xfb9   :  { %v14503_v8 = vpop.permute.xlu0 %14502  ;;  %29552 = vmatmul.mubr.msk.f32.vlgmr.msra.gmra.mrb[210].mxu1 %vm293_vm2, %v33740_v31 }
 0xfba   :  { %29560 = vmatpush3.xpose.msk.msra.mxu1 %vm293_vm2, %v14503_v8  ;;  %29561 = vmatprep.mubr.msk.f32.mxu1 %vm31188_vm1, %v36411_v13 }
 0xfbb   :  { %29569 = vmatprep.subr.mxu1 %v36411_v13 }
 0xfbd   :  { %v13348_v14 = vpop.permute.xlu0 %13347  ;;  %29562 = vmatmul.mubr.msk.f32.vlgmr.msra.gmra.mrb[212].mxu1 %vm293_vm2, %v33745_v2  ;;  %v14657_v62 = vpop.permute.xlu1 %14656 }
 0xfbe   :  { %29485 = vmatpush3.xpose.msk.msra.mxu0 %vm293_vm2, %v13348_v14  ;;  %29570 = vmatpush3.xpose.msk.msra.mxu1 %vm293_vm2, %v14657_v62 }
 0xfbf   :  { %29571 = vmatprep.mubr.msk.f32.mxu1 %vm31188_vm1, %v36411_v13  ;;  %29494 = vmatprep.subr.mxu0 %v36411_v13 }
 0xfc0   :  { %29579 = vmatprep.subr.mxu1 %v36411_v13 }
 0xfc1   :  { %29487 = vmatmul.mubr.msk.f32.vlgmr.msra.gmra.mrb[144].mxu0 %vm293_vm2, %v33750_v29  ;;  %v13656_v15 = vpop.permute.xlu0 %13655  ;;  %29572 = vmatmul.mubr.msk.f32.vlgmr.msra.gmra.mrb[214].mxu1 %vm293_vm2, %v33753_v48  ;;  %v13502_v58 = vpop.permute.xlu1 %13501 }
 0xfc2   :  { %29495 = vmatpush3.xpose.msk.msra.mxu0 %vm293_vm2, %v13502_v58  ;;  %29496 = vmatprep.mubr.msk.f32.mxu0 %vm31188_vm1, %v36411_v13 }
 0xfc3   :  { %29504 = vmatprep.subr.mxu0 %v36411_v13  ;;  %29581 = vmatprep.mubr.msk.f32.mxu1 %vm31188_vm1, %v36411_v13 }
 0xfc4   :  { %v13496_v5 = vpop.f32.mrb[198].mxu1 }
 0xfc5   :  { %v33871_v1 = vmul.f32 0.35355338, %v13496_v5  ;;  %v13964_v11 = vpop.permute.xlu0 %13963  ;;  %29497 = vmatmul.mubr.msk.f32.vlgmr.msra.gmra.mrb[146].mxu0 %vm293_vm2, %v33760_v18  ;;  %v13810_v52 = vpop.permute.xlu1 %13809 }
 0xfc6   :  { %v29493_v22 = vpop.f32.mrb[199].mxu1  ;;  %29505 = vmatpush3.xpose.msk.msra.mxu0 %vm293_vm2, %v13656_v15  ;;  %29506 = vmatprep.mubr.msk.f32.mxu0 %vm31188_vm1, %v36411_v13 }
 0xfc7   :  { %v14753_v7 = vsel %vm293_vm2, %v33871_v1, -inf  ;;  %29514 = vmatprep.subr.mxu0 %v36411_v13 }
 0xfc8   :  { %14754 = vmax.xlane.f32.xlu1 %v14753_v7  ;;  %v13650_v37 = vpop.f32.mrb[200].mxu1 }
 0xfc9   :  { %v33881_v26 = vmul.f32 0.35355338, %v13650_v37  ;;  %v14272_v63 = vpop.permute.xlu0 %14271  ;;  %29507 = vmatmul.mubr.msk.f32.vlgmr.msra.gmra.mrb[148].mxu0 %vm293_vm2, %v33763_v21  ;;  %v14118_v19 = vpop.permute.xlu1 %14117 }
 0xfca   :  { %v29503_v54 = vpop.f32.mrb[201].mxu1  ;;  %29515 = vmatpush3.xpose.msk.msra.mxu0 %vm293_vm2, %v13810_v52  ;;  %29516 = vmatprep.mubr.msk.f32.mxu0 %vm31188_vm1, %v36411_v13 }
 0xfcb   :  { %v14759_v39 = vsel %vm293_vm2, %v33881_v26, -inf  ;;  %29524 = vmatprep.subr.mxu0 %v36411_v13 }
 0xfcc   :  { %14760 = vmax.xlane.f32.xlu0 %v14759_v39 }
 0xfcd   :  { %v33891_v30 = vpop.permute.xlu0 %15176  ;;  %29517 = vmatmul.mubr.msk.f32.vlgmr.msra.gmra.mrb[150].mxu0 %vm293_vm2, %v33770_v41  ;;  %v14426_v56 = vpop.permute.xlu1 %14425 }
 0xfce   :  { %29525 = vmatpush3.xpose.msk.msra.mxu0 %vm293_vm2, %v13964_v11  ;;  %29526 = vmatprep.mubr.msk.f32.mxu0 %vm31188_vm1, %v36411_v13 }
 0xfcf   :  { %29534 = vmatprep.subr.mxu0 %v36411_v13 }
 0xfd1   :  { %v33899_v46 = vpop.permute.xlu0 %15328  ;;  %29527 = vmatmul.mubr.msk.f32.vlgmr.msra.gmra.mrb[152].mxu0 %vm293_vm2, %v33773_v16  ;;  %v15025_v51 = vpop.permute.xlu1 %15024 }
 0xfd2   :  { %29535 = vmatpush3.xpose.msk.msra.mxu0 %vm293_vm2, %v14118_v19  ;;  %29580 = vmatpush3.msra.mxu1 %v15025_v51 }
 0xfd3   :  { %29536 = vmatprep.mubr.msk.f32.mxu0 %vm31188_vm1, %v36411_v13  ;;  %29544 = vmatprep.subr.mxu0 %v36411_v13 }
 0xfd4   :  { %29589 = vmatprep.subr.mxu1 %v36411_v13 }
 0xfd5   :  { %v33908_v4 = vpop.permute.xlu0 %15480  ;;  %29537 = vmatmul.mubr.msk.f32.vlgmr.msra.gmra.mrb[154].mxu0 %vm293_vm2, %v33780_v57  ;;  %v33956_v32 = vpop.permute.xlu1 %16706 }
 0xfd6   :  { %29545 = vmatpush3.xpose.msk.msra.mxu0 %vm293_vm2, %v14272_v63  ;;  %29546 = vmatprep.mubr.msk.f32.mxu0 %vm31188_vm1, %v36411_v13 }
 0xfd7   :  { %29554 = vmatprep.subr.mxu0 %v36411_v13 }
 0xfd9   :  { %v33916_v28 = vpop.permute.xlu0 %15632  ;;  %29547 = vmatmul.mubr.msk.f32.vlgmr.msra.gmra.mrb[156].mxu0 %vm293_vm2, %v33783_v34  ;;  %16862 = vrot.lane.b32.xlu1 %v33701_v60, %s31192_s19  ;;  %v33958_v27 = vpop.permute.xlu1 %16240 }
 0xfda   :  { %29555 = vmatpush3.xpose.msk.msra.mxu0 %vm293_vm2, %v14426_v56  ;;  %29556 = vmatprep.mubr.msk.f32.mxu0 %vm31188_vm1, %v36411_v13 }
 0xfdb   :  { %29564 = vmatprep.subr.mxu0 %v36411_v13 }
 0xfdd   :  { %v33926_v44 = vpop.permute.xlu0 %15784  ;;  %29557 = vmatmul.mubr.msk.f32.vlgmr.msra.gmra.mrb[158].mxu0 %vm293_vm2, %v33790_v9 }
 0xfde   :  { %29566 = vmatprep.mubr.msk.f32.mxu0 %vm31188_vm1, %v36411_v13 }
 0xfe1   :  { %v33932_v55 = vpop.permute.xlu0 %15936 }
 0xfe5   :  { %v33934_v42 = vpop.permute.xlu0 %16088 }
 0xfe9   :  { %v33936_v36 = vpop.permute.xlu0 %16396 }
 0xfed   :  { %v33938_v61 = vpop.permute.xlu0 %16394 }
 0xfef   :  { %v13804_v3 = vpop.f32.mrb[202].mxu1 }
 0xff0   :  { %v14737_v24 = vmul.f32 0.35355338, %v13804_v3  ;;  %v29513_v40 = vpop.f32.mrb[203].mxu1 }
 0xff1   :  { %v33940_v47 = vpop.permute.xlu0 %16552 }
 0xff2   :  { %v14765_v50 = vsel %vm293_vm2, %v14737_v24, -inf }
 0xff3   :  { %v13958_v53 = vpop.f32.mrb[204].mxu1  ;;  %14766 = vmax.xlane.f32.xlu0 %v14765_v50 }
 0xff4   :  { %v14739_v25 = vmul.f32 0.35355338, %v13958_v53  ;;  %v29523_v6 = vpop.f32.mrb[205].mxu1 }
 0xff5   :  { %v33943_v10 = vpop.permute.xlu0 %16550 }
 0xff6   :  { %v14771_v17 = vsel %vm293_vm2, %v14739_v25, -inf }
 0xff7   :  { %14772 = vmax.xlane.f32.xlu0 %v14771_v17 }
 0xff9   :  { %v33946_v38 = vpop.permute.xlu0 %16708 }
 0xffd   :  { %v33948_v35 = vpop.permute.xlu0 %16864 }
0x1001   :  { %v14580_v20 = vpop.permute.xlu0 %14579 }
0x1002   :  { %29565 = vmatpush3.xpose.msk.msra.mxu0 %vm293_vm2, %v14580_v20 }
0x1003   :  { %29574 = vmatprep.subr.mxu0 %v36411_v13 }
0x1005   :  { %29567 = vmatmul.mubr.msk.f32.vlgmr.msra.gmra.mrb[160].mxu0 %vm293_vm2, %v33827_v49  ;;  %v33960_v33 = vpop.permute.xlu0 %17020 }
0x1006   :  { %29576 = vmatprep.mubr.msk.f32.mxu0 %vm31188_vm1, %v36411_v13 }
0x1055   :  { %v14755_v45 = vpop.xlane.xlu1 %14754 }
0x1056   :  { %v14805_v8 = vsub.f32 %v33871_v1, %v14755_v45 }
0x1058   :  { %v14824_v14 = vmul.f32 1.442695, %v14805_v8 }
0x1059   :  { %v14761_v62 = vpop.xlane.xlu0 %14760 }
0x105a   :  { %30791 = vpow2.f32 %v14824_v14  ;;  %v14807_v15 = vsub.f32 %v33881_v26, %v14761_v62 }
0x105c   :  { %v14828_v58 = vmul.f32 1.442695, %v14807_v15 }
0x105e   :  { %30793 = vpow2.f32 %v14828_v58 }
0x1064   :  { %v33964_v5 = vpop.eup %30791 }
0x1065   :  { %v14861_v11 = vsel %vm293_vm2, %v33964_v5, 0.0 }
0x1066   :  { %14862 = vadd.xlane.f32.xlu0 %v14861_v11 }
0x1068   :  { %v33968_v52 = vpop.eup %30793 }
0x1069   :  { %v14867_v22 = vsel %vm293_vm2, %v33968_v52, 0.0 }
0x106a   :  { %14868 = vadd.xlane.f32.xlu1 %v14867_v22 }
0x1080   :  { %v14767_v1 = vpop.xlane.xlu0 %14766 }
0x1081   :  { %v14809_v7 = vsub.f32 %v14737_v24, %v14767_v1 }
0x1083   :  { %v14832_v37 = vmul.f32 1.442695, %v14809_v7 }
0x1084   :  { %v14112_v63 = vpop.f32.mrb[206].mxu1  ;;  %v14773_v19 = vpop.xlane.xlu0 %14772 }
0x1085   :  { %30795 = vpow2.f32 %v14832_v37  ;;  %v14811_v26 = vsub.f32 %v14739_v25, %v14773_v19  ;;  %v29533_v54 = vpop.f32.mrb[207].mxu1  ;;  %v33980_v25 = vmul.f32 0.35355338, %v14112_v63 }
0x1087   :  { %v14836_v39 = vmul.f32 1.442695, %v14811_v26  ;;  %v14777_v37 = vsel %vm293_vm2, %v33980_v25, -inf }
0x1088   :  { %v14266_v56 = vpop.f32.mrb[208].mxu1 }
0x1089   :  { %30797 = vpow2.f32 %v14836_v39  ;;  %v29543_v51 = vpop.f32.mrb[209].mxu1  ;;  %v33974_v53 = vmul.f32 0.35355338, %v14266_v56 }
0x108b   :  { %v14783_v62 = vsel %vm293_vm2, %v33974_v53, -inf }
0x108c   :  { %v14420_v3 = vpop.f32.mrb[210].mxu1 }
0x108d   :  { %v29553_v40 = vpop.f32.mrb[211].mxu1  ;;  %v33990_v22 = vmul.f32 0.35355338, %v14420_v3 }
0x108f   :  { %v33972_v50 = vpop.eup %30795  ;;  %v14789_v54 = vsel %vm293_vm2, %v33990_v22, -inf }
0x1090   :  { %v14574_v6 = vpop.f32.mrb[212].mxu1  ;;  %v14873_v24 = vsel %vm293_vm2, %v33972_v50, 0.0 }
0x1091   :  { %v29563_v17 = vpop.f32.mrb[213].mxu1  ;;  %14874 = vadd.xlane.f32.xlu0 %v14873_v24  ;;  %v33982_v45 = vmul.f32 0.35355338, %v14574_v6 }
0x1093   :  { %v33978_v20 = vpop.eup %30797  ;;  %v14795_v7 = vsel %vm293_vm2, %v33982_v45, -inf }
0x1094   :  { %v33984_v8 = vpop.f32.mrb[144].mxu0  ;;  %v14728_v14 = vpop.f32.mrb[214].mxu1  ;;  %v14879_v15 = vsel %vm293_vm2, %v33978_v20, 0.0 }
0x1095   :  { %v29488_v58 = vpop.f32.mrb[145].mxu0  ;;  %v29573_v11 = vpop.f32.mrb[215].mxu1  ;;  %14784 = vmax.xlane.f32.xlu0 %v14783_v62  ;;  %14880 = vadd.xlane.f32.xlu1 %v14879_v15  ;;  %v33998_v19 = vmul.f32 0.35355338, %v14728_v14 }
0x1097   :  { %v14801_v51 = vsel %vm293_vm2, %v33998_v19, -inf }
0x1098   :  { %v33992_v1 = vpop.f32.mrb[146].mxu0 }
0x1099   :  { %v29498_v63 = vpop.f32.mrb[147].mxu0  ;;  %14796 = vmax.xlane.f32.xlu0 %v14795_v7  ;;  %14778 = vmax.xlane.f32.xlu1 %v14777_v37  ;;  %v34022_v37 = vpop.permute.xlu1 %16862 }
0x109c   :  { %v34000_v26 = vpop.f32.mrb[148].mxu0 }
0x109d   :  { %v29508_v39 = vpop.f32.mrb[149].mxu0  ;;  %14790 = vmax.xlane.f32.xlu1 %v14789_v54 }
0x10a0   :  { %v34004_v56 = vpop.f32.mrb[150].mxu0 }
0x10a1   :  { %v29518_v3 = vpop.f32.mrb[151].mxu0  ;;  %14802 = vmax.xlane.f32.xlu1 %v14801_v51 }
0x10a4   :  { %v34008_v40 = vpop.f32.mrb[152].mxu0 }
0x10a5   :  { %v29528_v6 = vpop.f32.mrb[153].mxu0 }
0x10a8   :  { %v34010_v24 = vpop.f32.mrb[154].mxu0 }
0x10a9   :  { %v29538_v17 = vpop.f32.mrb[155].mxu0 }
0x10ac   :  { %v34012_v14 = vpop.f32.mrb[156].mxu0 }
0x10ad   :  { %v29548_v62 = vpop.f32.mrb[157].mxu0 }
0x10af   :  { %17176 = vrot.lane.b32.xlu0 %v33735_v12, %s31191_s18 }
0x10b0   :  { %v34016_v15 = vpop.f32.mrb[158].mxu0 }
0x10b1   :  { %v29558_v58 = vpop.f32.mrb[159].mxu0 }
0x10b2   :  { %17018 = vrot.lane.b32.xlu1 %v33730_v0, %s31192_s19 }
0x10d8   :  { %v34020_v11 = vpop.f32.mrb[160].mxu0 }
0x10d9   :  { %v29568_v7 = vpop.f32.mrb[161].mxu0 }
0x10f3   :  { %v14863_v63 = vpop.xlane.xlu0 %14862 }
0x10f4   :  { %30799 = vrcp.f32 %v14863_v63 }
0x10f7   :  { %v14869_v54 = vpop.xlane.xlu1 %14868 }
0x10f8   :  { %30801 = vrcp.f32 %v14869_v54 }
0x10fe   :  { %v30800_v39 = vpop.eup %30799 }
0x10ff   :  { %v14915_v51 = vmul.f32 %v30800_v39, %v33964_v5 }
0x1101   :  { %29582 = vmatmul.mubr.msk.f32.vlgmr.msra.gmra.mrb[216].mxu1 %vm293_vm2, %v14915_v51 }
0x1102   :  { %v30802_v3 = vpop.eup %30801  ;;  %29590 = vmatpush3.msra.mxu1 %v33891_v30  ;;  %29591 = vmatprep.mubr.msk.f32.mxu1 %vm31188_vm1, %v36411_v13 }
0x1103   :  { %29599 = vmatprep.subr.mxu1 %v36411_v13  ;;  %v14919_v6 = vmul.f32 %v30802_v3, %v33968_v52 }
0x1105   :  { %29592 = vmatmul.mubr.msk.f32.vlgmr.msra.gmra.mrb[218].mxu1 %vm293_vm2, %v14919_v6 }
0x1106   :  { %29600 = vmatpush3.msra.mxu1 %v33899_v46  ;;  %29601 = vmatprep.mubr.msk.f32.mxu1 %vm31188_vm1, %v36411_v13 }
0x1107   :  { %29609 = vmatprep.subr.mxu1 %v36411_v13 }
0x111e   :  { %v14875_v5 = vpop.xlane.xlu0 %14874 }
0x111f   :  { %30803 = vrcp.f32 %v14875_v5 }
0x1122   :  { %v14881_v17 = vpop.xlane.xlu1 %14880  ;;  %v14785_v30 = vpop.xlane.xlu0 %14784 }
0x1123   :  { %30805 = vrcp.f32 %v14881_v17  ;;  %v14815_v62 = vsub.f32 %v33974_v53, %v14785_v30 }
0x1125   :  { %v14844_v58 = vmul.f32 1.442695, %v14815_v62 }
0x1126   :  { %v14779_v7 = vpop.xlane.xlu1 %14778  ;;  %v14797_v63 = vpop.xlane.xlu0 %14796 }
0x1127   :  { %30807 = vpow2.f32 %v14844_v58  ;;  %v14813_v52 = vsub.f32 %v33980_v25, %v14779_v7  ;;  %v14819_v39 = vsub.f32 %v33982_v45, %v14797_v63 }
0x1129   :  { %v30804_v54 = vpop.eup %30803  ;;  %v14840_v46 = vmul.f32 1.442695, %v14813_v52  ;;  %v14852_v53 = vmul.f32 1.442695, %v14819_v39  ;;  %v34084_v39 = vmul.f32 0.35355338, %v33992_v1 }
0x112a   :  { %v14791_v51 = vpop.xlane.xlu1 %14790  ;;  %v14923_v3 = vmul.f32 %v30804_v54, %v33972_v50  ;;  %v34079_v54 = vmul.f32 0.35355338, %v33984_v8  ;;  %v34100_v8 = vmul.f32 0.35355338, %v34004_v56  ;;  %v34103_v1 = vmul.f32 0.35355338, %v34010_v24 }
0x112b   :  { %30809 = vpow2.f32 %v14840_v46  ;;  %v14817_v6 = vsub.f32 %v33990_v22, %v14791_v51  ;;  %v34087_v51 = vmul.f32 0.35355338, %v34000_v26  ;;  %v34116_v56 = vmul.f32 0.35355338, %v34016_v15  ;;  %v34129_v15 = vpop.permute.xlu0 %17176 }
0x112c   :  { %29602 = vmatmul.mubr.msk.f32.vlgmr.msra.gmra.mrb[220].mxu1 %vm293_vm2, %v14923_v3  ;;  %v14750_v46 = vsel %vm293_vm2, %v34079_v54, -inf  ;;  %v14756_v3 = vsel %vm293_vm2, %v34084_v39, -inf  ;;  %v14768_v26 = vsel %vm293_vm2, %v34100_v8, -inf  ;;  %v34119_v24 = vmul.f32 0.35355338, %v34020_v11 }
0x112d   :  { %v30806_v5 = vpop.eup %30805  ;;  %v14848_v17 = vmul.f32 1.442695, %v14817_v6  ;;  %29610 = vmatpush3.msra.mxu1 %v33908_v4  ;;  %29611 = vmatprep.mubr.msk.f32.mxu1 %vm31188_vm1, %v36411_v13  ;;  %v14762_v6 = vsel %vm293_vm2, %v34087_v51, -inf }
0x112e   :  { %v14803_v25 = vpop.xlane.xlu1 %14802  ;;  %29619 = vmatprep.subr.mxu1 %v36411_v13  ;;  %v14927_v45 = vmul.f32 %v30806_v5, %v33978_v20  ;;  %v34108_v5 = vmul.f32 0.35355338, %v34008_v40 }
0x112f   :  { %30811 = vpow2.f32 %v14848_v17  ;;  %v14821_v50 = vsub.f32 %v33998_v19, %v14803_v25  ;;  %v14780_v17 = vsel %vm293_vm2, %v34103_v1, -inf }
0x1130   :  { %29612 = vmatmul.mubr.msk.f32.vlgmr.msra.gmra.mrb[222].mxu1 %vm293_vm2, %v14927_v45  ;;  %30813 = vpow2.f32 %v14852_v53  ;;  %v34111_v53 = vmul.f32 0.35355338, %v34012_v14  ;;  %v14774_v40 = vsel %vm293_vm2, %v34108_v5, -inf  ;;  %v14798_v14 = vsel %vm293_vm2, %v34119_v24, -inf }
0x1131   :  { %v34049_v22 = vpop.eup %30807  ;;  %v14856_v30 = vmul.f32 1.442695, %v14821_v50  ;;  %29620 = vmatpush3.msra.mxu1 %v33916_v28  ;;  %29621 = vmatprep.mubr.msk.f32.mxu1 %vm31188_vm1, %v36411_v13  ;;  %v14792_v45 = vsel %vm293_vm2, %v34116_v56, -inf }
0x1132   :  { %v14891_v4 = vsel %vm293_vm2, %v34049_v22, 0.0  ;;  %29629 = vmatprep.subr.mxu1 %v36411_v13  ;;  %v14786_v25 = vsel %vm293_vm2, %v34111_v53, -inf  ;;  %v17019_v11 = vpop.permute.xlu1 %17018 }
0x1133   :  { %30815 = vpow2.f32 %v14856_v30  ;;  %14892 = vadd.xlane.f32.xlu1 %v14891_v4 }
0x1135   :  { %v30810_v20 = vpop.eup %30809 }
0x1136   :  { %v14885_v19 = vsel %vm293_vm2, %v30810_v20, 0.0 }
0x1137   :  { %14886 = vadd.xlane.f32.xlu0 %v14885_v19 }
0x1139   :  { %v34058_v62 = vpop.eup %30811 }
0x113a   :  { %v14897_v58 = vsel %vm293_vm2, %v34058_v62, 0.0  ;;  %v34062_v28 = vpop.eup %30813 }
0x113b   :  { %14898 = vadd.xlane.f32.xlu0 %v14897_v58  ;;  %v14903_v52 = vsel %vm293_vm2, %v34062_v28, 0.0 }
0x113d   :  { %v34064_v7 = vpop.eup %30815 }
0x113e   :  { %v14909_v63 = vsel %vm293_vm2, %v34064_v7, 0.0 }
0x113f   :  { %14910 = vadd.xlane.f32.xlu1 %v14909_v63  ;;  %14904 = vadd.xlane.f32.xlu0 %v14903_v52 }
0x1150   :  { %17174 = vrot.lane.b32.xlu1 %v33735_v12, %s31192_s19 }
0x1155   :  { %17332 = vrot.lane.b32.xlu0 %v33740_v31, %s31191_s18 }
0x1159   :  { %17330 = vrot.lane.b32.xlu0 %v33740_v31, %s31192_s19 }
0x115d   :  { %17488 = vrot.lane.b32.xlu0 %v33745_v2, %s31191_s18 }
0x1174   :  { %14751 = vmax.xlane.f32.xlu1 %v14750_v46 }
0x117c   :  { %14757 = vmax.xlane.f32.xlu0 %v14756_v3 }
0x1180   :  { %14763 = vmax.xlane.f32.xlu0 %v14762_v6 }
0x1185   :  { %17486 = vrot.lane.b32.xlu1 %v33745_v2, %s31192_s19 }
0x1189   :  { %17642 = vrot.lane.b32.xlu1 %v33753_v48, %s31192_s19 }
0x1196   :  { %17644 = vrot.lane.b32.xlu0 %v33753_v48, %s31191_s18 }
0x11ad   :  { %14769 = vmax.xlane.f32.xlu1 %v14768_v26 }
0x11b1   :  { %14781 = vmax.xlane.f32.xlu1 %v14780_v17 }
0x11b5   :  { %14787 = vmax.xlane.f32.xlu1 %v14786_v25  ;;  %14775 = vmax.xlane.f32.xlu0 %v14774_v40 }
0x11b9   :  { %14799 = vmax.xlane.f32.xlu1 %v14798_v14  ;;  %14793 = vmax.xlane.f32.xlu0 %v14792_v45 }
0x11c0   :  { %v14893_v50 = vpop.xlane.xlu1 %14892 }
0x11c4   :  { %v14887_v30 = vpop.xlane.xlu0 %14886 }
0x11c5   :  { %30817 = vrcp.f32 %v14887_v30 }
0x11c6   :  { %30819 = vrcp.f32 %v14893_v50 }
0x11c8   :  { %v14899_v4 = vpop.xlane.xlu0 %14898 }
0x11c9   :  { %30821 = vrcp.f32 %v14899_v4 }
0x11cc   :  { %v14905_v19 = vpop.xlane.xlu0 %14904  ;;  %v14911_v63 = vpop.xlane.xlu1 %14910 }
0x11cd   :  { %30823 = vrcp.f32 %v14905_v19 }
0x11ce   :  { %30825 = vrcp.f32 %v14911_v63 }
0x11cf   :  { %v30818_v58 = vpop.eup %30817 }
0x11d0   :  { %v14931_v52 = vmul.f32 %v30818_v58, %v30810_v20  ;;  %v30820_v46 = vpop.eup %30819 }
0x11d1   :  { %v14935_v6 = vmul.f32 %v30820_v46, %v34049_v22 }
0x11d2   :  { %29622 = vmatmul.mubr.msk.f32.vlgmr.msra.gmra.mrb[224].mxu1 %vm293_vm2, %v14931_v52 }
0x11d3   :  { %29630 = vmatpush3.msra.mxu1 %v33926_v44  ;;  %29631 = vmatprep.mubr.msk.f32.mxu1 %vm31188_vm1, %v36411_v13  ;;  %v30822_v26 = vpop.eup %30821 }
0x11d4   :  { %v34135_v3 = vpop.f32.mrb[216].mxu1  ;;  %29639 = vmatprep.subr.mxu1 %v36411_v13  ;;  %v14939_v44 = vmul.f32 %v30822_v26, %v34058_v62 }
0x11d5   :  { %36505 = vst [vmem:[#allocation5_spill] sm:$0xff] %v34135_v3  ;;  %v29583_v17 = vpop.f32.mrb[217].mxu1 }
0x11d6   :  { %29632 = vmatmul.mubr.msk.f32.vlgmr.msra.gmra.mrb[226].mxu1 %vm293_vm2, %v14935_v6 }
0x11d7   :  { %29640 = vmatpush3.msra.mxu1 %v33932_v55  ;;  %29641 = vmatprep.mubr.msk.f32.mxu1 %vm31188_vm1, %v36411_v13  ;;  %v30824_v25 = vpop.eup %30823 }
0x11d8   :  { %v34143_v20 = vpop.f32.mrb[218].mxu1  ;;  %29649 = vmatprep.subr.mxu1 %v36411_v13  ;;  %v14943_v55 = vmul.f32 %v30824_v25, %v34062_v28  ;;  %v30826_v22 = vpop.eup %30825 }
0x11d9   :  { %36506 = vst [vmem:[#allocation16_spill] sm:$0xff] %v34143_v20  ;;  %v29593_v40 = vpop.f32.mrb[219].mxu1  ;;  %v14947_v62 = vmul.f32 %v30826_v22, %v34064_v7 }
0x11da   :  { %29642 = vmatmul.mubr.msk.f32.vlgmr.msra.gmra.mrb[228].mxu1 %vm293_vm2, %v14939_v44 }
0x11db   :  { %29650 = vmatpush3.msra.mxu1 %v33934_v42  ;;  %29651 = vmatprep.mubr.msk.f32.mxu1 %vm31188_vm1, %v36411_v13  ;;  %v17333_v42 = vpop.permute.xlu0 %17332 }
0x11dc   :  { %29659 = vmatprep.subr.mxu1 %v36411_v13 }
0x11de   :  { %29652 = vmatmul.mubr.msk.f32.vlgmr.msra.gmra.mrb[230].mxu1 %vm293_vm2, %v14943_v55 }
0x11df   :  { %29660 = vmatpush3.msra.mxu1 %v33958_v27  ;;  %29661 = vmatprep.mubr.msk.f32.mxu1 %vm31188_vm1, %v36411_v13 }
0x11e0   :  { %29669 = vmatprep.subr.mxu1 %v36411_v13 }
0x11e2   :  { %29662 = vmatmul.mubr.msk.f32.vlgmr.msra.gmra.mrb[232].mxu1 %vm293_vm2, %v14947_v62 }
0x11e3   :  { %29671 = vmatprep.mubr.msk.f32.mxu1 %vm31188_vm1, %v36411_v13 }
0x11e6   :  { %29670 = vmatpush3.xpose.msk.msra.mxu1 %vm293_vm2, %v33936_v36  ;;  %v17331_v36 = vpop.permute.xlu0 %17330 }
0x11e7   :  { %29679 = vmatprep.subr.mxu1 %v36411_v13 }
0x11e9   :  { %29672 = vmatmul.mubr.msk.f32.vlgmr.msra.gmra.mrb[234].mxu1 %vm293_vm2, %v33938_v61  ;;  %v17175_v61 = vpop.permute.xlu1 %17174 }
0x11ea   :  { %29680 = vmatpush3.xpose.msk.msra.mxu1 %vm293_vm2, %v33940_v47  ;;  %29681 = vmatprep.mubr.msk.f32.mxu1 %vm31188_vm1, %v36411_v13 }
0x11eb   :  { %29689 = vmatprep.subr.mxu1 %v36411_v13 }
0x11ed   :  { %29682 = vmatmul.mubr.msk.f32.vlgmr.msra.gmra.mrb[236].mxu1 %vm293_vm2, %v33943_v10 }
0x11ee   :  { %29690 = vmatpush3.xpose.msk.msra.mxu1 %vm293_vm2, %v33946_v38  ;;  %29691 = vmatprep.mubr.msk.f32.mxu1 %vm31188_vm1, %v36411_v13  ;;  %v17489_v38 = vpop.permute.xlu0 %17488 }
0x11ef   :  { %29699 = vmatprep.subr.mxu1 %v36411_v13 }
0x11f1   :  { %29692 = vmatmul.mubr.msk.f32.vlgmr.msra.gmra.mrb[238].mxu1 %vm293_vm2, %v33956_v32 }
0x11f2   :  { %29700 = vmatpush3.xpose.msk.msra.mxu1 %vm293_vm2, %v33948_v35  ;;  %29701 = vmatprep.mubr.msk.f32.mxu1 %vm31188_vm1, %v36411_v13 }
0x11f3   :  { %29709 = vmatprep.subr.mxu1 %v36411_v13 }
0x11f5   :  { %29702 = vmatmul.mubr.msk.f32.vlgmr.msra.gmra.mrb[240].mxu1 %vm293_vm2, %v34022_v37 }
0x11f6   :  { %29710 = vmatpush3.xpose.msk.msra.mxu1 %vm293_vm2, %v33960_v33  ;;  %29711 = vmatprep.mubr.msk.f32.mxu1 %vm31188_vm1, %v36411_v13 }
0x11f7   :  { %29719 = vmatprep.subr.mxu1 %v36411_v13 }
0x11f9   :  { %29712 = vmatmul.mubr.msk.f32.vlgmr.msra.gmra.mrb[242].mxu1 %vm293_vm2, %v17019_v11 }
0x11fa   :  { %29720 = vmatpush3.xpose.msk.msra.mxu1 %vm293_vm2, %v34129_v15  ;;  %29721 = vmatprep.mubr.msk.f32.mxu1 %vm31188_vm1, %v36411_v13 }
0x11fb   :  { %29729 = vmatprep.subr.mxu1 %v36411_v13 }
0x11fd   :  { %29722 = vmatmul.mubr.msk.f32.vlgmr.msra.gmra.mrb[244].mxu1 %vm293_vm2, %v17175_v61 }
0x11fe   :  { %29730 = vmatpush3.xpose.msk.msra.mxu1 %vm293_vm2, %v17333_v42  ;;  %29731 = vmatprep.mubr.msk.f32.mxu1 %vm31188_vm1, %v36411_v13 }
0x11ff   :  { %v34203_v47 = vpop.f32.mrb[220].mxu1  ;;  %29739 = vmatprep.subr.mxu1 %v36411_v13 }
0x1200   :  { %36507 = vst [vmem:[#allocation7_spill] sm:$0xff] %v34203_v47  ;;  %v29603_v10 = vpop.f32.mrb[221].mxu1 }
0x1201   :  { %29732 = vmatmul.mubr.msk.f32.vlgmr.msra.gmra.mrb[246].mxu1 %vm293_vm2, %v17331_v36  ;;  %v14752_v35 = vpop.xlane.xlu1 %14751 }
0x1202   :  { %v14804_v32 = vsub.f32 %v34079_v54, %v14752_v35  ;;  %29740 = vmatpush3.xpose.msk.msra.mxu1 %vm293_vm2, %v17489_v38  ;;  %29741 = vmatprep.mubr.msk.f32.mxu1 %vm31188_vm1, %v36411_v13 }
0x1203   :  { %v34211_v27 = vpop.f32.mrb[222].mxu1  ;;  %29749 = vmatprep.subr.mxu1 %v36411_v13 }
0x1204   :  { %36508 = vst [vmem:[#allocation17_spill] sm:$0xff] %v34211_v27  ;;  %v14822_v33 = vmul.f32 1.442695, %v14804_v32  ;;  %v29613_v37 = vpop.f32.mrb[223].mxu1 }
0x1205   :  { %v17487_v28 = vpop.permute.xlu1 %17486 }
0x1206   :  { %30827 = vpow2.f32 %v14822_v33  ;;  %29742 = vmatmul.mubr.msk.f32.vlgmr.msra.gmra.mrb[248].mxu1 %vm293_vm2, %v17487_v28 }
0x1207   :  { %29751 = vmatprep.mubr.msk.f32.mxu1 %vm31188_vm1, %v36411_v13 }
0x1209   :  { %v14758_v7 = vpop.xlane.xlu0 %14757  ;;  %v17643_v19 = vpop.permute.xlu1 %17642 }
0x120a   :  { %v14806_v54 = vsub.f32 %v34084_v39, %v14758_v7 }
0x120c   :  { %v14826_v14 = vmul.f32 1.442695, %v14806_v54 }
0x120d   :  { %v14764_v45 = vpop.xlane.xlu0 %14763 }
0x120e   :  { %30829 = vpow2.f32 %v14826_v14  ;;  %v14808_v15 = vsub.f32 %v34087_v51, %v14764_v45 }
0x1210   :  { %v34219_v11 = vpop.eup %30827  ;;  %v14830_v50 = vmul.f32 1.442695, %v14808_v15 }
0x1211   :  { %v17645_v30 = vpop.permute.xlu0 %17644  ;;  %v14858_v4 = vsel %vm293_vm2, %v34219_v11, 0.0 }
0x1212   :  { %30831 = vpow2.f32 %v14830_v50  ;;  %14859 = vadd.xlane.f32.xlu0 %v14858_v4  ;;  %29750 = vmatpush3.xpose.msk.msra.mxu1 %vm293_vm2, %v17645_v30 }
0x1213   :  { %29759 = vmatprep.subr.mxu1 %v36411_v13 }
0x1215   :  { %29752 = vmatmul.mubr.msk.f32.vlgmr.msra.gmra.mrb[250].mxu1 %vm293_vm2, %v17643_v19 }
0x1216   :  { %29761 = vmatprep.mubr.msk.f32.mxu1 %vm31188_vm1, %v36411_v13 }
0x1218   :  { %v34228_v39 = vpop.eup %30829 }
0x1219   :  { %v14864_v51 = vsel %vm293_vm2, %v34228_v39, 0.0 }
0x121a   :  { %14865 = vadd.xlane.f32.xlu1 %v14864_v51 }
0x121c   :  { %v34232_v58 = vpop.eup %30831 }
0x121d   :  { %v14870_v63 = vsel %vm293_vm2, %v34232_v58, 0.0 }
0x121e   :  { %14871 = vadd.xlane.f32.xlu0 %v14870_v63 }
0x123a   :  { %v14770_v52 = vpop.xlane.xlu1 %14769 }
0x123b   :  { %v14810_v46 = vsub.f32 %v34100_v8, %v14770_v52 }
0x123d   :  { %v14834_v6 = vmul.f32 1.442695, %v14810_v46 }
0x123e   :  { %v14782_v26 = vpop.xlane.xlu1 %14781 }
0x123f   :  { %30833 = vpow2.f32 %v14834_v6  ;;  %v14814_v17 = vsub.f32 %v34103_v1, %v14782_v26 }
0x1241   :  { %v14842_v44 = vmul.f32 1.442695, %v14814_v17 }
0x1242   :  { %v14788_v25 = vpop.xlane.xlu1 %14787  ;;  %v14776_v40 = vpop.xlane.xlu0 %14775 }
0x1243   :  { %30835 = vpow2.f32 %v14842_v44  ;;  %v14816_v55 = vsub.f32 %v34111_v53, %v14788_v25  ;;  %v14812_v22 = vsub.f32 %v34108_v5, %v14776_v40 }
0x1245   :  { %v14838_v62 = vmul.f32 1.442695, %v14812_v22  ;;  %v14846_v42 = vmul.f32 1.442695, %v14816_v55 }
0x1246   :  { %v14794_v36 = vpop.xlane.xlu0 %14793  ;;  %v14800_v28 = vpop.xlane.xlu1 %14799 }
0x1247   :  { %v14818_v61 = vsub.f32 %v34116_v56, %v14794_v36  ;;  %30837 = vpow2.f32 %v14838_v62  ;;  %v14820_v7 = vsub.f32 %v34119_v24, %v14800_v28 }
0x1248   :  { %30839 = vpow2.f32 %v14846_v42 }
0x1249   :  { %v34241_v8 = vpop.eup %30833  ;;  %v14850_v10 = vmul.f32 1.442695, %v14818_v61  ;;  %v14854_v54 = vmul.f32 1.442695, %v14820_v7 }
0x124a   :  { %v14876_v1 = vsel %vm293_vm2, %v34241_v8, 0.0 }
0x124b   :  { %14877 = vadd.xlane.f32.xlu1 %v14876_v1  ;;  %30841 = vpow2.f32 %v14850_v10 }
0x124c   :  { %30843 = vpow2.f32 %v14854_v54 }
0x124d   :  { %v34245_v38 = vpop.eup %30835 }
0x124e   :  { %v14888_v5 = vsel %vm293_vm2, %v34245_v38, 0.0 }
0x124f   :  { %14889 = vadd.xlane.f32.xlu1 %v14888_v5 }
0x1251   :  { %v34249_v53 = vpop.eup %30837 }
0x1252   :  { %v14882_v56 = vsel %vm293_vm2, %v34249_v53, 0.0  ;;  %v34253_v35 = vpop.eup %30839 }
0x1253   :  { %14883 = vadd.xlane.f32.xlu0 %v14882_v56  ;;  %v14894_v32 = vsel %vm293_vm2, %v34253_v35, 0.0 }
0x1255   :  { %v34257_v33 = vpop.eup %30841 }
0x1256   :  { %v14900_v37 = vsel %vm293_vm2, %v34257_v33, 0.0  ;;  %v34288_v14 = vpop.eup %30843 }
0x1257   :  { %14895 = vadd.xlane.f32.xlu0 %v14894_v32  ;;  %v14906_v24 = vsel %vm293_vm2, %v34288_v14, 0.0 }
0x125b   :  { %14901 = vadd.xlane.f32.xlu0 %v14900_v37 }
0x1260   :  { %14948 = vrot.lane.b32.xlu1 %v33750_v29, %s31190_s2 }
0x1264   :  { %16318 = vrot.lane.b32.xlu1 %v33750_v29, %s31191_s18 }
0x1268   :  { %16628 = vrot.lane.b32.xlu1 %v33763_v21, %s31192_s19 }
0x126c   :  { %16784 = vrot.lane.b32.xlu1 %v33770_v41, %s31192_s19 }
0x1270   :  { %16940 = vrot.lane.b32.xlu1 %v33773_v16, %s31192_s19 }
0x1271   :  { %15100 = vrot.lane.b32.xlu0 %v33760_v18, %s31190_s2 }
0x1275   :  { %15252 = vrot.lane.b32.xlu0 %v33763_v21, %s31190_s2 }
0x1279   :  { %15404 = vrot.lane.b32.xlu0 %v33770_v41, %s31190_s2 }
0x127d   :  { %15556 = vrot.lane.b32.xlu0 %v33773_v16, %s31190_s2 }
0x1281   :  { %15708 = vrot.lane.b32.xlu0 %v33780_v57, %s31190_s2 }
0x1285   :  { %15860 = vrot.lane.b32.xlu0 %v33783_v34, %s31190_s2 }
0x1289   :  { %16012 = vrot.lane.b32.xlu0 %v33790_v9, %s31190_s2 }
0x128d   :  { %16164 = vrot.lane.b32.xlu0 %v33827_v49, %s31190_s2 }
0x1291   :  { %16316 = vrot.lane.b32.xlu0 %v33750_v29, %s31192_s19 }
0x1294   :  { %14907 = vadd.xlane.f32.xlu1 %v14906_v24 }
0x1295   :  { %16474 = vrot.lane.b32.xlu0 %v33760_v18, %s31191_s18 }
0x1299   :  { %16472 = vrot.lane.b32.xlu0 %v33760_v18, %s31192_s19 }
0x129d   :  { %16630 = vrot.lane.b32.xlu0 %v33763_v21, %s31191_s18 }
0x129f   :  { %v14860_v36 = vpop.xlane.xlu0 %14859 }
0x12a0   :  { %30845 = vrcp.f32 %v14860_v36 }
0x12a1   :  { %16786 = vrot.lane.b32.xlu0 %v33770_v41, %s31191_s18 }
0x12a5   :  { %v34302_v45 = vpop.f32.mrb[224].mxu1  ;;  %17096 = vrot.lane.b32.xlu1 %v33780_v57, %s31192_s19  ;;  %16942 = vrot.lane.b32.xlu0 %v33773_v16, %s31191_s18 }
0x12a6   :  { %36509 = vst [vmem:[#allocation8_spill] sm:$0xff] %v34302_v45  ;;  %v29623_v15 = vpop.f32.mrb[225].mxu1 }
0x12a7   :  { %v14866_v1 = vpop.xlane.xlu1 %14865 }
0x12a8   :  { %30847 = vrcp.f32 %v14866_v1 }
0x12a9   :  { %v34308_v50 = vpop.f32.mrb[226].mxu1  ;;  %17252 = vrot.lane.b32.xlu1 %v33783_v34, %s31192_s19  ;;  %17098 = vrot.lane.b32.xlu0 %v33780_v57, %s31191_s18 }
0x12aa   :  { %36510 = vst [vmem:[#allocation18_spill] sm:$0xff] %v34308_v50  ;;  %v29633_v30 = vpop.f32.mrb[227].mxu1  ;;  %v30846_v54 = vpop.eup %30845 }
0x12ab   :  { %v14872_v24 = vpop.xlane.xlu0 %14871  ;;  %v14913_v30 = vmul.f32 %v30846_v54, %v34219_v11 }
0x12ac   :  { %30849 = vrcp.f32 %v14872_v24 }
0x12ad   :  { %v34314_v4 = vpop.f32.mrb[228].mxu1  ;;  %17408 = vrot.lane.b32.xlu1 %v33790_v9, %s31192_s19  ;;  %17254 = vrot.lane.b32.xlu0 %v33783_v34, %s31191_s18 }
0x12ae   :  { %36511 = vst [vmem:[#allocation9_spill] sm:$0xff] %v34314_v4  ;;  %v29643_v19 = vpop.f32.mrb[229].mxu1 }
0x12b1   :  { %v34320_v51 = vpop.f32.mrb[230].mxu1  ;;  %17564 = vrot.lane.b32.xlu1 %v33827_v49, %s31192_s19  ;;  %17410 = vrot.lane.b32.xlu0 %v33790_v9, %s31191_s18 }
0x12b2   :  { %36512 = vst [vmem:[#allocation19_spill] sm:$0xff] %v34320_v51  ;;  %v29653_v63 = vpop.f32.mrb[231].mxu1 }
0x12b5   :  { %v34326_v52 = vpop.f32.mrb[232].mxu1  ;;  %18012 = vrot.lane.b32.xlu1 %v33686_v23, %s31193_s20  ;;  %17566 = vrot.lane.b32.xlu0 %v33827_v49, %s31191_s18 }
0x12b6   :  { %36513 = vst [vmem:[#allocation10_spill] sm:$0xff] %v34326_v52  ;;  %v29663_v46 = vpop.f32.mrb[233].mxu1 }
0x12b9   :  { %19724 = vrot.lane.b32.xlu1 %v33750_v29, %s31194_s21  ;;  %18164 = vrot.lane.b32.xlu0 %v33691_v43, %s31193_s20 }
0x12bc   :  { %v34336_v6 = vpop.f32.mrb[234].mxu1 }
0x12bd   :  { %v29673_v26 = vpop.f32.mrb[235].mxu1  ;;  %19878 = vrot.lane.b32.xlu1 %v33760_v18, %s31195_s1  ;;  %18316 = vrot.lane.b32.xlu0 %v33696_v59, %s31193_s20 }
0x12c0   :  { %v34342_v17 = vpop.f32.mrb[236].mxu1 }
0x12c1   :  { %v29683_v44 = vpop.f32.mrb[237].mxu1  ;;  %19956 = vrot.lane.b32.xlu1 %v33691_v43, %s31195_s1  ;;  %18468 = vrot.lane.b32.xlu0 %v33701_v60, %s31193_s20 }
0x12c2   :  { %v30848_v44 = vpop.eup %30847 }
0x12c4   :  { %v34348_v25 = vpop.f32.mrb[238].mxu1 }
0x12c5   :  { %v29693_v40 = vpop.f32.mrb[239].mxu1  ;;  %20034 = vrot.lane.b32.xlu1 %v33763_v21, %s31195_s1  ;;  %18620 = vrot.lane.b32.xlu0 %v33730_v0, %s31193_s20 }
0x12c8   :  { %v34354_v55 = vpop.f32.mrb[240].mxu1 }
0x12c9   :  { %v29703_v22 = vpop.f32.mrb[241].mxu1  ;;  %20112 = vrot.lane.b32.xlu1 %v33696_v59, %s31195_s1  ;;  %18772 = vrot.lane.b32.xlu0 %v33735_v12, %s31193_s20 }
0x12ca   :  { %v14917_v22 = vmul.f32 %v30848_v44, %v34228_v39 }
0x12cc   :  { %v34360_v62 = vpop.f32.mrb[242].mxu1 }
0x12cd   :  { %v29713_v42 = vpop.f32.mrb[243].mxu1  ;;  %20268 = vrot.lane.b32.xlu1 %v33701_v60, %s31195_s1  ;;  %18924 = vrot.lane.b32.xlu0 %v33740_v31, %s31193_s20 }
0x12ce   :  { %v30850_v42 = vpop.eup %30849 }
0x12d0   :  { %v34366_v61 = vpop.f32.mrb[244].mxu1 }
0x12d1   :  { %v29723_v10 = vpop.f32.mrb[245].mxu1  ;;  %19076 = vrot.lane.b32.xlu0 %v33745_v2, %s31193_s20 }
0x12d2   :  { %v14921_v10 = vmul.f32 %v30850_v42, %v34232_v58  ;;  %v34446_v42 = vmul.f32 0.35355338, %v34336_v6 }
0x12d4   :  { %v34370_v5 = vpop.f32.mrb[246].mxu1 }
0x12d5   :  { %v29733_v56 = vpop.f32.mrb[247].mxu1  ;;  %19228 = vrot.lane.b32.xlu0 %v33753_v48, %s31193_s20 }
0x12d8   :  { %v14878_v32 = vpop.xlane.xlu1 %14877 }
0x12d9   :  { %v34374_v37 = vpop.f32.mrb[248].mxu1  ;;  %19722 = vrot.lane.b32.xlu0 %v33750_v29, %s31195_s1  ;;  %30851 = vrcp.f32 %v14878_v32 }
0x12da   :  { %v29743_v28 = vpop.f32.mrb[249].mxu1  ;;  %v34612_v45 = vmul.f32 0.35355338, %v34374_v37 }
0x12dc   :  { %v14890_v7 = vpop.xlane.xlu1 %14889 }
0x12dd   :  { %19802 = vrot.lane.b32.xlu0 %v33686_v23, %s31194_s21 }
0x12e0   :  { %v14949_v15 = vpop.permute.xlu1 %14948  ;;  %v14884_v19 = vpop.xlane.xlu0 %14883 }
0x12e1   :  { %29575 = vmatpush3.msra.mxu0 %v14949_v15  ;;  %19800 = vrot.lane.b32.xlu0 %v33686_v23, %s31195_s1  ;;  %30853 = vrcp.f32 %v14884_v19 }
0x12e2   :  { %29577 = vmatmul.mubr.msk.f32.vlgmr.msra.gmra.mrb[162].mxu0 %vm293_vm2, %v14913_v30  ;;  %29584 = vmatprep.subr.mxu0 %v36411_v13  ;;  %30855 = vrcp.f32 %v14890_v7 }
0x12e3   :  { %29586 = vmatprep.mubr.msk.f32.mxu0 %vm31188_vm1, %v36411_v13  ;;  %v30852_v1 = vpop.eup %30851 }
0x12e4   :  { %v14896_v63 = vpop.xlane.xlu0 %14895  ;;  %v14925_v56 = vmul.f32 %v30852_v1, %v34241_v8  ;;  %v17741_v1 = vsel %vm293_vm2, %v34446_v42, -inf }
0x12e5   :  { %19880 = vrot.lane.b32.xlu0 %v33760_v18, %s31194_s21  ;;  %30857 = vrcp.f32 %v14896_v63  ;;  %v16319_v63 = vpop.permute.xlu1 %16318 }
0x12e8   :  { %v34389_v46 = vpop.f32.mrb[250].mxu1  ;;  %v14902_v11 = vpop.xlane.xlu0 %14901 }
0x12e9   :  { %v29753_v26 = vpop.f32.mrb[251].mxu1  ;;  %19958 = vrot.lane.b32.xlu0 %v33691_v43, %s31194_s21  ;;  %30859 = vrcp.f32 %v14902_v11 }
0x12eb   :  { %v30854_v32 = vpop.eup %30853 }
0x12ec   :  { %v15101_v40 = vpop.permute.xlu0 %15100  ;;  %v14929_v28 = vmul.f32 %v30854_v32, %v34249_v53  ;;  %v30856_v7 = vpop.eup %30855 }
0x12ed   :  { %20036 = vrot.lane.b32.xlu0 %v33763_v21, %s31194_s21  ;;  %29585 = vmatpush3.msra.mxu0 %v15101_v40  ;;  %v14933_v54 = vmul.f32 %v30856_v7, %v34245_v38 }
0x12ee   :  { %29587 = vmatmul.mubr.msk.f32.vlgmr.msra.gmra.mrb[164].mxu0 %vm293_vm2, %v14917_v22  ;;  %29594 = vmatprep.subr.mxu0 %v36411_v13 }
0x12ef   :  { %29596 = vmatprep.mubr.msk.f32.mxu0 %vm31188_vm1, %v36411_v13  ;;  %v30858_v24 = vpop.eup %30857 }
0x12f0   :  { %v15253_v36 = vpop.permute.xlu0 %15252  ;;  %v14937_v15 = vmul.f32 %v30858_v24, %v34253_v35 }
0x12f1   :  { %20114 = vrot.lane.b32.xlu0 %v33696_v59, %s31194_s21  ;;  %29595 = vmatpush3.msra.mxu0 %v15253_v36 }
0x12f2   :  { %29597 = vmatmul.mubr.msk.f32.vlgmr.msra.gmra.mrb[166].mxu0 %vm293_vm2, %v14921_v10  ;;  %29604 = vmatprep.subr.mxu0 %v36411_v13 }
0x12f3   :  { %29606 = vmatprep.mubr.msk.f32.mxu0 %vm31188_vm1, %v36411_v13  ;;  %v30860_v30 = vpop.eup %30859 }
0x12f4   :  { %v15405_v39 = vpop.permute.xlu0 %15404  ;;  %v14941_v19 = vmul.f32 %v30860_v30, %v34257_v33  ;;  %v16629_v33 = vpop.permute.xlu1 %16628 }
0x12f5   :  { %20192 = vrot.lane.b32.xlu0 %v33770_v41, %s31194_s21  ;;  %29605 = vmatpush3.msra.mxu0 %v15405_v39 }
0x12f6   :  { %29607 = vmatmul.mubr.msk.f32.vlgmr.msra.gmra.mrb[168].mxu0 %vm293_vm2, %v14925_v56  ;;  %29614 = vmatprep.subr.mxu0 %v36411_v13 }
0x12f7   :  { %29616 = vmatprep.mubr.msk.f32.mxu0 %vm31188_vm1, %v36411_v13 }
0x12f8   :  { %v15557_v58 = vpop.permute.xlu0 %15556  ;;  %v16785_v11 = vpop.permute.xlu1 %16784 }
0x12f9   :  { %20190 = vrot.lane.b32.xlu0 %v33770_v41, %s31195_s1  ;;  %29615 = vmatpush3.msra.mxu0 %v15557_v58 }
0x12fa   :  { %29617 = vmatmul.mubr.msk.f32.vlgmr.msra.gmra.mrb[170].mxu0 %vm293_vm2, %v14929_v28  ;;  %29624 = vmatprep.subr.mxu0 %v36411_v13 }
0x12fb   :  { %29626 = vmatprep.mubr.msk.f32.mxu0 %vm31188_vm1, %v36411_v13 }
0x12fc   :  { %v15709_v8 = vpop.permute.xlu0 %15708  ;;  %v16941_v44 = vpop.permute.xlu1 %16940 }
0x12fd   :  { %20270 = vrot.lane.b32.xlu0 %v33701_v60, %s31194_s21  ;;  %29625 = vmatpush3.msra.mxu0 %v15709_v8 }
0x12fe   :  { %29627 = vmatmul.mubr.msk.f32.vlgmr.msra.gmra.mrb[172].mxu0 %vm293_vm2, %v14933_v54  ;;  %29634 = vmatprep.subr.mxu0 %v36411_v13 }
0x12ff   :  { %29636 = vmatprep.mubr.msk.f32.mxu0 %vm31188_vm1, %v36411_v13 }
0x1300   :  { %v15861_v53 = vpop.permute.xlu0 %15860 }
0x1301   :  { %20348 = vrot.lane.b32.xlu0 %v33773_v16, %s31194_s21  ;;  %29635 = vmatpush3.msra.mxu0 %v15861_v53 }
0x1302   :  { %29637 = vmatmul.mubr.msk.f32.vlgmr.msra.gmra.mrb[174].mxu0 %vm293_vm2, %v14937_v15  ;;  %29644 = vmatprep.subr.mxu0 %v36411_v13 }
0x1303   :  { %29646 = vmatprep.mubr.msk.f32.mxu0 %vm31188_vm1, %v36411_v13 }
0x1304   :  { %v16013_v38 = vpop.permute.xlu0 %16012 }
0x1305   :  { %20346 = vrot.lane.b32.xlu0 %v33773_v16, %s31195_s1  ;;  %29645 = vmatpush3.msra.mxu0 %v16013_v38 }
0x1306   :  { %29647 = vmatmul.mubr.msk.f32.vlgmr.msra.gmra.mrb[176].mxu0 %vm293_vm2, %v14941_v19  ;;  %29654 = vmatprep.subr.mxu0 %v36411_v13 }
0x1307   :  { %29656 = vmatprep.mubr.msk.f32.mxu0 %vm31188_vm1, %v36411_v13 }
0x1308   :  { %v16165_v35 = vpop.permute.xlu0 %16164 }
0x1309   :  { %20426 = vrot.lane.b32.xlu0 %v33730_v0, %s31194_s21  ;;  %29655 = vmatpush3.msra.mxu0 %v16165_v35 }
0x130a   :  { %29664 = vmatprep.subr.mxu0 %v36411_v13 }
0x130c   :  { %v16317_v26 = vpop.permute.xlu0 %16316 }
0x1310   :  { %v16475_v40 = vpop.permute.xlu0 %16474 }
0x1314   :  { %v16473_v36 = vpop.permute.xlu0 %16472 }
0x1318   :  { %v16631_v56 = vpop.permute.xlu0 %16630 }
0x131c   :  { %v16787_v6 = vpop.permute.xlu0 %16786 }
0x1321   :  { %v14908_v22 = vpop.xlane.xlu1 %14907 }
0x1322   :  { %30861 = vrcp.f32 %v14908_v22 }
0x1325   :  { %v17097_v10 = vpop.permute.xlu1 %17096 }
0x1328   :  { %17742 = vmax.xlane.f32.xlu0 %v17741_v1 }
0x1329   :  { %v17253_v39 = vpop.permute.xlu1 %17252 }
0x132c   :  { %v30862_v32 = vpop.eup %30861 }
0x132d   :  { %v17409_v58 = vpop.permute.xlu1 %17408  ;;  %v14945_v28 = vmul.f32 %v30862_v32, %v34288_v14  ;;  %v16943_v14 = vpop.permute.xlu0 %16942 }
0x132f   :  { %29657 = vmatmul.mubr.msk.f32.vlgmr.msra.gmra.mrb[178].mxu0 %vm293_vm2, %v14945_v28 }
0x1330   :  { %29665 = vmatpush3.xpose.msk.msra.mxu0 %vm293_vm2, %v16319_v63  ;;  %29666 = vmatprep.mubr.msk.f32.mxu0 %vm31188_vm1, %v36411_v13 }
0x1331   :  { %v17565_v7 = vpop.permute.xlu1 %17564  ;;  %29674 = vmatprep.subr.mxu0 %v36411_v13  ;;  %v17099_v54 = vpop.permute.xlu0 %17098 }
0x1333   :  { %29667 = vmatmul.mubr.msk.f32.vlgmr.msra.gmra.mrb[180].mxu0 %vm293_vm2, %v16317_v26 }
0x1334   :  { %29675 = vmatpush3.xpose.msk.msra.mxu0 %vm293_vm2, %v16475_v40  ;;  %29676 = vmatprep.mubr.msk.f32.mxu0 %vm31188_vm1, %v36411_v13 }
0x1335   :  { %v18013_v8 = vpop.permute.xlu1 %18012  ;;  %29684 = vmatprep.subr.mxu0 %v36411_v13  ;;  %v17255_v24 = vpop.permute.xlu0 %17254 }
0x1336   :  { %29760 = vmatpush3.msra.mxu1 %v18013_v8 }
0x1337   :  { %29677 = vmatmul.mubr.msk.f32.vlgmr.msra.gmra.mrb[182].mxu0 %vm293_vm2, %v16473_v36  ;;  %29769 = vmatprep.subr.mxu1 %v36411_v13 }
0x1338   :  { %29685 = vmatpush3.xpose.msk.msra.mxu0 %vm293_vm2, %v16631_v56  ;;  %29686 = vmatprep.mubr.msk.f32.mxu0 %vm31188_vm1, %v36411_v13 }
0x1339   :  { %29694 = vmatprep.subr.mxu0 %v36411_v13  ;;  %v17411_v53 = vpop.permute.xlu0 %17410  ;;  %v34635_v3 = vpop.permute.xlu1 %19724 }
0x133b   :  { %29687 = vmatmul.mubr.msk.f32.vlgmr.msra.gmra.mrb[184].mxu0 %vm293_vm2, %v16629_v33 }
0x133c   :  { %29695 = vmatpush3.xpose.msk.msra.mxu0 %vm293_vm2, %v16787_v6  ;;  %29696 = vmatprep.mubr.msk.f32.mxu0 %vm31188_vm1, %v36411_v13 }
0x133d   :  { %29704 = vmatprep.subr.mxu0 %v36411_v13  ;;  %v17567_v15 = vpop.permute.xlu0 %17566 }
0x133f   :  { %29697 = vmatmul.mubr.msk.f32.vlgmr.msra.gmra.mrb[186].mxu0 %vm293_vm2, %v16785_v11 }
0x1340   :  { %29705 = vmatpush3.xpose.msk.msra.mxu0 %vm293_vm2, %v16943_v14  ;;  %29706 = vmatprep.mubr.msk.f32.mxu0 %vm31188_vm1, %v36411_v13 }
0x1341   :  { %29714 = vmatprep.subr.mxu0 %v36411_v13  ;;  %v34516_v32 = vpop.permute.xlu0 %18164 }
0x1343   :  { %29707 = vmatmul.mubr.msk.f32.vlgmr.msra.gmra.mrb[188].mxu0 %vm293_vm2, %v16941_v44 }
0x1344   :  { %29715 = vmatpush3.xpose.msk.msra.mxu0 %vm293_vm2, %v17099_v54  ;;  %29716 = vmatprep.mubr.msk.f32.mxu0 %vm31188_vm1, %v36411_v13 }
0x1345   :  { %29724 = vmatprep.subr.mxu0 %v36411_v13 }
0x1347   :  { %29717 = vmatmul.mubr.msk.f32.vlgmr.msra.gmra.mrb[190].mxu0 %vm293_vm2, %v17097_v10 }
0x1348   :  { %29725 = vmatpush3.xpose.msk.msra.mxu0 %vm293_vm2, %v17255_v24  ;;  %29726 = vmatprep.mubr.msk.f32.mxu0 %vm31188_vm1, %v36411_v13 }
0x1349   :  { %29734 = vmatprep.subr.mxu0 %v36411_v13 }
0x134b   :  { %29727 = vmatmul.mubr.msk.f32.vlgmr.msra.gmra.mrb[192].mxu0 %vm293_vm2, %v17253_v39 }
0x134c   :  { %29735 = vmatpush3.xpose.msk.msra.mxu0 %vm293_vm2, %v17411_v53  ;;  %29736 = vmatprep.mubr.msk.f32.mxu0 %vm31188_vm1, %v36411_v13  ;;  %v34529_v53 = vmul.f32 0.35355338, %v34342_v17 }
0x134d   :  { %29744 = vmatprep.subr.mxu0 %v36411_v13 }
0x134f   :  { %29737 = vmatmul.mubr.msk.f32.vlgmr.msra.gmra.mrb[194].mxu0 %vm293_vm2, %v17409_v58  ;;  %v34518_v58 = vpop.permute.xlu0 %18316 }
0x1350   :  { %29745 = vmatpush3.xpose.msk.msra.mxu0 %vm293_vm2, %v17567_v15  ;;  %29746 = vmatprep.mubr.msk.f32.mxu0 %vm31188_vm1, %v36411_v13 }
0x1351   :  { %29754 = vmatprep.subr.mxu0 %v36411_v13 }
0x1353   :  { %29747 = vmatmul.mubr.msk.f32.vlgmr.msra.gmra.mrb[196].mxu0 %vm293_vm2, %v17565_v7  ;;  %v34520_v28 = vpop.permute.xlu0 %18468 }
0x1354   :  { %29756 = vmatprep.mubr.msk.f32.mxu0 %vm31188_vm1, %v36411_v13 }
0x1357   :  { %v34524_v8 = vpop.permute.xlu0 %18620 }
0x13b5   :  { %v34500_v30 = vpop.f32.mrb[162].mxu0 }
0x13b6   :  { %36514 = vst [vmem:[#allocation20_spill] sm:$0xff] %v34500_v30  ;;  %v29578_v38 = vpop.f32.mrb[163].mxu0 }
0x13c1   :  { %v34502_v19 = vpop.f32.mrb[164].mxu0 }
0x13c2   :  { %36515 = vst [vmem:[#allocation11_spill] sm:$0xff] %v34502_v19  ;;  %v29588_v35 = vpop.f32.mrb[165].mxu0 }
0x13c3   :  { %v34533_v35 = vpop.permute.xlu0 %18772 }
0x13c5   :  { %v34504_v63 = vpop.f32.mrb[166].mxu0 }
0x13c6   :  { %36516 = vst [vmem:[#allocation21_spill] sm:$0xff] %v34504_v63  ;;  %v29598_v33 = vpop.f32.mrb[167].mxu0 }
0x13c9   :  { %v34506_v11 = vpop.f32.mrb[168].mxu0 }
0x13ca   :  { %36517 = vst [vmem:[#allocation12_spill] sm:$0xff] %v34506_v11  ;;  %v29608_v26 = vpop.f32.mrb[169].mxu0  ;;  %v17783_v11 = vsel %vm293_vm2, %v34612_v45, -inf }
0x13cd   :  { %v34508_v44 = vpop.f32.mrb[170].mxu0 }
0x13ce   :  { %36518 = vst [vmem:[#allocation22_spill] sm:$0xff] %v34508_v44  ;;  %v29618_v40 = vpop.f32.mrb[171].mxu0 }
0x13cf   :  { %v34538_v40 = vmul.f32 0.35355338, %v34348_v25  ;;  %v34552_v25 = vpop.permute.xlu0 %18924 }
0x13d1   :  { %v34510_v22 = vpop.f32.mrb[172].mxu0 }
0x13d2   :  { %36519 = vst [vmem:[#allocation13_spill] sm:$0xff] %v34510_v22  ;;  %v29628_v36 = vpop.f32.mrb[173].mxu0 }
0x13d3   :  { %v17747_v36 = vsel %vm293_vm2, %v34529_v53, -inf  ;;  %v34567_v52 = vpop.permute.xlu0 %19076 }
0x13d5   :  { %v34512_v10 = vpop.f32.mrb[174].mxu0 }
0x13d6   :  { %36520 = vst [vmem:[#allocation23_spill] sm:$0xff] %v34512_v10  ;;  %v29638_v1 = vpop.f32.mrb[175].mxu0 }
0x13d9   :  { %v34514_v39 = vpop.f32.mrb[176].mxu0 }
0x13da   :  { %36521 = vst [vmem:[#allocation14_spill] sm:$0xff] %v34514_v39  ;;  %v29648_v56 = vpop.f32.mrb[177].mxu0 }
0x1402   :  { %v34522_v6 = vpop.f32.mrb[178].mxu0 }
0x1403   :  { %36522 = vst [vmem:[#allocation24_spill] sm:$0xff] %v34522_v6  ;;  %v29658_v7 = vpop.f32.mrb[179].mxu0 }
0x1406   :  { %v16390_v14 = vpop.f32.mrb[180].mxu0 }
0x1407   :  { %v34526_v54 = vmul.f32 0.35355338, %v16390_v14  ;;  %v29668_v24 = vpop.f32.mrb[181].mxu0  ;;  %v34547_v14 = vmul.f32 0.35355338, %v34354_v55 }
0x1408   :  { %v34550_v24 = vmul.f32 0.35355338, %v34360_v62 }
0x1409   :  { %v17738_v15 = vsel %vm293_vm2, %v34526_v54, -inf  ;;  %v17759_v62 = vsel %vm293_vm2, %v34547_v14, -inf }
0x140a   :  { %17739 = vmax.xlane.f32.xlu1 %v17738_v15  ;;  %v16546_v38 = vpop.f32.mrb[182].mxu0  ;;  %v17753_v15 = vsel %vm293_vm2, %v34538_v40, -inf }
0x140b   :  { %v34535_v33 = vmul.f32 0.35355338, %v16546_v38  ;;  %v29678_v26 = vpop.f32.mrb[183].mxu0 }
0x140d   :  { %v17744_v17 = vsel %vm293_vm2, %v34535_v33, -inf }
0x140e   :  { %17748 = vmax.xlane.f32.xlu1 %v17747_v36  ;;  %17745 = vmax.xlane.f32.xlu0 %v17744_v17  ;;  %v16702_v1 = vpop.f32.mrb[184].mxu0  ;;  %v34559_v17 = vmul.f32 0.35355338, %v34370_v5 }
0x140f   :  { %v34544_v56 = vmul.f32 0.35355338, %v16702_v1  ;;  %v29688_v7 = vpop.f32.mrb[185].mxu0  ;;  %v17765_v1 = vsel %vm293_vm2, %v34550_v24, -inf }
0x1410   :  { %v17777_v5 = vsel %vm293_vm2, %v34559_v17, -inf }
0x1411   :  { %v17750_v38 = vsel %vm293_vm2, %v34544_v56, -inf }
0x1412   :  { %17754 = vmax.xlane.f32.xlu0 %v17753_v15  ;;  %17751 = vmax.xlane.f32.xlu1 %v17750_v38  ;;  %v16858_v26 = vpop.f32.mrb[186].mxu0  ;;  %v34570_v38 = vmul.f32 0.35355338, %v34366_v61 }
0x1413   :  { %v29698_v36 = vpop.f32.mrb[187].mxu0  ;;  %v34561_v55 = vmul.f32 0.35355338, %v16858_v26 }
0x1415   :  { %v17756_v26 = vsel %vm293_vm2, %v34561_v55, -inf }
0x1416   :  { %17760 = vmax.xlane.f32.xlu0 %v17759_v62  ;;  %17766 = vmax.xlane.f32.xlu1 %v17765_v1  ;;  %v17014_v7 = vpop.f32.mrb[188].mxu0  ;;  %v34578_v62 = vpop.permute.xlu0 %19228  ;;  %v17771_v1 = vsel %vm293_vm2, %v34570_v38, -inf }
0x1417   :  { %v29708_v15 = vpop.f32.mrb[189].mxu0  ;;  %v34614_v44 = vmul.f32 0.35355338, %v17014_v7 }
0x1419   :  { %v17762_v47 = vsel %vm293_vm2, %v34614_v44, -inf }
0x141a   :  { %17778 = vmax.xlane.f32.xlu1 %v17777_v5  ;;  %17757 = vmax.xlane.f32.xlu0 %v17756_v26  ;;  %v34576_v36 = vpop.f32.mrb[190].mxu0  ;;  %v34586_v39 = vpop.permute.xlu0 %19722 }
0x141b   :  { %v29718_v6 = vpop.f32.mrb[191].mxu0 }
0x141e   :  { %17772 = vmax.xlane.f32.xlu0 %v17771_v1  ;;  %v34582_v15 = vpop.f32.mrb[192].mxu0  ;;  %v34590_v26 = vpop.permute.xlu0 %19802 }
0x141f   :  { %v29728_v61 = vpop.f32.mrb[193].mxu0 }
0x1422   :  { %v34584_v51 = vpop.f32.mrb[194].mxu0  ;;  %v34594_v6 = vpop.permute.xlu0 %19800 }
0x1423   :  { %v29738_v4 = vpop.f32.mrb[195].mxu0 }
0x1426   :  { %v34588_v10 = vpop.f32.mrb[196].mxu0  ;;  %v34598_v1 = vpop.permute.xlu0 %19880 }
0x1427   :  { %v29748_v5 = vpop.f32.mrb[197].mxu0 }
0x1428   :  { %v34607_v5 = vmul.f32 0.35355338, %v34389_v46 }
0x142a   :  { %v34600_v61 = vpop.permute.xlu0 %19958  ;;  %v17789_v27 = vsel %vm293_vm2, %v34607_v5, -inf }
0x142b   :  { %20424 = vrot.lane.b32.xlu1 %v33730_v0, %s31195_s1 }
0x142e   :  { %v34602_v50 = vpop.permute.xlu0 %20036 }
0x1432   :  { %v34604_v4 = vpop.permute.xlu0 %20114 }
0x1434   :  { %20504 = vrot.lane.b32.xlu0 %v33780_v57, %s31194_s21 }
0x1436   :  { %v34609_v22 = vpop.permute.xlu0 %20192 }
0x143a   :  { %v34622_v63 = vpop.permute.xlu0 %20190 }
0x143b   :  { %36523 = vst [vmem:[#allocation15_spill] sm:$0xff] %v34622_v63 }
0x143e   :  { %v34624_v46 = vpop.permute.xlu0 %20270 }
0x143f   :  { %36524 = vst [vmem:[#allocation33_spill] sm:$0xff] %v34624_v46 }
0x1442   :  { %v34626_v37 = vpop.permute.xlu0 %20348 }
0x1443   :  { %36525 = vst [vmem:[#allocation4_spill] sm:$0xff] %v34626_v37 }
0x1446   :  { %v34628_v7 = vpop.permute.xlu0 %20346 }
0x1447   :  { %36526 = vst [vmem:[#allocation25_spill] sm:$0xff] %v34628_v7 }
0x144f   :  { %17790 = vmax.xlane.f32.xlu1 %v17789_v27  ;;  %v34632_v27 = vpop.permute.xlu0 %20426 }
0x1450   :  { %36527 = vst [vmem:[#allocation6_spill] sm:$0xff] %v34632_v27 }
0x1453   :  { %17784 = vmax.xlane.f32.xlu0 %v17783_v11  ;;  %17763 = vmax.xlane.f32.xlu1 %v17762_v47  ;;  %v17743_v20 = vpop.xlane.xlu0 %17742  ;;  %v34637_v11 = vpop.permute.xlu1 %19878 }
0x1454   :  { %v17793_v19 = vsub.f32 %v34446_v42, %v17743_v20 }
0x1456   :  { %v17812_v30 = vmul.f32 1.442695, %v17793_v19 }
0x1457   :  { %v34639_v47 = vpop.permute.xlu1 %19956 }
0x1458   :  { %30863 = vpow2.f32 %v17812_v30 }
0x145b   :  { %v34643_v60 = vpop.permute.xlu1 %20034 }
0x145f   :  { %v34647_v59 = vpop.permute.xlu1 %20112 }
0x1462   :  { %v34641_v0 = vpop.eup %30863 }
0x1463   :  { %v34649_v16 = vpop.permute.xlu1 %20268 }
0x1464   :  { %36528 = vst [vmem:[#allocation35_spill] sm:$0xff] %v34649_v16 }
0x1469   :  { %20502 = vrot.lane.b32.xlu0 %v33780_v57, %s31195_s1  ;;  %v17849_v57 = vsel %vm293_vm2, %v34641_v0, 0.0 }
0x1488   :  { %17850 = vadd.xlane.f32.xlu0 %v17849_v57 }
0x1497   :  { %v34651_v20 = vpop.xlane.xlu1 %17739 }
0x149b   :  { %v17749_v42 = vpop.xlane.xlu1 %17748  ;;  %v34653_v30 = vpop.xlane.xlu0 %17745 }
0x149c   :  { %v17795_v19 = vsub.f32 %v34529_v53, %v17749_v42 }
0x149e   :  { %v17816_v43 = vmul.f32 1.442695, %v17795_v19 }
0x149f   :  { %v34656_v41 = vpop.xlane.xlu1 %17751  ;;  %v17755_v23 = vpop.xlane.xlu0 %17754 }
0x14a0   :  { %30865 = vpow2.f32 %v17816_v43  ;;  %v17797_v21 = vsub.f32 %v34538_v40, %v17755_v23 }
0x14a2   :  { %v17820_v18 = vmul.f32 1.442695, %v17797_v21 }
0x14a3   :  { %v17767_v57 = vpop.xlane.xlu1 %17766  ;;  %v17761_v27 = vpop.xlane.xlu0 %17760 }
0x14a4   :  { %v17801_v7 = vsub.f32 %v34550_v24, %v17767_v57  ;;  %v17799_v37 = vsub.f32 %v34547_v14, %v17761_v27  ;;  %30867 = vpow2.f32 %v17820_v18 }
0x14a6   :  { %v17828_v16 = vmul.f32 1.442695, %v17801_v7  ;;  %v17824_v46 = vmul.f32 1.442695, %v17799_v37 }
0x14a7   :  { %v34661_v63 = vpop.xlane.xlu0 %17757  ;;  %v17779_v7 = vpop.xlane.xlu1 %17778 }
0x14a8   :  { %30869 = vpow2.f32 %v17828_v16  ;;  %v17805_v27 = vsub.f32 %v34559_v17, %v17779_v7 }
0x14a9   :  { %30871 = vpow2.f32 %v17824_v46 }
0x14aa   :  { %v34663_v53 = vpop.eup %30865  ;;  %v17836_v19 = vmul.f32 1.442695, %v17805_v27 }
0x14ab   :  { %v17773_v42 = vpop.xlane.xlu0 %17772  ;;  %v17855_v23 = vsel %vm293_vm2, %v34663_v53, 0.0  ;;  %v34691_v57 = vpop.permute.xlu1 %20424 }
0x14ac   :  { %v17803_v43 = vsub.f32 %v34570_v38, %v17773_v42  ;;  %17856 = vadd.xlane.f32.xlu1 %v17855_v23 }
0x14ae   :  { %v17832_v21 = vmul.f32 1.442695, %v17803_v43  ;;  %v34668_v40 = vpop.eup %30867 }
0x14af   :  { %v17861_v18 = vsel %vm293_vm2, %v34668_v40, 0.0  ;;  %v34693_v42 = vpop.permute.xlu0 %20504 }
0x14b0   :  { %30873 = vpow2.f32 %v17832_v21  ;;  %17862 = vadd.xlane.f32.xlu0 %v17861_v18 }
0x14b1   :  { %30875 = vpow2.f32 %v17836_v19  ;;  %v34706_v19 = vmul.f32 0.35355338, %v34576_v36 }
0x14b2   :  { %v34672_v14 = vpop.eup %30869 }
0x14b3   :  { %v34674_v16 = vpop.eup %30871  ;;  %v17873_v24 = vsel %vm293_vm2, %v34672_v14, 0.0 }
0x14b4   :  { %v17867_v46 = vsel %vm293_vm2, %v34674_v16, 0.0  ;;  %17874 = vadd.xlane.f32.xlu0 %v17873_v24 }
0x14b5   :  { %17868 = vadd.xlane.f32.xlu1 %v17867_v46 }
0x14ba   :  { %v34680_v38 = vpop.eup %30873 }
0x14bb   :  { %v17879_v37 = vsel %vm293_vm2, %v34680_v38, 0.0 }
0x14bc   :  { %17880 = vadd.xlane.f32.xlu1 %v17879_v37  ;;  %v34697_v37 = vpop.eup %30875 }
0x14bd   :  { %v17885_v17 = vsel %vm293_vm2, %v34697_v37, 0.0 }
0x14ca   :  { %20582 = vrot.lane.b32.xlu0 %v33735_v12, %s31194_s21 }
0x14cd   :  { %20580 = vrot.lane.b32.xlu1 %v33735_v12, %s31195_s1 }
0x14d1   :  { %20660 = vrot.lane.b32.xlu1 %v33783_v34, %s31194_s21 }
0x14dc   :  { %v17791_v23 = vpop.xlane.xlu1 %17790 }
0x14dd   :  { %v17809_v43 = vsub.f32 %v34607_v5, %v17791_v23  ;;  %v34713_v23 = vmul.f32 0.35355338, %v34582_v15 }
0x14df   :  { %v17844_v24 = vmul.f32 1.442695, %v17809_v43  ;;  %v17768_v43 = vsel %vm293_vm2, %v34706_v19, -inf }
0x14e0   :  { %v17785_v21 = vpop.xlane.xlu0 %17784 }
0x14e1   :  { %v17807_v18 = vsub.f32 %v34612_v45, %v17785_v21  ;;  %v17774_v21 = vsel %vm293_vm2, %v34713_v23, -inf }
0x14e3   :  { %v17840_v46 = vmul.f32 1.442695, %v17807_v18 }
0x14e4   :  { %v34723_v36 = vpop.permute.xlu0 %20502 }
0x14e5   :  { %30877 = vpow2.f32 %v17840_v46  ;;  %v34735_v46 = vmul.f32 0.35355338, %v34584_v51 }
0x14e6   :  { %30879 = vpow2.f32 %v17844_v24 }
0x14e9   :  { %17886 = vadd.xlane.f32.xlu0 %v17885_v17  ;;  %v17780_v17 = vsel %vm293_vm2, %v34735_v46, -inf }
0x14ef   :  { %v34701_v7 = vpop.eup %30877 }
0x14f0   :  { %v34703_v27 = vpop.eup %30879  ;;  %v17891_v45 = vsel %vm293_vm2, %v34701_v7, 0.0 }
0x14f1   :  { %17892 = vadd.xlane.f32.xlu0 %v17891_v45  ;;  %v17897_v5 = vsel %vm293_vm2, %v34703_v27, 0.0  ;;  %v34741_v45 = vmul.f32 0.35355338, %v34588_v10 }
0x14f5   :  { %17898 = vadd.xlane.f32.xlu1 %v17897_v5  ;;  %17769 = vmax.xlane.f32.xlu0 %v17768_v43  ;;  %v17786_v5 = vsel %vm293_vm2, %v34741_v45, -inf }
0x14f9   :  { %17775 = vmax.xlane.f32.xlu0 %v17774_v21 }
0x1506   :  { %20658 = vrot.lane.b32.xlu1 %v33783_v34, %s31195_s1 }
0x150f   :  { %20738 = vrot.lane.b32.xlu0 %v33740_v31, %s31194_s21 }
0x1513   :  { %20736 = vrot.lane.b32.xlu0 %v33740_v31, %s31195_s1 }
0x1515   :  { %v17851_v15 = vpop.xlane.xlu0 %17850 }
0x1516   :  { %30881 = vrcp.f32 %v17851_v15 }
0x1517   :  { %20816 = vrot.lane.b32.xlu0 %v33790_v9, %s31194_s21 }
0x1520   :  { %v30882_v18 = vpop.eup %30881 }
0x1521   :  { %v17903_v24 = vmul.f32 %v30882_v18, %v34641_v0  ;;  %v17764_v0 = vpop.xlane.xlu1 %17763 }
0x1523   :  { %29762 = vmatmul.mubr.msk.f32.vlgmr.msra.gmra.mrb[252].mxu1 %vm293_vm2, %v17903_v24 }
0x1524   :  { %29770 = vmatpush3.msra.mxu1 %v34516_v32  ;;  %29771 = vmatprep.mubr.msk.f32.mxu1 %vm31188_vm1, %v36411_v13 }
0x1525   :  { %29779 = vmatprep.subr.mxu1 %v36411_v13 }
0x152a   :  { %17781 = vmax.xlane.f32.xlu1 %v17780_v17 }
0x1536   :  { %17787 = vmax.xlane.f32.xlu0 %v17786_v5 }
0x1539   :  { %v17857_v32 = vpop.xlane.xlu1 %17856 }
0x153a   :  { %30883 = vrcp.f32 %v17857_v32 }
0x153b   :  { %20814 = vrot.lane.b32.xlu1 %v33790_v9, %s31195_s1 }
0x153d   :  { %v17863_v51 = vpop.xlane.xlu0 %17862 }
0x153e   :  { %30885 = vrcp.f32 %v17863_v51  ;;  %v17798_v51 = vsub.f32 %v34561_v55, %v34661_v63 }
0x153f   :  { %20894 = vrot.lane.b32.xlu1 %v33745_v2, %s31194_s21 }
0x1541   :  { %v17875_v21 = vpop.xlane.xlu0 %17874 }
0x1542   :  { %v17869_v43 = vpop.xlane.xlu1 %17868 }
0x1543   :  { %30887 = vrcp.f32 %v17869_v43  ;;  %20892 = vrot.lane.b32.xlu1 %v33745_v2, %s31195_s1 }
0x1544   :  { %v30884_v10 = vpop.eup %30883  ;;  %30889 = vrcp.f32 %v17875_v21 }
0x1545   :  { %v17907_v15 = vmul.f32 %v30884_v10, %v34663_v53  ;;  %v34812_v55 = vpop.permute.xlu0 %20582 }
0x1547   :  { %20970 = vrot.lane.b32.xlu1 %v33827_v49, %s31195_s1  ;;  %29772 = vmatmul.mubr.msk.f32.vlgmr.msra.gmra.mrb[254].mxu1 %vm293_vm2, %v17907_v15 }
0x1548   :  { %29780 = vmatpush3.msra.mxu1 %v34518_v58  ;;  %29781 = vmatprep.mubr.msk.f32.mxu1 %vm31188_vm1, %v36411_v13  ;;  %v30886_v18 = vpop.eup %30885 }
0x1549   :  { %v17881_v24 = vpop.xlane.xlu1 %17880  ;;  %29789 = vmatprep.subr.mxu1 %v36411_v13  ;;  %v17911_v17 = vmul.f32 %v30886_v18, %v34668_v40 }
0x154a   :  { %30891 = vrcp.f32 %v17881_v24 }
0x154b   :  { %21050 = vrot.lane.b32.xlu1 %v33753_v48, %s31194_s21  ;;  %29782 = vmatmul.mubr.msk.f32.vlgmr.msra.gmra.mrb[0].mxu1 %vm293_vm2, %v17911_v17 }
0x154c   :  { %29790 = vmatpush3.msra.mxu1 %v34520_v28  ;;  %20972 = vrot.lane.b32.xlu0 %v33827_v49, %s31194_s21 }
0x154d   :  { %v30888_v53 = vpop.eup %30887  ;;  %29791 = vmatprep.mubr.msk.f32.mxu1 %vm31188_vm1, %v36411_v13  ;;  %29799 = vmatprep.subr.mxu1 %v36411_v13  ;;  %v34818_v18 = vpop.permute.xlu1 %20580 }
0x154e   :  { %v17915_v58 = vmul.f32 %v30888_v53, %v34674_v16  ;;  %v30890_v40 = vpop.eup %30889 }
0x154f   :  { %21048 = vrot.lane.b32.xlu1 %v33753_v48, %s31195_s1  ;;  %v17919_v28 = vmul.f32 %v30890_v40, %v34672_v14 }
0x1550   :  { %29792 = vmatmul.mubr.msk.f32.vlgmr.msra.gmra.mrb[2].mxu1 %vm293_vm2, %v17915_v58 }
0x1551   :  { %29800 = vmatpush3.msra.mxu1 %v34524_v8  ;;  %29801 = vmatprep.mubr.msk.f32.mxu1 %vm31188_vm1, %v36411_v13  ;;  %v17794_v8 = vsub.f32 %v34535_v33, %v34653_v30  ;;  %v17796_v30 = vsub.f32 %v34544_v56, %v34656_v41  ;;  %v34822_v17 = vpop.permute.xlu1 %20660 }
0x1552   :  { %29809 = vmatprep.subr.mxu1 %v36411_v13 }
0x1553   :  { %v17814_v14 = vmul.f32 1.442695, %v17794_v8 }
0x1554   :  { %v30892_v16 = vpop.eup %30891  ;;  %29802 = vmatmul.mubr.msk.f32.vlgmr.msra.gmra.mrb[4].mxu1 %vm293_vm2, %v17919_v28 }
0x1555   :  { %v17923_v5 = vmul.f32 %v30892_v16, %v34680_v38  ;;  %29810 = vmatpush3.msra.mxu1 %v34533_v35  ;;  %29811 = vmatprep.mubr.msk.f32.mxu1 %vm31188_vm1, %v36411_v13  ;;  %v17800_v38 = vsub.f32 %v34614_v44, %v17764_v0  ;;  %v17792_v35 = vsub.f32 %v34526_v54, %v34651_v20  ;;  %30893 = vpow2.f32 %v17814_v14 }
0x1556   :  { %29819 = vmatprep.subr.mxu1 %v36411_v13  ;;  %v17822_v44 = vmul.f32 1.442695, %v17798_v51 }
0x1557   :  { %v17826_v32 = vmul.f32 1.442695, %v17800_v38  ;;  %v17810_v33 = vmul.f32 1.442695, %v17792_v35 }
0x1558   :  { %29812 = vmatmul.mubr.msk.f32.vlgmr.msra.gmra.mrb[6].mxu1 %vm293_vm2, %v17923_v5 }
0x1559   :  { %29820 = vmatpush3.msra.mxu1 %v34552_v25  ;;  %29821 = vmatprep.mubr.msk.f32.mxu1 %vm31188_vm1, %v36411_v13  ;;  %30895 = vpow2.f32 %v17826_v32  ;;  %v17818_v25 = vmul.f32 1.442695, %v17796_v30 }
0x155a   :  { %29829 = vmatprep.subr.mxu1 %v36411_v13  ;;  %30897 = vpow2.f32 %v17810_v33 }
0x155b   :  { %30899 = vpow2.f32 %v17818_v25 }
0x155c   :  { %30901 = vpow2.f32 %v17822_v44 }
0x155f   :  { %v34798_v43 = vpop.eup %30893 }
0x1560   :  { %v17852_v0 = vsel %vm293_vm2, %v34798_v43, 0.0 }
0x1563   :  { %v34802_v54 = vpop.eup %30895 }
0x1564   :  { %v34804_v20 = vpop.eup %30897  ;;  %v17870_v41 = vsel %vm293_vm2, %v34802_v54, 0.0 }
0x1565   :  { %v17846_v63 = vsel %vm293_vm2, %v34804_v20, 0.0  ;;  %v34810_v56 = vpop.eup %30899 }
0x1566   :  { %v17858_v21 = vsel %vm293_vm2, %v34810_v56, 0.0  ;;  %v34816_v10 = vpop.eup %30901 }
0x1567   :  { %v17864_v24 = vsel %vm293_vm2, %v34816_v10, 0.0 }
0x156b   :  { %17853 = vadd.xlane.f32.xlu0 %v17852_v0 }
0x156f   :  { %17871 = vadd.xlane.f32.xlu0 %v17870_v41 }
0x1573   :  { %17847 = vadd.xlane.f32.xlu1 %v17846_v63 }
0x1576   :  { %v17887_v15 = vpop.xlane.xlu0 %17886 }
0x1577   :  { %17859 = vadd.xlane.f32.xlu1 %v17858_v21  ;;  %30903 = vrcp.f32 %v17887_v15  ;;  %v36535_v21 = vld [vmem:[#allocation31_spill] sm:$0xff]  ;;  %v36536_v15 = vld [vmem:[#allocation32_spill] sm:$0xff] }
0x157b   :  { %17865 = vadd.xlane.f32.xlu1 %v17864_v24  ;;  %v36538_v24 = vld [vmem:[#allocation37_spill] sm:$0xff] }
0x157e   :  { %v17893_v53 = vpop.xlane.xlu0 %17892 }
0x157f   :  { %30905 = vrcp.f32 %v17893_v53  ;;  %v36540_v53 = vld [vmem:[#allocation38_spill] sm:$0xff] }
0x1581   :  { %v30904_v58 = vpop.eup %30903 }
0x1582   :  { %v17899_v40 = vpop.xlane.xlu1 %17898  ;;  %v17927_v28 = vmul.f32 %v30904_v58, %v34697_v37  ;;  %v17770_v16 = vpop.xlane.xlu0 %17769  ;;  %v36541_v58 = vld [vmem:[#allocation29_spill] sm:$0xff] }
0x1583   :  { %30907 = vrcp.f32 %v17899_v40  ;;  %v17802_v5 = vsub.f32 %v34706_v19, %v17770_v16  ;;  %v36542_v40 = vld [vmem:[#allocation3_spill] sm:$0xff] }
0x1584   :  { %29822 = vmatmul.mubr.msk.f32.vlgmr.msra.gmra.mrb[8].mxu1 %vm293_vm2, %v17927_v28 }
0x1585   :  { %v17830_v8 = vmul.f32 1.442695, %v17802_v5  ;;  %29830 = vmatpush3.msra.mxu1 %v34567_v52  ;;  %29831 = vmatprep.mubr.msk.f32.mxu1 %vm31188_vm1, %v36411_v13  ;;  %v36543_v5 = vld [vmem:[#allocation36_spill] sm:$0xff] }
0x1586   :  { %v17776_v14 = vpop.xlane.xlu0 %17775  ;;  %29839 = vmatprep.subr.mxu1 %v36411_v13 }
0x1587   :  { %30909 = vpow2.f32 %v17830_v8  ;;  %v17804_v38 = vsub.f32 %v34713_v23, %v17776_v14  ;;  %v36544_v8 = vld [vmem:[#allocation30_spill] sm:$0xff] }
0x1589   :  { %v30906_v35 = vpop.eup %30905  ;;  %v17834_v37 = vmul.f32 1.442695, %v17804_v38 }
0x158a   :  { %v17931_v32 = vmul.f32 %v30906_v35, %v34701_v7 }
0x158b   :  { %30911 = vpow2.f32 %v17834_v37 }
0x158c   :  { %29832 = vmatmul.mubr.msk.f32.vlgmr.msra.gmra.mrb[10].mxu1 %vm293_vm2, %v17931_v32 }
0x158d   :  { %v30908_v19 = vpop.eup %30907  ;;  %29840 = vmatpush3.msra.mxu1 %v34578_v62  ;;  %29841 = vmatprep.mubr.msk.f32.mxu1 %vm31188_vm1, %v36411_v13 }
0x158e   :  { %v17935_v33 = vmul.f32 %v30908_v19, %v34703_v27  ;;  %29902 = vmatprep.subr.mxu1 %v36411_v13 }
0x1590   :  { %29842 = vmatmul.mubr.msk.f32.vlgmr.msra.gmra.mrb[12].mxu1 %vm293_vm2, %v17935_v33 }
0x1591   :  { %v34840_v52 = vpop.eup %30909  ;;  %29904 = vmatprep.mubr.msk.f32.mxu1 %vm31188_vm1, %v36411_v13 }
0x1592   :  { %v17876_v7 = vsel %vm293_vm2, %v34840_v52, 0.0 }
0x1593   :  { %17877 = vadd.xlane.f32.xlu1 %v17876_v7 }
0x1594   :  { %29903 = vmatpush3.xpose.msk.msra.mxu1 %vm293_vm2, %v34635_v3  ;;  %v36530_v3 = vld [vmem:[#allocation33_spill] sm:$0xff] }
0x1595   :  { %v34848_v62 = vpop.eup %30911  ;;  %29907 = vmatprep.subr.mxu1 %v36411_v13 }
0x1596   :  { %v17882_v27 = vsel %vm293_vm2, %v34848_v62, 0.0 }
0x1597   :  { %29905 = vmatmul.mubr.msk.f32.vlgmr.msra.gmra.mrb[14].mxu1 %vm293_vm2, %v34586_v39  ;;  %17883 = vadd.xlane.f32.xlu0 %v17882_v27  ;;  %v36531_v39 = vld [vmem:[#allocation35_spill] sm:$0xff] }
0x1598   :  { %29908 = vmatpush3.xpose.msk.msra.mxu1 %vm293_vm2, %v34590_v26  ;;  %29909 = vmatprep.mubr.msk.f32.mxu1 %vm31188_vm1, %v36411_v13 }
0x1599   :  { %29912 = vmatprep.subr.mxu1 %v36411_v13 }
0x159b   :  { %29910 = vmatmul.mubr.msk.f32.vlgmr.msra.gmra.mrb[16].mxu1 %vm293_vm2, %v34594_v6  ;;  %v36533_v6 = vld [vmem:[#allocation25_spill] sm:$0xff] }
0x159c   :  { %29913 = vmatpush3.xpose.msk.msra.mxu1 %vm293_vm2, %v34598_v1  ;;  %29914 = vmatprep.mubr.msk.f32.mxu1 %vm31188_vm1, %v36411_v13 }
0x159d   :  { %29917 = vmatprep.subr.mxu1 %v36411_v13 }
0x159f   :  { %29915 = vmatmul.mubr.msk.f32.vlgmr.msra.gmra.mrb[18].mxu1 %vm293_vm2, %v34637_v11 }
0x15a0   :  { %29918 = vmatpush3.xpose.msk.msra.mxu1 %vm293_vm2, %v34600_v61  ;;  %29919 = vmatprep.mubr.msk.f32.mxu1 %vm31188_vm1, %v36411_v13  ;;  %v36534_v61 = vld [vmem:[#allocation6_spill] sm:$0xff] }
0x15a1   :  { %29922 = vmatprep.subr.mxu1 %v36411_v13 }
0x15a3   :  { %29920 = vmatmul.mubr.msk.f32.vlgmr.msra.gmra.mrb[20].mxu1 %vm293_vm2, %v34639_v47 }
0x15a4   :  { %29923 = vmatpush3.xpose.msk.msra.mxu1 %vm293_vm2, %v34602_v50  ;;  %17936 = vrot.lane.b32.xlu1 %v33750_v29, %s31193_s20  ;;  %v20739_v50 = vpop.permute.xlu0 %20738 }
0x15a5   :  { %29924 = vmatprep.mubr.msk.f32.mxu1 %vm31188_vm1, %v36411_v13  ;;  %29927 = vmatprep.subr.mxu1 %v36411_v13 }
0x15a7   :  { %29925 = vmatmul.mubr.msk.f32.vlgmr.msra.gmra.mrb[22].mxu1 %vm293_vm2, %v34643_v60  ;;  %v36529_v60 = vld [vmem:[#allocation15_spill] sm:$0xff] }
0x15a8   :  { %29928 = vmatpush3.xpose.msk.msra.mxu1 %vm293_vm2, %v34604_v4  ;;  %29929 = vmatprep.mubr.msk.f32.mxu1 %vm31188_vm1, %v36411_v13  ;;  %v20737_v4 = vpop.permute.xlu0 %20736 }
0x15a9   :  { %29932 = vmatprep.subr.mxu1 %v36411_v13 }
0x15ab   :  { %29930 = vmatmul.mubr.msk.f32.vlgmr.msra.gmra.mrb[24].mxu1 %vm293_vm2, %v34647_v59  ;;  %v20659_v59 = vpop.permute.xlu1 %20658 }
0x15ac   :  { %29933 = vmatpush3.xpose.msk.msra.mxu1 %vm293_vm2, %v34609_v22  ;;  %29934 = vmatprep.mubr.msk.f32.mxu1 %vm31188_vm1, %v36411_v13  ;;  %v36532_v22 = vld [vmem:[#allocation4_spill] sm:$0xff]  ;;  %v20817_v23 = vpop.permute.xlu0 %20816 }
0x15ad   :  { %29937 = vmatprep.subr.mxu1 %v36411_v13 }
0x15af   :  { %29935 = vmatmul.mubr.msk.f32.vlgmr.msra.gmra.mrb[26].mxu1 %vm293_vm2, %v36529_v60 }
0x15b0   :  { %29938 = vmatpush3.xpose.msk.msra.mxu1 %vm293_vm2, %v36530_v3  ;;  %29939 = vmatprep.mubr.msk.f32.mxu1 %vm31188_vm1, %v36411_v13 }
0x15b1   :  { %29942 = vmatprep.subr.mxu1 %v36411_v13 }
0x15b3   :  { %29940 = vmatmul.mubr.msk.f32.vlgmr.msra.gmra.mrb[28].mxu1 %vm293_vm2, %v36531_v39 }
0x15b4   :  { %29943 = vmatpush3.xpose.msk.msra.mxu1 %vm293_vm2, %v36532_v22  ;;  %29944 = vmatprep.mubr.msk.f32.mxu1 %vm31188_vm1, %v36411_v13 }
0x15b5   :  { %29947 = vmatprep.subr.mxu1 %v36411_v13 }
0x15b7   :  { %v17782_v26 = vpop.xlane.xlu1 %17781  ;;  %29945 = vmatmul.mubr.msk.f32.vlgmr.msra.gmra.mrb[30].mxu1 %vm293_vm2, %v36533_v6 }
0x15b8   :  { %v17806_v1 = vsub.f32 %v34735_v46, %v17782_v26  ;;  %29948 = vmatpush3.xpose.msk.msra.mxu1 %vm293_vm2, %v36534_v61  ;;  %29949 = vmatprep.mubr.msk.f32.mxu1 %vm31188_vm1, %v36411_v13 }
0x15b9   :  { %29952 = vmatprep.subr.mxu1 %v36411_v13 }
0x15ba   :  { %v17838_v11 = vmul.f32 1.442695, %v17806_v1 }
0x15bb   :  { %29950 = vmatmul.mubr.msk.f32.vlgmr.msra.gmra.mrb[32].mxu1 %vm293_vm2, %v34691_v57  ;;  %v20815_v47 = vpop.permute.xlu1 %20814 }
0x15bc   :  { %30913 = vpow2.f32 %v17838_v11  ;;  %29953 = vmatpush3.xpose.msk.msra.mxu1 %vm293_vm2, %v34693_v42  ;;  %29954 = vmatprep.mubr.msk.f32.mxu1 %vm31188_vm1, %v36411_v13 }
0x15bd   :  { %29957 = vmatprep.subr.mxu1 %v36411_v13 }
0x15bf   :  { %29955 = vmatmul.mubr.msk.f32.vlgmr.msra.gmra.mrb[34].mxu1 %vm293_vm2, %v34723_v36  ;;  %v20895_v57 = vpop.permute.xlu1 %20894 }
0x15c0   :  { %29958 = vmatpush3.xpose.msk.msra.mxu1 %vm293_vm2, %v34812_v55  ;;  %29959 = vmatprep.mubr.msk.f32.mxu1 %vm31188_vm1, %v36411_v13 }
0x15c1   :  { %29962 = vmatprep.subr.mxu1 %v36411_v13 }
0x15c3   :  { %29960 = vmatmul.mubr.msk.f32.vlgmr.msra.gmra.mrb[36].mxu1 %vm293_vm2, %v34818_v18  ;;  %v17788_v42 = vpop.xlane.xlu0 %17787  ;;  %v20893_v51 = vpop.permute.xlu1 %20892  ;;  %v36537_v18 = vld [vmem:[#allocation27_spill] sm:$0xff] }
0x15c4   :  { %29963 = vmatpush3.xpose.msk.msra.mxu1 %vm293_vm2, %v34822_v17  ;;  %v17808_v46 = vsub.f32 %v34741_v45, %v17788_v42  ;;  %29964 = vmatprep.mubr.msk.f32.mxu1 %vm31188_vm1, %v36411_v13  ;;  %v36539_v17 = vld [vmem:[#allocation28_spill] sm:$0xff] }
0x15c5   :  { %29967 = vmatprep.subr.mxu1 %v36411_v13 }
0x15c6   :  { %v34940_v36 = vpop.eup %30913  ;;  %v17842_v30 = vmul.f32 1.442695, %v17808_v46 }
0x15c7   :  { %v17888_v25 = vsel %vm293_vm2, %v34940_v36, 0.0  ;;  %29965 = vmatmul.mubr.msk.f32.vlgmr.msra.gmra.mrb[38].mxu1 %vm293_vm2, %v20659_v59  ;;  %v20971_v45 = vpop.permute.xlu1 %20970  ;;  %v20973_v0 = vpop.permute.xlu0 %20972 }
0x15c8   :  { %17889 = vadd.xlane.f32.xlu0 %v17888_v25  ;;  %30915 = vpow2.f32 %v17842_v30  ;;  %29968 = vmatpush3.xpose.msk.msra.mxu1 %vm293_vm2, %v20739_v50 }
0x15c9   :  { %29969 = vmatprep.mubr.msk.f32.mxu1 %vm31188_vm1, %v36411_v13  ;;  %29972 = vmatprep.subr.mxu1 %v36411_v13 }
0x15cb   :  { %29970 = vmatmul.mubr.msk.f32.vlgmr.msra.gmra.mrb[40].mxu1 %vm293_vm2, %v20737_v4  ;;  %v21051_v63 = vpop.permute.xlu1 %21050 }
0x15cc   :  { %29973 = vmatpush3.xpose.msk.msra.mxu1 %vm293_vm2, %v20817_v23  ;;  %29974 = vmatprep.mubr.msk.f32.mxu1 %vm31188_vm1, %v36411_v13 }
0x15cd   :  { %29977 = vmatprep.subr.mxu1 %v36411_v13 }
0x15cf   :  { %29975 = vmatmul.mubr.msk.f32.vlgmr.msra.gmra.mrb[42].mxu1 %vm293_vm2, %v20815_v47  ;;  %v21049_v55 = vpop.permute.xlu1 %21048 }
0x15d0   :  { %29978 = vmatpush3.xpose.msk.msra.mxu1 %vm293_vm2, %v20895_v57  ;;  %29979 = vmatprep.mubr.msk.f32.mxu1 %vm31188_vm1, %v36411_v13 }
0x15d1   :  { %29982 = vmatprep.subr.mxu1 %v36411_v13 }
0x15d2   :  { %v34960_v44 = vpop.eup %30915 }
0x15d3   :  { %29980 = vmatmul.mubr.msk.f32.vlgmr.msra.gmra.mrb[44].mxu1 %vm293_vm2, %v20893_v51  ;;  %v17894_v41 = vsel %vm293_vm2, %v34960_v44, 0.0 }
0x15d4   :  { %29983 = vmatpush3.xpose.msk.msra.mxu1 %vm293_vm2, %v20973_v0  ;;  %17895 = vadd.xlane.f32.xlu1 %v17894_v41 }
0x15d5   :  { %29984 = vmatprep.mubr.msk.f32.mxu1 %vm31188_vm1, %v36411_v13  ;;  %29987 = vmatprep.subr.mxu1 %v36411_v13 }
0x15d7   :  { %29985 = vmatmul.mubr.msk.f32.vlgmr.msra.gmra.mrb[46].mxu1 %vm293_vm2, %v20971_v45 }
0x15d8   :  { %29988 = vmatpush3.xpose.msk.msra.mxu1 %vm293_vm2, %v21051_v63  ;;  %29989 = vmatprep.mubr.msk.f32.mxu1 %vm31188_vm1, %v36411_v13 }
0x15d9   :  { %29997 = vmatprep.subr.mxu1 %v36411_v13 }
0x15db   :  { %29990 = vmatmul.mubr.msk.f32.vlgmr.msra.gmra.mrb[48].mxu1 %vm293_vm2, %v21049_v55 }
0x15dc   :  { %29999 = vmatprep.mubr.msk.f32.mxu1 %vm31188_vm1, %v36411_v13 }
0x15de   :  { %18088 = vrot.lane.b32.xlu0 %v36535_v21, %s31193_s20 }
0x15e2   :  { %18240 = vrot.lane.b32.xlu0 %v36536_v15, %s31193_s20 }
0x15e5   :  { %21418 = vrot.lane.b32.xlu1 %v36537_v18, %s31196_s22 }
0x15e6   :  { %18392 = vrot.lane.b32.xlu0 %v36538_v24, %s31193_s20 }
0x15e9   :  { %21570 = vrot.lane.b32.xlu1 %v36539_v17, %s31196_s22 }
0x15ea   :  { %18544 = vrot.lane.b32.xlu0 %v36540_v53, %s31193_s20 }
0x15ed   :  { %21722 = vrot.lane.b32.xlu1 %v36541_v58, %s31196_s22 }
0x15ee   :  { %18696 = vrot.lane.b32.xlu0 %v36542_v40, %s31193_s20 }
0x15f1   :  { %21798 = vrot.lane.b32.xlu1 %v36538_v24, %s31196_s22 }
0x15f2   :  { %18848 = vrot.lane.b32.xlu0 %v33783_v34, %s31193_s20 }
0x15f5   :  { %21950 = vrot.lane.b32.xlu1 %v36540_v53, %s31196_s22 }
0x15f6   :  { %v34999_v28 = vpop.f32.mrb[252].mxu1  ;;  %19000 = vrot.lane.b32.xlu0 %v33790_v9, %s31193_s20 }
0x15f7   :  { %v29763_v16 = vpop.f32.mrb[253].mxu1 }
0x15f8   :  { %v17854_v1 = vpop.xlane.xlu0 %17853 }
0x15f9   :  { %22102 = vrot.lane.b32.xlu1 %v36542_v40, %s31196_s22 }
0x15fa   :  { %19152 = vrot.lane.b32.xlu0 %v33827_v49, %s31193_s20 }
0x15fc   :  { %v17872_v61 = vpop.xlane.xlu0 %17871 }
0x15fd   :  { %22254 = vrot.lane.b32.xlu1 %v33783_v34, %s31196_s22 }
0x15fe   :  { %21342 = vrot.lane.b32.xlu0 %v33750_v29, %s31196_s22 }
0x1600   :  { %v17848_v14 = vpop.xlane.xlu1 %17847 }
0x1601   :  { %30917 = vrcp.f32 %v17848_v14 }
0x1602   :  { %21494 = vrot.lane.b32.xlu0 %v36535_v21, %s31196_s22  ;;  %30919 = vrcp.f32 %v17854_v1 }
0x1604   :  { %v17860_v38 = vpop.xlane.xlu1 %17859 }
0x1605   :  { %30921 = vrcp.f32 %v17860_v38 }
0x1606   :  { %21646 = vrot.lane.b32.xlu0 %v36536_v15, %s31196_s22 }
0x1608   :  { %v17866_v32 = vpop.xlane.xlu1 %17865 }
0x1609   :  { %30923 = vrcp.f32 %v17866_v32 }
0x160a   :  { %21874 = vrot.lane.b32.xlu0 %v36543_v5, %s31196_s22  ;;  %30925 = vrcp.f32 %v17872_v61 }
0x160b   :  { %v30918_v27 = vpop.eup %30917 }
0x160c   :  { %v17901_v50 = vmul.f32 %v30918_v27, %v34804_v20  ;;  %v30920_v11 = vpop.eup %30919 }
0x160d   :  { %v17905_v42 = vmul.f32 %v30920_v11, %v34798_v43 }
0x160e   :  { %22026 = vrot.lane.b32.xlu0 %v36544_v8, %s31196_s22 }
0x160f   :  { %v30922_v46 = vpop.eup %30921 }
0x1610   :  { %v17909_v25 = vmul.f32 %v30922_v46, %v34810_v56 }
0x1612   :  { %22178 = vrot.lane.b32.xlu0 %v33735_v12, %s31196_s22 }
0x1613   :  { %v30924_v51 = vpop.eup %30923 }
0x1614   :  { %v17913_v41 = vmul.f32 %v30924_v51, %v34816_v10  ;;  %v30926_v63 = vpop.eup %30925 }
0x1615   :  { %v17917_v38 = vmul.f32 %v30926_v63, %v34802_v54 }
0x161a   :  { %v35021_v35 = vpop.f32.mrb[254].mxu1 }
0x161b   :  { %v29773_v37 = vpop.f32.mrb[255].mxu1 }
0x161e   :  { %v35023_v19 = vpop.f32.mrb[0].mxu1 }
0x161f   :  { %v29783_v33 = vpop.f32.mrb[1].mxu1 }
0x1620   :  { %v17878_v7 = vpop.xlane.xlu1 %17877 }
0x1621   :  { %30927 = vrcp.f32 %v17878_v7 }
0x1623   :  { %v35025_v60 = vpop.f32.mrb[2].mxu1 }
0x1624   :  { %v29793_v3 = vpop.f32.mrb[3].mxu1  ;;  %v17937_v59 = vpop.permute.xlu1 %17936 }
0x1625   :  { %29755 = vmatpush3.msra.mxu0 %v17937_v59  ;;  %v17884_v4 = vpop.xlane.xlu0 %17883 }
0x1626   :  { %29757 = vmatmul.mubr.msk.f32.vlgmr.msra.gmra.mrb[198].mxu0 %vm293_vm2, %v17901_v50  ;;  %29764 = vmatprep.subr.mxu0 %v36411_v13  ;;  %30929 = vrcp.f32 %v17884_v4 }
0x1627   :  { %v35029_v39 = vpop.f32.mrb[4].mxu1  ;;  %29766 = vmatprep.mubr.msk.f32.mxu0 %vm31188_vm1, %v36411_v13 }
0x1628   :  { %v29803_v22 = vpop.f32.mrb[5].mxu1 }
0x162b   :  { %v35034_v26 = vpop.f32.mrb[6].mxu1  ;;  %v30928_v37 = vpop.eup %30927 }
0x162c   :  { %v29813_v6 = vpop.f32.mrb[7].mxu1  ;;  %v17921_v33 = vmul.f32 %v30928_v37, %v34840_v52 }
0x1630   :  { %v30930_v7 = vpop.eup %30929 }
0x1631   :  { %v17925_v50 = vmul.f32 %v30930_v7, %v34848_v62 }
0x1655   :  { %v17890_v20 = vpop.xlane.xlu0 %17889 }
0x1656   :  { %30931 = vrcp.f32 %v17890_v20 }
0x1657   :  { %v35036_v47 = vpop.f32.mrb[8].mxu1 }
0x1658   :  { %v29823_v23 = vpop.f32.mrb[9].mxu1 }
0x1659   :  { %v18089_v57 = vpop.permute.xlu0 %18088 }
0x165a   :  { %29765 = vmatpush3.msra.mxu0 %v18089_v57 }
0x165b   :  { %29767 = vmatmul.mubr.msk.f32.vlgmr.msra.gmra.mrb[200].mxu0 %vm293_vm2, %v17905_v42  ;;  %29774 = vmatprep.subr.mxu0 %v36411_v13 }
0x165c   :  { %29776 = vmatprep.mubr.msk.f32.mxu0 %vm31188_vm1, %v36411_v13 }
0x165d   :  { %v18241_v30 = vpop.permute.xlu0 %18240 }
0x165e   :  { %29775 = vmatpush3.msra.mxu0 %v18241_v30 }
0x165f   :  { %29777 = vmatmul.mubr.msk.f32.vlgmr.msra.gmra.mrb[202].mxu0 %vm293_vm2, %v17909_v25  ;;  %29784 = vmatprep.subr.mxu0 %v36411_v13  ;;  %v35046_v43 = vpop.f32.mrb[10].mxu1 }
0x1660   :  { %29786 = vmatprep.mubr.msk.f32.mxu0 %vm31188_vm1, %v36411_v13  ;;  %v29833_v45 = vpop.f32.mrb[11].mxu1  ;;  %v30932_v22 = vpop.eup %30931 }
0x1661   :  { %v18393_v0 = vpop.permute.xlu0 %18392  ;;  %v17896_v55 = vpop.xlane.xlu1 %17895  ;;  %v17929_v62 = vmul.f32 %v30932_v22, %v34940_v36 }
0x1662   :  { %29785 = vmatpush3.msra.mxu0 %v18393_v0  ;;  %30933 = vrcp.f32 %v17896_v55 }
0x1663   :  { %29787 = vmatmul.mubr.msk.f32.vlgmr.msra.gmra.mrb[204].mxu0 %vm293_vm2, %v17913_v41  ;;  %29794 = vmatprep.subr.mxu0 %v36411_v13  ;;  %v35053_v56 = vpop.f32.mrb[12].mxu1  ;;  %v13127_v41 = vld [vmem:[%s36369_s7 + $0x8] sm:$0xff] }
0x1664   :  { %29796 = vmatprep.mubr.msk.f32.mxu0 %vm31188_vm1, %v36411_v13  ;;  %v29843_v16 = vpop.f32.mrb[13].mxu1 }
0x1665   :  { %v18545_v14 = vpop.permute.xlu0 %18544  ;;  %v21419_v32 = vpop.permute.xlu1 %21418 }
0x1666   :  { %29795 = vmatpush3.msra.mxu0 %v18545_v14  ;;  %29998 = vmatpush3.msra.mxu1 %v21419_v32 }
0x1667   :  { %29797 = vmatmul.mubr.msk.f32.vlgmr.msra.gmra.mrb[206].mxu0 %vm293_vm2, %v17917_v38  ;;  %29804 = vmatprep.subr.mxu0 %v36411_v13 }
0x1668   :  { %29806 = vmatprep.mubr.msk.f32.mxu0 %vm31188_vm1, %v36411_v13  ;;  %30007 = vmatprep.subr.mxu1 %v36411_v13 }
0x1669   :  { %v18697_v10 = vpop.permute.xlu0 %18696 }
0x166a   :  { %29805 = vmatpush3.msra.mxu0 %v18697_v10  ;;  %v19796_v54 = vpop.f32.mrb[14].mxu1 }
0x166b   :  { %29807 = vmatmul.mubr.msk.f32.vlgmr.msra.gmra.mrb[208].mxu0 %vm293_vm2, %v17921_v33  ;;  %29814 = vmatprep.subr.mxu0 %v36411_v13  ;;  %v35066_v27 = vmul.f32 0.35355338, %v19796_v54  ;;  %v29906_v3 = vpop.f32.mrb[15].mxu1 }
0x166c   :  { %29816 = vmatprep.mubr.msk.f32.mxu0 %vm31188_vm1, %v36411_v13  ;;  %v30934_v20 = vpop.eup %30933 }
0x166d   :  { %v18849_v59 = vpop.permute.xlu0 %18848  ;;  %v21144_v52 = vsel %vm293_vm2, %v35066_v27, -inf  ;;  %v17933_v36 = vmul.f32 %v30934_v20, %v34960_v44 }
0x166e   :  { %29815 = vmatpush3.msra.mxu0 %v18849_v59  ;;  %v19874_v6 = vpop.f32.mrb[16].mxu1  ;;  %21145 = vmax.xlane.f32.xlu1 %v21144_v52 }
0x166f   :  { %29817 = vmatmul.mubr.msk.f32.vlgmr.msra.gmra.mrb[210].mxu0 %vm293_vm2, %v17925_v50  ;;  %v35074_v1 = vmul.f32 0.35355338, %v19874_v6  ;;  %v29911_v61 = vpop.f32.mrb[17].mxu1  ;;  %29824 = vmatprep.subr.mxu0 %v36411_v13 }
0x1670   :  { %29826 = vmatprep.mubr.msk.f32.mxu0 %vm31188_vm1, %v36411_v13 }
0x1671   :  { %v19001_v4 = vpop.permute.xlu0 %19000  ;;  %v21147_v11 = vsel %vm293_vm2, %v35074_v1, -inf }
0x1672   :  { %29825 = vmatpush3.msra.mxu0 %v19001_v4  ;;  %v19952_v23 = vpop.f32.mrb[18].mxu1  ;;  %21148 = vmax.xlane.f32.xlu0 %v21147_v11 }
0x1673   :  { %29827 = vmatmul.mubr.msk.f32.vlgmr.msra.gmra.mrb[212].mxu0 %vm293_vm2, %v17929_v62  ;;  %v35083_v57 = vmul.f32 0.35355338, %v19952_v23  ;;  %v29916_v42 = vpop.f32.mrb[19].mxu1  ;;  %29834 = vmatprep.subr.mxu0 %v36411_v13 }
0x1674   :  { %29836 = vmatprep.mubr.msk.f32.mxu0 %vm31188_vm1, %v36411_v13 }
0x1675   :  { %v19153_v46 = vpop.permute.xlu0 %19152  ;;  %v21150_v30 = vsel %vm293_vm2, %v35083_v57, -inf }
0x1676   :  { %29835 = vmatpush3.msra.mxu0 %v19153_v46  ;;  %v20030_v25 = vpop.f32.mrb[20].mxu1  ;;  %21151 = vmax.xlane.f32.xlu1 %v21150_v30 }
0x1677   :  { %29837 = vmatmul.mubr.msk.f32.vlgmr.msra.gmra.mrb[214].mxu0 %vm293_vm2, %v17933_v36  ;;  %v35092_v51 = vmul.f32 0.35355338, %v20030_v25  ;;  %v29921_v45 = vpop.f32.mrb[21].mxu1  ;;  %29844 = vmatprep.subr.mxu0 %v13127_v41 }
0x1678   :  { %29845 = vmatpush3.msra.mxu0 %v13127_v41 }
0x1679   :  { %v21153_v0 = vsel %vm293_vm2, %v35092_v51, -inf }
0x167a   :  { %v20108_v63 = vpop.f32.mrb[22].mxu1  ;;  %21154 = vmax.xlane.f32.xlu1 %v21153_v0 }
0x167b   :  { %v35099_v44 = vmul.f32 0.35355338, %v20108_v63  ;;  %v29926_v55 = vpop.f32.mrb[23].mxu1 }
0x167d   :  { %v21156_v16 = vsel %vm293_vm2, %v35099_v44, -inf }
0x167e   :  { %v20186_v14 = vpop.f32.mrb[24].mxu1  ;;  %21157 = vmax.xlane.f32.xlu1 %v21156_v16 }
0x167f   :  { %v35103_v38 = vmul.f32 0.35355338, %v20186_v14  ;;  %v29931_v37 = vpop.f32.mrb[25].mxu1 }
0x1681   :  { %v21159_v32 = vsel %vm293_vm2, %v35103_v38, -inf }
0x1682   :  { %v20264_v10 = vpop.f32.mrb[26].mxu1  ;;  %21160 = vmax.xlane.f32.xlu1 %v21159_v32 }
0x1683   :  { %v35107_v33 = vmul.f32 0.35355338, %v20264_v10  ;;  %v29936_v7 = vpop.f32.mrb[27].mxu1 }
0x1685   :  { %v21162_v54 = vsel %vm293_vm2, %v35107_v33, -inf }
0x1686   :  { %v20342_v3 = vpop.f32.mrb[28].mxu1  ;;  %21163 = vmax.xlane.f32.xlu1 %v21162_v54 }
0x1687   :  { %v35111_v59 = vmul.f32 0.35355338, %v20342_v3  ;;  %v29941_v50 = vpop.f32.mrb[29].mxu1 }
0x1688   :  { %22330 = vrot.lane.b32.xlu0 %v33740_v31, %s31196_s22 }
0x1689   :  { %v21165_v22 = vsel %vm293_vm2, %v35111_v59, -inf }
0x168a   :  { %v20420_v52 = vpop.f32.mrb[30].mxu1  ;;  %21166 = vmax.xlane.f32.xlu1 %v21165_v22 }
0x168b   :  { %v35117_v6 = vmul.f32 0.35355338, %v20420_v52  ;;  %v29946_v61 = vpop.f32.mrb[31].mxu1 }
0x168d   :  { %v21168_v4 = vsel %vm293_vm2, %v35117_v6, -inf }
0x168e   :  { %v20498_v62 = vpop.f32.mrb[32].mxu1  ;;  %21169 = vmax.xlane.f32.xlu1 %v21168_v4 }
0x168f   :  { %v35121_v20 = vmul.f32 0.35355338, %v20498_v62  ;;  %v29951_v11 = vpop.f32.mrb[33].mxu1 }
0x1691   :  { %v21171_v23 = vsel %vm293_vm2, %v35121_v20, -inf }
0x1692   :  { %v20576_v42 = vpop.f32.mrb[34].mxu1  ;;  %21172 = vmax.xlane.f32.xlu1 %v21171_v23 }
0x1693   :  { %v29956_v46 = vpop.f32.mrb[35].mxu1  ;;  %v35133_v37 = vmul.f32 0.35355338, %v20576_v42 }
0x1695   :  { %v21174_v3 = vsel %vm293_vm2, %v35133_v37, -inf }
0x1696   :  { %v20654_v36 = vpop.f32.mrb[36].mxu1 }
0x1697   :  { %v35125_v30 = vmul.f32 0.35355338, %v20654_v36  ;;  %v29961_v25 = vpop.f32.mrb[37].mxu1 }
0x1699   :  { %v21177_v45 = vsel %vm293_vm2, %v35125_v30, -inf }
0x169a   :  { %v20732_v0 = vpop.f32.mrb[38].mxu1  ;;  %21178 = vmax.xlane.f32.xlu1 %v21177_v45 }
0x169b   :  { %v29966_v41 = vpop.f32.mrb[39].mxu1  ;;  %v35135_v7 = vmul.f32 0.35355338, %v20732_v0 }
0x169c   :  { %v13126_v41 = vld [vmem:[%s36369_s7] sm:$0xff] }
0x169d   :  { %v21180_v62 = vsel %vm293_vm2, %v35135_v7, -inf  ;;  %29873 = vmatprep.subr.mxu0 %v13126_v41 }
0x169e   :  { %v20810_v63 = vpop.f32.mrb[40].mxu1 }
0x169f   :  { %v35129_v55 = vmul.f32 0.35355338, %v20810_v63  ;;  %v29971_v16 = vpop.f32.mrb[41].mxu1  ;;  %v35164_v63 = vpop.permute.xlu1 %21570 }
0x16a0   :  { %v35166_v16 = vpop.permute.xlu0 %21342 }
0x16a1   :  { %v21183_v14 = vsel %vm293_vm2, %v35129_v55, -inf }
0x16a2   :  { %v20888_v32 = vpop.f32.mrb[42].mxu1  ;;  %21184 = vmax.xlane.f32.xlu1 %v21183_v14 }
0x16a3   :  { %v29976_v10 = vpop.f32.mrb[43].mxu1  ;;  %v35143_v61 = vmul.f32 0.35355338, %v20888_v32  ;;  %v35168_v14 = vpop.permute.xlu1 %21722 }
0x16a4   :  { %v35170_v32 = vpop.permute.xlu0 %21494 }
0x16a5   :  { %v21186_v46 = vsel %vm293_vm2, %v35143_v61, -inf }
0x16a6   :  { %v20966_v54 = vpop.f32.mrb[44].mxu1 }
0x16a7   :  { %v35139_v50 = vmul.f32 0.35355338, %v20966_v54  ;;  %21175 = vmax.xlane.f32.xlu0 %v21174_v3  ;;  %v29981_v22 = vpop.f32.mrb[45].mxu1  ;;  %v35172_v10 = vpop.permute.xlu1 %21798 }
0x16a8   :  { %v35174_v54 = vpop.permute.xlu0 %21646 }
0x16a9   :  { %v21189_v52 = vsel %vm293_vm2, %v35139_v50, -inf }
0x16aa   :  { %21190 = vmax.xlane.f32.xlu1 %v21189_v52  ;;  %v21044_v4 = vpop.f32.mrb[46].mxu1 }
0x16ab   :  { %21181 = vmax.xlane.f32.xlu0 %v21180_v62  ;;  %v29986_v11 = vpop.f32.mrb[47].mxu1  ;;  %v35147_v23 = vmul.f32 0.35355338, %v21044_v4  ;;  %v35176_v3 = vpop.permute.xlu1 %21950 }
0x16ac   :  { %36545 = vst [vmem:[#allocation34_spill] sm:$0xff] %v35176_v3  ;;  %v35178_v22 = vpop.permute.xlu0 %21874 }
0x16ad   :  { %v21192_v0 = vsel %vm293_vm2, %v35147_v23, -inf  ;;  %36546 = vst [vmem:[#allocation26_spill] sm:$0xff] %v35178_v22 }
0x16ae   :  { %v21122_v42 = vpop.f32.mrb[48].mxu1 }
0x16af   :  { %v35151_v36 = vmul.f32 0.35355338, %v21122_v42  ;;  %21187 = vmax.xlane.f32.xlu0 %v21186_v46  ;;  %v29991_v25 = vpop.f32.mrb[49].mxu1  ;;  %v35180_v52 = vpop.permute.xlu1 %22102 }
0x16b0   :  { %36547 = vst [vmem:[#allocation15_spill] sm:$0xff] %v35180_v52  ;;  %v35182_v4 = vpop.permute.xlu0 %22026 }
0x16b1   :  { %v21195_v45 = vsel %vm293_vm2, %v35151_v36, -inf  ;;  %36548 = vst [vmem:[#allocation33_spill] sm:$0xff] %v35182_v4 }
0x16b2   :  { %21196 = vmax.xlane.f32.xlu1 %v21195_v45 }
0x16b3   :  { %21193 = vmax.xlane.f32.xlu0 %v21192_v0  ;;  %v35184_v62 = vpop.permute.xlu1 %22254 }
0x16b4   :  { %36549 = vst [vmem:[#allocation35_spill] sm:$0xff] %v35184_v62  ;;  %v35187_v46 = vpop.permute.xlu0 %22178 }
0x16b5   :  { %36550 = vst [vmem:[#allocation4_spill] sm:$0xff] %v35187_v46 }
0x16c3   :  { %22406 = vrot.lane.b32.xlu1 %v33790_v9, %s31196_s22 }
0x16c9   :  { %22482 = vrot.lane.b32.xlu0 %v33745_v2, %s31196_s22 }
0x16f9   :  { %v18008_v11 = vpop.f32.mrb[198].mxu0 }
0x16fa   :  { %v29758_v42 = vpop.f32.mrb[199].mxu0  ;;  %29846 = vmatprep.mubr.msk.f32.mxu0 %vm293_vm2, %v18008_v11 }
0x16fb   :  { %v21146_v25 = vpop.xlane.xlu1 %21145  ;;  %29847 = vmatmul.mubr.msk.f32.vlgmr.msra.gmra.mrb[216].mxu0 %vm293_vm2, %v34999_v28 }
0x16fc   :  { %v21198_v45 = vsub.f32 %v35066_v27, %v21146_v25  ;;  %29874 = vmatpush3.msra.mxu0 %v13126_v41 }
0x16fd   :  { %29992 = vmatprep.subr.mxu0 %v36411_v13 }
0x16fe   :  { %v21216_v0 = vmul.f32 1.442695, %v21198_v45 }
0x16ff   :  { %v21149_v52 = vpop.xlane.xlu0 %21148 }
0x1700   :  { %30935 = vpow2.f32 %v21216_v0  ;;  %v21199_v62 = vsub.f32 %v35074_v1, %v21149_v52 }
0x1702   :  { %v21218_v4 = vmul.f32 1.442695, %v21199_v62 }
0x1703   :  { %v21152_v42 = vpop.xlane.xlu1 %21151 }
0x1704   :  { %30937 = vpow2.f32 %v21218_v4  ;;  %v21200_v11 = vsub.f32 %v35083_v57, %v21152_v42 }
0x1706   :  { %v21220_v46 = vmul.f32 1.442695, %v21200_v11 }
0x1707   :  { %v21155_v3 = vpop.xlane.xlu1 %21154 }
0x1708   :  { %30939 = vpow2.f32 %v21220_v46  ;;  %v21201_v28 = vsub.f32 %v35092_v51, %v21155_v3 }
0x170a   :  { %v35196_v22 = vpop.eup %30935  ;;  %v21222_v27 = vmul.f32 1.442695, %v21201_v28 }
0x170b   :  { %v21158_v41 = vpop.xlane.xlu1 %21157  ;;  %v21252_v25 = vsel %vm293_vm2, %v35196_v22, 0.0 }
0x170c   :  { %30941 = vpow2.f32 %v21222_v27  ;;  %v21202_v1 = vsub.f32 %v35099_v44, %v21158_v41  ;;  %21253 = vadd.xlane.f32.xlu0 %v21252_v25 }
0x170e   :  { %v35201_v52 = vpop.eup %30937  ;;  %v21224_v4 = vmul.f32 1.442695, %v21202_v1 }
0x170f   :  { %v21161_v57 = vpop.xlane.xlu1 %21160  ;;  %v21255_v62 = vsel %vm293_vm2, %v35201_v52, 0.0 }
0x1710   :  { %30943 = vpow2.f32 %v21224_v4  ;;  %v21203_v51 = vsub.f32 %v35103_v38, %v21161_v57  ;;  %21256 = vadd.xlane.f32.xlu1 %v21255_v62 }
0x1712   :  { %v35206_v3 = vpop.eup %30939  ;;  %v21226_v46 = vmul.f32 1.442695, %v21203_v51 }
0x1713   :  { %v21164_v45 = vpop.xlane.xlu1 %21163  ;;  %v21258_v0 = vsel %vm293_vm2, %v35206_v3, 0.0 }
0x1714   :  { %30945 = vpow2.f32 %v21226_v46  ;;  %v21204_v44 = vsub.f32 %v35107_v33, %v21164_v45  ;;  %21259 = vadd.xlane.f32.xlu0 %v21258_v0 }
0x1716   :  { %v35211_v42 = vpop.eup %30941  ;;  %v21228_v11 = vmul.f32 1.442695, %v21204_v44 }
0x1717   :  { %v21167_v28 = vpop.xlane.xlu1 %21166  ;;  %v21261_v27 = vsel %vm293_vm2, %v35211_v42, 0.0 }
0x1718   :  { %30947 = vpow2.f32 %v21228_v11  ;;  %v21205_v38 = vsub.f32 %v35111_v59, %v21167_v28  ;;  %21262 = vadd.xlane.f32.xlu1 %v21261_v27 }
0x171a   :  { %v35216_v41 = vpop.eup %30943  ;;  %v21230_v25 = vmul.f32 1.442695, %v21205_v38 }
0x171b   :  { %v21170_v1 = vpop.xlane.xlu1 %21169  ;;  %v21264_v4 = vsel %vm293_vm2, %v35216_v41, 0.0 }
0x171c   :  { %30949 = vpow2.f32 %v21230_v25  ;;  %v21206_v33 = vsub.f32 %v35117_v6, %v21170_v1  ;;  %21265 = vadd.xlane.f32.xlu0 %v21264_v4 }
0x171e   :  { %v35221_v57 = vpop.eup %30945  ;;  %v21232_v62 = vmul.f32 1.442695, %v21206_v33 }
0x171f   :  { %v21173_v51 = vpop.xlane.xlu1 %21172  ;;  %v21267_v46 = vsel %vm293_vm2, %v35221_v57, 0.0 }
0x1720   :  { %30951 = vpow2.f32 %v21232_v62  ;;  %v21207_v59 = vsub.f32 %v35121_v20, %v21173_v51  ;;  %21268 = vadd.xlane.f32.xlu1 %v21267_v46 }
0x1722   :  { %v35226_v45 = vpop.eup %30947  ;;  %v21234_v0 = vmul.f32 1.442695, %v21207_v59 }
0x1723   :  { %v21270_v44 = vsel %vm293_vm2, %v35226_v45, 0.0 }
0x1724   :  { %30953 = vpow2.f32 %v21234_v0  ;;  %21271 = vadd.xlane.f32.xlu0 %v21270_v44 }
0x1726   :  { %v35230_v6 = vpop.eup %30949 }
0x1727   :  { %v21179_v11 = vpop.xlane.xlu1 %21178  ;;  %v21273_v28 = vsel %vm293_vm2, %v35230_v6, 0.0 }
0x1728   :  { %v21209_v27 = vsub.f32 %v35125_v30, %v21179_v11  ;;  %21274 = vadd.xlane.f32.xlu1 %v21273_v28  ;;  %v35246_v30 = vpop.permute.xlu0 %22330 }
0x172a   :  { %v35235_v38 = vpop.eup %30951  ;;  %v21238_v20 = vmul.f32 1.442695, %v21209_v27 }
0x172b   :  { %v21276_v25 = vsel %vm293_vm2, %v35235_v38, 0.0 }
0x172c   :  { %30955 = vpow2.f32 %v21238_v20  ;;  %21277 = vadd.xlane.f32.xlu0 %v21276_v25 }
0x172e   :  { %v18160_v1 = vpop.f32.mrb[200].mxu0  ;;  %v35239_v4 = vpop.eup %30953 }
0x172f   :  { %v29768_v33 = vpop.f32.mrb[201].mxu0  ;;  %29849 = vmatprep.mubr.msk.f32.mxu0 %vm293_vm2, %v18160_v1  ;;  %v21185_v62 = vpop.xlane.xlu1 %21184  ;;  %v21279_v51 = vsel %vm293_vm2, %v35239_v4, 0.0 }
0x1730   :  { %29850 = vmatmul.mubr.msk.f32.gmra.mrb[218].mxu0 %vm293_vm2, %v35021_v35  ;;  %v21211_v46 = vsub.f32 %v35129_v55, %v21185_v62  ;;  %21280 = vadd.xlane.f32.xlu1 %v21279_v51 }
0x1732   :  { %v18312_v59 = vpop.f32.mrb[202].mxu0  ;;  %v21242_v0 = vmul.f32 1.442695, %v21211_v46 }
0x1733   :  { %v29778_v44 = vpop.f32.mrb[203].mxu0  ;;  %29852 = vmatprep.mubr.msk.f32.mxu0 %vm293_vm2, %v18312_v59 }
0x1734   :  { %29853 = vmatmul.mubr.msk.f32.gmra.mrb[220].mxu0 %vm293_vm2, %v35023_v19  ;;  %30957 = vpow2.f32 %v21242_v0  ;;  %v21176_v11 = vpop.xlane.xlu0 %21175 }
0x1735   :  { %v21208_v28 = vsub.f32 %v35133_v37, %v21176_v11 }
0x1736   :  { %v18464_v27 = vpop.f32.mrb[204].mxu0  ;;  %v35253_v20 = vpop.eup %30955 }
0x1737   :  { %v29788_v35 = vpop.f32.mrb[205].mxu0  ;;  %29855 = vmatprep.mubr.msk.f32.mxu0 %vm293_vm2, %v18464_v27  ;;  %v21236_v55 = vmul.f32 1.442695, %v21208_v28  ;;  %v21191_v25 = vpop.xlane.xlu1 %21190  ;;  %v21285_v1 = vsel %vm293_vm2, %v35253_v20, 0.0 }
0x1738   :  { %29856 = vmatmul.mubr.msk.f32.gmra.mrb[222].mxu0 %vm293_vm2, %v35025_v60  ;;  %v21213_v19 = vsub.f32 %v35139_v50, %v21191_v25  ;;  %21286 = vadd.xlane.f32.xlu1 %v21285_v1  ;;  %v21182_v33 = vpop.xlane.xlu0 %21181 }
0x1739   :  { %30959 = vpow2.f32 %v21236_v55  ;;  %v21210_v37 = vsub.f32 %v35135_v7, %v21182_v33 }
0x173a   :  { %v18616_v62 = vpop.f32.mrb[206].mxu0  ;;  %v21246_v46 = vmul.f32 1.442695, %v21213_v19 }
0x173b   :  { %v29798_v51 = vpop.f32.mrb[207].mxu0  ;;  %29858 = vmatprep.mubr.msk.f32.mxu0 %vm293_vm2, %v18616_v62  ;;  %v21240_v59 = vmul.f32 1.442695, %v21210_v37 }
0x173c   :  { %29859 = vmatmul.mubr.msk.f32.gmra.mrb[224].mxu0 %vm293_vm2, %v35029_v39  ;;  %v21188_v0 = vpop.xlane.xlu0 %21187 }
0x173d   :  { %30961 = vpow2.f32 %v21240_v59  ;;  %v21212_v60 = vsub.f32 %v35143_v61, %v21188_v0 }
0x173e   :  { %v18768_v44 = vpop.f32.mrb[208].mxu0  ;;  %v35266_v50 = vpop.eup %30957  ;;  %30963 = vpow2.f32 %v21246_v46 }
0x173f   :  { %v29808_v11 = vpop.f32.mrb[209].mxu0  ;;  %29861 = vmatprep.mubr.msk.f32.mxu0 %vm293_vm2, %v18768_v44  ;;  %v21244_v7 = vmul.f32 1.442695, %v21212_v60  ;;  %v21197_v28 = vpop.xlane.xlu1 %21196  ;;  %v21291_v27 = vsel %vm293_vm2, %v35266_v50, 0.0  ;;  %v36551_v60 = vld [vmem:[#allocation20_spill] sm:$0xff] }
0x1740   :  { %29862 = vmatmul.mubr.msk.f32.gmra.mrb[226].mxu0 %vm293_vm2, %v35034_v26  ;;  %v21215_v39 = vsub.f32 %v35151_v36, %v21197_v28  ;;  %21292 = vadd.xlane.f32.xlu1 %v21291_v27  ;;  %v21194_v35 = vpop.xlane.xlu0 %21193  ;;  %v36553_v27 = vld [vmem:[#allocation11_spill] sm:$0xff] }
0x1741   :  { %30965 = vpow2.f32 %v21244_v7  ;;  %v21214_v61 = vsub.f32 %v35147_v23, %v21194_v35  ;;  %v36552_v7 = vld [vmem:[#allocation5_spill] sm:$0xff] }
0x1742   :  { %v18920_v55 = vpop.f32.mrb[210].mxu0  ;;  %v21250_v25 = vmul.f32 1.442695, %v21215_v39  ;;  %v36554_v39 = vld [vmem:[#allocation16_spill] sm:$0xff]  ;;  %v36555_v35 = vld [vmem:[#allocation21_spill] sm:$0xff] }
0x1743   :  { %v29818_v1 = vpop.f32.mrb[211].mxu0  ;;  %29864 = vmatprep.mubr.msk.f32.mxu0 %vm293_vm2, %v18920_v55  ;;  %v35276_v19 = vpop.eup %30959  ;;  %v21248_v33 = vmul.f32 1.442695, %v21214_v61  ;;  %v36556_v61 = vld [vmem:[#allocation7_spill] sm:$0xff]  ;;  %v36558_v55 = vld [vmem:[#allocation17_spill] sm:$0xff] }
0x1744   :  { %29865 = vmatmul.mubr.msk.f32.gmra.mrb[228].mxu0 %vm293_vm2, %v35036_v47  ;;  %30967 = vpow2.f32 %v21250_v25  ;;  %v21282_v26 = vsel %vm293_vm2, %v35276_v19, 0.0  ;;  %v36559_v25 = vld [vmem:[#allocation22_spill] sm:$0xff]  ;;  %v36560_v1 = vld [vmem:[#allocation8_spill] sm:$0xff] }
0x1745   :  { %30969 = vpow2.f32 %v21248_v33  ;;  %21283 = vadd.xlane.f32.xlu0 %v21282_v26  ;;  %v36561_v33 = vld [vmem:[#allocation13_spill] sm:$0xff]  ;;  %v36562_v26 = vld [vmem:[#allocation18_spill] sm:$0xff] }
0x1746   :  { %v19072_v36 = vpop.f32.mrb[212].mxu0 }
0x1747   :  { %v29828_v37 = vpop.f32.mrb[213].mxu0  ;;  %29867 = vmatprep.mubr.msk.f32.mxu0 %vm293_vm2, %v19072_v36  ;;  %v35283_v23 = vpop.eup %30961  ;;  %v36563_v36 = vld [vmem:[#allocation23_spill] sm:$0xff] }
0x1748   :  { %29868 = vmatmul.mubr.msk.f32.gmra.mrb[230].mxu0 %vm293_vm2, %v35046_v43  ;;  %v21288_v62 = vsel %vm293_vm2, %v35283_v23, 0.0  ;;  %v35289_v51 = vpop.eup %30963  ;;  %v36564_v37 = vld [vmem:[#allocation9_spill] sm:$0xff] }
0x1749   :  { %21289 = vadd.xlane.f32.xlu0 %v21288_v62  ;;  %v21297_v0 = vsel %vm293_vm2, %v35289_v51, 0.0  ;;  %v36565_v62 = vld [vmem:[#allocation14_spill] sm:$0xff] }
0x174a   :  { %v19224_v47 = vpop.f32.mrb[214].mxu0 }
0x174b   :  { %v29838_v46 = vpop.f32.mrb[215].mxu0  ;;  %29870 = vmatprep.mubr.msk.f32.mxu0 %vm293_vm2, %v19224_v47  ;;  %v35292_v59 = vpop.eup %30965  ;;  %v36566_v47 = vld [vmem:[#allocation19_spill] sm:$0xff] }
0x174c   :  { %29871 = vmatmul.mubr.msk.f32.gmra.mrb[232].mxu0 %vm293_vm2, %v35053_v56  ;;  %v21294_v43 = vsel %vm293_vm2, %v35292_v59, 0.0  ;;  %v36567_v46 = vld [vmem:[#allocation24_spill] sm:$0xff] }
0x174d   :  { %29875 = vmatprep.mubr.msk.f32.mxu0 %vm293_vm2, %v36551_v60  ;;  %21298 = vadd.xlane.f32.xlu0 %v21297_v0  ;;  %v36568_v0 = vld [vmem:[#allocation10_spill] sm:$0xff]  ;;  %v35404_v60 = vpop.permute.xlu1 %22406 }
0x174e   :  { %21295 = vadd.xlane.f32.xlu1 %v21294_v43  ;;  %v35302_v44 = vpop.eup %30967  ;;  %v35398_v43 = vpop.permute.xlu0 %22482 }
0x174f   :  { %v35304_v11 = vpop.eup %30969  ;;  %v21303_v56 = vsel %vm293_vm2, %v35302_v44, 0.0 }
0x1750   :  { %29876 = vmatmul.mubr.msk.f32.vlgmr.msra.gmra.mrb[216].mxu0 %vm293_vm2, %v36552_v7  ;;  %v21300_v28 = vsel %vm293_vm2, %v35304_v11, 0.0 }
0x1751   :  { %29993 = vmatpush3.msra.mxu0 %v35166_v16  ;;  %29878 = vmatprep.mubr.msk.f32.mxu0 %vm293_vm2, %v36553_v27  ;;  %v36557_v16 = vld [vmem:[#allocation12_spill] sm:$0xff] }
0x1752   :  { %21304 = vadd.xlane.f32.xlu0 %v21303_v56  ;;  %21301 = vadd.xlane.f32.xlu1 %v21300_v28 }
0x1753   :  { %30002 = vmatprep.subr.mxu0 %v36411_v13 }
0x1754   :  { %29879 = vmatmul.mubr.msk.f32.gmra.mrb[218].mxu0 %vm293_vm2, %v36554_v39 }
0x1755   :  { %29881 = vmatprep.mubr.msk.f32.mxu0 %vm293_vm2, %v36555_v35 }
0x1758   :  { %29882 = vmatmul.mubr.msk.f32.gmra.mrb[220].mxu0 %vm293_vm2, %v36556_v61 }
0x1759   :  { %29884 = vmatprep.mubr.msk.f32.mxu0 %vm293_vm2, %v36557_v16 }
0x175c   :  { %29885 = vmatmul.mubr.msk.f32.gmra.mrb[222].mxu0 %vm293_vm2, %v36558_v55 }
0x175d   :  { %29887 = vmatprep.mubr.msk.f32.mxu0 %vm293_vm2, %v36559_v25 }
0x1760   :  { %29888 = vmatmul.mubr.msk.f32.gmra.mrb[224].mxu0 %vm293_vm2, %v36560_v1  ;;  %v36570_v1 = vld [vmem:[#allocation34_spill] sm:$0xff] }
0x1761   :  { %29890 = vmatprep.mubr.msk.f32.mxu0 %vm293_vm2, %v36561_v33 }
0x1763   :  { %22558 = vrot.lane.b32.xlu1 %v33827_v49, %s31196_s22 }
0x1764   :  { %29891 = vmatmul.mubr.msk.f32.gmra.mrb[226].mxu0 %vm293_vm2, %v36562_v26  ;;  %v36571_v26 = vld [vmem:[#allocation33_spill] sm:$0xff] }
0x1765   :  { %29893 = vmatprep.mubr.msk.f32.mxu0 %vm293_vm2, %v36563_v36 }
0x1767   :  { %22939 = vrot.lane.b32.xlu1 %v33750_v29, %s31197_s27 }
0x1768   :  { %22634 = vrot.lane.b32.xlu0 %v33753_v48, %s31196_s22  ;;  %29894 = vmatmul.mubr.msk.f32.gmra.mrb[228].mxu0 %vm293_vm2, %v36564_v37 }
0x1769   :  { %29896 = vmatprep.mubr.msk.f32.mxu0 %vm293_vm2, %v36565_v62 }
0x176b   :  { %23017 = vrot.lane.b32.xlu1 %v36537_v18, %s31197_s27 }
0x176c   :  { %22937 = vrot.lane.b32.xlu0 %v33750_v29, %s31198_s28  ;;  %29897 = vmatmul.mubr.msk.f32.gmra.mrb[230].mxu0 %vm293_vm2, %v36566_v47  ;;  %v36573_v47 = vld [vmem:[#allocation4_spill] sm:$0xff] }
0x176d   :  { %29899 = vmatprep.mubr.msk.f32.mxu0 %vm293_vm2, %v36567_v46 }
0x176f   :  { %23095 = vrot.lane.b32.xlu1 %v36535_v21, %s31197_s27 }
0x1770   :  { %23015 = vrot.lane.b32.xlu0 %v36537_v18, %s31198_s28  ;;  %29900 = vmatmul.mubr.msk.f32.gmra.mrb[232].mxu0 %vm293_vm2, %v36568_v0 }
0x1771   :  { %29994 = vmatprep.mubr.msk.f32.mxu0 %vm31188_vm1, %v36411_v13 }
0x1773   :  { %23173 = vrot.lane.b32.xlu1 %v36539_v17, %s31197_s27 }
0x1774   :  { %23093 = vrot.lane.b32.xlu0 %v36535_v21, %s31198_s28 }
0x1777   :  { %23251 = vrot.lane.b32.xlu1 %v36536_v15, %s31197_s27 }
0x1778   :  { %23171 = vrot.lane.b32.xlu0 %v36539_v17, %s31198_s28 }
0x177b   :  { %23329 = vrot.lane.b32.xlu1 %v36541_v58, %s31197_s27 }
0x177c   :  { %23249 = vrot.lane.b32.xlu0 %v36536_v15, %s31198_s28 }
0x177f   :  { %23407 = vrot.lane.b32.xlu1 %v36538_v24, %s31197_s27 }
0x1780   :  { %23327 = vrot.lane.b32.xlu0 %v36541_v58, %s31198_s28 }
0x1783   :  { %23485 = vrot.lane.b32.xlu1 %v36543_v5, %s31197_s27 }
0x1784   :  { %23405 = vrot.lane.b32.xlu0 %v36538_v24, %s31198_s28 }
0x1787   :  { %23563 = vrot.lane.b32.xlu1 %v36540_v53, %s31197_s27 }
0x1788   :  { %23483 = vrot.lane.b32.xlu0 %v36543_v5, %s31198_s28 }
0x178b   :  { %23561 = vrot.lane.b32.xlu1 %v36540_v53, %s31198_s28 }
0x178c   :  { %23641 = vrot.lane.b32.xlu0 %v36544_v8, %s31197_s27 }
0x178f   :  { %23719 = vrot.lane.b32.xlu1 %v36542_v40, %s31197_s27 }
0x1790   :  { %23639 = vrot.lane.b32.xlu0 %v36544_v8, %s31198_s28 }
0x1793   :  { %23717 = vrot.lane.b32.xlu1 %v36542_v40, %s31198_s28 }
0x1794   :  { %23797 = vrot.lane.b32.xlu0 %v33735_v12, %s31197_s27 }
0x1797   :  { %23875 = vrot.lane.b32.xlu1 %v33783_v34, %s31197_s27 }
0x1798   :  { %23795 = vrot.lane.b32.xlu0 %v33735_v12, %s31198_s28 }
0x1799   :  { %v21254_v7 = vpop.xlane.xlu0 %21253 }
0x179a   :  { %30971 = vrcp.f32 %v21254_v7 }
0x179b   :  { %23873 = vrot.lane.b32.xlu1 %v33783_v34, %s31198_s28 }
0x179c   :  { %23953 = vrot.lane.b32.xlu0 %v33740_v31, %s31197_s27 }
0x179d   :  { %v21257_v56 = vpop.xlane.xlu1 %21256 }
0x179e   :  { %30973 = vrcp.f32 %v21257_v56 }
0x179f   :  { %24031 = vrot.lane.b32.xlu1 %v33790_v9, %s31197_s27 }
0x17a0   :  { %23951 = vrot.lane.b32.xlu0 %v33740_v31, %s31198_s28 }
0x17a1   :  { %v21260_v28 = vpop.xlane.xlu0 %21259 }
0x17a2   :  { %30975 = vrcp.f32 %v21260_v28 }
0x17a3   :  { %24029 = vrot.lane.b32.xlu1 %v33790_v9, %s31198_s28 }
0x17a4   :  { %24109 = vrot.lane.b32.xlu0 %v33745_v2, %s31197_s27  ;;  %v30972_v27 = vpop.eup %30971 }
0x17a5   :  { %v21307_v39 = vmul.f32 %v30972_v27, %v35196_v22  ;;  %v21263_v35 = vpop.xlane.xlu1 %21262 }
0x17a6   :  { %30977 = vrcp.f32 %v21263_v35 }
0x17a7   :  { %24187 = vrot.lane.b32.xlu1 %v33827_v49, %s31197_s27  ;;  %29995 = vmatmul.mubr.msk.f32.vlgmr.msra.gmra.mrb[234].mxu0 %vm293_vm2, %v21307_v39 }
0x17a8   :  { %24107 = vrot.lane.b32.xlu0 %v33745_v2, %s31198_s28  ;;  %v30974_v61 = vpop.eup %30973  ;;  %30003 = vmatpush3.msra.mxu0 %v35170_v32 }
0x17a9   :  { %30004 = vmatprep.mubr.msk.f32.mxu0 %vm31188_vm1, %v36411_v13  ;;  %v21309_v16 = vmul.f32 %v30974_v61, %v35201_v52  ;;  %v21266_v55 = vpop.xlane.xlu0 %21265  ;;  %30012 = vmatprep.subr.mxu0 %v36411_v13 }
0x17aa   :  { %30979 = vrcp.f32 %v21266_v55 }
0x17ab   :  { %24185 = vrot.lane.b32.xlu1 %v33827_v49, %s31198_s28  ;;  %30000 = vmatmul.mubr.msk.f32.vlgmr.msra.gmra.mrb[50].mxu1 %vm293_vm2, %v21309_v16  ;;  %v36574_v16 = vld [vmem:[#allocation35_spill] sm:$0xff] }
0x17ac   :  { %24265 = vrot.lane.b32.xlu0 %v33753_v48, %s31197_s27  ;;  %v30976_v22 = vpop.eup %30975  ;;  %30008 = vmatpush3.msra.mxu1 %v35164_v63 }
0x17ad   :  { %30009 = vmatprep.mubr.msk.f32.mxu1 %vm31188_vm1, %v36411_v13  ;;  %v21269_v32 = vpop.xlane.xlu1 %21268  ;;  %v21311_v52 = vmul.f32 %v30976_v22, %v35206_v3  ;;  %30017 = vmatprep.subr.mxu1 %v36411_v13 }
0x17ae   :  { %30981 = vrcp.f32 %v21269_v32 }
0x17af   :  { %24633 = vrot.lane.b32.xlu1 %v36537_v18, %s31199_s29  ;;  %30005 = vmatmul.mubr.msk.f32.vlgmr.msra.gmra.mrb[236].mxu0 %vm293_vm2, %v21311_v52 }
0x17b0   :  { %24263 = vrot.lane.b32.xlu0 %v33753_v48, %s31198_s28  ;;  %v30978_v25 = vpop.eup %30977  ;;  %30013 = vmatpush3.msra.mxu0 %v35174_v54 }
0x17b1   :  { %30014 = vmatprep.mubr.msk.f32.mxu0 %vm31188_vm1, %v36411_v13  ;;  %v21313_v63 = vmul.f32 %v30978_v25, %v35211_v42  ;;  %v21272_v3 = vpop.xlane.xlu0 %21271  ;;  %30022 = vmatprep.subr.mxu0 %v36411_v13 }
0x17b2   :  { %30983 = vrcp.f32 %v21272_v3 }
0x17b3   :  { %24785 = vrot.lane.b32.xlu1 %v36539_v17, %s31199_s29  ;;  %30010 = vmatmul.mubr.msk.f32.vlgmr.msra.gmra.mrb[52].mxu1 %vm293_vm2, %v21313_v63 }
0x17b4   :  { %24557 = vrot.lane.b32.xlu0 %v33750_v29, %s31199_s29  ;;  %v30980_v18 = vpop.eup %30979  ;;  %30018 = vmatpush3.msra.mxu1 %v35168_v14 }
0x17b5   :  { %30019 = vmatprep.mubr.msk.f32.mxu1 %vm31188_vm1, %v36411_v13  ;;  %v21275_v54 = vpop.xlane.xlu1 %21274  ;;  %v21315_v42 = vmul.f32 %v30980_v18, %v35216_v41  ;;  %30027 = vmatprep.subr.mxu1 %v36411_v13 }
0x17b6   :  { %30985 = vrcp.f32 %v21275_v54 }
0x17b7   :  { %24937 = vrot.lane.b32.xlu1 %v36541_v58, %s31199_s29  ;;  %30015 = vmatmul.mubr.msk.f32.vlgmr.msra.gmra.mrb[238].mxu0 %vm293_vm2, %v21315_v42  ;;  %v36569_v58 = vld [vmem:[#allocation26_spill] sm:$0xff] }
0x17b8   :  { %24709 = vrot.lane.b32.xlu0 %v36535_v21, %s31199_s29  ;;  %v30982_v29 = vpop.eup %30981  ;;  %30023 = vmatpush3.msra.mxu0 %v35172_v10 }
0x17b9   :  { %30024 = vmatprep.mubr.msk.f32.mxu0 %vm31188_vm1, %v36411_v13  ;;  %v21317_v17 = vmul.f32 %v30982_v29, %v35221_v57  ;;  %v21278_v14 = vpop.xlane.xlu0 %21277  ;;  %30032 = vmatprep.subr.mxu0 %v36411_v13 }
0x17ba   :  { %30987 = vrcp.f32 %v21278_v14 }
0x17bb   :  { %30020 = vmatmul.mubr.msk.f32.vlgmr.msra.gmra.mrb[54].mxu1 %vm293_vm2, %v21317_v17 }
0x17bc   :  { %24861 = vrot.lane.b32.xlu0 %v36536_v15, %s31199_s29  ;;  %v30984_v21 = vpop.eup %30983  ;;  %30028 = vmatpush3.msra.mxu1 %v36569_v58 }
0x17bd   :  { %30029 = vmatprep.mubr.msk.f32.mxu1 %vm31188_vm1, %v36411_v13  ;;  %v21281_v10 = vpop.xlane.xlu1 %21280  ;;  %v21319_v41 = vmul.f32 %v30984_v21, %v35226_v45  ;;  %30037 = vmatprep.subr.mxu1 %v36411_v13 }
0x17be   :  { %30989 = vrcp.f32 %v21281_v10 }
0x17bf   :  { %30025 = vmatmul.mubr.msk.f32.vlgmr.msra.gmra.mrb[240].mxu0 %vm293_vm2, %v21319_v41 }
0x17c0   :  { %v30986_v57 = vpop.eup %30985  ;;  %30033 = vmatpush3.msra.mxu0 %v36570_v1  ;;  %30034 = vmatprep.mubr.msk.f32.mxu0 %vm31188_vm1, %v36411_v13 }
0x17c1   :  { %v21321_v15 = vmul.f32 %v30986_v57, %v35230_v6  ;;  %30042 = vmatprep.subr.mxu0 %v36411_v13  ;;  %v36572_v6 = vld [vmem:[#allocation15_spill] sm:$0xff] }
0x17c3   :  { %30030 = vmatmul.mubr.msk.f32.vlgmr.msra.gmra.mrb[56].mxu1 %vm293_vm2, %v21321_v15 }
0x17c4   :  { %v30988_v33 = vpop.eup %30987  ;;  %30038 = vmatpush3.msra.mxu1 %v36571_v26  ;;  %30039 = vmatprep.mubr.msk.f32.mxu1 %vm31188_vm1, %v36411_v13 }
0x17c5   :  { %v21287_v45 = vpop.xlane.xlu1 %21286  ;;  %v21323_v36 = vmul.f32 %v30988_v33, %v35235_v38  ;;  %30047 = vmatprep.subr.mxu1 %v36411_v13 }
0x17c6   :  { %30991 = vrcp.f32 %v21287_v45 }
0x17c7   :  { %30035 = vmatmul.mubr.msk.f32.vlgmr.msra.gmra.mrb[242].mxu0 %vm293_vm2, %v21323_v36 }
0x17c8   :  { %v30990_v37 = vpop.eup %30989  ;;  %30043 = vmatpush3.msra.mxu0 %v36572_v6  ;;  %30044 = vmatprep.mubr.msk.f32.mxu0 %vm31188_vm1, %v36411_v13 }
0x17c9   :  { %v21325_v62 = vmul.f32 %v30990_v37, %v35239_v4  ;;  %30052 = vmatprep.subr.mxu0 %v36411_v13 }
0x17cb   :  { %30040 = vmatmul.mubr.msk.f32.vlgmr.msra.gmra.mrb[58].mxu1 %vm293_vm2, %v21325_v62 }
0x17cc   :  { %30048 = vmatpush3.msra.mxu1 %v36573_v47  ;;  %30049 = vmatprep.mubr.msk.f32.mxu1 %vm31188_vm1, %v36411_v13 }
0x17cd   :  { %v21293_v38 = vpop.xlane.xlu1 %21292  ;;  %30057 = vmatprep.subr.mxu1 %v36411_v13 }
0x17ce   :  { %30993 = vrcp.f32 %v21293_v38 }
0x17d0   :  { %v30992_v46 = vpop.eup %30991 }
0x17d1   :  { %v21329_v0 = vmul.f32 %v30992_v46, %v35253_v20 }
0x17d2   :  { %v21284_v7 = vpop.xlane.xlu0 %21283 }
0x17d3   :  { %30995 = vrcp.f32 %v21284_v7  ;;  %30050 = vmatmul.mubr.msk.f32.vlgmr.msra.gmra.mrb[60].mxu1 %vm293_vm2, %v21329_v0 }
0x17d4   :  { %30058 = vmatpush3.msra.mxu1 %v35246_v30  ;;  %30059 = vmatprep.mubr.msk.f32.mxu1 %vm31188_vm1, %v36411_v13 }
0x17d5   :  { %30067 = vmatprep.subr.mxu1 %v36411_v13 }
0x17d6   :  { %v21290_v4 = vpop.xlane.xlu0 %21289 }
0x17d7   :  { %30997 = vrcp.f32 %v21290_v4 }
0x17d8   :  { %v30994_v56 = vpop.eup %30993 }
0x17d9   :  { %v21333_v28 = vmul.f32 %v30994_v56, %v35266_v50 }
0x17da   :  { %v21299_v39 = vpop.xlane.xlu0 %21298 }
0x17db   :  { %v21296_v27 = vpop.xlane.xlu1 %21295  ;;  %30060 = vmatmul.mubr.msk.f32.vlgmr.msra.gmra.mrb[62].mxu1 %vm293_vm2, %v21333_v28 }
0x17dc   :  { %30999 = vrcp.f32 %v21296_v27  ;;  %30068 = vmatpush3.msra.mxu1 %v35398_v43  ;;  %30069 = vmatprep.mubr.msk.f32.mxu1 %vm31188_vm1, %v36411_v13 }
0x17dd   :  { %31001 = vrcp.f32 %v21299_v39  ;;  %v30996_v30 = vpop.eup %30995  ;;  %30077 = vmatprep.subr.mxu1 %v36411_v13 }
0x17de   :  { %v21327_v61 = vmul.f32 %v30996_v30, %v35276_v19 }
0x17df   :  { %v21302_v20 = vpop.xlane.xlu1 %21301  ;;  %v21305_v35 = vpop.xlane.xlu0 %21304 }
0x17e0   :  { %31003 = vrcp.f32 %v21302_v20  ;;  %30045 = vmatmul.mubr.msk.f32.vlgmr.msra.gmra.mrb[244].mxu0 %vm293_vm2, %v21327_v61 }
0x17e1   :  { %31005 = vrcp.f32 %v21305_v35  ;;  %v30998_v50 = vpop.eup %30997  ;;  %30053 = vmatpush3.msra.mxu0 %v36574_v16  ;;  %30054 = vmatprep.mubr.msk.f32.mxu0 %vm31188_vm1, %v36411_v13 }
0x17e2   :  { %30062 = vmatprep.subr.mxu0 %v36411_v13  ;;  %v21331_v22 = vmul.f32 %v30998_v50, %v35283_v23 }
0x17e3   :  { %v22559_v43 = vpop.permute.xlu1 %22558  ;;  %v22635_v55 = vpop.permute.xlu0 %22634 }
0x17e4   :  { %30055 = vmatmul.mubr.msk.f32.vlgmr.msra.gmra.mrb[246].mxu0 %vm293_vm2, %v21331_v22 }
0x17e5   :  { %30063 = vmatpush3.msra.mxu0 %v35404_v60  ;;  %30064 = vmatprep.mubr.msk.f32.mxu0 %vm31188_vm1, %v36411_v13  ;;  %v13128_v60 = vld [vmem:[%s36369_s7 + $0x10] sm:$0xff] }
0x17e6   :  { %v31000_v32 = vpop.eup %30999  ;;  %30072 = vmatprep.subr.mxu0 %v36411_v13 }
0x17e7   :  { %v31002_v19 = vpop.eup %31001  ;;  %v22940_v52 = vpop.permute.xlu1 %22939  ;;  %v21335_v63 = vmul.f32 %v31000_v32, %v35292_v59 }
0x17e8   :  { %v22938_v25 = vpop.permute.xlu0 %22937  ;;  %v21337_v3 = vmul.f32 %v31002_v19, %v35289_v51 }
0x17e9   :  { %30065 = vmatmul.mubr.msk.f32.vlgmr.msra.gmra.mrb[248].mxu0 %vm293_vm2, %v21335_v63 }
0x17ea   :  { %v31004_v23 = vpop.eup %31003  ;;  %30070 = vmatmul.mubr.msk.f32.vlgmr.msra.gmra.mrb[64].mxu1 %vm293_vm2, %v21337_v3  ;;  %30073 = vmatpush3.msra.mxu0 %v22559_v43 }
0x17eb   :  { %v31006_v18 = vpop.eup %31005  ;;  %30078 = vmatpush3.msra.mxu1 %v22635_v55  ;;  %v23018_v54 = vpop.permute.xlu1 %23017  ;;  %30074 = vmatprep.mubr.msk.f32.mxu0 %vm31188_vm1, %v36411_v13  ;;  %v21339_v59 = vmul.f32 %v31004_v23, %v35304_v11 }
0x17ec   :  { %v23016_v42 = vpop.permute.xlu0 %23015  ;;  %v21341_v51 = vmul.f32 %v31006_v18, %v35302_v44  ;;  %30079 = vmatprep.mubr.msk.f32.mxu1 %vm31188_vm1, %v36411_v13  ;;  %30111 = vmatprep.subr.mxu1 %v36411_v13 }
0x17ed   :  { %30075 = vmatmul.mubr.msk.f32.vlgmr.msra.gmra.mrb[250].mxu0 %vm293_vm2, %v21339_v59  ;;  %30082 = vmatprep.subr.mxu0 %v13128_v60 }
0x17ee   :  { %30080 = vmatmul.mubr.msk.f32.vlgmr.msra.gmra.mrb[66].mxu1 %vm293_vm2, %v21341_v51  ;;  %30083 = vmatpush3.msra.mxu0 %v13128_v60 }
0x17ef   :  { %v23096_v29 = vpop.permute.xlu1 %23095  ;;  %30113 = vmatprep.mubr.msk.f32.mxu1 %vm31188_vm1, %v36411_v13  ;;  %30156 = vmatprep.subr.mxu0 %v36411_v13 }
0x17f0   :  { %v23094_v17 = vpop.permute.xlu0 %23093 }
0x17f2   :  { %30112 = vmatpush3.xpose.msk.msra.mxu1 %vm293_vm2, %v22940_v52 }
0x17f3   :  { %v23174_v44 = vpop.permute.xlu1 %23173  ;;  %30116 = vmatprep.subr.mxu1 %v36411_v13 }
0x17f4   :  { %v23172_v11 = vpop.permute.xlu0 %23171 }
0x17f5   :  { %30114 = vmatmul.mubr.msk.f32.vlgmr.msra.gmra.mrb[68].mxu1 %vm293_vm2, %v22938_v25 }
0x17f6   :  { %30117 = vmatpush3.xpose.msk.msra.mxu1 %vm293_vm2, %v23018_v54  ;;  %30118 = vmatprep.mubr.msk.f32.mxu1 %vm31188_vm1, %v36411_v13 }
0x17f7   :  { %v23252_v14 = vpop.permute.xlu1 %23251  ;;  %30121 = vmatprep.subr.mxu1 %v36411_v13 }
0x17f8   :  { %v23250_v21 = vpop.permute.xlu0 %23249 }
0x17f9   :  { %30119 = vmatmul.mubr.msk.f32.vlgmr.msra.gmra.mrb[70].mxu1 %vm293_vm2, %v23016_v42 }
0x17fa   :  { %30122 = vmatpush3.xpose.msk.msra.mxu1 %vm293_vm2, %v23096_v29  ;;  %30123 = vmatprep.mubr.msk.f32.mxu1 %vm31188_vm1, %v36411_v13 }
0x17fb   :  { %v23330_v58 = vpop.permute.xlu1 %23329  ;;  %30126 = vmatprep.subr.mxu1 %v36411_v13 }
0x17fc   :  { %v23328_v10 = vpop.permute.xlu0 %23327 }
0x17fd   :  { %30124 = vmatmul.mubr.msk.f32.vlgmr.msra.gmra.mrb[72].mxu1 %vm293_vm2, %v23094_v17 }
0x17fe   :  { %30127 = vmatpush3.xpose.msk.msra.mxu1 %vm293_vm2, %v23174_v44  ;;  %30128 = vmatprep.mubr.msk.f32.mxu1 %vm31188_vm1, %v36411_v13 }
0x17ff   :  { %v23408_v41 = vpop.permute.xlu1 %23407  ;;  %30131 = vmatprep.subr.mxu1 %v36411_v13 }
0x1800   :  { %v23406_v57 = vpop.permute.xlu0 %23405 }
0x1801   :  { %30129 = vmatmul.mubr.msk.f32.vlgmr.msra.gmra.mrb[74].mxu1 %vm293_vm2, %v23172_v11 }
0x1802   :  { %30132 = vmatpush3.xpose.msk.msra.mxu1 %vm293_vm2, %v23252_v14  ;;  %30133 = vmatprep.mubr.msk.f32.mxu1 %vm31188_vm1, %v36411_v13 }
0x1803   :  { %v23486_v1 = vpop.permute.xlu1 %23485  ;;  %30136 = vmatprep.subr.mxu1 %v36411_v13 }
0x1804   :  { %v23484_v15 = vpop.permute.xlu0 %23483 }
0x1805   :  { %30134 = vmatmul.mubr.msk.f32.vlgmr.msra.gmra.mrb[76].mxu1 %vm293_vm2, %v23250_v21 }
0x1806   :  { %30137 = vmatpush3.xpose.msk.msra.mxu1 %vm293_vm2, %v23330_v58  ;;  %30138 = vmatprep.mubr.msk.f32.mxu1 %vm31188_vm1, %v36411_v13 }
0x1807   :  { %v23564_v33 = vpop.permute.xlu1 %23563  ;;  %30141 = vmatprep.subr.mxu1 %v36411_v13 }
0x1808   :  { %v23642_v26 = vpop.permute.xlu0 %23641 }
0x1809   :  { %30139 = vmatmul.mubr.msk.f32.vlgmr.msra.gmra.mrb[78].mxu1 %vm293_vm2, %v23328_v10 }
0x180a   :  { %30142 = vmatpush3.xpose.msk.msra.mxu1 %vm293_vm2, %v23408_v41  ;;  %30143 = vmatprep.mubr.msk.f32.mxu1 %vm31188_vm1, %v36411_v13 }
0x180b   :  { %v23562_v45 = vpop.permute.xlu1 %23561  ;;  %30146 = vmatprep.subr.mxu1 %v36411_v13 }
0x180c   :  { %v35575_v36 = vpop.permute.xlu0 %23639 }
0x180d   :  { %30144 = vmatmul.mubr.msk.f32.vlgmr.msra.gmra.mrb[80].mxu1 %vm293_vm2, %v23406_v57 }
0x180e   :  { %30147 = vmatpush3.xpose.msk.msra.mxu1 %vm293_vm2, %v23486_v1  ;;  %30148 = vmatprep.mubr.msk.f32.mxu1 %vm31188_vm1, %v36411_v13 }
0x180f   :  { %v23720_v37 = vpop.permute.xlu1 %23719  ;;  %30151 = vmatprep.subr.mxu1 %v36411_v13 }
0x1810   :  { %v35582_v6 = vpop.permute.xlu0 %23797 }
0x1811   :  { %30149 = vmatmul.mubr.msk.f32.vlgmr.msra.gmra.mrb[82].mxu1 %vm293_vm2, %v23484_v15 }
0x1812   :  { %30152 = vmatpush3.xpose.msk.msra.mxu1 %vm293_vm2, %v23564_v33  ;;  %30153 = vmatprep.mubr.msk.f32.mxu1 %vm31188_vm1, %v36411_v13 }
0x1813   :  { %v23718_v62 = vpop.permute.xlu1 %23717  ;;  %30161 = vmatprep.subr.mxu1 %v36411_v13 }
0x1814   :  { %v35589_v47 = vpop.permute.xlu0 %23795 }
0x1815   :  { %30154 = vmatmul.mubr.msk.f32.vlgmr.msra.gmra.mrb[84].mxu1 %vm293_vm2, %v23562_v45 }
0x1816   :  { %30162 = vmatpush3.xpose.msk.msra.mxu1 %vm293_vm2, %v23720_v37  ;;  %30163 = vmatprep.mubr.msk.f32.mxu1 %vm31188_vm1, %v36411_v13 }
0x1817   :  { %v23876_v38 = vpop.permute.xlu1 %23875  ;;  %30171 = vmatprep.subr.mxu1 %v36411_v13 }
0x1818   :  { %v35596_v46 = vpop.permute.xlu0 %23953 }
0x1819   :  { %30164 = vmatmul.mubr.msk.f32.vlgmr.msra.gmra.mrb[86].mxu1 %vm293_vm2, %v23718_v62 }
0x181a   :  { %30172 = vmatpush3.xpose.msk.msra.mxu1 %vm293_vm2, %v23876_v38  ;;  %30173 = vmatprep.mubr.msk.f32.mxu1 %vm31188_vm1, %v36411_v13 }
0x181b   :  { %v23874_v0 = vpop.permute.xlu1 %23873  ;;  %30181 = vmatprep.subr.mxu1 %v36411_v13 }
0x181c   :  { %v35602_v7 = vpop.permute.xlu0 %23951 }
0x181d   :  { %30174 = vmatmul.mubr.msk.f32.vlgmr.msra.gmra.mrb[88].mxu1 %vm293_vm2, %v23874_v0 }
0x181e   :  { %30183 = vmatprep.mubr.msk.f32.mxu1 %vm31188_vm1, %v36411_v13 }
0x181f   :  { %v24032_v4 = vpop.permute.xlu1 %24031 }
0x1820   :  { %v35608_v56 = vpop.permute.xlu0 %24109  ;;  %30182 = vmatpush3.xpose.msk.msra.mxu1 %vm293_vm2, %v24032_v4 }
0x1821   :  { %30191 = vmatprep.subr.mxu1 %v36411_v13 }
0x1823   :  { %v24030_v28 = vpop.permute.xlu1 %24029 }
0x1824   :  { %v35612_v27 = vpop.permute.xlu0 %24107  ;;  %30184 = vmatmul.mubr.msk.f32.vlgmr.msra.gmra.mrb[90].mxu1 %vm293_vm2, %v24030_v28 }
0x1825   :  { %30193 = vmatprep.mubr.msk.f32.mxu1 %vm31188_vm1, %v36411_v13 }
0x1827   :  { %v24188_v39 = vpop.permute.xlu1 %24187 }
0x1828   :  { %v35617_v30 = vpop.permute.xlu0 %24265  ;;  %30192 = vmatpush3.xpose.msk.msra.mxu1 %vm293_vm2, %v24188_v39 }
0x1829   :  { %30201 = vmatprep.subr.mxu1 %v36411_v13 }
0x182b   :  { %v24186_v20 = vpop.permute.xlu1 %24185 }
0x182c   :  { %v35621_v35 = vpop.permute.xlu0 %24263  ;;  %30194 = vmatmul.mubr.msk.f32.vlgmr.msra.gmra.mrb[92].mxu1 %vm293_vm2, %v24186_v20 }
0x182d   :  { %30203 = vmatprep.mubr.msk.f32.mxu1 %vm31188_vm1, %v36411_v13 }
0x1830   :  { %v24558_v61 = vpop.permute.xlu0 %24557 }
0x1831   :  { %30202 = vmatpush3.msra.mxu1 %v24558_v61 }
0x1832   :  { %30211 = vmatprep.subr.mxu1 %v36411_v13 }
0x187a   :  { %v21414_v50 = vpop.f32.mrb[234].mxu0 }
0x187b   :  { %v29996_v16 = vpop.f32.mrb[235].mxu0  ;;  %30084 = vmatprep.mubr.msk.f32.mxu0 %vm293_vm2, %v21414_v50 }
0x187e   :  { %v21490_v43 = vpop.f32.mrb[50].mxu1 }
0x187f   :  { %v30001_v55 = vpop.f32.mrb[51].mxu1  ;;  %30085 = vmatmul.mubr.msk.f32.vlgmr.msra.gmra.mrb[216].mxu0 %vm293_vm2, %v21490_v43 }
0x1880   :  { %30157 = vmatpush3.xpose.msk.msra.mxu0 %vm293_vm2, %v23642_v26  ;;  %v24634_v55 = vpop.permute.xlu1 %24633 }
0x1881   :  { %30166 = vmatprep.subr.mxu0 %v36411_v13 }
0x1882   :  { %v21566_v22 = vpop.f32.mrb[236].mxu0 }
0x1883   :  { %v30006_v32 = vpop.f32.mrb[237].mxu0  ;;  %30087 = vmatprep.mubr.msk.f32.mxu0 %vm293_vm2, %v21566_v22 }
0x1886   :  { %v21642_v19 = vpop.f32.mrb[52].mxu1 }
0x1887   :  { %v30011_v52 = vpop.f32.mrb[53].mxu1  ;;  %30088 = vmatmul.mubr.msk.f32.gmra.mrb[218].mxu0 %vm293_vm2, %v21642_v19 }
0x188a   :  { %v21718_v25 = vpop.f32.mrb[238].mxu0 }
0x188b   :  { %v30016_v63 = vpop.f32.mrb[239].mxu0  ;;  %30090 = vmatprep.mubr.msk.f32.mxu0 %vm293_vm2, %v21718_v25 }
0x188e   :  { %v21794_v3 = vpop.f32.mrb[54].mxu1 }
0x188f   :  { %v30021_v23 = vpop.f32.mrb[55].mxu1  ;;  %30091 = vmatmul.mubr.msk.f32.gmra.mrb[220].mxu0 %vm293_vm2, %v21794_v3 }
0x1892   :  { %v21870_v60 = vpop.f32.mrb[240].mxu0 }
0x1893   :  { %v30026_v18 = vpop.f32.mrb[241].mxu0  ;;  %30093 = vmatprep.mubr.msk.f32.mxu0 %vm293_vm2, %v21870_v60 }
0x1896   :  { %v21946_v54 = vpop.f32.mrb[56].mxu1 }
0x1897   :  { %v30031_v42 = vpop.f32.mrb[57].mxu1  ;;  %30094 = vmatmul.mubr.msk.f32.gmra.mrb[222].mxu0 %vm293_vm2, %v21946_v54 }
0x189a   :  { %v22022_v59 = vpop.f32.mrb[242].mxu0 }
0x189b   :  { %v30036_v51 = vpop.f32.mrb[243].mxu0  ;;  %30096 = vmatprep.mubr.msk.f32.mxu0 %vm293_vm2, %v22022_v59 }
0x189e   :  { %v22098_v29 = vpop.f32.mrb[58].mxu1 }
0x189f   :  { %v30041_v17 = vpop.f32.mrb[59].mxu1  ;;  %30097 = vmatmul.mubr.msk.f32.gmra.mrb[224].mxu0 %vm293_vm2, %v22098_v29 }
0x18a6   :  { %v22250_v44 = vpop.f32.mrb[60].mxu1 }
0x18a7   :  { %v30051_v11 = vpop.f32.mrb[61].mxu1 }
0x18ae   :  { %v22402_v14 = vpop.f32.mrb[62].mxu1 }
0x18af   :  { %v30061_v21 = vpop.f32.mrb[63].mxu1 }
0x18b3   :  { %v22174_v58 = vpop.f32.mrb[244].mxu0 }
0x18b4   :  { %v30046_v10 = vpop.f32.mrb[245].mxu0  ;;  %30099 = vmatprep.mubr.msk.f32.mxu0 %vm293_vm2, %v22174_v58 }
0x18b5   :  { %30100 = vmatmul.mubr.msk.f32.gmra.mrb[226].mxu0 %vm293_vm2, %v22250_v44 }
0x18b7   :  { %v22326_v41 = vpop.f32.mrb[246].mxu0 }
0x18b8   :  { %v30056_v57 = vpop.f32.mrb[247].mxu0  ;;  %30102 = vmatprep.mubr.msk.f32.mxu0 %vm293_vm2, %v22326_v41 }
0x18b9   :  { %30103 = vmatmul.mubr.msk.f32.gmra.mrb[228].mxu0 %vm293_vm2, %v22402_v14 }
0x18bc   :  { %v22478_v1 = vpop.f32.mrb[248].mxu0 }
0x18bd   :  { %v22554_v15 = vpop.f32.mrb[64].mxu1  ;;  %v30066_v33 = vpop.f32.mrb[249].mxu0  ;;  %30105 = vmatprep.mubr.msk.f32.mxu0 %vm293_vm2, %v22478_v1 }
0x18be   :  { %v30071_v26 = vpop.f32.mrb[65].mxu1  ;;  %30106 = vmatmul.mubr.msk.f32.gmra.mrb[230].mxu0 %vm293_vm2, %v22554_v15 }
0x18c0   :  { %v22630_v45 = vpop.f32.mrb[250].mxu0 }
0x18c1   :  { %v22706_v37 = vpop.f32.mrb[66].mxu1  ;;  %v30076_v62 = vpop.f32.mrb[251].mxu0  ;;  %30108 = vmatprep.mubr.msk.f32.mxu0 %vm293_vm2, %v22630_v45 }
0x18c2   :  { %v30081_v38 = vpop.f32.mrb[67].mxu1  ;;  %30109 = vmatmul.mubr.msk.f32.gmra.mrb[232].mxu0 %vm293_vm2, %v22706_v37 }
0x18c3   :  { %30158 = vmatprep.mubr.msk.f32.mxu0 %vm31188_vm1, %v36411_v13 }
0x18c6   :  { %30159 = vmatmul.mubr.msk.f32.vlgmr.msra.gmra.mrb[252].mxu0 %vm293_vm2, %v35575_v36 }
0x18c7   :  { %30167 = vmatpush3.xpose.msk.msra.mxu0 %vm293_vm2, %v35582_v6  ;;  %30168 = vmatprep.mubr.msk.f32.mxu0 %vm31188_vm1, %v36411_v13 }
0x18c8   :  { %v23011_v0 = vpop.f32.mrb[68].mxu1  ;;  %30176 = vmatprep.subr.mxu0 %v36411_v13 }
0x18c9   :  { %v35656_v4 = vmul.f32 0.35355338, %v23011_v0  ;;  %v30115_v28 = vpop.f32.mrb[69].mxu1 }
0x18ca   :  { %30169 = vmatmul.mubr.msk.f32.vlgmr.msra.gmra.mrb[254].mxu0 %vm293_vm2, %v35589_v47 }
0x18cb   :  { %v24359_v39 = vsel %vm293_vm2, %v35656_v4, -inf  ;;  %30177 = vmatpush3.xpose.msk.msra.mxu0 %vm293_vm2, %v35596_v46  ;;  %30178 = vmatprep.mubr.msk.f32.mxu0 %vm31188_vm1, %v36411_v13 }
0x18cc   :  { %24360 = vmax.xlane.f32.xlu1 %v24359_v39  ;;  %v23089_v36 = vpop.f32.mrb[70].mxu1  ;;  %30186 = vmatprep.subr.mxu0 %v36411_v13  ;;  %v35734_v39 = vpop.permute.xlu1 %24785 }
0x18cd   :  { %v35667_v6 = vmul.f32 0.35355338, %v23089_v36  ;;  %v30120_v20 = vpop.f32.mrb[71].mxu1  ;;  %v35736_v36 = vpop.permute.xlu0 %24709 }
0x18ce   :  { %30179 = vmatmul.mubr.msk.f32.vlgmr.msra.gmra.mrb[0].mxu0 %vm293_vm2, %v35602_v7 }
0x18cf   :  { %v24362_v47 = vsel %vm293_vm2, %v35667_v6, -inf  ;;  %30187 = vmatpush3.xpose.msk.msra.mxu0 %vm293_vm2, %v35608_v56  ;;  %30188 = vmatprep.mubr.msk.f32.mxu0 %vm31188_vm1, %v36411_v13 }
0x18d0   :  { %24363 = vmax.xlane.f32.xlu0 %v24362_v47  ;;  %v23167_v46 = vpop.f32.mrb[72].mxu1  ;;  %30196 = vmatprep.subr.mxu0 %v36411_v13  ;;  %v35738_v20 = vpop.permute.xlu1 %24937 }
0x18d1   :  { %v35678_v61 = vmul.f32 0.35355338, %v23167_v46  ;;  %v30125_v50 = vpop.f32.mrb[73].mxu1  ;;  %v35740_v47 = vpop.permute.xlu0 %24861 }
0x18d2   :  { %30189 = vmatmul.mubr.msk.f32.vlgmr.msra.gmra.mrb[2].mxu0 %vm293_vm2, %v35612_v27 }
0x18d3   :  { %v24365_v7 = vsel %vm293_vm2, %v35678_v61, -inf  ;;  %30197 = vmatpush3.xpose.msk.msra.mxu0 %vm293_vm2, %v35617_v30  ;;  %30198 = vmatprep.mubr.msk.f32.mxu0 %vm31188_vm1, %v36411_v13 }
0x18d4   :  { %24366 = vmax.xlane.f32.xlu0 %v24365_v7  ;;  %v23245_v56 = vpop.f32.mrb[74].mxu1  ;;  %30206 = vmatprep.subr.mxu0 %v36411_v13 }
0x18d5   :  { %v35689_v16 = vmul.f32 0.35355338, %v23245_v56  ;;  %v30130_v43 = vpop.f32.mrb[75].mxu1 }
0x18d6   :  { %30199 = vmatmul.mubr.msk.f32.vlgmr.msra.gmra.mrb[4].mxu0 %vm293_vm2, %v35621_v35 }
0x18d7   :  { %v24368_v27 = vsel %vm293_vm2, %v35689_v16, -inf  ;;  %30207 = vmatpush3.msra.mxu0 %v24634_v55  ;;  %30208 = vmatprep.mubr.msk.f32.mxu0 %vm31188_vm1, %v36411_v13 }
0x18d8   :  { %24369 = vmax.xlane.f32.xlu1 %v24368_v27  ;;  %v23323_v30 = vpop.f32.mrb[76].mxu1  ;;  %30216 = vmatprep.subr.mxu0 %v36411_v13 }
0x18d9   :  { %v35698_v22 = vmul.f32 0.35355338, %v23323_v30  ;;  %v30135_v32 = vpop.f32.mrb[77].mxu1 }
0x18db   :  { %v24371_v19 = vsel %vm293_vm2, %v35698_v22, -inf }
0x18dc   :  { %24372 = vmax.xlane.f32.xlu0 %v24371_v19  ;;  %v23401_v52 = vpop.f32.mrb[78].mxu1 }
0x18dd   :  { %v35702_v35 = vmul.f32 0.35355338, %v23401_v52  ;;  %v30140_v25 = vpop.f32.mrb[79].mxu1 }
0x18df   :  { %v24374_v63 = vsel %vm293_vm2, %v35702_v35, -inf }
0x18e0   :  { %24375 = vmax.xlane.f32.xlu1 %v24374_v63  ;;  %v23479_v3 = vpop.f32.mrb[80].mxu1 }
0x18e1   :  { %v35706_v23 = vmul.f32 0.35355338, %v23479_v3  ;;  %v30145_v60 = vpop.f32.mrb[81].mxu1 }
0x18e3   :  { %v24377_v18 = vsel %vm293_vm2, %v35706_v23, -inf }
0x18e4   :  { %24378 = vmax.xlane.f32.xlu0 %v24377_v18  ;;  %v23557_v54 = vpop.f32.mrb[82].mxu1 }
0x18e5   :  { %v35710_v42 = vmul.f32 0.35355338, %v23557_v54  ;;  %v30150_v59 = vpop.f32.mrb[83].mxu1 }
0x18e7   :  { %v24380_v51 = vsel %vm293_vm2, %v35710_v42, -inf }
0x18e8   :  { %24381 = vmax.xlane.f32.xlu1 %v24380_v51  ;;  %v23635_v29 = vpop.f32.mrb[84].mxu1 }
0x18e9   :  { %v35714_v17 = vmul.f32 0.35355338, %v23635_v29  ;;  %v30155_v44 = vpop.f32.mrb[85].mxu1 }
0x18eb   :  { %v24383_v11 = vsel %vm293_vm2, %v35714_v17, -inf }
0x18ec   :  { %24384 = vmax.xlane.f32.xlu0 %v24383_v11  ;;  %v23791_v14 = vpop.f32.mrb[86].mxu1 }
0x18ed   :  { %v35718_v21 = vmul.f32 0.35355338, %v23791_v14  ;;  %v30165_v58 = vpop.f32.mrb[87].mxu1 }
0x18ef   :  { %v24389_v10 = vsel %vm293_vm2, %v35718_v21, -inf }
0x18f0   :  { %24390 = vmax.xlane.f32.xlu0 %v24389_v10  ;;  %v23947_v41 = vpop.f32.mrb[88].mxu1 }
0x18f1   :  { %v35722_v57 = vmul.f32 0.35355338, %v23947_v41  ;;  %v30175_v1 = vpop.f32.mrb[89].mxu1 }
0x18f3   :  { %v24395_v15 = vsel %vm293_vm2, %v35722_v57, -inf }
0x18f4   :  { %24396 = vmax.xlane.f32.xlu0 %v24395_v15 }
0x18f7   :  { %v24103_v33 = vpop.f32.mrb[90].mxu1 }
0x18f8   :  { %v35726_v26 = vmul.f32 0.35355338, %v24103_v33  ;;  %v30185_v45 = vpop.f32.mrb[91].mxu1 }
0x18fa   :  { %v24401_v37 = vsel %vm293_vm2, %v35726_v26, -inf }
0x18fb   :  { %24402 = vmax.xlane.f32.xlu0 %v24401_v37 }
0x18ff   :  { %v24259_v62 = vpop.f32.mrb[92].mxu1 }
0x1900   :  { %v35730_v38 = vmul.f32 0.35355338, %v24259_v62  ;;  %v30195_v0 = vpop.f32.mrb[93].mxu1 }
0x1902   :  { %v24407_v28 = vsel %vm293_vm2, %v35730_v38, -inf }
0x1903   :  { %24408 = vmax.xlane.f32.xlu0 %v24407_v28 }
0x1959   :  { %v24361_v46 = vpop.xlane.xlu1 %24360 }
0x195a   :  { %v24413_v50 = vsub.f32 %v35656_v4, %v24361_v46 }
0x195c   :  { %v24431_v7 = vmul.f32 1.442695, %v24413_v50 }
0x195d   :  { %v24364_v56 = vpop.xlane.xlu0 %24363 }
0x195e   :  { %31007 = vpow2.f32 %v24431_v7  ;;  %v24414_v43 = vsub.f32 %v35667_v6, %v24364_v56 }
0x1960   :  { %v24433_v55 = vmul.f32 1.442695, %v24414_v43 }
0x1961   :  { %v24367_v27 = vpop.xlane.xlu0 %24366 }
0x1962   :  { %31009 = vpow2.f32 %v24433_v55  ;;  %v24415_v30 = vsub.f32 %v35678_v61, %v24367_v27 }
0x1964   :  { %v24435_v32 = vmul.f32 1.442695, %v24415_v30 }
0x1965   :  { %v24370_v19 = vpop.xlane.xlu1 %24369 }
0x1966   :  { %31011 = vpow2.f32 %v24435_v32  ;;  %v24416_v52 = vsub.f32 %v35689_v16, %v24370_v19 }
0x1968   :  { %v35746_v25 = vpop.eup %31007  ;;  %v24437_v63 = vmul.f32 1.442695, %v24416_v52 }
0x1969   :  { %v24373_v3 = vpop.xlane.xlu0 %24372  ;;  %v24467_v4 = vsel %vm293_vm2, %v35746_v25, 0.0 }
0x196a   :  { %31013 = vpow2.f32 %v24437_v63  ;;  %v24417_v6 = vsub.f32 %v35698_v22, %v24373_v3  ;;  %24468 = vadd.xlane.f32.xlu0 %v24467_v4 }
0x196c   :  { %v35751_v60 = vpop.eup %31009  ;;  %v24439_v18 = vmul.f32 1.442695, %v24417_v6 }
0x196d   :  { %v24376_v61 = vpop.xlane.xlu1 %24375  ;;  %v24470_v54 = vsel %vm293_vm2, %v35751_v60, 0.0 }
0x196e   :  { %31015 = vpow2.f32 %v24439_v18  ;;  %v24418_v16 = vsub.f32 %v35702_v35, %v24376_v61  ;;  %24471 = vadd.xlane.f32.xlu1 %v24470_v54 }
0x1970   :  { %v35756_v59 = vpop.eup %31011  ;;  %v24441_v51 = vmul.f32 1.442695, %v24418_v16 }
0x1971   :  { %v24379_v29 = vpop.xlane.xlu0 %24378  ;;  %v24473_v44 = vsel %vm293_vm2, %v35756_v59, 0.0 }
0x1972   :  { %31017 = vpow2.f32 %v24441_v51  ;;  %v24419_v22 = vsub.f32 %v35706_v23, %v24379_v29  ;;  %24474 = vadd.xlane.f32.xlu0 %v24473_v44 }
0x1974   :  { %v35761_v11 = vpop.eup %31013  ;;  %v24443_v14 = vmul.f32 1.442695, %v24419_v22 }
0x1975   :  { %v24382_v58 = vpop.xlane.xlu1 %24381  ;;  %v24476_v10 = vsel %vm293_vm2, %v35761_v11, 0.0 }
0x1976   :  { %31019 = vpow2.f32 %v24443_v14  ;;  %v24420_v35 = vsub.f32 %v35710_v42, %v24382_v58  ;;  %24477 = vadd.xlane.f32.xlu1 %v24476_v10 }
0x1978   :  { %v35766_v41 = vpop.eup %31015  ;;  %v24445_v1 = vmul.f32 1.442695, %v24420_v35 }
0x1979   :  { %v24385_v15 = vpop.xlane.xlu0 %24384  ;;  %v24479_v33 = vsel %vm293_vm2, %v35766_v41, 0.0 }
0x197a   :  { %31021 = vpow2.f32 %v24445_v1  ;;  %v24421_v23 = vsub.f32 %v35714_v17, %v24385_v15  ;;  %24480 = vadd.xlane.f32.xlu0 %v24479_v33 }
0x197c   :  { %v35771_v45 = vpop.eup %31017  ;;  %v24447_v37 = vmul.f32 1.442695, %v24421_v23 }
0x197d   :  { %v24391_v62 = vpop.xlane.xlu0 %24390  ;;  %v24482_v0 = vsel %vm293_vm2, %v35771_v45, 0.0 }
0x197e   :  { %31023 = vpow2.f32 %v24447_v37  ;;  %v24423_v42 = vsub.f32 %v35718_v21, %v24391_v62  ;;  %24483 = vadd.xlane.f32.xlu1 %v24482_v0 }
0x1980   :  { %v35776_v28 = vpop.eup %31019  ;;  %v24451_v46 = vmul.f32 1.442695, %v24423_v42 }
0x1981   :  { %v24485_v50 = vsel %vm293_vm2, %v35776_v28, 0.0  ;;  %v24397_v7 = vpop.xlane.xlu0 %24396 }
0x1982   :  { %31025 = vpow2.f32 %v24451_v46  ;;  %24486 = vadd.xlane.f32.xlu0 %v24485_v50  ;;  %v24425_v17 = vsub.f32 %v35722_v57, %v24397_v7 }
0x1984   :  { %v35781_v56 = vpop.eup %31021  ;;  %v24455_v43 = vmul.f32 1.442695, %v24425_v17 }
0x1985   :  { %v24488_v55 = vsel %vm293_vm2, %v35781_v56, 0.0 }
0x1986   :  { %31027 = vpow2.f32 %v24455_v43  ;;  %24489 = vadd.xlane.f32.xlu1 %v24488_v55 }
0x1988   :  { %v35785_v21 = vpop.eup %31023  ;;  %v24403_v27 = vpop.xlane.xlu0 %24402 }
0x1989   :  { %v24491_v30 = vsel %vm293_vm2, %v35785_v21, 0.0  ;;  %v24427_v32 = vsub.f32 %v35726_v26, %v24403_v27 }
0x198a   :  { %24492 = vadd.xlane.f32.xlu0 %v24491_v30 }
0x198b   :  { %v24459_v19 = vmul.f32 1.442695, %v24427_v32 }
0x198c   :  { %v35790_v52 = vpop.eup %31025 }
0x198d   :  { %31029 = vpow2.f32 %v24459_v19  ;;  %v24497_v57 = vsel %vm293_vm2, %v35790_v52, 0.0 }
0x198e   :  { %24498 = vadd.xlane.f32.xlu0 %v24497_v57 }
0x1990   :  { %v35794_v63 = vpop.eup %31027  ;;  %v24409_v3 = vpop.xlane.xlu0 %24408 }
0x1991   :  { %v24429_v4 = vsub.f32 %v35730_v38, %v24409_v3  ;;  %v24503_v6 = vsel %vm293_vm2, %v35794_v63, 0.0 }
0x1992   :  { %24504 = vadd.xlane.f32.xlu0 %v24503_v6 }
0x1993   :  { %v24463_v18 = vmul.f32 1.442695, %v24429_v4 }
0x1995   :  { %31031 = vpow2.f32 %v24463_v18 }
0x1997   :  { %v35799_v26 = vpop.eup %31029 }
0x1998   :  { %v24509_v61 = vsel %vm293_vm2, %v35799_v26, 0.0 }
0x1999   :  { %v23713_v54 = vpop.f32.mrb[252].mxu0  ;;  %24510 = vadd.xlane.f32.xlu1 %v24509_v61 }
0x199a   :  { %v30160_v16 = vpop.f32.mrb[253].mxu0  ;;  %v35805_v22 = vmul.f32 0.35355338, %v23713_v54 }
0x199c   :  { %v24386_v35 = vsel %vm293_vm2, %v35805_v22, -inf }
0x199d   :  { %v23869_v51 = vpop.f32.mrb[254].mxu0 }
0x199e   :  { %v30170_v29 = vpop.f32.mrb[255].mxu0  ;;  %v35809_v10 = vmul.f32 0.35355338, %v23869_v51 }
0x199f   :  { %v35803_v44 = vpop.eup %31031 }
0x19a0   :  { %v24515_v38 = vsel %vm293_vm2, %v35803_v44, 0.0  ;;  %v24392_v23 = vsel %vm293_vm2, %v35809_v10, -inf }
0x19a1   :  { %v24025_v14 = vpop.f32.mrb[0].mxu0  ;;  %24516 = vadd.xlane.f32.xlu1 %v24515_v38 }
0x19a2   :  { %v30180_v58 = vpop.f32.mrb[1].mxu0  ;;  %v35813_v33 = vmul.f32 0.35355338, %v24025_v14 }
0x19a4   :  { %v24398_v42 = vsel %vm293_vm2, %v35813_v33, -inf }
0x19a5   :  { %v24181_v1 = vpop.f32.mrb[2].mxu0  ;;  %24387 = vmax.xlane.f32.xlu1 %v24386_v35 }
0x19a6   :  { %v30190_v15 = vpop.f32.mrb[3].mxu0  ;;  %v35819_v0 = vmul.f32 0.35355338, %v24181_v1 }
0x19a8   :  { %25089 = vrot.lane.b32.xlu0 %v36543_v5, %s31199_s29  ;;  %v24404_v5 = vsel %vm293_vm2, %v35819_v0, -inf }
0x19a9   :  { %v24337_v37 = vpop.f32.mrb[4].mxu0  ;;  %24393 = vmax.xlane.f32.xlu1 %v24392_v23 }
0x19aa   :  { %v30200_v62 = vpop.f32.mrb[5].mxu0  ;;  %v35825_v46 = vmul.f32 0.35355338, %v24337_v37 }
0x19ac   :  { %25241 = vrot.lane.b32.xlu0 %v36544_v8, %s31199_s29  ;;  %v24410_v50 = vsel %vm293_vm2, %v35825_v46, -inf }
0x19ad   :  { %24399 = vmax.xlane.f32.xlu1 %v24398_v42 }
0x19b0   :  { %25393 = vrot.lane.b32.xlu0 %v33735_v12, %s31199_s29 }
0x19b1   :  { %24405 = vmax.xlane.f32.xlu1 %v24404_v5 }
0x19b4   :  { %25545 = vrot.lane.b32.xlu0 %v33740_v31, %s31199_s29 }
0x19b5   :  { %24411 = vmax.xlane.f32.xlu1 %v24410_v50 }
0x19b8   :  { %25697 = vrot.lane.b32.xlu0 %v33745_v2, %s31199_s29 }
0x19c6   :  { %25013 = vrot.lane.b32.xlu1 %v36538_v24, %s31199_s29 }
0x19ca   :  { %25165 = vrot.lane.b32.xlu1 %v36540_v53, %s31199_s29 }
0x19ce   :  { %25317 = vrot.lane.b32.xlu1 %v36542_v40, %s31199_s29 }
0x19d2   :  { %25469 = vrot.lane.b32.xlu1 %v33783_v34, %s31199_s29 }
0x19d6   :  { %25621 = vrot.lane.b32.xlu1 %v33790_v9, %s31199_s29 }
0x19f7   :  { %v24469_v12 = vpop.xlane.xlu0 %24468 }
0x19f8   :  { %31033 = vrcp.f32 %v24469_v12 }
0x19fb   :  { %v24472_v31 = vpop.xlane.xlu1 %24471 }
0x19fc   :  { %31035 = vrcp.f32 %v24472_v31 }
0x19ff   :  { %v24475_v2 = vpop.xlane.xlu0 %24474 }
0x1a00   :  { %31037 = vrcp.f32 %v24475_v2 }
0x1a02   :  { %v31034_v8 = vpop.eup %31033 }
0x1a03   :  { %v24522_v24 = vmul.f32 %v31034_v8, %v35746_v25  ;;  %v24478_v7 = vpop.xlane.xlu1 %24477 }
0x1a04   :  { %31039 = vrcp.f32 %v24478_v7 }
0x1a05   :  { %30204 = vmatmul.mubr.msk.f32.vlgmr.msra.gmra.mrb[94].mxu1 %vm293_vm2, %v24522_v24 }
0x1a06   :  { %v31036_v53 = vpop.eup %31035  ;;  %30212 = vmatpush3.msra.mxu1 %v35736_v36  ;;  %30213 = vmatprep.mubr.msk.f32.mxu1 %vm31188_vm1, %v36411_v13 }
0x1a07   :  { %v24524_v34 = vmul.f32 %v31036_v53, %v35751_v60  ;;  %v24481_v9 = vpop.xlane.xlu0 %24480  ;;  %30221 = vmatprep.subr.mxu1 %v36411_v13 }
0x1a08   :  { %31041 = vrcp.f32 %v24481_v9 }
0x1a09   :  { %30209 = vmatmul.mubr.msk.f32.vlgmr.msra.gmra.mrb[6].mxu0 %vm293_vm2, %v24524_v34 }
0x1a0a   :  { %v31038_v40 = vpop.eup %31037  ;;  %30217 = vmatpush3.msra.mxu0 %v35734_v39  ;;  %30218 = vmatprep.mubr.msk.f32.mxu0 %vm31188_vm1, %v36411_v13 }
0x1a0b   :  { %v24526_v25 = vmul.f32 %v31038_v40, %v35756_v59  ;;  %v24484_v36 = vpop.xlane.xlu1 %24483  ;;  %30226 = vmatprep.subr.mxu0 %v36411_v13 }
0x1a0c   :  { %31043 = vrcp.f32 %v24484_v36 }
0x1a0d   :  { %30214 = vmatmul.mubr.msk.f32.vlgmr.msra.gmra.mrb[96].mxu1 %vm293_vm2, %v24526_v25 }
0x1a0e   :  { %v31040_v60 = vpop.eup %31039  ;;  %30222 = vmatpush3.msra.mxu1 %v35740_v47  ;;  %30223 = vmatprep.mubr.msk.f32.mxu1 %vm31188_vm1, %v36411_v13 }
0x1a0f   :  { %v24528_v17 = vmul.f32 %v31040_v60, %v35761_v11  ;;  %30231 = vmatprep.subr.mxu1 %v36411_v13  ;;  %v24487_v43 = vpop.xlane.xlu0 %24486 }
0x1a11   :  { %30219 = vmatmul.mubr.msk.f32.vlgmr.msra.gmra.mrb[8].mxu0 %vm293_vm2, %v24528_v17 }
0x1a12   :  { %v31042_v39 = vpop.eup %31041  ;;  %30227 = vmatpush3.msra.mxu0 %v35738_v20  ;;  %30228 = vmatprep.mubr.msk.f32.mxu0 %vm31188_vm1, %v36411_v13 }
0x1a13   :  { %v24530_v59 = vmul.f32 %v31042_v39, %v35766_v41  ;;  %v24490_v55 = vpop.xlane.xlu1 %24489  ;;  %30236 = vmatprep.subr.mxu0 %v36411_v13 }
0x1a14   :  { %31045 = vrcp.f32 %v24490_v55 }
0x1a15   :  { %30224 = vmatmul.mubr.msk.f32.vlgmr.msra.gmra.mrb[98].mxu1 %vm293_vm2, %v24530_v59 }
0x1a16   :  { %v31044_v47 = vpop.eup %31043  ;;  %30233 = vmatprep.mubr.msk.f32.mxu1 %vm31188_vm1, %v36411_v13 }
0x1a17   :  { %v24532_v11 = vmul.f32 %v31044_v47, %v35771_v45  ;;  %v24493_v27 = vpop.xlane.xlu0 %24492 }
0x1a19   :  { %30229 = vmatmul.mubr.msk.f32.vlgmr.msra.gmra.mrb[10].mxu0 %vm293_vm2, %v24532_v11 }
0x1a1a   :  { %30238 = vmatprep.mubr.msk.f32.mxu0 %vm31188_vm1, %v36411_v13 }
0x1a1b   :  { %v24499_v20 = vpop.xlane.xlu0 %24498 }
0x1a1e   :  { %v31046_v30 = vpop.eup %31045 }
0x1a1f   :  { %v24505_v41 = vpop.xlane.xlu0 %24504  ;;  %v24536_v32 = vmul.f32 %v31046_v30, %v35781_v56 }
0x1a23   :  { %v25090_v19 = vpop.permute.xlu0 %25089 }
0x1a24   :  { %30237 = vmatpush3.msra.mxu0 %v25090_v19 }
0x1a25   :  { %30239 = vmatmul.mubr.msk.f32.vlgmr.msra.gmra.mrb[12].mxu0 %vm293_vm2, %v24536_v32  ;;  %30246 = vmatprep.subr.mxu0 %v36411_v13 }
0x1a26   :  { %30248 = vmatprep.mubr.msk.f32.mxu0 %vm31188_vm1, %v36411_v13  ;;  %v24511_v57 = vpop.xlane.xlu1 %24510 }
0x1a27   :  { %v25242_v45 = vpop.permute.xlu0 %25241 }
0x1a28   :  { %30247 = vmatpush3.msra.mxu0 %v25242_v45 }
0x1a29   :  { %30256 = vmatprep.subr.mxu0 %v36411_v13 }
0x1a2e   :  { %v35885_v3 = vpop.xlane.xlu1 %24516 }
0x1a32   :  { %v24388_v4 = vpop.xlane.xlu1 %24387 }
0x1a33   :  { %v24422_v6 = vsub.f32 %v35805_v22, %v24388_v4 }
0x1a35   :  { %v24449_v56 = vmul.f32 1.442695, %v24422_v6 }
0x1a36   :  { %v24394_v18 = vpop.xlane.xlu1 %24393 }
0x1a37   :  { %31047 = vpow2.f32 %v24449_v56  ;;  %v24424_v61 = vsub.f32 %v35809_v10, %v24394_v18 }
0x1a38   :  { %31049 = vrcp.f32 %v24487_v43 }
0x1a39   :  { %v24453_v54 = vmul.f32 1.442695, %v24424_v61 }
0x1a3a   :  { %v24400_v16 = vpop.xlane.xlu1 %24399 }
0x1a3b   :  { %31051 = vpow2.f32 %v24453_v54  ;;  %v24426_v51 = vsub.f32 %v35813_v33, %v24400_v16  ;;  %v13129_v16 = vld [vmem:[%s36369_s7 + $0x18] sm:$0xff] }
0x1a3c   :  { %31053 = vrcp.f32 %v24493_v27 }
0x1a3d   :  { %v24457_v29 = vmul.f32 1.442695, %v24426_v51 }
0x1a3e   :  { %v24406_v38 = vpop.xlane.xlu1 %24405 }
0x1a3f   :  { %31055 = vpow2.f32 %v24457_v29  ;;  %v24428_v14 = vsub.f32 %v35819_v0, %v24406_v38 }
0x1a40   :  { %31057 = vrcp.f32 %v24499_v20 }
0x1a41   :  { %v35891_v58 = vpop.eup %31047  ;;  %v24461_v22 = vmul.f32 1.442695, %v24428_v14 }
0x1a42   :  { %v24412_v35 = vpop.xlane.xlu1 %24411  ;;  %v24494_v10 = vsel %vm293_vm2, %v35891_v58, 0.0  ;;  %v31050_v1 = vpop.eup %31049 }
0x1a43   :  { %31059 = vpow2.f32 %v24461_v22  ;;  %v24430_v15 = vsub.f32 %v35825_v46, %v24412_v35  ;;  %24495 = vadd.xlane.f32.xlu1 %v24494_v10  ;;  %v24534_v37 = vmul.f32 %v31050_v1, %v35776_v28 }
0x1a44   :  { %31061 = vrcp.f32 %v24505_v41 }
0x1a45   :  { %v35896_v33 = vpop.eup %31051  ;;  %v24465_v23 = vmul.f32 1.442695, %v24430_v15 }
0x1a46   :  { %v25014_v62 = vpop.permute.xlu1 %25013  ;;  %v24500_v0 = vsel %vm293_vm2, %v35896_v33, 0.0  ;;  %v31054_v42 = vpop.eup %31053 }
0x1a47   :  { %31063 = vpow2.f32 %v24465_v23  ;;  %24501 = vadd.xlane.f32.xlu1 %v24500_v0  ;;  %30232 = vmatpush3.msra.mxu1 %v25014_v62  ;;  %v24538_v28 = vmul.f32 %v31054_v42, %v35785_v21 }
0x1a48   :  { %30234 = vmatmul.mubr.msk.f32.vlgmr.msra.gmra.mrb[100].mxu1 %vm293_vm2, %v24534_v37  ;;  %30241 = vmatprep.subr.mxu1 %v36411_v13  ;;  %31065 = vrcp.f32 %v24511_v57 }
0x1a49   :  { %v35903_v46 = vpop.eup %31055  ;;  %30243 = vmatprep.mubr.msk.f32.mxu1 %vm31188_vm1, %v36411_v13  ;;  %31067 = vrcp.f32 %v35885_v3 }
0x1a4a   :  { %v25166_v5 = vpop.permute.xlu1 %25165  ;;  %v24506_v50 = vsel %vm293_vm2, %v35903_v46, 0.0  ;;  %v31058_v12 = vpop.eup %31057 }
0x1a4b   :  { %24507 = vadd.xlane.f32.xlu1 %v24506_v50  ;;  %30242 = vmatpush3.msra.mxu1 %v25166_v5  ;;  %v24542_v2 = vmul.f32 %v31058_v12, %v35790_v52  ;;  %v26178_v50 = vld [vmem:[%s36370_s9 + $0x10] sm:$0xff]  ;;  %v26179_v12 = vld [vmem:[%s36370_s9 + $0x18] sm:$0xff] }
0x1a4c   :  { %30244 = vmatmul.mubr.msk.f32.vlgmr.msra.gmra.mrb[102].mxu1 %vm293_vm2, %v24538_v28  ;;  %30251 = vmatprep.subr.mxu1 %v36411_v13  ;;  %v26177_v28 = vld [vmem:[%s36370_s9 + $0x8] sm:$0xff] }
0x1a4d   :  { %v35912_v31 = vpop.eup %31059  ;;  %30253 = vmatprep.mubr.msk.f32.mxu1 %vm31188_vm1, %v36411_v13 }
0x1a4e   :  { %v25318_v8 = vpop.permute.xlu1 %25317  ;;  %v24512_v21 = vsel %vm293_vm2, %v35912_v31, 0.0  ;;  %v31062_v24 = vpop.eup %31061 }
0x1a4f   :  { %24513 = vadd.xlane.f32.xlu0 %v24512_v21  ;;  %30252 = vmatpush3.msra.mxu1 %v25318_v8  ;;  %v24546_v53 = vmul.f32 %v31062_v24, %v35794_v63  ;;  %v25394_v63 = vpop.permute.xlu0 %25393 }
0x1a50   :  { %30254 = vmatmul.mubr.msk.f32.vlgmr.msra.gmra.mrb[104].mxu1 %vm293_vm2, %v24542_v2  ;;  %30261 = vmatprep.subr.mxu1 %v36411_v13 }
0x1a51   :  { %v35921_v7 = vpop.eup %31063  ;;  %30263 = vmatprep.mubr.msk.f32.mxu1 %vm31188_vm1, %v36411_v13 }
0x1a52   :  { %v25470_v34 = vpop.permute.xlu1 %25469  ;;  %v24518_v52 = vsel %vm293_vm2, %v35921_v7, 0.0  ;;  %v31066_v9 = vpop.eup %31065 }
0x1a53   :  { %24519 = vadd.xlane.f32.xlu0 %v24518_v52  ;;  %30262 = vmatpush3.msra.mxu1 %v25470_v34  ;;  %v24550_v40 = vmul.f32 %v31066_v9, %v35799_v26  ;;  %v25546_v26 = vpop.permute.xlu0 %25545  ;;  %v31068_v59 = vpop.eup %31067 }
0x1a54   :  { %30264 = vmatmul.mubr.msk.f32.vlgmr.msra.gmra.mrb[106].mxu1 %vm293_vm2, %v24546_v53  ;;  %30271 = vmatprep.subr.mxu1 %v36411_v13 }
0x1a55   :  { %30273 = vmatprep.mubr.msk.f32.mxu1 %vm31188_vm1, %v36411_v13 }
0x1a56   :  { %v25622_v25 = vpop.permute.xlu1 %25621 }
0x1a57   :  { %30272 = vmatpush3.msra.mxu1 %v25622_v25  ;;  %v25698_v43 = vpop.permute.xlu0 %25697 }
0x1a58   :  { %30274 = vmatmul.mubr.msk.f32.vlgmr.msra.gmra.mrb[108].mxu1 %vm293_vm2, %v24550_v40  ;;  %30281 = vmatprep.subr.mxu1 %v36411_v13 }
0x1a59   :  { %30283 = vmatprep.mubr.msk.f32.mxu1 %vm31188_vm1, %v36411_v13 }
0x1a5c   :  { %25773 = vrot.lane.b32.xlu1 %v33827_v49, %s31199_s29  ;;  %v24554_v49 = vmul.f32 %v31068_v59, %v35803_v44 }
0x1a69   :  { %25849 = vrot.lane.b32.xlu0 %v33753_v48, %s31199_s29 }
0x1ad0   :  { %v24496_v36 = vpop.xlane.xlu1 %24495 }
0x1ad1   :  { %31069 = vrcp.f32 %v24496_v36  ;;  %v27762_v36 = vld [vmem:[%s36371_s8] ss:$0 sm:$0xff] }
0x1ad4   :  { %v24502_v60 = vpop.xlane.xlu1 %24501 }
0x1ad5   :  { %31071 = vrcp.f32 %v24502_v60 }
0x1ad8   :  { %v24629_v17 = vpop.f32.mrb[94].mxu1  ;;  %v24508_v39 = vpop.xlane.xlu1 %24507 }
0x1ad9   :  { %v30205_v55 = vpop.f32.mrb[95].mxu1  ;;  %31073 = vrcp.f32 %v24508_v39 }
0x1adb   :  { %v31070_v47 = vpop.eup %31069 }
0x1adc   :  { %v24540_v11 = vmul.f32 %v31070_v47, %v35891_v58  ;;  %v24705_v48 = vpop.f32.mrb[6].mxu0  ;;  %v25774_v27 = vpop.permute.xlu1 %25773 }
0x1add   :  { %v30210_v20 = vpop.f32.mrb[7].mxu0  ;;  %v24514_v41 = vpop.xlane.xlu0 %24513  ;;  %30282 = vmatpush3.msra.mxu1 %v25774_v27 }
0x1ade   :  { %31075 = vrcp.f32 %v24514_v41  ;;  %30249 = vmatmul.mubr.msk.f32.vlgmr.msra.gmra.mrb[14].mxu0 %vm293_vm2, %v24540_v11  ;;  %30284 = vmatmul.mubr.msk.f32.vlgmr.msra.gmra.mrb[110].mxu1 %vm293_vm2, %v24554_v49 }
0x1adf   :  { %v31072_v30 = vpop.eup %31071  ;;  %30257 = vmatpush3.msra.mxu0 %v25394_v63  ;;  %30258 = vmatprep.mubr.msk.f32.mxu0 %vm31188_vm1, %v36411_v13 }
0x1ae0   :  { %v24544_v32 = vmul.f32 %v31072_v30, %v35896_v33  ;;  %v24781_v44 = vpop.f32.mrb[96].mxu1  ;;  %30266 = vmatprep.subr.mxu0 %v36411_v13 }
0x1ae1   :  { %v30215_v19 = vpop.f32.mrb[97].mxu1  ;;  %v24520_v45 = vpop.xlane.xlu0 %24519 }
0x1ae2   :  { %31077 = vrcp.f32 %v24520_v45  ;;  %30259 = vmatmul.mubr.msk.f32.vlgmr.msra.gmra.mrb[16].mxu0 %vm293_vm2, %v24544_v32 }
0x1ae3   :  { %v31074_v57 = vpop.eup %31073  ;;  %30267 = vmatpush3.msra.mxu0 %v25546_v26  ;;  %30268 = vmatprep.mubr.msk.f32.mxu0 %vm31188_vm1, %v36411_v13 }
0x1ae4   :  { %v24548_v3 = vmul.f32 %v31074_v57, %v35903_v46  ;;  %v24857_v4 = vpop.f32.mrb[8].mxu0  ;;  %30276 = vmatprep.subr.mxu0 %v36411_v13  ;;  %v26176_v46 = vld [vmem:[%s36370_s9] sm:$0xff] }
0x1ae5   :  { %v30220_v6 = vpop.f32.mrb[9].mxu0  ;;  %v25850_v51 = vpop.permute.xlu0 %25849  ;;  %v30371_v5 = vpack.c.bf16 %v26177_v28, %v26176_v46 }
0x1ae6   :  { %30269 = vmatmul.mubr.msk.f32.vlgmr.msra.gmra.mrb[18].mxu0 %vm293_vm2, %v24548_v3 }
0x1ae7   :  { %30277 = vmatpush3.msra.mxu0 %v25698_v43  ;;  %30278 = vmatprep.mubr.msk.f32.mxu0 %vm31188_vm1, %v36411_v13 }
0x1ae8   :  { %v31076_v56 = vpop.eup %31075  ;;  %v24933_v18 = vpop.f32.mrb[98].mxu1  ;;  %30286 = vmatprep.subr.mxu0 %v36411_v13  ;;  %30372 = vmatprep.subr.bf16.mxu1 %v30371_v5 }
0x1ae9   :  { %v24552_v61 = vmul.f32 %v31076_v56, %v35912_v31  ;;  %v30225_v54 = vpop.f32.mrb[99].mxu1  ;;  %30374 = vmatpush3.bf16.msra.mxu1 %v30371_v5  ;;  %v30375_v31 = vpack.c.bf16 %v26179_v12, %v26178_v50 }
0x1aeb   :  { %30279 = vmatmul.mubr.msk.f32.vlgmr.msra.gmra.mrb[20].mxu0 %vm293_vm2, %v24552_v61  ;;  %30376 = vmatprep.subr.bf16.mxu1 %v30375_v31 }
0x1aec   :  { %v31078_v29 = vpop.eup %31077  ;;  %v25009_v38 = vpop.f32.mrb[10].mxu0  ;;  %30287 = vmatpush3.msra.mxu0 %v25850_v51  ;;  %30288 = vmatprep.mubr.msk.f32.mxu0 %vm31188_vm1, %v36411_v13 }
0x1aed   :  { %v24556_v14 = vmul.f32 %v31078_v29, %v35921_v7  ;;  %v30230_v58 = vpop.f32.mrb[11].mxu0  ;;  %30291 = vmatprep.subr.mxu0 %v13129_v16  ;;  %30378 = vmatpush3.bf16.msra.mxu1 %v30375_v31  ;;  %v36090_v31 = vld [vmem:[%s36374_s11] ss:$0 sm:$0xff] }
0x1aef   :  { %30289 = vmatmul.mubr.msk.f32.vlgmr.msra.gmra.mrb[22].mxu0 %vm293_vm2, %v24556_v14 }
0x1af0   :  { %30293 = vmatprep.mubr.msk.f32.mxu0 %vm293_vm2, %v24629_v17  ;;  %30292 = vmatpush3.msra.mxu0 %v13129_v16 }
0x1af3   :  { %30294 = vmatmul.mubr.msk.f32.vlgmr.msra.gmra.mrb[216].mxu0 %vm293_vm2, %v24705_v48 }
0x1af4   :  { %30296 = vmatprep.mubr.msk.f32.mxu0 %vm293_vm2, %v24781_v44  ;;  %v18_v44 = vstv %s36372_s12 }
0x1af5   :  { %19 = vst [vmem:[#allocation2] sm:$0x1] %v18_v44 }
0x1af7   :  { %30297 = vmatmul.mubr.msk.f32.gmra.mrb[218].mxu0 %vm293_vm2, %v24857_v4 }
0x1af8   :  { %v25161_v22 = vpop.f32.mrb[12].mxu0  ;;  %30299 = vmatprep.mubr.msk.f32.mxu0 %vm293_vm2, %v24933_v18 }
0x1af9   :  { %v30240_v35 = vpop.f32.mrb[13].mxu0 }
0x1afb   :  { %30300 = vmatmul.mubr.msk.f32.gmra.mrb[220].mxu0 %vm293_vm2, %v25009_v38 }
0x1b1b   :  { %v25085_v13 = vpop.f32.mrb[100].mxu1 }
0x1b1c   :  { %v30235_v10 = vpop.f32.mrb[101].mxu1  ;;  %30302 = vmatprep.mubr.msk.f32.mxu0 %vm293_vm2, %v25085_v13 }
0x1b1d   :  { %30303 = vmatmul.mubr.msk.f32.gmra.mrb[222].mxu0 %vm293_vm2, %v25161_v22 }
0x1b1f   :  { %v25237_v1 = vpop.f32.mrb[102].mxu1 }
0x1b20   :  { %v30245_v15 = vpop.f32.mrb[103].mxu1  ;;  %30305 = vmatprep.mubr.msk.f32.mxu0 %vm293_vm2, %v25237_v1  ;;  %v36079_v1 = vld [vmem:[%s36373_s10] ss:$0 sm:$0xff] }
0x1b23   :  { %v25389_v33 = vpop.f32.mrb[104].mxu1 }
0x1b24   :  { %v30255_v23 = vpop.f32.mrb[105].mxu1 }
0x1b27   :  { %v25541_v37 = vpop.f32.mrb[106].mxu1 }
0x1b28   :  { %v30265_v62 = vpop.f32.mrb[107].mxu1 }
0x1b2b   :  { %v25693_v0 = vpop.f32.mrb[108].mxu1 }
0x1b2c   :  { %v30275_v42 = vpop.f32.mrb[109].mxu1 }
0x1bb1   :  { %v25313_v2 = vpop.f32.mrb[14].mxu0  ;;  %v25845_v8 = vpop.f32.mrb[110].mxu1 }
0x1bb2   :  { %v30250_v21 = vpop.f32.mrb[15].mxu0  ;;  %v30285_v24 = vpop.f32.mrb[111].mxu1  ;;  %30306 = vmatmul.mubr.msk.f32.gmra.mrb[224].mxu0 %vm293_vm2, %v25313_v2 }
0x1bb3   :  { %30308 = vmatprep.mubr.msk.f32.mxu0 %vm293_vm2, %v25389_v33 }
0x1bb5   :  { %v25465_v7 = vpop.f32.mrb[16].mxu0 }
0x1bb6   :  { %v30260_v53 = vpop.f32.mrb[17].mxu0  ;;  %30309 = vmatmul.mubr.msk.f32.gmra.mrb[226].mxu0 %vm293_vm2, %v25465_v7 }
0x1bb7   :  { %30311 = vmatprep.mubr.msk.f32.mxu0 %vm293_vm2, %v25541_v37 }
0x1bb9   :  { %v25617_v34 = vpop.f32.mrb[18].mxu0 }
0x1bba   :  { %v30270_v52 = vpop.f32.mrb[19].mxu0  ;;  %30312 = vmatmul.mubr.msk.f32.gmra.mrb[228].mxu0 %vm293_vm2, %v25617_v34 }
0x1bbb   :  { %30314 = vmatprep.mubr.msk.f32.mxu0 %vm293_vm2, %v25693_v0 }
0x1bbe   :  { %v25769_v9 = vpop.f32.mrb[20].mxu0 }
0x1bbf   :  { %v30280_v40 = vpop.f32.mrb[21].mxu0  ;;  %30315 = vmatmul.mubr.msk.f32.gmra.mrb[230].mxu0 %vm293_vm2, %v25769_v9 }
0x1bc0   :  { %30317 = vmatprep.mubr.msk.f32.mxu0 %vm293_vm2, %v25845_v8 }
0x1bc2   :  { %v25921_v25 = vpop.f32.mrb[22].mxu0 }
0x1bc3   :  { %v30290_v63 = vpop.f32.mrb[23].mxu0  ;;  %30318 = vmatmul.mubr.msk.f32.gmra.mrb[232].mxu0 %vm293_vm2, %v25921_v25 }
0x1bc6   :  { %v30295_v26 = vpop.f32.mrb[216].mxu0 }
0x1bc7   :  { %v26045_v60 = vpop.f32.mrb[217].mxu0  ;;  %v36003_v39 = vadd.f32 %v30295_v26, %v27762_v36 }
0x1bc8   :  { %v36001_v17 = vadd.f32 %v27762_v36, %v26045_v60 }
0x1bca   :  { %v30298_v59 = vpop.f32.mrb[218].mxu0  ;;  %30328 = vmatprep.mubr.msk.f32.mxu1 %vm80_vm0, %v36001_v17 }
0x1bcb   :  { %v26055_v43 = vpop.f32.mrb[219].mxu0  ;;  %30329 = vmatmul.mubr.msk.f32.vlgmr.msra.gmra.mrb[112].mxu1 %vm80_vm0, %v36003_v39  ;;  %v36011_v47 = vadd.f32 %v30298_v59, %v27762_v36 }
0x1bcc   :  { %v36009_v55 = vadd.f32 %v27762_v36, %v26055_v43 }
0x1bce   :  { %v30301_v49 = vpop.f32.mrb[220].mxu0  ;;  %30331 = vmatprep.mubr.msk.f32.mxu1 %vm80_vm0, %v36009_v55 }
0x1bcf   :  { %v26065_v11 = vpop.f32.mrb[221].mxu0  ;;  %30332 = vmatmul.mubr.msk.f32.gmra.mrb[114].mxu1 %vm80_vm0, %v36011_v47  ;;  %v36019_v27 = vadd.f32 %v30301_v49, %v27762_v36 }
0x1bd0   :  { %v36017_v48 = vadd.f32 %v27762_v36, %v26065_v11 }
0x1bd2   :  { %30334 = vmatprep.mubr.msk.f32.mxu1 %vm80_vm0, %v36017_v48 }
0x1bd3   :  { %30335 = vmatmul.mubr.msk.f32.gmra.mrb[116].mxu1 %vm80_vm0, %v36019_v27 }
0x1bf0   :  { %v30304_v20 = vpop.f32.mrb[222].mxu0 }
0x1bf1   :  { %v26075_v41 = vpop.f32.mrb[223].mxu0  ;;  %v36027_v32 = vadd.f32 %v30304_v20, %v27762_v36 }
0x1bf2   :  { %v36025_v30 = vadd.f32 %v27762_v36, %v26075_v41 }
0x1bf4   :  { %30337 = vmatprep.mubr.msk.f32.mxu1 %vm80_vm0, %v36025_v30 }
0x1bf5   :  { %30338 = vmatmul.mubr.msk.f32.gmra.mrb[118].mxu1 %vm80_vm0, %v36027_v32 }
0x1c85   :  { %v30307_v19 = vpop.f32.mrb[224].mxu0 }
0x1c86   :  { %v26085_v45 = vpop.f32.mrb[225].mxu0  ;;  %v36038_v3 = vadd.f32 %v30307_v19, %v27762_v36 }
0x1c87   :  { %v36036_v57 = vadd.f32 %v27762_v36, %v26085_v45 }
0x1c89   :  { %v30310_v4 = vpop.f32.mrb[226].mxu0  ;;  %30340 = vmatprep.mubr.msk.f32.mxu1 %vm80_vm0, %v36036_v57 }
0x1c8a   :  { %v26095_v6 = vpop.f32.mrb[227].mxu0  ;;  %30341 = vmatmul.mubr.msk.f32.gmra.mrb[120].mxu1 %vm80_vm0, %v36038_v3  ;;  %v36046_v18 = vadd.f32 %v30310_v4, %v27762_v36  ;;  %v31200_v4 = vmov 0  }
0x1c8b   :  { %v36044_v56 = vadd.f32 %v27762_v36, %v26095_v6  ;;  %30501 = vset.pattern.permute.xlu0 %v31200_v4  ;;  %30502 = vset.pattern.permute.xlu1 %v31200_v4  ;;  %v36107_v6 = vld [vmem:[#allocation2] ss:$0 sm:$0xff] }
0x1c8d   :  { %v30313_v61 = vpop.f32.mrb[228].mxu0  ;;  %30343 = vmatprep.mubr.msk.f32.mxu1 %vm80_vm0, %v36044_v56 }
0x1c8e   :  { %v26105_v54 = vpop.f32.mrb[229].mxu0  ;;  %30344 = vmatmul.mubr.msk.f32.gmra.mrb[122].mxu1 %vm80_vm0, %v36046_v18  ;;  %v36054_v51 = vadd.f32 %v30313_v61, %v27762_v36 }
0x1c8f   :  { %v36052_v16 = vadd.f32 %v27762_v36, %v26105_v54 }
0x1c91   :  { %30346 = vmatprep.mubr.msk.f32.mxu1 %vm80_vm0, %v36052_v16 }
0x1c92   :  { %v30316_v29 = vpop.f32.mrb[230].mxu0  ;;  %30347 = vmatmul.mubr.msk.f32.gmra.mrb[124].mxu1 %vm80_vm0, %v36054_v51 }
0x1c93   :  { %v26115_v38 = vpop.f32.mrb[231].mxu0  ;;  %v36062_v58 = vadd.f32 %v30316_v29, %v27762_v36 }
0x1c94   :  { %v36060_v14 = vadd.f32 %v27762_v36, %v26115_v38 }
0x1c96   :  { %v30319_v22 = vpop.f32.mrb[232].mxu0  ;;  %30349 = vmatprep.mubr.msk.f32.mxu1 %vm80_vm0, %v36060_v14 }
0x1c97   :  { %v26125_v35 = vpop.f32.mrb[233].mxu0  ;;  %30350 = vmatmul.mubr.msk.f32.gmra.mrb[126].mxu1 %vm80_vm0, %v36062_v58  ;;  %v36070_v10 = vadd.f32 %v30319_v22, %v27762_v36 }
0x1c98   :  { %v36068_v13 = vadd.f32 %v27762_v36, %v26125_v35 }
0x1c9a   :  { %30352 = vmatprep.mubr.msk.f32.mxu1 %vm80_vm0, %v36068_v13 }
0x1c9b   :  { %30353 = vmatmul.mubr.msk.f32.gmra.mrb[128].mxu1 %vm80_vm0, %v36070_v10 }
0x1c9e   :  { %v30330_v15 = vpop.f32.mrb[112].mxu1 }
0x1c9f   :  { %v26313_v33 = vadd.f32 %v30330_v15, %v36079_v1  ;;  %v26307_v23 = vpop.f32.mrb[113].mxu1 }
0x1ca0   :  { %v26308_v37 = vadd.f32 %v36079_v1, %v26307_v23 }
0x1ca1   :  { %31079 = vtanh.f32 %v26313_v33 }
0x1ca2   :  { %31081 = vtanh.f32 %v26308_v37  ;;  %v30333_v62 = vpop.f32.mrb[114].mxu1 }
0x1ca3   :  { %v26323_v0 = vadd.f32 %v30333_v62, %v36079_v1  ;;  %v26317_v42 = vpop.f32.mrb[115].mxu1 }
0x1ca4   :  { %v26318_v46 = vadd.f32 %v36079_v1, %v26317_v42 }
0x1ca5   :  { %31083 = vtanh.f32 %v26323_v0 }
0x1ca6   :  { %31085 = vtanh.f32 %v26318_v46  ;;  %v30336_v28 = vpop.f32.mrb[116].mxu1 }
0x1ca7   :  { %v26333_v5 = vadd.f32 %v30336_v28, %v36079_v1  ;;  %v26327_v50 = vpop.f32.mrb[117].mxu1 }
0x1ca8   :  { %v26328_v12 = vadd.f32 %v36079_v1, %v26327_v50 }
0x1ca9   :  { %31087 = vtanh.f32 %v26333_v5 }
0x1caa   :  { %31089 = vtanh.f32 %v26328_v12 }
0x1cab   :  { %v31080_v2 = vpop.eup %31079 }
0x1cac   :  { %v31082_v8 = vpop.eup %31081  ;;  %v26422_v21 = vmul.f32 %v31080_v2, %v36090_v31 }
0x1cad   :  { %v26421_v24 = vmul.f32 %v31082_v8, %v36090_v31 }
0x1cae   :  { %v26443_v7 = vsel %vm26439_vm3, %v26422_v21, 0.0 }
0x1caf   :  { %v31084_v53 = vpop.eup %31083  ;;  %26444 = vadd.xlane.f32.xlu0 %v26443_v7  ;;  %v26440_v34 = vsel %vm26439_vm3, %v26421_v24, 0.0 }
0x1cb0   :  { %v31086_v52 = vpop.eup %31085  ;;  %26441 = vadd.xlane.f32.xlu1 %v26440_v34  ;;  %v26424_v9 = vmul.f32 %v31084_v53, %v36090_v31 }
0x1cb1   :  { %v26423_v25 = vmul.f32 %v31086_v52, %v36090_v31 }
0x1cb2   :  { %v26449_v40 = vsel %vm26439_vm3, %v26424_v9, 0.0 }
0x1cb3   :  { %v31088_v63 = vpop.eup %31087  ;;  %26450 = vadd.xlane.f32.xlu0 %v26449_v40  ;;  %v26446_v36 = vsel %vm26439_vm3, %v26423_v25, 0.0 }
0x1cb4   :  { %v26426_v26 = vmul.f32 %v31088_v63, %v36090_v31  ;;  %v31090_v60 = vpop.eup %31089 }
0x1cb5   :  { %v26425_v43 = vmul.f32 %v31090_v60, %v36090_v31 }
0x1cb6   :  { %v26455_v59 = vsel %vm26439_vm3, %v26426_v26, 0.0 }
0x1cb7   :  { %26447 = vadd.xlane.f32.xlu0 %v26446_v36  ;;  %v26452_v49 = vsel %vm26439_vm3, %v26425_v43, 0.0 }
0x1cbb   :  { %26456 = vadd.xlane.f32.xlu0 %v26455_v59 }
0x1cbf   :  { %26453 = vadd.xlane.f32.xlu0 %v26452_v49 }
0x1cc8   :  { %v30339_v11 = vpop.f32.mrb[118].mxu1 }
0x1cc9   :  { %v26337_v20 = vpop.f32.mrb[119].mxu1 }
0x1cca   :  { %v26338_v41 = vadd.f32 %v36079_v1, %v26337_v20 }
0x1ccc   :  { %31091 = vtanh.f32 %v26338_v41 }
0x1cd6   :  { %v31092_v44 = vpop.eup %31091 }
0x1cd7   :  { %v26427_v19 = vmul.f32 %v31092_v44, %v36090_v31 }
0x1cd9   :  { %v26458_v45 = vsel %vm26439_vm3, %v26427_v19, 0.0 }
0x1cda   :  { %26459 = vadd.xlane.f32.xlu0 %v26458_v45 }
0x1d3c   :  { %v26445_v61 = vpop.xlane.xlu0 %26444 }
0x1d3d   :  { %v26502_v54 = vadd.f32 %v36107_v6, %v26445_v61  ;;  %v26442_v29 = vpop.xlane.xlu1 %26441 }
0x1d3e   :  { %v26501_v38 = vadd.f32 %v36107_v6, %v26442_v29 }
0x1d3f   :  { %v26527_v22 = vsel %vm26519_vm4, %v26502_v54, -inf }
0x1d40   :  { %v26520_v35 = vsel %vm26519_vm4, %v26501_v38, -inf  ;;  %v26451_v15 = vpop.xlane.xlu0 %26450  ;;  %v26528_v23 = vrot.slane %v26527_v22, 4 }
0x1d41   :  { %v26521_v33 = vrot.slane %v26520_v35, 4  ;;  %v36114_v62 = vadd.f32 %v36107_v6, %v26451_v15 }
0x1d42   :  { %v26529_v46 = vmax.f32 %v26527_v22, %v26528_v23 }
0x1d43   :  { %v26522_v37 = vmax.f32 %v26520_v35, %v26521_v33  ;;  %v26541_v5 = vsel %vm26519_vm4, %v36114_v62, -inf }
0x1d44   :  { %v26448_v0 = vpop.xlane.xlu0 %26447  ;;  %v26530_v21 = vrot.slane %v26529_v46, 2  ;;  %v26542_v24 = vrot.slane %v26541_v5, 4 }
0x1d45   :  { %v26503_v42 = vadd.f32 %v36107_v6, %v26448_v0  ;;  %v26523_v28 = vrot.slane %v26522_v37, 2 }
0x1d46   :  { %v26531_v25 = vmax.f32 %v26529_v46, %v26530_v21  ;;  %v26543_v63 = vmax.f32 %v26541_v5, %v26542_v24 }
0x1d47   :  { %v26534_v50 = vsel %vm26519_vm4, %v26503_v42, -inf  ;;  %v26524_v53 = vmax.f32 %v26522_v37, %v26523_v28  ;;  %v26343_v37 = vadd.f32 %v30339_v11, %v36079_v1 }
0x1d48   :  { %v26535_v12 = vrot.slane %v26534_v50, 4  ;;  %v26457_v2 = vpop.xlane.xlu0 %26456  ;;  %v26532_v20 = vrot.slane %v26531_v25, 1  ;;  %v26544_v41 = vrot.slane %v26543_v63, 2 }
0x1d49   :  { %v26506_v8 = vadd.f32 %v36107_v6, %v26457_v2  ;;  %v26525_v60 = vrot.slane %v26524_v53, 1  ;;  %31093 = vtanh.f32 %v26343_v37 }
0x1d4a   :  { %v26536_v7 = vmax.f32 %v26534_v50, %v26535_v12  ;;  %v26533_v29 = vmax.f32 %v26531_v25, %v26532_v20  ;;  %v26545_v22 = vmax.f32 %v26543_v63, %v26544_v41 }
0x1d4b   :  { %v26555_v34 = vsel %vm26519_vm4, %v26506_v8, -inf  ;;  %v26526_v19 = vmax.f32 %v26524_v53, %v26525_v60 }
0x1d4c   :  { %v26556_v52 = vrot.slane %v26555_v34, 4  ;;  %v26454_v9 = vpop.xlane.xlu0 %26453  ;;  %v26537_v36 = vrot.slane %v26536_v7, 2  ;;  %v26647_v46 = vsub.f32 %v26502_v54, %v26533_v29  ;;  %v26546_v28 = vrot.slane %v26545_v22, 1 }
0x1d4d   :  { %v26505_v40 = vadd.f32 %v36107_v6, %v26454_v9  ;;  %v26646_v15 = vsub.f32 %v26501_v38, %v26526_v19 }
0x1d4e   :  { %v26557_v26 = vmax.f32 %v26555_v34, %v26556_v52  ;;  %v26538_v44 = vmax.f32 %v26536_v7, %v26537_v36  ;;  %v26666_v7 = vmul.f32 1.442695, %v26647_v46  ;;  %v26547_v53 = vmax.f32 %v26545_v22, %v26546_v28 }
0x1d4f   :  { %v26548_v59 = vsel %vm26519_vm4, %v26505_v40, -inf  ;;  %v26664_v50 = vmul.f32 1.442695, %v26646_v15 }
0x1d50   :  { %v26558_v43 = vrot.slane %v26557_v26, 2  ;;  %v26549_v49 = vrot.slane %v26548_v59, 4  ;;  %v26539_v35 = vrot.slane %v26538_v44, 1 }
0x1d51   :  { %31095 = vpow2.f32 %v26664_v50 }
0x1d52   :  { %v26559_v45 = vmax.f32 %v26557_v26, %v26558_v43  ;;  %v26550_v4 = vmax.f32 %v26548_v59, %v26549_v49  ;;  %v26540_v5 = vmax.f32 %v26538_v44, %v26539_v35  ;;  %v26649_v26 = vsub.f32 %v36114_v62, %v26547_v53 }
0x1d53   :  { %v31094_v49 = vpop.eup %31093 }
0x1d54   :  { %v26551_v61 = vrot.slane %v26550_v4, 2  ;;  %v26560_v33 = vrot.slane %v26559_v45, 1  ;;  %v26648_v34 = vsub.f32 %v26503_v42, %v26540_v5  ;;  %v26670_v20 = vmul.f32 1.442695, %v26649_v26 }
0x1d56   :  { %v26552_v23 = vmax.f32 %v26550_v4, %v26551_v61  ;;  %v26561_v12 = vmax.f32 %v26559_v45, %v26560_v33  ;;  %v26668_v63 = vmul.f32 1.442695, %v26648_v34 }
0x1d58   :  { %v26553_v0 = vrot.slane %v26552_v23, 1  ;;  %v26651_v9 = vsub.f32 %v26506_v8, %v26561_v12 }
0x1d5a   :  { %v26554_v2 = vmax.f32 %v26552_v23, %v26553_v0  ;;  %v26674_v42 = vmul.f32 1.442695, %v26651_v9 }
0x1d5b   :  { %v36132_v44 = vpop.eup %31095 }
0x1d5c   :  { %v26650_v21 = vsub.f32 %v26505_v40, %v26554_v2  ;;  %v26700_v22 = vsel %vm26519_vm4, %v36132_v44, 0.0  ;;  %v26428_v2 = vmul.f32 %v31094_v49, %v36090_v31 }
0x1d5d   :  { %v30342_v24 = vpop.f32.mrb[120].mxu1  ;;  %v26701_v28 = vrot.slane %v26700_v22, 4 }
0x1d5e   :  { %v26353_v52 = vadd.f32 %v30342_v24, %v36079_v1  ;;  %v26347_v38 = vpop.f32.mrb[121].mxu1  ;;  %v26672_v25 = vmul.f32 1.442695, %v26650_v21 }
0x1d5f   :  { %v26348_v11 = vadd.f32 %v36079_v1, %v26347_v38 }
0x1d60   :  { %31097 = vtanh.f32 %v26353_v52 }
0x1d61   :  { %31099 = vpow2.f32 %v26672_v25  ;;  %v30345_v54 = vpop.f32.mrb[122].mxu1 }
0x1d62   :  { %31101 = vtanh.f32 %v26348_v11  ;;  %v26363_v36 = vadd.f32 %v30345_v54, %v36079_v1  ;;  %v26357_v40 = vpop.f32.mrb[123].mxu1  ;;  %v26702_v11 = vadd.f32 %v26701_v28, %v26700_v22 }
0x1d63   :  { %31103 = vpow2.f32 %v26666_v7  ;;  %v26358_v60 = vadd.f32 %v36079_v1, %v26357_v40 }
0x1d64   :  { %31105 = vtanh.f32 %v26363_v36  ;;  %v26703_v49 = vrot.slane %v26702_v11, 2 }
0x1d65   :  { %31107 = vtanh.f32 %v26358_v60  ;;  %v30348_v8 = vpop.f32.mrb[124].mxu1 }
0x1d66   :  { %31109 = vpow2.f32 %v26668_v63  ;;  %v26373_v59 = vadd.f32 %v30348_v8, %v36079_v1  ;;  %v26367_v43 = vpop.f32.mrb[125].mxu1  ;;  %v26461_v63 = vsel %vm26439_vm3, %v26428_v2, 0.0  ;;  %v26704_v22 = vadd.f32 %v26703_v49, %v26702_v11 }
0x1d67   :  { %31111 = vpow2.f32 %v26674_v42  ;;  %v26368_v41 = vadd.f32 %v36079_v1, %v26367_v43 }
0x1d68   :  { %31113 = vtanh.f32 %v26373_v59  ;;  %v26705_v2 = vrot.slane %v26704_v22, 1 }
0x1d69   :  { %31115 = vpow2.f32 %v26670_v20 }
0x1d6a   :  { %v31098_v19 = vpop.eup %31097  ;;  %v30351_v62 = vpop.f32.mrb[126].mxu1  ;;  %31117 = vtanh.f32 %v26368_v41 }
0x1d6b   :  { %v36134_v45 = vpop.eup %31099  ;;  %v26377_v4 = vpop.f32.mrb[127].mxu1  ;;  %v26430_v61 = vmul.f32 %v31098_v19, %v36090_v31  ;;  %v26383_v35 = vadd.f32 %v30351_v62, %v36079_v1 }
0x1d6c   :  { %v31102_v29 = vpop.eup %31101  ;;  %v26728_v5 = vsel %vm26519_vm4, %v36134_v45, 0.0  ;;  %v26378_v24 = vadd.f32 %v36079_v1, %v26377_v4 }
0x1d6d   :  { %v36140_v15 = vpop.eup %31103  ;;  %v26467_v33 = vsel %vm26439_vm3, %v26430_v61, 0.0  ;;  %v26429_v0 = vmul.f32 %v31102_v29, %v36090_v31  ;;  %31119 = vtanh.f32 %v26383_v35  ;;  %v26729_v54 = vrot.slane %v26728_v5, 4 }
0x1d6e   :  { %v31106_v23 = vpop.eup %31105  ;;  %v30354_v37 = vpop.f32.mrb[128].mxu1  ;;  %26468 = vadd.xlane.f32.xlu1 %v26467_v33  ;;  %v26707_v52 = vsel %vm26519_vm4, %v36140_v15, 0.0 }
0x1d6f   :  { %v31108_v46 = vpop.eup %31107  ;;  %v26387_v50 = vpop.f32.mrb[129].mxu1  ;;  %v26432_v12 = vmul.f32 %v31106_v23, %v36090_v31  ;;  %v26464_v53 = vsel %vm26439_vm3, %v26429_v0, 0.0  ;;  %v26708_v36 = vrot.slane %v26707_v52, 4  ;;  %v26393_v26 = vadd.f32 %v30354_v37, %v36079_v1 }
0x1d70   :  { %v36148_v21 = vpop.eup %31109  ;;  %v26388_v7 = vadd.f32 %v36079_v1, %v26387_v50  ;;  %26465 = vadd.xlane.f32.xlu0 %v26464_v53  ;;  %v26431_v9 = vmul.f32 %v31108_v46, %v36090_v31  ;;  %v26730_v41 = vadd.f32 %v26729_v54, %v26728_v5 }
0x1d71   :  { %v36153_v34 = vpop.eup %31111  ;;  %v26473_v38 = vsel %vm26439_vm3, %v26432_v12, 0.0  ;;  %v26714_v60 = vsel %vm26519_vm4, %v36148_v21, 0.0  ;;  %v26709_v19 = vadd.f32 %v26708_v36, %v26707_v52 }
0x1d72   :  { %v31114_v25 = vpop.eup %31113  ;;  %31121 = vtanh.f32 %v26388_v7  ;;  %26474 = vadd.xlane.f32.xlu1 %v26473_v38  ;;  %v26735_v40 = vsel %vm26519_vm4, %v36153_v34, 0.0  ;;  %v26470_v8 = vsel %vm26439_vm3, %v26431_v9, 0.0  ;;  %v26715_v62 = vrot.slane %v26714_v60, 4 }
0x1d73   :  { %31123 = vtanh.f32 %v26378_v24  ;;  %v36163_v42 = vpop.eup %31115  ;;  %v26434_v59 = vmul.f32 %v31114_v25, %v36090_v31  ;;  %v26736_v20 = vrot.slane %v26735_v40, 4  ;;  %v26731_v33 = vrot.slane %v26730_v41, 2 }
0x1d74   :  { %26462 = vadd.xlane.f32.xlu0 %v26461_v63  ;;  %v31118_v43 = vpop.eup %31117  ;;  %31125 = vtanh.f32 %v26393_v26  ;;  %v26721_v1 = vsel %vm26519_vm4, %v36163_v42, 0.0  ;;  %v26710_v37 = vrot.slane %v26709_v19, 2  ;;  %v26716_v46 = vadd.f32 %v26715_v62, %v26714_v60 }
0x1d75   :  { %v26479_v4 = vsel %vm26439_vm3, %v26434_v59, 0.0  ;;  %v26433_v61 = vmul.f32 %v31118_v43, %v36090_v31  ;;  %v26737_v35 = vadd.f32 %v26736_v20, %v26735_v40  ;;  %v26722_v0 = vrot.slane %v26721_v1, 4 }
0x1d76   :  { %26471 = vadd.xlane.f32.xlu1 %v26470_v8  ;;  %v26732_v7 = vadd.f32 %v26731_v33, %v26730_v41  ;;  %v26711_v52 = vadd.f32 %v26710_v37, %v26709_v19  ;;  %v26717_v9 = vrot.slane %v26716_v46, 2  ;;  %v26706_v40 = vadd.f32 %v26705_v2, %v26704_v22  ;;  %v26460_v2 = vpop.xlane.xlu0 %26459 }
0x1d77   :  { %v31120_v29 = vpop.eup %31119  ;;  %v26476_v28 = vsel %vm26439_vm3, %v26433_v61, 0.0  ;;  %v26738_v24 = vrot.slane %v26737_v35, 2  ;;  %v26723_v38 = vadd.f32 %v26722_v0, %v26721_v1 }
0x1d78   :  { %v26436_v50 = vmul.f32 %v31120_v29, %v36090_v31  ;;  %v26733_v36 = vrot.slane %v26732_v7, 1  ;;  %v26712_v26 = vrot.slane %v26711_v52, 1  ;;  %v26718_v8 = vadd.f32 %v26717_v9, %v26716_v46 }
0x1d79   :  { %v26739_v63 = vadd.f32 %v26738_v24, %v26737_v35  ;;  %v26724_v60 = vrot.slane %v26723_v38, 2  ;;  %31127 = vrcp.f32 %v26706_v40  ;;  %v26507_v24 = vadd.f32 %v36107_v6, %v26460_v2 }
0x1d7a   :  { %26480 = vadd.xlane.f32.xlu1 %v26479_v4  ;;  %v26485_v25 = vsel %vm26439_vm3, %v26436_v50, 0.0  ;;  %v26734_v20 = vadd.f32 %v26733_v36, %v26732_v7  ;;  %v26719_v19 = vrot.slane %v26718_v8, 1  ;;  %v26713_v62 = vadd.f32 %v26712_v26, %v26711_v52 }
0x1d7b   :  { %v26740_v49 = vrot.slane %v26739_v63, 1  ;;  %v26725_v41 = vadd.f32 %v26724_v60, %v26723_v38 }
0x1d7c   :  { %v31122_v23 = vpop.eup %31121  ;;  %31129 = vrcp.f32 %v26734_v20  ;;  %v26720_v29 = vadd.f32 %v26719_v19, %v26718_v8 }
0x1d7d   :  { %v26437_v5 = vmul.f32 %v31122_v23, %v36090_v31  ;;  %v31124_v12 = vpop.eup %31123  ;;  %v26741_v4 = vadd.f32 %v26740_v49, %v26739_v63  ;;  %v26726_v61 = vrot.slane %v26725_v41, 1  ;;  %31131 = vrcp.f32 %v26713_v62 }
0x1d7e   :  { %26477 = vadd.xlane.f32.xlu1 %v26476_v28  ;;  %v26435_v11 = vmul.f32 %v31124_v12, %v36090_v31  ;;  %v31126_v54 = vpop.eup %31125 }
0x1d7f   :  { %v26488_v53 = vsel %vm26439_vm3, %v26437_v5, 0.0  ;;  %v26438_v43 = vmul.f32 %v31126_v54, %v36090_v31  ;;  %31133 = vrcp.f32 %v26741_v4  ;;  %v26727_v22 = vadd.f32 %v26726_v61, %v26725_v41 }
0x1d80   :  { %26489 = vadd.xlane.f32.xlu0 %v26488_v53  ;;  %v26482_v59 = vsel %vm26439_vm3, %v26435_v11, 0.0  ;;  %31135 = vrcp.f32 %v26720_v29 }
0x1d81   :  { %v26491_v1 = vsel %vm26439_vm3, %v26438_v43, 0.0  ;;  %31137 = vrcp.f32 %v26727_v22 }
0x1d82   :  { %26486 = vadd.xlane.f32.xlu1 %v26485_v25 }
0x1d83   :  { %v31128_v35 = vpop.eup %31127 }
0x1d84   :  { %v26827_v31 = vmul.f32 %v31128_v35, %v36132_v44 }
0x1d86   :  { %26483 = vadd.xlane.f32.xlu1 %v26482_v59  ;;  %v31130_v33 = vpop.eup %31129 }
0x1d87   :  { %v31132_v23 = vpop.eup %31131  ;;  %v26835_v37 = vmul.f32 %v31130_v33, %v36134_v45  ;;  %v26562_v45 = vsel %vm26519_vm4, %v26507_v24, -inf }
0x1d88   :  { %v26829_v46 = vmul.f32 %v31132_v23, %v36140_v15  ;;  %v26563_v7 = vrot.slane %v26562_v45, 4 }
0x1d89   :  { %v31134_v0 = vpop.eup %31133 }
0x1d8a   :  { %26492 = vadd.xlane.f32.xlu1 %v26491_v1  ;;  %v31136_v28 = vpop.eup %31135  ;;  %v26837_v5 = vmul.f32 %v31134_v0, %v36153_v34  ;;  %v26564_v15 = vmax.f32 %v26562_v45, %v26563_v7 }
0x1d8b   :  { %v26831_v50 = vmul.f32 %v31136_v28, %v36148_v21  ;;  %v31138_v12 = vpop.eup %31137 }
0x1d8c   :  { %v26833_v44 = vmul.f32 %v31138_v12, %v36163_v42  ;;  %v26565_v53 = vrot.slane %v26564_v15, 2 }
0x1d8e   :  { %v26566_v38 = vmax.f32 %v26564_v15, %v26565_v53 }
0x1d90   :  { %v26567_v54 = vrot.slane %v26566_v38, 1 }
0x1d92   :  { %v26568_v41 = vmax.f32 %v26566_v38, %v26567_v54 }
0x1d94   :  { %v26652_v0 = vsub.f32 %v26507_v24, %v26568_v41 }
0x1d96   :  { %26864 = vperm.xlu0 %30501, %v26827_v31  }
0x1d9a   :  { %26884 = vperm.xlu0 %30501, %v26835_v37  }
0x1d9b   :  { %26869 = vperm.xlu1 %30502, %v26829_v46  }
0x1d9e   :  { %26889 = vperm.xlu0 %30501, %v26837_v5  }
0x1d9f   :  { %26874 = vperm.xlu1 %30502, %v26831_v50  }
0x1da3   :  { %26879 = vperm.xlu1 %30502, %v26833_v44  }
0x1dfb   :  { %v26469_v52 = vpop.xlane.xlu1 %26468 }
0x1dfc   :  { %v26510_v34 = vadd.f32 %v36107_v6, %v26469_v52 }
0x1dfd   :  { %v26466_v9 = vpop.xlane.xlu0 %26465 }
0x1dfe   :  { %v26583_v21 = vsel %vm26519_vm4, %v26510_v34, -inf  ;;  %v26509_v11 = vadd.f32 %v36107_v6, %v26466_v9  ;;  %v26676_v9 = vmul.f32 1.442695, %v26652_v0 }
0x1dff   :  { %v26584_v25 = vrot.slane %v26583_v21, 4  ;;  %v26475_v42 = vpop.xlane.xlu1 %26474 }
0x1e00   :  { %v36194_v63 = vadd.f32 %v36107_v6, %v26475_v42  ;;  %v26576_v40 = vsel %vm26519_vm4, %v26509_v11, -inf }
0x1e01   :  { %v26585_v36 = vmax.f32 %v26583_v21, %v26584_v25  ;;  %v26577_v26 = vrot.slane %v26576_v40, 4  ;;  %v26463_v8 = vpop.xlane.xlu0 %26462 }
0x1e02   :  { %v26597_v60 = vsel %vm26519_vm4, %v36194_v63, -inf  ;;  %v36200_v49 = vadd.f32 %v36107_v6, %v26463_v8 }
0x1e03   :  { %v26586_v59 = vrot.slane %v26585_v36, 2  ;;  %v26598_v43 = vrot.slane %v26597_v60, 4  ;;  %v26472_v20 = vpop.xlane.xlu1 %26471  ;;  %v26578_v19 = vmax.f32 %v26576_v40, %v26577_v26 }
0x1e04   :  { %v36203_v62 = vadd.f32 %v36107_v6, %v26472_v20  ;;  %v26569_v61 = vsel %vm26519_vm4, %v36200_v49, -inf }
0x1e05   :  { %v26587_v1 = vmax.f32 %v26585_v36, %v26586_v59  ;;  %v26599_v4 = vmax.f32 %v26597_v60, %v26598_v43  ;;  %v26579_v29 = vrot.slane %v26578_v19, 2  ;;  %v26570_v22 = vrot.slane %v26569_v61, 4 }
0x1e06   :  { %v26590_v35 = vsel %vm26519_vm4, %v36203_v62, -inf }
0x1e07   :  { %v26588_v31 = vrot.slane %v26587_v1, 1  ;;  %v26600_v33 = vrot.slane %v26599_v4, 2  ;;  %v26591_v23 = vrot.slane %v26590_v35, 4  ;;  %v26481_v37 = vpop.xlane.xlu1 %26480  ;;  %v26580_v46 = vmax.f32 %v26578_v19, %v26579_v29 }
0x1e08   :  { %v26571_v28 = vmax.f32 %v26569_v61, %v26570_v22  ;;  %v36210_v5 = vadd.f32 %v36107_v6, %v26481_v37 }
0x1e09   :  { %v26589_v50 = vmax.f32 %v26587_v1, %v26588_v31  ;;  %v26601_v12 = vmax.f32 %v26599_v4, %v26600_v33  ;;  %v26592_v44 = vmax.f32 %v26590_v35, %v26591_v23  ;;  %v26581_v2 = vrot.slane %v26580_v46, 1 }
0x1e0a   :  { %v26572_v45 = vrot.slane %v26571_v28, 2  ;;  %v26611_v7 = vsel %vm26519_vm4, %v36210_v5, -inf }
0x1e0b   :  { %v26655_v15 = vsub.f32 %v26510_v34, %v26589_v50  ;;  %v26602_v53 = vrot.slane %v26601_v12, 1  ;;  %v26593_v52 = vrot.slane %v26592_v44, 2  ;;  %v26612_v38 = vrot.slane %v26611_v7, 4  ;;  %v26478_v21 = vpop.xlane.xlu1 %26477 }
0x1e0c   :  { %v26582_v24 = vmax.f32 %v26580_v46, %v26581_v2  ;;  %v26573_v25 = vmax.f32 %v26571_v28, %v26572_v45  ;;  %v36215_v42 = vadd.f32 %v36107_v6, %v26478_v21 }
0x1e0d   :  { %v26682_v54 = vmul.f32 1.442695, %v26655_v15  ;;  %v26603_v36 = vmax.f32 %v26601_v12, %v26602_v53  ;;  %v26594_v40 = vmax.f32 %v26592_v44, %v26593_v52  ;;  %v26613_v26 = vmax.f32 %v26611_v7, %v26612_v38  ;;  %v26490_v60 = vpop.xlane.xlu0 %26489 }
0x1e0e   :  { %v26654_v8 = vsub.f32 %v26509_v11, %v26582_v24  ;;  %v26574_v59 = vrot.slane %v26573_v25, 1  ;;  %v26604_v34 = vsel %vm26519_vm4, %v36215_v42, -inf  ;;  %v26517_v43 = vadd.f32 %v36107_v6, %v26490_v60 }
0x1e0f   :  { %31139 = vpow2.f32 %v26682_v54  ;;  %v26657_v20 = vsub.f32 %v36194_v63, %v26603_v36  ;;  %v26595_v41 = vrot.slane %v26594_v40, 1  ;;  %v26614_v19 = vrot.slane %v26613_v26, 2  ;;  %v26487_v1 = vpop.xlane.xlu1 %26486 }
0x1e10   :  { %v26680_v4 = vmul.f32 1.442695, %v26654_v8  ;;  %v26575_v61 = vmax.f32 %v26573_v25, %v26574_v59  ;;  %v26605_v29 = vrot.slane %v26604_v34, 4  ;;  %v26632_v22 = vsel %vm26519_vm4, %v26517_v43, -inf }
0x1e11   :  { %31141 = vpow2.f32 %v26676_v9  ;;  %v26596_v35 = vmax.f32 %v26594_v40, %v26595_v41  ;;  %v26615_v11 = vmax.f32 %v26613_v26, %v26614_v19  ;;  %v26633_v31 = vrot.slane %v26632_v22, 4 }
0x1e12   :  { %v26686_v33 = vmul.f32 1.442695, %v26657_v20  ;;  %v26653_v23 = vsub.f32 %v36200_v49, %v26575_v61  ;;  %v26606_v37 = vmax.f32 %v26604_v34, %v26605_v29  ;;  %v26516_v0 = vadd.f32 %v36107_v6, %v26487_v1 }
0x1e13   :  { %31143 = vpow2.f32 %v26680_v4  ;;  %v26656_v63 = vsub.f32 %v36203_v62, %v26596_v35  ;;  %v26616_v46 = vrot.slane %v26615_v11, 1  ;;  %v26634_v28 = vmax.f32 %v26632_v22, %v26633_v31  ;;  %v26484_v50 = vpop.xlane.xlu1 %26483 }
0x1e14   :  { %v26678_v12 = vmul.f32 1.442695, %v26653_v23  ;;  %v26607_v44 = vrot.slane %v26606_v37, 2  ;;  %v26625_v2 = vsel %vm26519_vm4, %v26516_v0, -inf  ;;  %v36227_v45 = vadd.f32 %v36107_v6, %v26484_v50 }
0x1e15   :  { %v26684_v7 = vmul.f32 1.442695, %v26656_v63  ;;  %v26617_v15 = vmax.f32 %v26615_v11, %v26616_v46  ;;  %v26635_v53 = vrot.slane %v26634_v28, 2  ;;  %v26626_v49 = vrot.slane %v26625_v2, 4 }
0x1e16   :  { %31145 = vpow2.f32 %v26686_v33  ;;  %v26608_v52 = vmax.f32 %v26606_v37, %v26607_v44  ;;  %v26618_v38 = vsel %vm26519_vm4, %v36227_v45, -inf }
0x1e17   :  { %31147 = vpow2.f32 %v26678_v12  ;;  %v26659_v62 = vsub.f32 %v36210_v5, %v26617_v15  ;;  %v26636_v21 = vmax.f32 %v26634_v28, %v26635_v53  ;;  %v26627_v9 = vmax.f32 %v26625_v2, %v26626_v49  ;;  %v26493_v24 = vpop.xlane.xlu1 %26492 }
0x1e18   :  { %v26609_v25 = vrot.slane %v26608_v52, 1  ;;  %v26619_v54 = vrot.slane %v26618_v38, 4  ;;  %31149 = vpow2.f32 %v26684_v7  ;;  %v36235_v34 = vadd.f32 %v36107_v6, %v26493_v24 }
0x1e19   :  { %v36232_v36 = vpop.eup %31139  ;;  %v26637_v40 = vrot.slane %v26636_v21, 1  ;;  %v26628_v26 = vrot.slane %v26627_v9, 2  ;;  %v26690_v60 = vmul.f32 1.442695, %v26659_v62 }
0x1e1a   :  { %v26610_v8 = vmax.f32 %v26608_v52, %v26609_v25  ;;  %v26620_v59 = vmax.f32 %v26618_v38, %v26619_v54  ;;  %v26763_v61 = vsel %vm26519_vm4, %v36232_v36, 0.0  ;;  %v26639_v6 = vsel %vm26519_vm4, %v36235_v34, -inf }
0x1e1b   :  { %v36237_v20 = vpop.eup %31141  ;;  %v26638_v41 = vmax.f32 %v26636_v21, %v26637_v40  ;;  %v26629_v5 = vmax.f32 %v26627_v9, %v26628_v26  ;;  %31151 = vpow2.f32 %v26690_v60  ;;  %v26764_v46 = vrot.slane %v26763_v61, 4 }
0x1e1c   :  { %v26658_v19 = vsub.f32 %v36215_v42, %v26610_v8  ;;  %v26621_v1 = vrot.slane %v26620_v59, 2  ;;  %v26742_v28 = vsel %vm26519_vm4, %v36237_v20, 0.0 }
0x1e1d   :  { %v36240_v4 = vpop.eup %31143  ;;  %v26662_v29 = vsub.f32 %v26517_v43, %v26638_v41  ;;  %v26630_v22 = vrot.slane %v26629_v5, 1  ;;  %v26640_v43 = vrot.slane %v26639_v6, 4  ;;  %v26743_v49 = vrot.slane %v26742_v28, 4 }
0x1e1e   :  { %v26688_v35 = vmul.f32 1.442695, %v26658_v19  ;;  %v26622_v11 = vmax.f32 %v26620_v59, %v26621_v1  ;;  %v26756_v42 = vsel %vm26519_vm4, %v36240_v4, 0.0  ;;  %v26765_v52 = vadd.f32 %v26764_v46, %v26763_v61 }
0x1e1f   :  { %v26696_v31 = vmul.f32 1.442695, %v26662_v29  ;;  %v26631_v33 = vmax.f32 %v26629_v5, %v26630_v22  ;;  %v26757_v44 = vrot.slane %v26756_v42, 4  ;;  %v26641_v62 = vmax.f32 %v26639_v6, %v26640_v43 }
0x1e20   :  { %v36246_v23 = vpop.eup %31145  ;;  %v26623_v37 = vrot.slane %v26622_v11, 1  ;;  %v26744_v26 = vadd.f32 %v26743_v49, %v26742_v28  ;;  %v26766_v60 = vrot.slane %v26765_v52, 2 }
0x1e21   :  { %v36250_v63 = vpop.eup %31147  ;;  %31153 = vpow2.f32 %v26696_v31  ;;  %v26661_v50 = vsub.f32 %v26516_v0, %v26631_v33  ;;  %v26777_v2 = vsel %vm26519_vm4, %v36246_v23, 0.0  ;;  %v26758_v9 = vadd.f32 %v26757_v44, %v26756_v42 }
0x1e22   :  { %31155 = vpow2.f32 %v26688_v35  ;;  %v36254_v12 = vpop.eup %31149  ;;  %v26624_v7 = vmax.f32 %v26622_v11, %v26623_v37  ;;  %v26749_v15 = vsel %vm26519_vm4, %v36250_v63, 0.0  ;;  %v26778_v21 = vrot.slane %v26777_v2, 4 }
0x1e23   :  { %v26694_v53 = vmul.f32 1.442695, %v26661_v50  ;;  %v26750_v0 = vrot.slane %v26749_v15, 4  ;;  %v26770_v24 = vsel %vm26519_vm4, %v36254_v12, 0.0  ;;  %v26642_v40 = vrot.slane %v26641_v62, 2 }
0x1e24   :  { %v26660_v38 = vsub.f32 %v36227_v45, %v26624_v7  ;;  %v26779_v8 = vadd.f32 %v26778_v21, %v26777_v2  ;;  %v26771_v59 = vrot.slane %v26770_v24, 4  ;;  %v26759_v45 = vrot.slane %v26758_v9, 2 }
0x1e25   :  { %31157 = vpow2.f32 %v26694_v53  ;;  %v36263_v54 = vpop.eup %31151  ;;  %v26643_v41 = vmax.f32 %v26641_v62, %v26642_v40  ;;  %v26751_v19 = vadd.f32 %v26750_v0, %v26749_v15  ;;  %v26745_v35 = vrot.slane %v26744_v26, 2 }
0x1e26   :  { %v26692_v25 = vmul.f32 1.442695, %v26660_v38  ;;  %v26791_v1 = vsel %vm26519_vm4, %v36263_v54, 0.0  ;;  %v26767_v11 = vadd.f32 %v26766_v60, %v26765_v52  ;;  %v26780_v31 = vrot.slane %v26779_v8, 2 }
0x1e27   :  { %v26644_v22 = vrot.slane %v26643_v41, 1  ;;  %v26772_v33 = vadd.f32 %v26771_v59, %v26770_v24  ;;  %v26792_v42 = vrot.slane %v26791_v1, 4  ;;  %v26760_v46 = vadd.f32 %v26759_v45, %v26758_v9 }
0x1e28   :  { %31159 = vpow2.f32 %v26692_v25  ;;  %v26752_v43 = vrot.slane %v26751_v19, 2  ;;  %v26746_v7 = vadd.f32 %v26745_v35, %v26744_v26  ;;  %v26768_v15 = vrot.slane %v26767_v11, 1 }
0x1e29   :  { %v26645_v37 = vmax.f32 %v26643_v41, %v26644_v22  ;;  %v26773_v49 = vrot.slane %v26772_v33, 2  ;;  %v26793_v52 = vadd.f32 %v26792_v42, %v26791_v1  ;;  %v26761_v21 = vrot.slane %v26760_v46, 1 }
0x1e2a   :  { %v26781_v0 = vadd.f32 %v26780_v31, %v26779_v8  ;;  %v26753_v24 = vadd.f32 %v26752_v43, %v26751_v19  ;;  %v26747_v40 = vrot.slane %v26746_v7, 1  ;;  %v26769_v1 = vadd.f32 %v26768_v15, %v26767_v11 }
0x1e2b   :  { %v36265_v5 = vpop.eup %31153  ;;  %v26663_v2 = vsub.f32 %v36235_v34, %v26645_v37  ;;  %v26774_v59 = vadd.f32 %v26773_v49, %v26772_v33  ;;  %v26794_v34 = vrot.slane %v26793_v52, 2  ;;  %v26762_v22 = vadd.f32 %v26761_v21, %v26760_v46 }
0x1e2c   :  { %v36269_v61 = vpop.eup %31155  ;;  %v26812_v29 = vsel %vm26519_vm4, %v36265_v5, 0.0  ;;  %v26782_v45 = vrot.slane %v26781_v0, 1  ;;  %v26748_v35 = vadd.f32 %v26747_v40, %v26746_v7 }
0x1e2d   :  { %v26813_v6 = vrot.slane %v26812_v29, 4  ;;  %v26784_v28 = vsel %vm26519_vm4, %v36269_v61, 0.0  ;;  %v26698_v62 = vmul.f32 1.442695, %v26663_v2  ;;  %v26795_v31 = vadd.f32 %v26794_v34, %v26793_v52 }
0x1e2e   :  { %v26785_v38 = vrot.slane %v26784_v28, 4 }
0x1e2f   :  { %v26814_v50 = vadd.f32 %v26813_v6, %v26812_v29  ;;  %v36275_v44 = vpop.eup %31157  ;;  %31161 = vpow2.f32 %v26698_v62  ;;  %v26754_v29 = vrot.slane %v26753_v24, 1  ;;  %v26775_v6 = vrot.slane %v26774_v59, 1 }
0x1e30   :  { %v26805_v9 = vsel %vm26519_vm4, %v36275_v44, 0.0  ;;  %v26786_v26 = vadd.f32 %v26785_v38, %v26784_v28  ;;  %31163 = vrcp.f32 %v26769_v1  ;;  %v26796_v11 = vrot.slane %v26795_v31, 1 }
0x1e31   :  { %v26815_v53 = vrot.slane %v26814_v50, 2  ;;  %v26806_v41 = vrot.slane %v26805_v9, 4  ;;  %31165 = vrcp.f32 %v26762_v22  ;;  %v26755_v33 = vadd.f32 %v26754_v29, %v26753_v24 }
0x1e32   :  { %v36280_v25 = vpop.eup %31159  ;;  %v26787_v42 = vrot.slane %v26786_v26, 2  ;;  %v26776_v49 = vadd.f32 %v26775_v6, %v26774_v59 }
0x1e33   :  { %v26816_v60 = vadd.f32 %v26815_v53, %v26814_v50  ;;  %v26798_v8 = vsel %vm26519_vm4, %v36280_v25, 0.0  ;;  %v26807_v37 = vadd.f32 %v26806_v41, %v26805_v9  ;;  %v26783_v50 = vadd.f32 %v26782_v45, %v26781_v0 }
0x1e34   :  { %v26799_v43 = vrot.slane %v26798_v8, 4  ;;  %31167 = vrcp.f32 %v26755_v33  ;;  %v26788_v46 = vadd.f32 %v26787_v42, %v26786_v26  ;;  %v26797_v9 = vadd.f32 %v26796_v11, %v26795_v31 }
0x1e35   :  { %v26817_v19 = vrot.slane %v26816_v60, 1  ;;  %v26808_v15 = vrot.slane %v26807_v37, 2  ;;  %31169 = vrcp.f32 %v26748_v35 }
0x1e36   :  { %v26800_v53 = vadd.f32 %v26799_v43, %v26798_v8  ;;  %31171 = vrcp.f32 %v26783_v50  ;;  %v26789_v38 = vrot.slane %v26788_v46, 1 }
0x1e37   :  { %v26818_v28 = vadd.f32 %v26817_v19, %v26816_v60  ;;  %v26809_v62 = vadd.f32 %v26808_v15, %v26807_v37 }
0x1e38   :  { %v26801_v0 = vrot.slane %v26800_v53, 2  ;;  %v26790_v29 = vadd.f32 %v26789_v38, %v26788_v46 }
0x1e39   :  { %v36284_v2 = vpop.eup %31161  ;;  %31173 = vrcp.f32 %v26818_v28  ;;  %v26810_v34 = vrot.slane %v26809_v62, 1 }
0x1e3a   :  { %v26819_v7 = vsel %vm26519_vm4, %v36284_v2, 0.0  ;;  %v31164_v21 = vpop.eup %31163  ;;  %31175 = vrcp.f32 %v26776_v49  ;;  %v26802_v41 = vadd.f32 %v26801_v0, %v26800_v53  ;;  %v26870_v49 = vpop.permute.xlu1 %26869 }
0x1e3b   :  { %v26820_v52 = vrot.slane %v26819_v7, 4  ;;  %v26845_v40 = vmul.f32 %v31164_v21, %v36232_v36  ;;  %v31166_v60 = vpop.eup %31165  ;;  %31177 = vrcp.f32 %v26797_v9  ;;  %v26811_v36 = vadd.f32 %v26810_v34, %v26809_v62 }
0x1e3c   :  { %v26843_v1 = vmul.f32 %v31166_v60, %v36240_v4  ;;  %v26803_v35 = vrot.slane %v26802_v41, 1  ;;  %31179 = vrcp.f32 %v26790_v29  ;;  %v26953_v62 = vmul.f32 %v26870_v49, %v36003_v39 }
0x1e3d   :  { %v26821_v24 = vadd.f32 %v26820_v52, %v26819_v7  ;;  %26909 = vperm.xlu1 %30502, %v26845_v40   ;;  %31181 = vrcp.f32 %v26811_v36  ;;  %v26865_v52 = vpop.permute.xlu0 %26864 }
0x1e3e   :  { %v31168_v26 = vpop.eup %31167  ;;  %v26952_v21 = vmul.f32 %v26865_v52, %v36001_v17 }
0x1e3f   :  { %v26822_v45 = vrot.slane %v26821_v24, 2  ;;  %v31170_v59 = vpop.eup %31169  ;;  %v26841_v22 = vmul.f32 %v31168_v26, %v36250_v63  ;;  %v26804_v63 = vadd.f32 %v26803_v35, %v26802_v41 }
0x1e40   :  { %v31172_v8 = vpop.eup %31171  ;;  %v26839_v42 = vmul.f32 %v31170_v59, %v36237_v20  ;;  %v26970_v9 = vsel %vm80_vm0, %v26952_v21, 0.0 }
0x1e41   :  { %26904 = vperm.xlu1 %30502, %v26843_v1   ;;  %26899 = vperm.xlu0 %30501, %v26841_v22   ;;  %v26823_v6 = vadd.f32 %v26822_v45, %v26821_v24  ;;  %v26849_v31 = vmul.f32 %v31172_v8, %v36246_v23  ;;  %31183 = vrcp.f32 %v26804_v63  ;;  %v26971_v26 = vrot.slane %v26970_v9, 4 }
0x1e43   :  { %v31174_v19 = vpop.eup %31173  ;;  %v26824_v4 = vrot.slane %v26823_v6, 1  ;;  %v26972_v59 = vadd.f32 %v26971_v26, %v26970_v9 }
0x1e44   :  { %v31176_v37 = vpop.eup %31175  ;;  %v26859_v43 = vmul.f32 %v31174_v19, %v36265_v5 }
0x1e45   :  { %26919 = vperm.xlu1 %30502, %v26849_v31   ;;  %26894 = vperm.xlu0 %30501, %v26839_v42   ;;  %v26847_v33 = vmul.f32 %v31176_v37, %v36254_v12  ;;  %v31178_v50 = vpop.eup %31177  ;;  %v26825_v28 = vadd.f32 %v26824_v4, %v26823_v6  ;;  %v26973_v35 = vrot.slane %v26972_v59, 2 }
0x1e46   :  { %v26853_v11 = vmul.f32 %v31178_v50, %v36263_v54  ;;  %v31180_v23 = vpop.eup %31179  ;;  %v26875_v54 = vpop.permute.xlu1 %26874 }
0x1e47   :  { %31185 = vrcp.f32 %v26825_v28  ;;  %v26851_v20 = vmul.f32 %v31180_v23, %v36269_v61  ;;  %v31182_v46 = vpop.eup %31181  ;;  %v26954_v61 = vmul.f32 %v26875_v54, %v36009_v55  ;;  %v26974_v4 = vadd.f32 %v26973_v35, %v26972_v59 }
0x1e48   :  { %v26857_v5 = vmul.f32 %v31182_v46, %v36275_v44  ;;  %v26885_v44 = vpop.permute.xlu0 %26884 }
0x1e49   :  { %26914 = vperm.xlu1 %30502, %v26847_v33   ;;  %26944 = vperm.xlu0 %30501, %v26859_v43   ;;  %v26956_v24 = vmul.f32 %v26885_v44, %v36017_v48 }
0x1e4a   :  { %v26880_v38 = vpop.permute.xlu1 %26879 }
0x1e4b   :  { %v31184_v15 = vpop.eup %31183  ;;  %v26955_v0 = vmul.f32 %v26880_v38, %v36011_v47  ;;  %v26998_v55 = vsel %vm80_vm0, %v26956_v24, 0.0 }
0x1e4c   :  { %v26855_v12 = vmul.f32 %v31184_v15, %v36280_v25  ;;  %v26977_v25 = vsel %vm80_vm0, %v26953_v62, 0.0  ;;  %v26890_v34 = vpop.permute.xlu0 %26889  ;;  %v26999_v45 = vrot.slane %v26998_v55, 4  ;;  %v26975_v15 = vrot.slane %v26974_v4, 1 }
0x1e4d   :  { %26929 = vperm.xlu1 %30502, %v26853_v11   ;;  %v26991_v40 = vsel %vm80_vm0, %v26955_v0, 0.0  ;;  %v26978_v60 = vrot.slane %v26977_v25, 4  ;;  %v26957_v47 = vmul.f32 %v26890_v34, %v36019_v27 }
0x1e4e   :  { %v26992_v17 = vrot.slane %v26991_v40, 4  ;;  %v27000_v8 = vadd.f32 %v26999_v45, %v26998_v55  ;;  %v26976_v0 = vadd.f32 %v26975_v15, %v26974_v4 }
0x1e4f   :  { %v26979_v41 = vadd.f32 %v26978_v60, %v26977_v25  ;;  %v27005_v22 = vsel %vm80_vm0, %v26957_v47, 0.0 }
0x1e50   :  { %v26993_v48 = vadd.f32 %v26992_v17, %v26991_v40  ;;  %v27006_v36 = vrot.slane %v27005_v22, 4  ;;  %v27001_v37 = vrot.slane %v27000_v8, 2 }
0x1e51   :  { %26924 = vperm.xlu1 %30502, %v26851_v20   ;;  %v31186_v53 = vpop.eup %31185  ;;  %v26980_v1 = vrot.slane %v26979_v41, 2 }
0x1e52   :  { %v26861_v7 = vmul.f32 %v31186_v53, %v36284_v2  ;;  %v26984_v2 = vsel %vm80_vm0, %v26954_v61, 0.0  ;;  %v26994_v6 = vrot.slane %v26993_v48, 2  ;;  %v27007_v33 = vadd.f32 %v27006_v36, %v27005_v22 }
0x1e53   :  { %v26985_v39 = vrot.slane %v26984_v2, 4  ;;  %v26981_v42 = vadd.f32 %v26980_v1, %v26979_v41  ;;  %v27002_v46 = vadd.f32 %v27001_v37, %v27000_v8 }
0x1e54   :  { %v26995_v63 = vadd.f32 %v26994_v6, %v26993_v48 }
0x1e55   :  { %26939 = vperm.xlu1 %30502, %v26857_v5   ;;  %v26986_v29 = vadd.f32 %v26985_v39, %v26984_v2  ;;  %v26982_v28 = vrot.slane %v26981_v42, 1 }
0x1e57   :  { %v26987_v19 = vrot.slane %v26986_v29, 2  ;;  %v26983_v62 = vadd.f32 %v26982_v28, %v26981_v42 }
0x1e59   :  { %26934 = vperm.xlu1 %30502, %v26855_v12   ;;  %v26988_v43 = vadd.f32 %v26987_v19, %v26986_v29  ;;  %v26996_v12 = vrot.slane %v26995_v63, 1  ;;  %v27115_v39 = vsel %vm27114_vm5, %v26983_v62, %v26976_v0 }
0x1e5b   :  { %v26989_v5 = vrot.slane %v26988_v43, 1  ;;  %v26997_v25 = vadd.f32 %v26996_v12, %v26995_v63 }
0x1e5d   :  { %26949 = vperm.xlu1 %30502, %v26861_v7   ;;  %v27008_v7 = vrot.slane %v27007_v33, 2  ;;  %v26990_v61 = vadd.f32 %v26989_v5, %v26988_v43 }
0x1e5f   :  { %v27009_v9 = vadd.f32 %v27008_v7, %v27007_v33  ;;  %v27117_v17 = vsel %vm27116_vm6, %v26990_v61, %v27115_v39 }
0x1e60   :  { %v27119_v41 = vsel %vm27118_vm7, %v26997_v25, %v27117_v17 }
0x1e61   :  { %v27010_v59 = vrot.slane %v27009_v9, 1 }
0x1e63   :  { %v27011_v63 = vadd.f32 %v27010_v59, %v27009_v9 }
0x1ebc   :  { %v26910_v31 = vpop.permute.xlu1 %26909 }
0x1ebd   :  { %v26961_v11 = vmul.f32 %v26910_v31, %v36038_v3 }
0x1ebf   :  { %v27033_v3 = vsel %vm80_vm0, %v26961_v11, 0.0 }
0x1ec0   :  { %v26905_v27 = vpop.permute.xlu1 %26904  ;;  %v26900_v50 = vpop.permute.xlu0 %26899  ;;  %v27034_v40 = vrot.slane %v27033_v3, 4 }
0x1ec1   :  { %v26960_v23 = vmul.f32 %v26905_v27, %v36036_v57  ;;  %v26959_v20 = vmul.f32 %v26900_v50, %v36027_v32  ;;  %v27003_v32 = vrot.slane %v27002_v46, 1 }
0x1ec2   :  { %v27035_v48 = vadd.f32 %v27034_v40, %v27033_v3 }
0x1ec3   :  { %v27019_v53 = vsel %vm80_vm0, %v26959_v20, 0.0  ;;  %v27026_v49 = vsel %vm80_vm0, %v26960_v23, 0.0  ;;  %v27004_v55 = vadd.f32 %v27003_v32, %v27002_v46 }
0x1ec4   :  { %v27020_v54 = vrot.slane %v27019_v53, 4  ;;  %v26920_v52 = vpop.permute.xlu1 %26919  ;;  %v26895_v38 = vpop.permute.xlu0 %26894  ;;  %v27027_v24 = vrot.slane %v27026_v49, 4  ;;  %v27036_v33 = vrot.slane %v27035_v48, 2 }
0x1ec5   :  { %v26958_v57 = vmul.f32 %v26895_v38, %v36025_v30  ;;  %v26963_v44 = vmul.f32 %v26920_v52, %v36046_v18  ;;  %v27121_v36 = vsel %vm27120_vm8, %v27004_v55, %v27119_v41 }
0x1ec6   :  { %v27021_v21 = vadd.f32 %v27020_v54, %v27019_v53  ;;  %v27028_v47 = vadd.f32 %v27027_v24, %v27026_v49  ;;  %v27123_v46 = vsel %vm27122_vm9, %v27011_v63, %v27121_v36  ;;  %v27037_v53 = vadd.f32 %v27036_v33, %v27035_v48 }
0x1ec7   :  { %v27012_v2 = vsel %vm80_vm0, %v26958_v57, 0.0  ;;  %v27047_v18 = vsel %vm80_vm0, %v26963_v44, 0.0 }
0x1ec8   :  { %v27022_v60 = vrot.slane %v27021_v21, 2  ;;  %v26915_v34 = vpop.permute.xlu1 %26914  ;;  %v27013_v26 = vrot.slane %v27012_v2, 4  ;;  %v26945_v19 = vpop.permute.xlu0 %26944  ;;  %v27048_v35 = vrot.slane %v27047_v18, 4  ;;  %v27029_v42 = vrot.slane %v27028_v47, 2 }
0x1ec9   :  { %v26962_v30 = vmul.f32 %v26915_v34, %v36044_v56  ;;  %v26968_v4 = vmul.f32 %v26945_v19, %v36068_v13  ;;  %v27038_v9 = vrot.slane %v27037_v53, 1 }
0x1eca   :  { %v27014_v45 = vadd.f32 %v27013_v26, %v27012_v2  ;;  %v27023_v1 = vadd.f32 %v27022_v60, %v27021_v21  ;;  %v27049_v11 = vadd.f32 %v27048_v35, %v27047_v18  ;;  %v27030_v5 = vadd.f32 %v27029_v42, %v27028_v47 }
0x1ecb   :  { %v27040_v29 = vsel %vm80_vm0, %v26962_v30, 0.0  ;;  %v27082_v12 = vsel %vm80_vm0, %v26968_v4, 0.0 }
0x1ecc   :  { %v27041_v22 = vrot.slane %v27040_v29, 4  ;;  %v26930_v8 = vpop.permute.xlu1 %26929  ;;  %v27015_v56 = vrot.slane %v27014_v45, 2  ;;  %v27024_v27 = vrot.slane %v27023_v1, 1  ;;  %v27050_v38 = vrot.slane %v27049_v11, 2 }
0x1ecd   :  { %v26965_v6 = vmul.f32 %v26930_v8, %v36054_v51  ;;  %v27083_v32 = vrot.slane %v27082_v12, 4  ;;  %v27031_v21 = vrot.slane %v27030_v5, 1 }
0x1ece   :  { %v27042_v31 = vadd.f32 %v27041_v22, %v27040_v29  ;;  %v27016_v37 = vadd.f32 %v27015_v56, %v27014_v45  ;;  %v27025_v7 = vadd.f32 %v27024_v27, %v27023_v1  ;;  %v27051_v40 = vadd.f32 %v27050_v38, %v27049_v11 }
0x1ecf   :  { %v27061_v43 = vsel %vm80_vm0, %v26965_v6, 0.0  ;;  %v27084_v34 = vadd.f32 %v27083_v32, %v27082_v12  ;;  %v27032_v30 = vadd.f32 %v27031_v21, %v27030_v5  ;;  %v27039_v29 = vadd.f32 %v27038_v9, %v27037_v53 }
0x1ed0   :  { %v27043_v50 = vrot.slane %v27042_v31, 2  ;;  %v26925_v28 = vpop.permute.xlu1 %26924  ;;  %v27017_v23 = vrot.slane %v27016_v37, 1  ;;  %v27062_v20 = vrot.slane %v27061_v43, 4  ;;  %v27052_v59 = vrot.slane %v27051_v40, 1 }
0x1ed1   :  { %v26964_v51 = vmul.f32 %v26925_v28, %v36052_v16  ;;  %v27085_v22 = vrot.slane %v27084_v34, 2 }
0x1ed2   :  { %v27018_v15 = vadd.f32 %v27017_v23, %v27016_v37  ;;  %v27044_v49 = vadd.f32 %v27043_v50, %v27042_v31  ;;  %v27063_v3 = vadd.f32 %v27062_v20, %v27061_v43  ;;  %v27053_v42 = vadd.f32 %v27052_v59, %v27051_v40 }
0x1ed3   :  { %v27054_v13 = vsel %vm80_vm0, %v26964_v51, 0.0  ;;  %v27086_v43 = vadd.f32 %v27085_v22, %v27084_v34 }
0x1ed4   :  { %v27055_v54 = vrot.slane %v27054_v13, 4  ;;  %v26940_v52 = vpop.permute.xlu1 %26939  ;;  %v27125_v62 = vsel %vm27124_vm10, %v27018_v15, %v27123_v46  ;;  %v27045_v0 = vrot.slane %v27044_v49, 1  ;;  %v27064_v60 = vrot.slane %v27063_v3, 2 }
0x1ed5   :  { %v26967_v16 = vmul.f32 %v26940_v52, %v36062_v58  ;;  %v27127_v57 = vsel %vm27126_vm11, %v27025_v7, %v27125_v62  ;;  %v27087_v23 = vrot.slane %v27086_v43, 1 }
0x1ed6   :  { %v27056_v61 = vadd.f32 %v27055_v54, %v27054_v13  ;;  %27139 = vst.msk [vmem:[%s36375_s13] sm:$0xff] %vm80_vm0, %v27127_v57  ;;  %v27046_v17 = vadd.f32 %v27045_v0, %v27044_v49  ;;  %v27065_v48 = vadd.f32 %v27064_v60, %v27063_v3 }
0x1ed7   :  { %v27075_v44 = vsel %vm80_vm0, %v26967_v16, 0.0  ;;  %v27088_v53 = vadd.f32 %v27087_v23, %v27086_v43 }
0x1ed8   :  { %v27057_v25 = vrot.slane %v27056_v61, 2  ;;  %v27076_v24 = vrot.slane %v27075_v44, 4  ;;  %v26935_v2 = vpop.permute.xlu1 %26934  ;;  %v27066_v37 = vrot.slane %v27065_v48, 1 }
0x1ed9   :  { %v26966_v58 = vmul.f32 %v26935_v2, %v36060_v14  ;;  %v27128_v14 = vsel %vm27114_vm5, %v27039_v29, %v27032_v30 }
0x1eda   :  { %v27058_v39 = vadd.f32 %v27057_v25, %v27056_v61  ;;  %v27077_v26 = vadd.f32 %v27076_v24, %v27075_v44  ;;  %v27129_v56 = vsel %vm27116_vm6, %v27046_v17, %v27128_v14  ;;  %v27067_v11 = vadd.f32 %v27066_v37, %v27065_v48 }
0x1edb   :  { %v27068_v55 = vsel %vm80_vm0, %v26966_v58, 0.0  ;;  %v27130_v33 = vsel %vm27118_vm7, %v27053_v42, %v27129_v56 }
0x1edc   :  { %v27059_v18 = vrot.slane %v27058_v39, 1  ;;  %v27078_v41 = vrot.slane %v27077_v26, 2  ;;  %v27069_v47 = vrot.slane %v27068_v55, 4  ;;  %v26950_v45 = vpop.permute.xlu1 %26949 }
0x1edd   :  { %v26969_v1 = vmul.f32 %v26950_v45, %v36070_v10 }
0x1ede   :  { %v27070_v8 = vadd.f32 %v27069_v47, %v27068_v55  ;;  %v27079_v19 = vadd.f32 %v27078_v41, %v27077_v26  ;;  %v27060_v6 = vadd.f32 %v27059_v18, %v27058_v39 }
0x1edf   :  { %v27089_v35 = vsel %vm80_vm0, %v26969_v1, 0.0 }
0x1ee0   :  { %v27071_v36 = vrot.slane %v27070_v8, 2  ;;  %v27090_v31 = vrot.slane %v27089_v35, 4  ;;  %v27080_v10 = vrot.slane %v27079_v19, 1  ;;  %v27131_v27 = vsel %vm27120_vm8, %v27060_v6, %v27130_v33 }
0x1ee1   :  { %v27132_v5 = vsel %vm27122_vm9, %v27067_v11, %v27131_v27 }
0x1ee2   :  { %v27072_v4 = vadd.f32 %v27071_v36, %v27070_v8  ;;  %v27091_v63 = vadd.f32 %v27090_v31, %v27089_v35  ;;  %v27081_v46 = vadd.f32 %v27080_v10, %v27079_v19 }
0x1ee4   :  { %v27073_v50 = vrot.slane %v27072_v4, 1  ;;  %v27092_v28 = vrot.slane %v27091_v63, 2 }
0x1ee6   :  { %v27074_v20 = vadd.f32 %v27073_v50, %v27072_v4  ;;  %v27093_v51 = vadd.f32 %v27092_v28, %v27091_v63 }
0x1ee8   :  { %v27133_v15 = vsel %vm27124_vm10, %v27074_v20, %v27132_v5  ;;  %v27094_v12 = vrot.slane %v27093_v51, 1 }
0x1ee9   :  { %v27134_v13 = vsel %vm27126_vm11, %v27081_v46, %v27133_v15 }
0x1eea   :  { %27140 = vst.msk [vmem:[%s36375_s13 + $0x8] sm:$0xff] %vm80_vm0, %v27134_v13  ;;  %v27095_v7 = vadd.f32 %v27094_v12, %v27093_v51 }
0x1eec   :  { %v27135_v49 = vsel %vm27114_vm5, %v27095_v7, %v27088_v53 }
0x1eed   :  { %27142 = vst.msk [vmem:[%s36375_s13 + $0x10] sm:$0x3] %vm27141_vm12, %v27135_v49 }

</bundles_post_ra>
